<compile_context>
chip_gen: v5e
topology: v5e:2x2
jax: 0.10.0
libtpu: 0.0.40
codegen_flags: <defaults>
</compile_context>

<pallas_src>
import jax
import jax.numpy as jnp
from jax.experimental import pallas as pl
from jax.experimental.pallas import tpu as pltpu

# ----------------------------- model config ---------------------------------
IMG = 16                      # input image spatial size
C_IN = 3                      # input channels
PATCH = 8                     # patch size -> (16/8)^2 = 4 patches
N_PATCH = (IMG // PATCH) ** 2
SEQ_LEN = N_PATCH + 1         # + class token = 5
PATCH_DIM = C_IN * PATCH * PATCH   # 192
D_MODEL = 32                  # vit.hidden_dim
N_HEADS = 4
D_K = D_MODEL // N_HEADS
MLP_DIM = 64
NUM_LAYERS = 2
NUM_CLASSES = 10
LN_EPS = 1e-6                 # torchvision ViT uses LayerNorm(eps=1e-6)
SIGMA_INIT = 1.0
B_TILE_MAX = 24               # 24 imgs/step -> 120 rows (~v5e 128-row MXU; use 48 -> 240 on v6e/v7x)


def _round_up(x, m):
    return (x + m - 1) // m * m


# ----------------------------- fused Pallas kernel ---------------------------
def _make_kernel(b_tile):
    """Kernel closure over the (trace-time) per-step image count."""

    def kernel(sig_ref,                     # SMEM (L,)            exp(sigma_l)
               patches_ref,                 # (rows, PATCH_DIM)    cls rows are zero
               mask_ref,                    # (rows, rows)         block-diag 0 / -1e30
               add_ref,                     # (rows, D)            cls_tok+pos / conv_b+pos
               conv_wT_ref,                 # (PATCH_DIM, D)
               lvec_ref,                    # (L, 8, D)  rows: ln1_g,ln1_b,ln2_g,ln2_b,b_o,mlp_b2
               w_qkv_T_ref, b_qkv_ref,      # (L, D, 3D), (L, 1, 3D)
               w_o_T_ref, w_o_sq_ref,       # (L, D, D), (L, D, D)
               mlp_w1_T_ref, mlp_b1_ref,    # (L, D, MLP), (L, 1, MLP)
               mlp_w2_T_ref,                # (L, MLP, D)
               fvec_ref,                    # (2, D)  final LN gain / bias
               cls_wT_ref, cls_w_sqT_ref, cls_b_ref,   # (D, NC), (D, NC), (1, NC)
               out_ref,                     # (b_tile, 3*NC)  [logits | loc | scale]
               zm_ref, zv_ref):             # VMEM scratch (rows, D) x2

        def mm(a, bmat):   # (M,K)@(K,N), f32 accumulation on the MXU
            return jax.lax.dot_general(a, bmat, (((1,), (0,)), ((), ())),
                                       preferred_element_type=jnp.float32)

        def layernorm(x, g, bvec):
            mu = jnp.mean(x, axis=-1, keepdims=True)
            d = x - mu
            var = jnp.mean(d * d, axis=-1, keepdims=True)
            return d * jax.lax.rsqrt(var + LN_EPS) * g + bvec

        def erf(z):
            # TODO(synk): lax.erf has no guaranteed Mosaic lowering; Abramowitz & Stegun
            # 7.1.26 polynomial (|err| <= 1.5e-7) keeps exact-erf GELU on VPU/EUP ops.
            az = jnp.abs(z)
            t = 1.0 / (1.0 + 0.3275911 * az)
            poly = t * (0.254829592 + t * (-0.284496736 + t * (1.421413741
                     + t * (-1.453152027 + t * 1.061405429))))
            e = 1.0 - poly * jnp.exp(-az * az)
            return jnp.where(z >= 0, e, -e)

        def gelu_exact(x):
            return 0.5 * x * (1.0 + erf(x * 0.7071067811865476))

        # token embedding: conv(kernel=stride=patch) folded into one matmul over all rows
        x = mm(patches_ref[...], conv_wT_ref[...]) + add_ref[...]        # (rows, D)

        inv_sqrt_dk = 1.0 / (D_K ** 0.5)
        last_y_mean = last_y_var = None

        for l in range(NUM_LAYERS):                       # static, fully unrolled
            lv = lvec_ref[l]                              # (8, D)
            ln1_g, ln1_b = lv[0:1], lv[1:2]
            ln2_g, ln2_b = lv[2:3], lv[3:4]
            b_o, mlp_b2 = lv[4:5], lv[5:6]

            residual = x
            h = layernorm(x, ln1_g, ln1_b)
            qkv = mm(h, w_qkv_T_ref[l]) + b_qkv_ref[l]                   # (rows, 3D)

            exp_sig = sig_ref[l]
            for hd in range(N_HEADS):                     # 4-way unrolled
                q0 = hd * D_K
                qh = qkv[:, q0:q0 + D_K]
                kh = qkv[:, D_MODEL + q0:D_MODEL + q0 + D_K]
                vh = qkv[:, 2 * D_MODEL + q0:2 * D_MODEL + q0 + D_K]

                # block-diagonal attention over all images of the tile at once
                s = jax.lax.dot_general(qh, kh, (((1,), (1,)), ((), ())),
                                        preferred_element_type=jnp.float32)
                s = s * inv_sqrt_dk + mask_ref[...]       # mask added BEFORE row-max
                s = s - jnp.max(s, axis=-1, keepdims=True)
                p = jnp.exp(s)                            # cross-image entries underflow to 0
                p = p / jnp.sum(p, axis=-1, keepdims=True)

                hm = mm(p, vh)                            # head means
                dv = vh - hm            # elementwise, matches torch reference exactly
                hv = exp_sig + mm(p, dv * dv)             # p @ (ones*exp_sig) == exp_sig
                zm_ref[:, q0:q0 + D_K] = hm               # scatter into lane slot (no concat)
                zv_ref[:, q0:q0 + D_K] = hv

            y_mean = mm(zm_ref[...], w_o_T_ref[l]) + b_o
            y_var = mm(zv_ref[...], w_o_sq_ref[l])   # torch ref: z_vars @ (W_o**2), no transpose
            x = y_mean + residual                    # layer dropout == identity
            residual = x
            h = layernorm(x, ln2_g, ln2_b)
            h = mm(h, mlp_w1_T_ref[l]) + mlp_b1_ref[l]
            h = gelu_exact(h)
            h = mm(h, mlp_w2_T_ref[l]) + mlp_b2
            x = h + residual
            last_y_mean, last_y_var = y_mean, y_var

        # classifier heads: cls rows only (rows [0:b_tile] by construction)
        fv = fvec_ref[...]
        xc = layernorm(x[:b_tile], fv[0:1], fv[1:2])      # final LN is row-wise
        mc = last_y_mean[:b_tile]
        vc = last_y_var[:b_tile]
        lm = mm(jnp.concatenate([xc, mc], axis=0), cls_wT_ref[...]) + cls_b_ref[...]
        scale = jnp.sqrt(mm(vc, cls_w_sqT_ref[...]))
        out_ref[...] = jnp.concatenate([lm[:b_tile], lm[b_tile:], scale], axis=1)

    return kernel


# ----------------------------- wrapper / glue ---------------------------------
def _extract_patches(images):
    # Conv2d(kernel=stride=PATCH) input layout: pure reshape/transpose (layout only).
    b = images.shape[0]
    x = images.reshape(b, C_IN, IMG // PATCH, PATCH, IMG // PATCH, PATCH)
    return x.transpose(0, 2, 4, 1, 3, 5).reshape(b, N_PATCH, PATCH_DIM)


def probformer_forward(params, images, *, b_tile_max=B_TILE_MAX):
    f32 = jnp.float32
    b = images.shape[0]
    b_tile = min(_round_up(b_tile_max, 8), _round_up(b, 8))   # multiple of 8 (sublane align)
    n_tiles = -(-b // b_tile)
    b_pad = n_tiles * b_tile
    rows = b_tile * SEQ_LEN                                    # per-step matmul row count

    # batch-scaled input, row layout per tile: [b_tile cls rows (zero) | b_tile*N_PATCH patch rows]
    patches = _extract_patches(images).astype(f32)
    if b_pad != b:
        patches = jnp.concatenate(
            [patches, jnp.zeros((b_pad - b, N_PATCH, PATCH_DIM), f32)], axis=0)
    patch_rows = patches.reshape(n_tiles, b_tile * N_PATCH, PATCH_DIM)
    patches_rows = jnp.concatenate(
        [jnp.zeros((n_tiles, b_tile, PATCH_DIM), f32), patch_rows], axis=1)

    # additive embedding term per row (batch independent)
    cls_add = (params["cls_token"].reshape(D_MODEL) + params["pos_emb"][0, 0]).astype(f32)
    patch_add = (params["conv_b"][None, :] + params["pos_emb"][0, 1:SEQ_LEN]).astype(f32)
    add_rows = jnp.concatenate(
        [jnp.broadcast_to(cls_add[None, :], (b_tile, D_MODEL)),
         jnp.tile(patch_add, (b_tile, 1))], axis=0)                       # (rows, D)

    # block-diagonal attention mask (image id per row), built once per trace
    ids = jnp.concatenate([jnp.arange(b_tile, dtype=jnp.int32),
                           jnp.repeat(jnp.arange(b_tile, dtype=jnp.int32), N_PATCH)])
    attn_mask = jnp.where(ids[:, None] == ids[None, :], 0.0, -1e30).astype(f32)

    # hoisted parameter preprocessing (transposes / squares / exp / packing) — once per trace
    conv_wT = params["conv_w"].reshape(D_MODEL, PATCH_DIM).T.astype(f32)
    layers = params["layers"]
    st = lambda k: jnp.stack([lp[k] for lp in layers]).astype(f32)
    lvec = jnp.stack([st("ln1_g"), st("ln1_b"), st("ln2_g"), st("ln2_b"),
                      st("b_o"), st("mlp_b2"),
                      jnp.zeros((NUM_LAYERS, D_MODEL), f32),
                      jnp.zeros((NUM_LAYERS, D_MODEL), f32)], axis=1)     # (L, 8, D)
    w_qkv_T = jnp.transpose(st("w_qkv"), (0, 2, 1))                       # (L, D, 3D)
    b_qkv = st("b_qkv").reshape(NUM_LAYERS, 1, 3 * D_MODEL)
    w_o_T = jnp.transpose(st("w_o"), (0, 2, 1))                           # (L, D, D)
    w_o_sq = st("w_o") ** 2                                               # contracted on dim 0
    mlp_w1_T = jnp.transpose(st("mlp_w1"), (0, 2, 1))                     # (L, D, MLP)
    mlp_b1 = st("mlp_b1").reshape(NUM_LAYERS, 1, MLP_DIM)
    mlp_w2_T = jnp.transpose(st("mlp_w2"), (0, 2, 1))                     # (L, MLP, D)
    fvec = jnp.stack([params["ln_g"], params["ln_b"]]).astype(f32)        # (2, D)
    cls_wT = params["cls_w"].T.astype(f32)                                # (D, NC)
    cls_w_sqT = (params["cls_w"] ** 2).T.astype(f32)                      # (D, NC)
    cls_b = params["cls_b"].reshape(1, NUM_CLASSES).astype(f32)
    sig_exp = jnp.exp(jnp.stack([lp["sigma"] for lp in layers]).astype(f32))   # (L,)

    consts = (attn_mask, add_rows, conv_wT, lvec, w_qkv_T, b_qkv, w_o_T, w_o_sq,
              mlp_w1_T, mlp_b1, mlp_w2_T, fvec, cls_wT, cls_w_sqT, cls_b)

    def const_spec(a):   # full array, same block every grid step -> fetched once, VMEM-resident
        return pl.BlockSpec(a.shape, lambda t, _z=(0,) * a.ndim: _z)

    out = pl.pallas_call(
        _make_kernel(b_tile),
        grid=(n_tiles,),
        in_specs=[pl.BlockSpec(memory_space=pltpu.SMEM),
                  pl.BlockSpec((None, rows, PATCH_DIM), lambda t: (t, 0, 0))]
                 + [const_spec(a) for a in consts],
        out_specs=pl.BlockSpec((b_tile, 3 * NUM_CLASSES), lambda t: (t, 0)),
        out_shape=jax.ShapeDtypeStruct((b_pad, 3 * NUM_CLASSES), f32),
        scratch_shapes=[pltpu.VMEM((rows, D_MODEL), f32),
                        pltpu.VMEM((rows, D_MODEL), f32)],
        compiler_params=pltpu.CompilerParams(dimension_semantics=("parallel",)),
    )(sig_exp, patches_rows, *consts)

    out = out[:b]
    logits = out[:, :NUM_CLASSES]
    cls_loc = out[:, NUM_CLASSES:2 * NUM_CLASSES]
    cls_scale = out[:, 2 * NUM_CLASSES:]
    # TODO(synk): torch.distributions.Normal returned as a (loc, scale) pair.
    return logits, (cls_loc, cls_scale)


# ----------------------------- deterministic params --------------------------
def init_params(key):
    def nrm(k, shape, scale=0.02):
        return scale * jax.random.normal(k, shape, jnp.float32)

    ks = iter(jax.random.split(key, 8 + 8 * NUM_LAYERS))
    params = {
        "conv_w": nrm(next(ks), (D_MODEL, C_IN, PATCH, PATCH)),
        "conv_b": jnp.zeros((D_MODEL,), jnp.float32),
        "cls_token": nrm(next(ks), (1, 1, D_MODEL)),
        "pos_emb": nrm(next(ks), (1, SEQ_LEN, D_MODEL)),
        "ln_g": jnp.ones((D_MODEL,), jnp.float32),
        "ln_b": jnp.zeros((D_MODEL,), jnp.float32),
        "cls_w": nrm(next(ks), (NUM_CLASSES, D_MODEL)),
        "cls_b": jnp.zeros((NUM_CLASSES,), jnp.float32),
        "layers": [],
    }
    for _ in range(NUM_LAYERS):
        params["layers"].append({
            "ln1_g": jnp.ones((D_MODEL,), jnp.float32),
            "ln1_b": jnp.zeros((D_MODEL,), jnp.float32),
            "ln2_g": jnp.ones((D_MODEL,), jnp.float32),
            "ln2_b": jnp.zeros((D_MODEL,), jnp.float32),
            "w_qkv": nrm(next(ks), (3 * D_MODEL, D_MODEL)),
            "b_qkv": jnp.zeros((3 * D_MODEL,), jnp.float32),
            "w_o": nrm(next(ks), (D_MODEL, D_MODEL)),
            "b_o": jnp.zeros((D_MODEL,), jnp.float32),
            "mlp_w1": nrm(next(ks), (MLP_DIM, D_MODEL)),
            "mlp_b1": jnp.zeros((MLP_DIM,), jnp.float32),
            "mlp_w2": nrm(next(ks), (D_MODEL, MLP_DIM)),
            "mlp_b2": jnp.zeros((D_MODEL,), jnp.float32),
            "sigma": jnp.float32(SIGMA_INIT),
        })
    return params


# ----------------------------- main -------------------------------------------
if __name__ == "__main__":
    key = jax.random.PRNGKey(0)
    pkey, xkey = jax.random.split(key)
    params = init_params(pkey)
    images = jax.random.normal(xkey, (2, C_IN, IMG, IMG), jnp.float32)

    fwd = jax.jit(probformer_forward)
    logits, (cls_loc, cls_scale) = fwd(params, images)
    jax.block_until_ready((logits, cls_loc, cls_scale))

    assert logits.shape == (2, NUM_CLASSES)
    assert cls_loc.shape == (2, NUM_CLASSES)
    assert cls_scale.shape == (2, NUM_CLASSES)
    assert bool(jnp.all(jnp.isfinite(logits)))
    assert bool(jnp.all(cls_scale >= 0))
    print("KERNEL_OK")
</pallas_src>

<mosaic_0001>
module attributes {stable_mosaic.version = 11 : i64} {
  func.func @kernel(%arg0: i32, %arg1: memref<2xf32, #tpu.memory_space<smem>>, %arg2: memref<1x40x192xf32, #tpu.memory_space<vmem>>, %arg3: memref<40x40xf32, #tpu.memory_space<vmem>>, %arg4: memref<40x32xf32, #tpu.memory_space<vmem>>, %arg5: memref<192x32xf32, #tpu.memory_space<vmem>>, %arg6: memref<2x8x32xf32, #tpu.memory_space<vmem>>, %arg7: memref<2x32x96xf32, #tpu.memory_space<vmem>>, %arg8: memref<2x1x96xf32, #tpu.memory_space<vmem>>, %arg9: memref<2x32x32xf32, #tpu.memory_space<vmem>>, %arg10: memref<2x32x32xf32, #tpu.memory_space<vmem>>, %arg11: memref<2x32x64xf32, #tpu.memory_space<vmem>>, %arg12: memref<2x1x64xf32, #tpu.memory_space<vmem>>, %arg13: memref<2x64x32xf32, #tpu.memory_space<vmem>>, %arg14: memref<2x32xf32, #tpu.memory_space<vmem>>, %arg15: memref<32x10xf32, #tpu.memory_space<vmem>>, %arg16: memref<32x10xf32, #tpu.memory_space<vmem>>, %arg17: memref<1x10xf32, #tpu.memory_space<vmem>>, %arg18: memref<8x30xf32, #tpu.memory_space<vmem>>, %arg19: memref<40x32xf32, #tpu.memory_space<vmem>>, %arg20: memref<40x32xf32, #tpu.memory_space<vmem>>) attributes {dimension_semantics = [#tpu.dimension_semantics<parallel>], iteration_bounds = array<i64: 1>, scalar_prefetch = 0 : i64, scratch_operands = 2 : i64, tpu.core_type = #tpu.core_type<tc>, window_params = [{transform_indices = @transform_0, window_bounds = array<i64: 2>}, {transform_indices = @transform_1, window_bounds = array<i64: 1, 40, 192>}, {pipeline_mode = #tpu.pipeline_mode<synchronous>, transform_indices = @transform_2, window_bounds = array<i64: 40, 40>}, {pipeline_mode = #tpu.pipeline_mode<synchronous>, transform_indices = @transform_3, window_bounds = array<i64: 40, 32>}, {pipeline_mode = #tpu.pipeline_mode<synchronous>, transform_indices = @transform_4, window_bounds = array<i64: 192, 32>}, {pipeline_mode = #tpu.pipeline_mode<synchronous>, transform_indices = @transform_5, window_bounds = array<i64: 2, 8, 32>}, {pipeline_mode = #tpu.pipeline_mode<synchronous>, transform_indices = @transform_6, window_bounds = array<i64: 2, 32, 96>}, {pipeline_mode = #tpu.pipeline_mode<synchronous>, transform_indices = @transform_7, window_bounds = array<i64: 2, 1, 96>}, {pipeline_mode = #tpu.pipeline_mode<synchronous>, transform_indices = @transform_8, window_bounds = array<i64: 2, 32, 32>}, {pipeline_mode = #tpu.pipeline_mode<synchronous>, transform_indices = @transform_9, window_bounds = array<i64: 2, 32, 32>}, {pipeline_mode = #tpu.pipeline_mode<synchronous>, transform_indices = @transform_10, window_bounds = array<i64: 2, 32, 64>}, {pipeline_mode = #tpu.pipeline_mode<synchronous>, transform_indices = @transform_11, window_bounds = array<i64: 2, 1, 64>}, {pipeline_mode = #tpu.pipeline_mode<synchronous>, transform_indices = @transform_12, window_bounds = array<i64: 2, 64, 32>}, {pipeline_mode = #tpu.pipeline_mode<synchronous>, transform_indices = @transform_13, window_bounds = array<i64: 2, 32>}, {pipeline_mode = #tpu.pipeline_mode<synchronous>, transform_indices = @transform_14, window_bounds = array<i64: 32, 10>}, {pipeline_mode = #tpu.pipeline_mode<synchronous>, transform_indices = @transform_15, window_bounds = array<i64: 32, 10>}, {pipeline_mode = #tpu.pipeline_mode<synchronous>, transform_indices = @transform_16, window_bounds = array<i64: 1, 10>}, {transform_indices = @transform_17, window_bounds = array<i64: 8, 30>}]} {
    %c0 = arith.constant 0 : index
    %c0_0 = arith.constant 0 : index
    %c0_1 = arith.constant 0 : index
    %0 = vector.load %arg2[%c0, %c0_0, %c0_1] : memref<1x40x192xf32, #tpu.memory_space<vmem>>, vector<1x40x192xf32>
    %1 = vector.shape_cast %0 : vector<1x40x192xf32> to vector<40x192xf32>
    %c0_2 = arith.constant 0 : index
    %c0_3 = arith.constant 0 : index
    %2 = vector.load %arg5[%c0_2, %c0_3] : memref<192x32xf32, #tpu.memory_space<vmem>>, vector<192x32xf32>
    %cst = arith.constant dense<0.000000e+00> : vector<40x32xf32>
    %3 = tpu.matmul %1, %2, %cst {dimension_numbers = #tpu.dot_dimension_numbers<[1], [0], [0], [1], [0, 0, 1, 1], [], []>} : vector<40x192xf32>, vector<192x32xf32>, vector<40x32xf32> -> vector<40x32xf32>
    %c0_4 = arith.constant 0 : index
    %c0_5 = arith.constant 0 : index
    %4 = vector.load %arg4[%c0_4, %c0_5] : memref<40x32xf32, #tpu.memory_space<vmem>>, vector<40x32xf32>
    %5 = arith.addf %3, %4 : vector<40x32xf32>
    %c0_6 = arith.constant 0 : index
    %c0_7 = arith.constant 0 : index
    %c0_8 = arith.constant 0 : index
    %6 = vector.load %arg6[%c0_6, %c0_7, %c0_8] : memref<2x8x32xf32, #tpu.memory_space<vmem>>, vector<1x8x32xf32>
    %7 = vector.shape_cast %6 : vector<1x8x32xf32> to vector<8x32xf32>
    %8 = vector.extract_strided_slice %7 {offsets = [0, 0], sizes = [1, 32], strides = [1, 1]} : vector<8x32xf32> to vector<1x32xf32>
    %9 = vector.extract_strided_slice %7 {offsets = [1, 0], sizes = [1, 32], strides = [1, 1]} : vector<8x32xf32> to vector<1x32xf32>
    %10 = vector.extract_strided_slice %7 {offsets = [2, 0], sizes = [1, 32], strides = [1, 1]} : vector<8x32xf32> to vector<1x32xf32>
    %11 = vector.extract_strided_slice %7 {offsets = [3, 0], sizes = [1, 32], strides = [1, 1]} : vector<8x32xf32> to vector<1x32xf32>
    %12 = vector.extract_strided_slice %7 {offsets = [4, 0], sizes = [1, 32], strides = [1, 1]} : vector<8x32xf32> to vector<1x32xf32>
    %13 = vector.extract_strided_slice %7 {offsets = [5, 0], sizes = [1, 32], strides = [1, 1]} : vector<8x32xf32> to vector<1x32xf32>
    %cst_9 = arith.constant dense<0.000000e+00> : vector<40xf32>
    %14 = vector.multi_reduction <add>, %5, %cst_9 [1] : vector<40x32xf32> to vector<40xf32>
    %15 = vector.shape_cast %14 : vector<40xf32> to vector<40x1xf32>
    %cst_10 = arith.constant 3.200000e+01 : f32
    %16 = vector.broadcast %cst_10 : f32 to vector<40x1xf32>
    %17 = arith.divf %15, %16 : vector<40x1xf32>
    %18 = vector.broadcast %17 : vector<40x1xf32> to vector<40x32xf32>
    %19 = arith.subf %5, %18 : vector<40x32xf32>
    %20 = arith.mulf %19, %19 : vector<40x32xf32>
    %cst_11 = arith.constant dense<0.000000e+00> : vector<40xf32>
    %21 = vector.multi_reduction <add>, %20, %cst_11 [1] : vector<40x32xf32> to vector<40xf32>
    %22 = vector.shape_cast %21 : vector<40xf32> to vector<40x1xf32>
    %cst_12 = arith.constant 3.200000e+01 : f32
    %23 = vector.broadcast %cst_12 : f32 to vector<40x1xf32>
    %24 = arith.divf %22, %23 : vector<40x1xf32>
    %cst_13 = arith.constant 9.99999997E-7 : f32
    %25 = vector.broadcast %cst_13 : f32 to vector<40x1xf32>
    %26 = arith.addf %24, %25 : vector<40x1xf32>
    %27 = math.rsqrt %26 : vector<40x1xf32>
    %28 = vector.broadcast %27 : vector<40x1xf32> to vector<40x32xf32>
    %29 = arith.mulf %19, %28 : vector<40x32xf32>
    %30 = vector.broadcast %8 : vector<1x32xf32> to vector<40x32xf32>
    %31 = arith.mulf %29, %30 : vector<40x32xf32>
    %32 = vector.broadcast %9 : vector<1x32xf32> to vector<40x32xf32>
    %33 = arith.addf %31, %32 : vector<40x32xf32>
    %c0_14 = arith.constant 0 : index
    %c0_15 = arith.constant 0 : index
    %c0_16 = arith.constant 0 : index
    %34 = vector.load %arg7[%c0_14, %c0_15, %c0_16] : memref<2x32x96xf32, #tpu.memory_space<vmem>>, vector<1x32x96xf32>
    %35 = vector.shape_cast %34 : vector<1x32x96xf32> to vector<32x96xf32>
    %cst_17 = arith.constant dense<0.000000e+00> : vector<40x96xf32>
    %36 = tpu.matmul %33, %35, %cst_17 {dimension_numbers = #tpu.dot_dimension_numbers<[1], [0], [0], [1], [0, 0, 1, 1], [], []>} : vector<40x32xf32>, vector<32x96xf32>, vector<40x96xf32> -> vector<40x96xf32>
    %c0_18 = arith.constant 0 : index
    %c0_19 = arith.constant 0 : index
    %c0_20 = arith.constant 0 : index
    %37 = vector.load %arg8[%c0_18, %c0_19, %c0_20] : memref<2x1x96xf32, #tpu.memory_space<vmem>>, vector<1x1x96xf32>
    %38 = vector.shape_cast %37 : vector<1x1x96xf32> to vector<1x96xf32>
    %39 = vector.broadcast %38 : vector<1x96xf32> to vector<40x96xf32>
    %40 = arith.addf %36, %39 : vector<40x96xf32>
    %c0_21 = arith.constant 0 : index
    %41 = memref.load %arg1[%c0_21] : memref<2xf32, #tpu.memory_space<smem>>
    %42 = vector.extract_strided_slice %40 {offsets = [0, 0], sizes = [40, 8], strides = [1, 1]} : vector<40x96xf32> to vector<40x8xf32>
    %43 = vector.extract_strided_slice %40 {offsets = [0, 32], sizes = [40, 8], strides = [1, 1]} : vector<40x96xf32> to vector<40x8xf32>
    %44 = vector.extract_strided_slice %40 {offsets = [0, 64], sizes = [40, 8], strides = [1, 1]} : vector<40x96xf32> to vector<40x8xf32>
    %cst_22 = arith.constant dense<0.000000e+00> : vector<40x40xf32>
    %45 = tpu.matmul %42, %43, %cst_22 {dimension_numbers = #tpu.dot_dimension_numbers<[1], [1], [0], [0], [0, 0, 1, 0], [], []>} : vector<40x8xf32>, vector<40x8xf32>, vector<40x40xf32> -> vector<40x40xf32>
    %cst_23 = arith.constant 0.353553385 : f32
    %46 = vector.broadcast %cst_23 : f32 to vector<40x40xf32>
    %47 = arith.mulf %45, %46 : vector<40x40xf32>
    %c0_24 = arith.constant 0 : index
    %c0_25 = arith.constant 0 : index
    %48 = vector.load %arg3[%c0_24, %c0_25] : memref<40x40xf32, #tpu.memory_space<vmem>>, vector<40x40xf32>
    %49 = arith.addf %47, %48 : vector<40x40xf32>
    %cst_26 = arith.constant dense<0xFF800000> : vector<40xf32>
    %50 = vector.multi_reduction <maximumf>, %49, %cst_26 [1] : vector<40x40xf32> to vector<40xf32>
    %51 = vector.shape_cast %50 : vector<40xf32> to vector<40x1xf32>
    %52 = vector.broadcast %51 : vector<40x1xf32> to vector<40x40xf32>
    %53 = arith.subf %49, %52 : vector<40x40xf32>
    %54 = math.exp %53 : vector<40x40xf32>
    %cst_27 = arith.constant dense<0.000000e+00> : vector<40xf32>
    %55 = vector.multi_reduction <add>, %54, %cst_27 [1] : vector<40x40xf32> to vector<40xf32>
    %56 = vector.shape_cast %55 : vector<40xf32> to vector<40x1xf32>
    %57 = vector.broadcast %56 : vector<40x1xf32> to vector<40x40xf32>
    %58 = arith.divf %54, %57 : vector<40x40xf32>
    %cst_28 = arith.constant dense<0.000000e+00> : vector<40x8xf32>
    %59 = tpu.matmul %58, %44, %cst_28 {dimension_numbers = #tpu.dot_dimension_numbers<[1], [0], [0], [1], [0, 0, 1, 1], [], []>} : vector<40x40xf32>, vector<40x8xf32>, vector<40x8xf32> -> vector<40x8xf32>
    %60 = arith.subf %44, %59 : vector<40x8xf32>
    %61 = arith.mulf %60, %60 : vector<40x8xf32>
    %cst_29 = arith.constant dense<0.000000e+00> : vector<40x8xf32>
    %62 = tpu.matmul %58, %61, %cst_29 {dimension_numbers = #tpu.dot_dimension_numbers<[1], [0], [0], [1], [0, 0, 1, 1], [], []>} : vector<40x40xf32>, vector<40x8xf32>, vector<40x8xf32> -> vector<40x8xf32>
    %63 = vector.broadcast %41 : f32 to vector<40x8xf32>
    %64 = arith.addf %63, %62 : vector<40x8xf32>
    %c0_30 = arith.constant 0 : index
    %c0_31 = arith.constant 0 : index
    %65 = vector.load %arg19[%c0_30, %c0_31] : memref<40x32xf32, #tpu.memory_space<vmem>>, vector<40x8xf32>
    tpu.vector_store %arg19[%c0_30, %c0_31], %59 {strides = array<i32>} : memref<40x32xf32, #tpu.memory_space<vmem>>, vector<40x8xf32>,
    %c0_32 = arith.constant 0 : index
    %c0_33 = arith.constant 0 : index
    %66 = vector.load %arg20[%c0_32, %c0_33] : memref<40x32xf32, #tpu.memory_space<vmem>>, vector<40x8xf32>
    tpu.vector_store %arg20[%c0_32, %c0_33], %64 {strides = array<i32>} : memref<40x32xf32, #tpu.memory_space<vmem>>, vector<40x8xf32>,
    %67 = vector.extract_strided_slice %40 {offsets = [0, 8], sizes = [40, 8], strides = [1, 1]} : vector<40x96xf32> to vector<40x8xf32>
    %68 = vector.extract_strided_slice %40 {offsets = [0, 40], sizes = [40, 8], strides = [1, 1]} : vector<40x96xf32> to vector<40x8xf32>
    %69 = vector.extract_strided_slice %40 {offsets = [0, 72], sizes = [40, 8], strides = [1, 1]} : vector<40x96xf32> to vector<40x8xf32>
    %cst_34 = arith.constant dense<0.000000e+00> : vector<40x40xf32>
    %70 = tpu.matmul %67, %68, %cst_34 {dimension_numbers = #tpu.dot_dimension_numbers<[1], [1], [0], [0], [0, 0, 1, 0], [], []>} : vector<40x8xf32>, vector<40x8xf32>, vector<40x40xf32> -> vector<40x40xf32>
    %cst_35 = arith.constant 0.353553385 : f32
    %71 = vector.broadcast %cst_35 : f32 to vector<40x40xf32>
    %72 = arith.mulf %70, %71 : vector<40x40xf32>
    %c0_36 = arith.constant 0 : index
    %c0_37 = arith.constant 0 : index
    %73 = vector.load %arg3[%c0_36, %c0_37] : memref<40x40xf32, #tpu.memory_space<vmem>>, vector<40x40xf32>
    %74 = arith.addf %72, %73 : vector<40x40xf32>
    %cst_38 = arith.constant dense<0xFF800000> : vector<40xf32>
    %75 = vector.multi_reduction <maximumf>, %74, %cst_38 [1] : vector<40x40xf32> to vector<40xf32>
    %76 = vector.shape_cast %75 : vector<40xf32> to vector<40x1xf32>
    %77 = vector.broadcast %76 : vector<40x1xf32> to vector<40x40xf32>
    %78 = arith.subf %74, %77 : vector<40x40xf32>
    %79 = math.exp %78 : vector<40x40xf32>
    %cst_39 = arith.constant dense<0.000000e+00> : vector<40xf32>
    %80 = vector.multi_reduction <add>, %79, %cst_39 [1] : vector<40x40xf32> to vector<40xf32>
    %81 = vector.shape_cast %80 : vector<40xf32> to vector<40x1xf32>
    %82 = vector.broadcast %81 : vector<40x1xf32> to vector<40x40xf32>
    %83 = arith.divf %79, %82 : vector<40x40xf32>
    %cst_40 = arith.constant dense<0.000000e+00> : vector<40x8xf32>
    %84 = tpu.matmul %83, %69, %cst_40 {dimension_numbers = #tpu.dot_dimension_numbers<[1], [0], [0], [1], [0, 0, 1, 1], [], []>} : vector<40x40xf32>, vector<40x8xf32>, vector<40x8xf32> -> vector<40x8xf32>
    %85 = arith.subf %69, %84 : vector<40x8xf32>
    %86 = arith.mulf %85, %85 : vector<40x8xf32>
    %cst_41 = arith.constant dense<0.000000e+00> : vector<40x8xf32>
    %87 = tpu.matmul %83, %86, %cst_41 {dimension_numbers = #tpu.dot_dimension_numbers<[1], [0], [0], [1], [0, 0, 1, 1], [], []>} : vector<40x40xf32>, vector<40x8xf32>, vector<40x8xf32> -> vector<40x8xf32>
    %88 = vector.broadcast %41 : f32 to vector<40x8xf32>
    %89 = arith.addf %88, %87 : vector<40x8xf32>
    %c0_42 = arith.constant 0 : index
    %c8 = arith.constant 8 : index
    %90 = vector.load %arg19[%c0_42, %c8] : memref<40x32xf32, #tpu.memory_space<vmem>>, vector<40x8xf32>
    tpu.vector_store %arg19[%c0_42, %c8], %84 {strides = array<i32>} : memref<40x32xf32, #tpu.memory_space<vmem>>, vector<40x8xf32>,
    %c0_43 = arith.constant 0 : index
    %c8_44 = arith.constant 8 : index
    %91 = vector.load %arg20[%c0_43, %c8_44] : memref<40x32xf32, #tpu.memory_space<vmem>>, vector<40x8xf32>
    tpu.vector_store %arg20[%c0_43, %c8_44], %89 {strides = array<i32>} : memref<40x32xf32, #tpu.memory_space<vmem>>, vector<40x8xf32>,
    %92 = vector.extract_strided_slice %40 {offsets = [0, 16], sizes = [40, 8], strides = [1, 1]} : vector<40x96xf32> to vector<40x8xf32>
    %93 = vector.extract_strided_slice %40 {offsets = [0, 48], sizes = [40, 8], strides = [1, 1]} : vector<40x96xf32> to vector<40x8xf32>
    %94 = vector.extract_strided_slice %40 {offsets = [0, 80], sizes = [40, 8], strides = [1, 1]} : vector<40x96xf32> to vector<40x8xf32>
    %cst_45 = arith.constant dense<0.000000e+00> : vector<40x40xf32>
    %95 = tpu.matmul %92, %93, %cst_45 {dimension_numbers = #tpu.dot_dimension_numbers<[1], [1], [0], [0], [0, 0, 1, 0], [], []>} : vector<40x8xf32>, vector<40x8xf32>, vector<40x40xf32> -> vector<40x40xf32>
    %cst_46 = arith.constant 0.353553385 : f32
    %96 = vector.broadcast %cst_46 : f32 to vector<40x40xf32>
    %97 = arith.mulf %95, %96 : vector<40x40xf32>
    %c0_47 = arith.constant 0 : index
    %c0_48 = arith.constant 0 : index
    %98 = vector.load %arg3[%c0_47, %c0_48] : memref<40x40xf32, #tpu.memory_space<vmem>>, vector<40x40xf32>
    %99 = arith.addf %97, %98 : vector<40x40xf32>
    %cst_49 = arith.constant dense<0xFF800000> : vector<40xf32>
    %100 = vector.multi_reduction <maximumf>, %99, %cst_49 [1] : vector<40x40xf32> to vector<40xf32>
    %101 = vector.shape_cast %100 : vector<40xf32> to vector<40x1xf32>
    %102 = vector.broadcast %101 : vector<40x1xf32> to vector<40x40xf32>
    %103 = arith.subf %99, %102 : vector<40x40xf32>
    %104 = math.exp %103 : vector<40x40xf32>
    %cst_50 = arith.constant dense<0.000000e+00> : vector<40xf32>
    %105 = vector.multi_reduction <add>, %104, %cst_50 [1] : vector<40x40xf32> to vector<40xf32>
    %106 = vector.shape_cast %105 : vector<40xf32> to vector<40x1xf32>
    %107 = vector.broadcast %106 : vector<40x1xf32> to vector<40x40xf32>
    %108 = arith.divf %104, %107 : vector<40x40xf32>
    %cst_51 = arith.constant dense<0.000000e+00> : vector<40x8xf32>
    %109 = tpu.matmul %108, %94, %cst_51 {dimension_numbers = #tpu.dot_dimension_numbers<[1], [0], [0], [1], [0, 0, 1, 1], [], []>} : vector<40x40xf32>, vector<40x8xf32>, vector<40x8xf32> -> vector<40x8xf32>
    %110 = arith.subf %94, %109 : vector<40x8xf32>
    %111 = arith.mulf %110, %110 : vector<40x8xf32>
    %cst_52 = arith.constant dense<0.000000e+00> : vector<40x8xf32>
    %112 = tpu.matmul %108, %111, %cst_52 {dimension_numbers = #tpu.dot_dimension_numbers<[1], [0], [0], [1], [0, 0, 1, 1], [], []>} : vector<40x40xf32>, vector<40x8xf32>, vector<40x8xf32> -> vector<40x8xf32>
    %113 = vector.broadcast %41 : f32 to vector<40x8xf32>
    %114 = arith.addf %113, %112 : vector<40x8xf32>
    %c0_53 = arith.constant 0 : index
    %c16 = arith.constant 16 : index
    %115 = vector.load %arg19[%c0_53, %c16] : memref<40x32xf32, #tpu.memory_space<vmem>>, vector<40x8xf32>
    tpu.vector_store %arg19[%c0_53, %c16], %109 {strides = array<i32>} : memref<40x32xf32, #tpu.memory_space<vmem>>, vector<40x8xf32>,
    %c0_54 = arith.constant 0 : index
    %c16_55 = arith.constant 16 : index
    %116 = vector.load %arg20[%c0_54, %c16_55] : memref<40x32xf32, #tpu.memory_space<vmem>>, vector<40x8xf32>
    tpu.vector_store %arg20[%c0_54, %c16_55], %114 {strides = array<i32>} : memref<40x32xf32, #tpu.memory_space<vmem>>, vector<40x8xf32>,
    %117 = vector.extract_strided_slice %40 {offsets = [0, 24], sizes = [40, 8], strides = [1, 1]} : vector<40x96xf32> to vector<40x8xf32>
    %118 = vector.extract_strided_slice %40 {offsets = [0, 56], sizes = [40, 8], strides = [1, 1]} : vector<40x96xf32> to vector<40x8xf32>
    %119 = vector.extract_strided_slice %40 {offsets = [0, 88], sizes = [40, 8], strides = [1, 1]} : vector<40x96xf32> to vector<40x8xf32>
    %cst_56 = arith.constant dense<0.000000e+00> : vector<40x40xf32>
    %120 = tpu.matmul %117, %118, %cst_56 {dimension_numbers = #tpu.dot_dimension_numbers<[1], [1], [0], [0], [0, 0, 1, 0], [], []>} : vector<40x8xf32>, vector<40x8xf32>, vector<40x40xf32> -> vector<40x40xf32>
    %cst_57 = arith.constant 0.353553385 : f32
    %121 = vector.broadcast %cst_57 : f32 to vector<40x40xf32>
    %122 = arith.mulf %120, %121 : vector<40x40xf32>
    %c0_58 = arith.constant 0 : index
    %c0_59 = arith.constant 0 : index
    %123 = vector.load %arg3[%c0_58, %c0_59] : memref<40x40xf32, #tpu.memory_space<vmem>>, vector<40x40xf32>
    %124 = arith.addf %122, %123 : vector<40x40xf32>
    %cst_60 = arith.constant dense<0xFF800000> : vector<40xf32>
    %125 = vector.multi_reduction <maximumf>, %124, %cst_60 [1] : vector<40x40xf32> to vector<40xf32>
    %126 = vector.shape_cast %125 : vector<40xf32> to vector<40x1xf32>
    %127 = vector.broadcast %126 : vector<40x1xf32> to vector<40x40xf32>
    %128 = arith.subf %124, %127 : vector<40x40xf32>
    %129 = math.exp %128 : vector<40x40xf32>
    %cst_61 = arith.constant dense<0.000000e+00> : vector<40xf32>
    %130 = vector.multi_reduction <add>, %129, %cst_61 [1] : vector<40x40xf32> to vector<40xf32>
    %131 = vector.shape_cast %130 : vector<40xf32> to vector<40x1xf32>
    %132 = vector.broadcast %131 : vector<40x1xf32> to vector<40x40xf32>
    %133 = arith.divf %129, %132 : vector<40x40xf32>
    %cst_62 = arith.constant dense<0.000000e+00> : vector<40x8xf32>
    %134 = tpu.matmul %133, %119, %cst_62 {dimension_numbers = #tpu.dot_dimension_numbers<[1], [0], [0], [1], [0, 0, 1, 1], [], []>} : vector<40x40xf32>, vector<40x8xf32>, vector<40x8xf32> -> vector<40x8xf32>
    %135 = arith.subf %119, %134 : vector<40x8xf32>
    %136 = arith.mulf %135, %135 : vector<40x8xf32>
    %cst_63 = arith.constant dense<0.000000e+00> : vector<40x8xf32>
    %137 = tpu.matmul %133, %136, %cst_63 {dimension_numbers = #tpu.dot_dimension_numbers<[1], [0], [0], [1], [0, 0, 1, 1], [], []>} : vector<40x40xf32>, vector<40x8xf32>, vector<40x8xf32> -> vector<40x8xf32>
    %138 = vector.broadcast %41 : f32 to vector<40x8xf32>
    %139 = arith.addf %138, %137 : vector<40x8xf32>
    %c0_64 = arith.constant 0 : index
    %c24 = arith.constant 24 : index
    %140 = vector.load %arg19[%c0_64, %c24] : memref<40x32xf32, #tpu.memory_space<vmem>>, vector<40x8xf32>
    tpu.vector_store %arg19[%c0_64, %c24], %134 {strides = array<i32>} : memref<40x32xf32, #tpu.memory_space<vmem>>, vector<40x8xf32>,
    %c0_65 = arith.constant 0 : index
    %c24_66 = arith.constant 24 : index
    %141 = vector.load %arg20[%c0_65, %c24_66] : memref<40x32xf32, #tpu.memory_space<vmem>>, vector<40x8xf32>
    tpu.vector_store %arg20[%c0_65, %c24_66], %139 {strides = array<i32>} : memref<40x32xf32, #tpu.memory_space<vmem>>, vector<40x8xf32>,
    %c0_67 = arith.constant 0 : index
    %c0_68 = arith.constant 0 : index
    %142 = vector.load %arg19[%c0_67, %c0_68] : memref<40x32xf32, #tpu.memory_space<vmem>>, vector<40x32xf32>
    %c0_69 = arith.constant 0 : index
    %c0_70 = arith.constant 0 : index
    %c0_71 = arith.constant 0 : index
    %143 = vector.load %arg9[%c0_69, %c0_70, %c0_71] : memref<2x32x32xf32, #tpu.memory_space<vmem>>, vector<1x32x32xf32>
    %144 = vector.shape_cast %143 : vector<1x32x32xf32> to vector<32x32xf32>
    %cst_72 = arith.constant dense<0.000000e+00> : vector<40x32xf32>
    %145 = tpu.matmul %142, %144, %cst_72 {dimension_numbers = #tpu.dot_dimension_numbers<[1], [0], [0], [1], [0, 0, 1, 1], [], []>} : vector<40x32xf32>, vector<32x32xf32>, vector<40x32xf32> -> vector<40x32xf32>
    %146 = vector.broadcast %12 : vector<1x32xf32> to vector<40x32xf32>
    %147 = arith.addf %145, %146 : vector<40x32xf32>
    %148 = arith.addf %147, %5 : vector<40x32xf32>
    %cst_73 = arith.constant dense<0.000000e+00> : vector<40xf32>
    %149 = vector.multi_reduction <add>, %148, %cst_73 [1] : vector<40x32xf32> to vector<40xf32>
    %150 = vector.shape_cast %149 : vector<40xf32> to vector<40x1xf32>
    %cst_74 = arith.constant 3.200000e+01 : f32
    %151 = vector.broadcast %cst_74 : f32 to vector<40x1xf32>
    %152 = arith.divf %150, %151 : vector<40x1xf32>
    %153 = vector.broadcast %152 : vector<40x1xf32> to vector<40x32xf32>
    %154 = arith.subf %148, %153 : vector<40x32xf32>
    %155 = arith.mulf %154, %154 : vector<40x32xf32>
    %cst_75 = arith.constant dense<0.000000e+00> : vector<40xf32>
    %156 = vector.multi_reduction <add>, %155, %cst_75 [1] : vector<40x32xf32> to vector<40xf32>
    %157 = vector.shape_cast %156 : vector<40xf32> to vector<40x1xf32>
    %cst_76 = arith.constant 3.200000e+01 : f32
    %158 = vector.broadcast %cst_76 : f32 to vector<40x1xf32>
    %159 = arith.divf %157, %158 : vector<40x1xf32>
    %cst_77 = arith.constant 9.99999997E-7 : f32
    %160 = vector.broadcast %cst_77 : f32 to vector<40x1xf32>
    %161 = arith.addf %159, %160 : vector<40x1xf32>
    %162 = math.rsqrt %161 : vector<40x1xf32>
    %163 = vector.broadcast %162 : vector<40x1xf32> to vector<40x32xf32>
    %164 = arith.mulf %154, %163 : vector<40x32xf32>
    %165 = vector.broadcast %10 : vector<1x32xf32> to vector<40x32xf32>
    %166 = arith.mulf %164, %165 : vector<40x32xf32>
    %167 = vector.broadcast %11 : vector<1x32xf32> to vector<40x32xf32>
    %168 = arith.addf %166, %167 : vector<40x32xf32>
    %c0_78 = arith.constant 0 : index
    %c0_79 = arith.constant 0 : index
    %c0_80 = arith.constant 0 : index
    %169 = vector.load %arg11[%c0_78, %c0_79, %c0_80] : memref<2x32x64xf32, #tpu.memory_space<vmem>>, vector<1x32x64xf32>
    %170 = vector.shape_cast %169 : vector<1x32x64xf32> to vector<32x64xf32>
    %cst_81 = arith.constant dense<0.000000e+00> : vector<40x64xf32>
    %171 = tpu.matmul %168, %170, %cst_81 {dimension_numbers = #tpu.dot_dimension_numbers<[1], [0], [0], [1], [0, 0, 1, 1], [], []>} : vector<40x32xf32>, vector<32x64xf32>, vector<40x64xf32> -> vector<40x64xf32>
    %c0_82 = arith.constant 0 : index
    %c0_83 = arith.constant 0 : index
    %c0_84 = arith.constant 0 : index
    %172 = vector.load %arg12[%c0_82, %c0_83, %c0_84] : memref<2x1x64xf32, #tpu.memory_space<vmem>>, vector<1x1x64xf32>
    %173 = vector.shape_cast %172 : vector<1x1x64xf32> to vector<1x64xf32>
    %174 = vector.broadcast %173 : vector<1x64xf32> to vector<40x64xf32>
    %175 = arith.addf %171, %174 : vector<40x64xf32>
    %cst_85 = arith.constant 5.000000e-01 : f32
    %176 = vector.broadcast %cst_85 : f32 to vector<40x64xf32>
    %177 = arith.mulf %176, %175 : vector<40x64xf32>
    %cst_86 = arith.constant 0.707106769 : f32
    %178 = vector.broadcast %cst_86 : f32 to vector<40x64xf32>
    %179 = arith.mulf %175, %178 : vector<40x64xf32>
    %180 = math.absf %179 : vector<40x64xf32>
    %cst_87 = arith.constant 0.327591091 : f32
    %181 = vector.broadcast %cst_87 : f32 to vector<40x64xf32>
    %182 = arith.mulf %181, %180 : vector<40x64xf32>
    %cst_88 = arith.constant 1.000000e+00 : f32
    %183 = vector.broadcast %cst_88 : f32 to vector<40x64xf32>
    %184 = arith.addf %183, %182 : vector<40x64xf32>
    %cst_89 = arith.constant 1.000000e+00 : f32
    %185 = vector.broadcast %cst_89 : f32 to vector<40x64xf32>
    %186 = arith.divf %185, %184 : vector<40x64xf32>
    %cst_90 = arith.constant 1.06140542 : f32
    %187 = vector.broadcast %cst_90 : f32 to vector<40x64xf32>
    %188 = arith.mulf %186, %187 : vector<40x64xf32>
    %cst_91 = arith.constant -1.45315206 : f32
    %189 = vector.broadcast %cst_91 : f32 to vector<40x64xf32>
    %190 = arith.addf %189, %188 : vector<40x64xf32>
    %191 = arith.mulf %186, %190 : vector<40x64xf32>
    %cst_92 = arith.constant 1.42141378 : f32
    %192 = vector.broadcast %cst_92 : f32 to vector<40x64xf32>
    %193 = arith.addf %192, %191 : vector<40x64xf32>
    %194 = arith.mulf %186, %193 : vector<40x64xf32>
    %cst_93 = arith.constant -0.284496725 : f32
    %195 = vector.broadcast %cst_93 : f32 to vector<40x64xf32>
    %196 = arith.addf %195, %194 : vector<40x64xf32>
    %197 = arith.mulf %186, %196 : vector<40x64xf32>
    %cst_94 = arith.constant 0.254829586 : f32
    %198 = vector.broadcast %cst_94 : f32 to vector<40x64xf32>
    %199 = arith.addf %198, %197 : vector<40x64xf32>
    %200 = arith.mulf %186, %199 : vector<40x64xf32>
    %cst_95 = arith.constant 0.000000e+00 : f32
    %201 = vector.broadcast %cst_95 : f32 to vector<40x64xf32>
    %202 = arith.subf %201, %180 : vector<40x64xf32>
    %203 = arith.mulf %202, %180 : vector<40x64xf32>
    %204 = math.exp %203 : vector<40x64xf32>
    %205 = arith.mulf %200, %204 : vector<40x64xf32>
    %cst_96 = arith.constant 1.000000e+00 : f32
    %206 = vector.broadcast %cst_96 : f32 to vector<40x64xf32>
    %207 = arith.subf %206, %205 : vector<40x64xf32>
    %cst_97 = arith.constant 0.000000e+00 : f32
    %208 = vector.broadcast %cst_97 : f32 to vector<40x64xf32>
    %209 = arith.cmpf oge, %179, %208 : vector<40x64xf32>
    %cst_98 = arith.constant 0.000000e+00 : f32
    %210 = vector.broadcast %cst_98 : f32 to vector<40x64xf32>
    %211 = arith.subf %210, %207 : vector<40x64xf32>
    %212 = arith.select %209, %207, %211 : vector<40x64xi1>, vector<40x64xf32>
    %cst_99 = arith.constant 1.000000e+00 : f32
    %213 = vector.broadcast %cst_99 : f32 to vector<40x64xf32>
    %214 = arith.addf %213, %212 : vector<40x64xf32>
    %215 = arith.mulf %177, %214 : vector<40x64xf32>
    %c0_100 = arith.constant 0 : index
    %c0_101 = arith.constant 0 : index
    %c0_102 = arith.constant 0 : index
    %216 = vector.load %arg13[%c0_100, %c0_101, %c0_102] : memref<2x64x32xf32, #tpu.memory_space<vmem>>, vector<1x64x32xf32>
    %217 = vector.shape_cast %216 : vector<1x64x32xf32> to vector<64x32xf32>
    %cst_103 = arith.constant dense<0.000000e+00> : vector<40x32xf32>
    %218 = tpu.matmul %215, %217, %cst_103 {dimension_numbers = #tpu.dot_dimension_numbers<[1], [0], [0], [1], [0, 0, 1, 1], [], []>} : vector<40x64xf32>, vector<64x32xf32>, vector<40x32xf32> -> vector<40x32xf32>
    %219 = vector.broadcast %13 : vector<1x32xf32> to vector<40x32xf32>
    %220 = arith.addf %218, %219 : vector<40x32xf32>
    %221 = arith.addf %220, %148 : vector<40x32xf32>
    %c1 = arith.constant 1 : index
    %c0_104 = arith.constant 0 : index
    %c0_105 = arith.constant 0 : index
    %222 = vector.load %arg6[%c1, %c0_104, %c0_105] : memref<2x8x32xf32, #tpu.memory_space<vmem>>, vector<1x8x32xf32>
    %223 = vector.shape_cast %222 : vector<1x8x32xf32> to vector<8x32xf32>
    %224 = vector.extract_strided_slice %223 {offsets = [0, 0], sizes = [1, 32], strides = [1, 1]} : vector<8x32xf32> to vector<1x32xf32>
    %225 = vector.extract_strided_slice %223 {offsets = [1, 0], sizes = [1, 32], strides = [1, 1]} : vector<8x32xf32> to vector<1x32xf32>
    %226 = vector.extract_strided_slice %223 {offsets = [2, 0], sizes = [1, 32], strides = [1, 1]} : vector<8x32xf32> to vector<1x32xf32>
    %227 = vector.extract_strided_slice %223 {offsets = [3, 0], sizes = [1, 32], strides = [1, 1]} : vector<8x32xf32> to vector<1x32xf32>
    %228 = vector.extract_strided_slice %223 {offsets = [4, 0], sizes = [1, 32], strides = [1, 1]} : vector<8x32xf32> to vector<1x32xf32>
    %229 = vector.extract_strided_slice %223 {offsets = [5, 0], sizes = [1, 32], strides = [1, 1]} : vector<8x32xf32> to vector<1x32xf32>
    %cst_106 = arith.constant dense<0.000000e+00> : vector<40xf32>
    %230 = vector.multi_reduction <add>, %221, %cst_106 [1] : vector<40x32xf32> to vector<40xf32>
    %231 = vector.shape_cast %230 : vector<40xf32> to vector<40x1xf32>
    %cst_107 = arith.constant 3.200000e+01 : f32
    %232 = vector.broadcast %cst_107 : f32 to vector<40x1xf32>
    %233 = arith.divf %231, %232 : vector<40x1xf32>
    %234 = vector.broadcast %233 : vector<40x1xf32> to vector<40x32xf32>
    %235 = arith.subf %221, %234 : vector<40x32xf32>
    %236 = arith.mulf %235, %235 : vector<40x32xf32>
    %cst_108 = arith.constant dense<0.000000e+00> : vector<40xf32>
    %237 = vector.multi_reduction <add>, %236, %cst_108 [1] : vector<40x32xf32> to vector<40xf32>
    %238 = vector.shape_cast %237 : vector<40xf32> to vector<40x1xf32>
    %cst_109 = arith.constant 3.200000e+01 : f32
    %239 = vector.broadcast %cst_109 : f32 to vector<40x1xf32>
    %240 = arith.divf %238, %239 : vector<40x1xf32>
    %cst_110 = arith.constant 9.99999997E-7 : f32
    %241 = vector.broadcast %cst_110 : f32 to vector<40x1xf32>
    %242 = arith.addf %240, %241 : vector<40x1xf32>
    %243 = math.rsqrt %242 : vector<40x1xf32>
    %244 = vector.broadcast %243 : vector<40x1xf32> to vector<40x32xf32>
    %245 = arith.mulf %235, %244 : vector<40x32xf32>
    %246 = vector.broadcast %224 : vector<1x32xf32> to vector<40x32xf32>
    %247 = arith.mulf %245, %246 : vector<40x32xf32>
    %248 = vector.broadcast %225 : vector<1x32xf32> to vector<40x32xf32>
    %249 = arith.addf %247, %248 : vector<40x32xf32>
    %c1_111 = arith.constant 1 : index
    %c0_112 = arith.constant 0 : index
    %c0_113 = arith.constant 0 : index
    %250 = vector.load %arg7[%c1_111, %c0_112, %c0_113] : memref<2x32x96xf32, #tpu.memory_space<vmem>>, vector<1x32x96xf32>
    %251 = vector.shape_cast %250 : vector<1x32x96xf32> to vector<32x96xf32>
    %cst_114 = arith.constant dense<0.000000e+00> : vector<40x96xf32>
    %252 = tpu.matmul %249, %251, %cst_114 {dimension_numbers = #tpu.dot_dimension_numbers<[1], [0], [0], [1], [0, 0, 1, 1], [], []>} : vector<40x32xf32>, vector<32x96xf32>, vector<40x96xf32> -> vector<40x96xf32>
    %c1_115 = arith.constant 1 : index
    %c0_116 = arith.constant 0 : index
    %c0_117 = arith.constant 0 : index
    %253 = vector.load %arg8[%c1_115, %c0_116, %c0_117] : memref<2x1x96xf32, #tpu.memory_space<vmem>>, vector<1x1x96xf32>
    %254 = vector.shape_cast %253 : vector<1x1x96xf32> to vector<1x96xf32>
    %255 = vector.broadcast %254 : vector<1x96xf32> to vector<40x96xf32>
    %256 = arith.addf %252, %255 : vector<40x96xf32>
    %c1_118 = arith.constant 1 : index
    %257 = memref.load %arg1[%c1_118] : memref<2xf32, #tpu.memory_space<smem>>
    %258 = vector.extract_strided_slice %256 {offsets = [0, 0], sizes = [40, 8], strides = [1, 1]} : vector<40x96xf32> to vector<40x8xf32>
    %259 = vector.extract_strided_slice %256 {offsets = [0, 32], sizes = [40, 8], strides = [1, 1]} : vector<40x96xf32> to vector<40x8xf32>
    %260 = vector.extract_strided_slice %256 {offsets = [0, 64], sizes = [40, 8], strides = [1, 1]} : vector<40x96xf32> to vector<40x8xf32>
    %cst_119 = arith.constant dense<0.000000e+00> : vector<40x40xf32>
    %261 = tpu.matmul %258, %259, %cst_119 {dimension_numbers = #tpu.dot_dimension_numbers<[1], [1], [0], [0], [0, 0, 1, 0], [], []>} : vector<40x8xf32>, vector<40x8xf32>, vector<40x40xf32> -> vector<40x40xf32>
    %cst_120 = arith.constant 0.353553385 : f32
    %262 = vector.broadcast %cst_120 : f32 to vector<40x40xf32>
    %263 = arith.mulf %261, %262 : vector<40x40xf32>
    %c0_121 = arith.constant 0 : index
    %c0_122 = arith.constant 0 : index
    %264 = vector.load %arg3[%c0_121, %c0_122] : memref<40x40xf32, #tpu.memory_space<vmem>>, vector<40x40xf32>
    %265 = arith.addf %263, %264 : vector<40x40xf32>
    %cst_123 = arith.constant dense<0xFF800000> : vector<40xf32>
    %266 = vector.multi_reduction <maximumf>, %265, %cst_123 [1] : vector<40x40xf32> to vector<40xf32>
    %267 = vector.shape_cast %266 : vector<40xf32> to vector<40x1xf32>
    %268 = vector.broadcast %267 : vector<40x1xf32> to vector<40x40xf32>
    %269 = arith.subf %265, %268 : vector<40x40xf32>
    %270 = math.exp %269 : vector<40x40xf32>
    %cst_124 = arith.constant dense<0.000000e+00> : vector<40xf32>
    %271 = vector.multi_reduction <add>, %270, %cst_124 [1] : vector<40x40xf32> to vector<40xf32>
    %272 = vector.shape_cast %271 : vector<40xf32> to vector<40x1xf32>
    %273 = vector.broadcast %272 : vector<40x1xf32> to vector<40x40xf32>
    %274 = arith.divf %270, %273 : vector<40x40xf32>
    %cst_125 = arith.constant dense<0.000000e+00> : vector<40x8xf32>
    %275 = tpu.matmul %274, %260, %cst_125 {dimension_numbers = #tpu.dot_dimension_numbers<[1], [0], [0], [1], [0, 0, 1, 1], [], []>} : vector<40x40xf32>, vector<40x8xf32>, vector<40x8xf32> -> vector<40x8xf32>
    %276 = arith.subf %260, %275 : vector<40x8xf32>
    %277 = arith.mulf %276, %276 : vector<40x8xf32>
    %cst_126 = arith.constant dense<0.000000e+00> : vector<40x8xf32>
    %278 = tpu.matmul %274, %277, %cst_126 {dimension_numbers = #tpu.dot_dimension_numbers<[1], [0], [0], [1], [0, 0, 1, 1], [], []>} : vector<40x40xf32>, vector<40x8xf32>, vector<40x8xf32> -> vector<40x8xf32>
    %279 = vector.broadcast %257 : f32 to vector<40x8xf32>
    %280 = arith.addf %279, %278 : vector<40x8xf32>
    %c0_127 = arith.constant 0 : index
    %c0_128 = arith.constant 0 : index
    %281 = vector.load %arg19[%c0_127, %c0_128] : memref<40x32xf32, #tpu.memory_space<vmem>>, vector<40x8xf32>
    tpu.vector_store %arg19[%c0_127, %c0_128], %275 {strides = array<i32>} : memref<40x32xf32, #tpu.memory_space<vmem>>, vector<40x8xf32>,
    %c0_129 = arith.constant 0 : index
    %c0_130 = arith.constant 0 : index
    %282 = vector.load %arg20[%c0_129, %c0_130] : memref<40x32xf32, #tpu.memory_space<vmem>>, vector<40x8xf32>
    tpu.vector_store %arg20[%c0_129, %c0_130], %280 {strides = array<i32>} : memref<40x32xf32, #tpu.memory_space<vmem>>, vector<40x8xf32>,
    %283 = vector.extract_strided_slice %256 {offsets = [0, 8], sizes = [40, 8], strides = [1, 1]} : vector<40x96xf32> to vector<40x8xf32>
    %284 = vector.extract_strided_slice %256 {offsets = [0, 40], sizes = [40, 8], strides = [1, 1]} : vector<40x96xf32> to vector<40x8xf32>
    %285 = vector.extract_strided_slice %256 {offsets = [0, 72], sizes = [40, 8], strides = [1, 1]} : vector<40x96xf32> to vector<40x8xf32>
    %cst_131 = arith.constant dense<0.000000e+00> : vector<40x40xf32>
    %286 = tpu.matmul %283, %284, %cst_131 {dimension_numbers = #tpu.dot_dimension_numbers<[1], [1], [0], [0], [0, 0, 1, 0], [], []>} : vector<40x8xf32>, vector<40x8xf32>, vector<40x40xf32> -> vector<40x40xf32>
    %cst_132 = arith.constant 0.353553385 : f32
    %287 = vector.broadcast %cst_132 : f32 to vector<40x40xf32>
    %288 = arith.mulf %286, %287 : vector<40x40xf32>
    %c0_133 = arith.constant 0 : index
    %c0_134 = arith.constant 0 : index
    %289 = vector.load %arg3[%c0_133, %c0_134] : memref<40x40xf32, #tpu.memory_space<vmem>>, vector<40x40xf32>
    %290 = arith.addf %288, %289 : vector<40x40xf32>
    %cst_135 = arith.constant dense<0xFF800000> : vector<40xf32>
    %291 = vector.multi_reduction <maximumf>, %290, %cst_135 [1] : vector<40x40xf32> to vector<40xf32>
    %292 = vector.shape_cast %291 : vector<40xf32> to vector<40x1xf32>
    %293 = vector.broadcast %292 : vector<40x1xf32> to vector<40x40xf32>
    %294 = arith.subf %290, %293 : vector<40x40xf32>
    %295 = math.exp %294 : vector<40x40xf32>
    %cst_136 = arith.constant dense<0.000000e+00> : vector<40xf32>
    %296 = vector.multi_reduction <add>, %295, %cst_136 [1] : vector<40x40xf32> to vector<40xf32>
    %297 = vector.shape_cast %296 : vector<40xf32> to vector<40x1xf32>
    %298 = vector.broadcast %297 : vector<40x1xf32> to vector<40x40xf32>
    %299 = arith.divf %295, %298 : vector<40x40xf32>
    %cst_137 = arith.constant dense<0.000000e+00> : vector<40x8xf32>
    %300 = tpu.matmul %299, %285, %cst_137 {dimension_numbers = #tpu.dot_dimension_numbers<[1], [0], [0], [1], [0, 0, 1, 1], [], []>} : vector<40x40xf32>, vector<40x8xf32>, vector<40x8xf32> -> vector<40x8xf32>
    %301 = arith.subf %285, %300 : vector<40x8xf32>
    %302 = arith.mulf %301, %301 : vector<40x8xf32>
    %cst_138 = arith.constant dense<0.000000e+00> : vector<40x8xf32>
    %303 = tpu.matmul %299, %302, %cst_138 {dimension_numbers = #tpu.dot_dimension_numbers<[1], [0], [0], [1], [0, 0, 1, 1], [], []>} : vector<40x40xf32>, vector<40x8xf32>, vector<40x8xf32> -> vector<40x8xf32>
    %304 = vector.broadcast %257 : f32 to vector<40x8xf32>
    %305 = arith.addf %304, %303 : vector<40x8xf32>
    %c0_139 = arith.constant 0 : index
    %c8_140 = arith.constant 8 : index
    %306 = vector.load %arg19[%c0_139, %c8_140] : memref<40x32xf32, #tpu.memory_space<vmem>>, vector<40x8xf32>
    tpu.vector_store %arg19[%c0_139, %c8_140], %300 {strides = array<i32>} : memref<40x32xf32, #tpu.memory_space<vmem>>, vector<40x8xf32>,
    %c0_141 = arith.constant 0 : index
    %c8_142 = arith.constant 8 : index
    %307 = vector.load %arg20[%c0_141, %c8_142] : memref<40x32xf32, #tpu.memory_space<vmem>>, vector<40x8xf32>
    tpu.vector_store %arg20[%c0_141, %c8_142], %305 {strides = array<i32>} : memref<40x32xf32, #tpu.memory_space<vmem>>, vector<40x8xf32>,
    %308 = vector.extract_strided_slice %256 {offsets = [0, 16], sizes = [40, 8], strides = [1, 1]} : vector<40x96xf32> to vector<40x8xf32>
    %309 = vector.extract_strided_slice %256 {offsets = [0, 48], sizes = [40, 8], strides = [1, 1]} : vector<40x96xf32> to vector<40x8xf32>
    %310 = vector.extract_strided_slice %256 {offsets = [0, 80], sizes = [40, 8], strides = [1, 1]} : vector<40x96xf32> to vector<40x8xf32>
    %cst_143 = arith.constant dense<0.000000e+00> : vector<40x40xf32>
    %311 = tpu.matmul %308, %309, %cst_143 {dimension_numbers = #tpu.dot_dimension_numbers<[1], [1], [0], [0], [0, 0, 1, 0], [], []>} : vector<40x8xf32>, vector<40x8xf32>, vector<40x40xf32> -> vector<40x40xf32>
    %cst_144 = arith.constant 0.353553385 : f32
    %312 = vector.broadcast %cst_144 : f32 to vector<40x40xf32>
    %313 = arith.mulf %311, %312 : vector<40x40xf32>
    %c0_145 = arith.constant 0 : index
    %c0_146 = arith.constant 0 : index
    %314 = vector.load %arg3[%c0_145, %c0_146] : memref<40x40xf32, #tpu.memory_space<vmem>>, vector<40x40xf32>
    %315 = arith.addf %313, %314 : vector<40x40xf32>
    %cst_147 = arith.constant dense<0xFF800000> : vector<40xf32>
    %316 = vector.multi_reduction <maximumf>, %315, %cst_147 [1] : vector<40x40xf32> to vector<40xf32>
    %317 = vector.shape_cast %316 : vector<40xf32> to vector<40x1xf32>
    %318 = vector.broadcast %317 : vector<40x1xf32> to vector<40x40xf32>
    %319 = arith.subf %315, %318 : vector<40x40xf32>
    %320 = math.exp %319 : vector<40x40xf32>
    %cst_148 = arith.constant dense<0.000000e+00> : vector<40xf32>
    %321 = vector.multi_reduction <add>, %320, %cst_148 [1] : vector<40x40xf32> to vector<40xf32>
    %322 = vector.shape_cast %321 : vector<40xf32> to vector<40x1xf32>
    %323 = vector.broadcast %322 : vector<40x1xf32> to vector<40x40xf32>
    %324 = arith.divf %320, %323 : vector<40x40xf32>
    %cst_149 = arith.constant dense<0.000000e+00> : vector<40x8xf32>
    %325 = tpu.matmul %324, %310, %cst_149 {dimension_numbers = #tpu.dot_dimension_numbers<[1], [0], [0], [1], [0, 0, 1, 1], [], []>} : vector<40x40xf32>, vector<40x8xf32>, vector<40x8xf32> -> vector<40x8xf32>
    %326 = arith.subf %310, %325 : vector<40x8xf32>
    %327 = arith.mulf %326, %326 : vector<40x8xf32>
    %cst_150 = arith.constant dense<0.000000e+00> : vector<40x8xf32>
    %328 = tpu.matmul %324, %327, %cst_150 {dimension_numbers = #tpu.dot_dimension_numbers<[1], [0], [0], [1], [0, 0, 1, 1], [], []>} : vector<40x40xf32>, vector<40x8xf32>, vector<40x8xf32> -> vector<40x8xf32>
    %329 = vector.broadcast %257 : f32 to vector<40x8xf32>
    %330 = arith.addf %329, %328 : vector<40x8xf32>
    %c0_151 = arith.constant 0 : index
    %c16_152 = arith.constant 16 : index
    %331 = vector.load %arg19[%c0_151, %c16_152] : memref<40x32xf32, #tpu.memory_space<vmem>>, vector<40x8xf32>
    tpu.vector_store %arg19[%c0_151, %c16_152], %325 {strides = array<i32>} : memref<40x32xf32, #tpu.memory_space<vmem>>, vector<40x8xf32>,
    %c0_153 = arith.constant 0 : index
    %c16_154 = arith.constant 16 : index
    %332 = vector.load %arg20[%c0_153, %c16_154] : memref<40x32xf32, #tpu.memory_space<vmem>>, vector<40x8xf32>
    tpu.vector_store %arg20[%c0_153, %c16_154], %330 {strides = array<i32>} : memref<40x32xf32, #tpu.memory_space<vmem>>, vector<40x8xf32>,
    %333 = vector.extract_strided_slice %256 {offsets = [0, 24], sizes = [40, 8], strides = [1, 1]} : vector<40x96xf32> to vector<40x8xf32>
    %334 = vector.extract_strided_slice %256 {offsets = [0, 56], sizes = [40, 8], strides = [1, 1]} : vector<40x96xf32> to vector<40x8xf32>
    %335 = vector.extract_strided_slice %256 {offsets = [0, 88], sizes = [40, 8], strides = [1, 1]} : vector<40x96xf32> to vector<40x8xf32>
    %cst_155 = arith.constant dense<0.000000e+00> : vector<40x40xf32>
    %336 = tpu.matmul %333, %334, %cst_155 {dimension_numbers = #tpu.dot_dimension_numbers<[1], [1], [0], [0], [0, 0, 1, 0], [], []>} : vector<40x8xf32>, vector<40x8xf32>, vector<40x40xf32> -> vector<40x40xf32>
    %cst_156 = arith.constant 0.353553385 : f32
    %337 = vector.broadcast %cst_156 : f32 to vector<40x40xf32>
    %338 = arith.mulf %336, %337 : vector<40x40xf32>
    %c0_157 = arith.constant 0 : index
    %c0_158 = arith.constant 0 : index
    %339 = vector.load %arg3[%c0_157, %c0_158] : memref<40x40xf32, #tpu.memory_space<vmem>>, vector<40x40xf32>
    %340 = arith.addf %338, %339 : vector<40x40xf32>
    %cst_159 = arith.constant dense<0xFF800000> : vector<40xf32>
    %341 = vector.multi_reduction <maximumf>, %340, %cst_159 [1] : vector<40x40xf32> to vector<40xf32>
    %342 = vector.shape_cast %341 : vector<40xf32> to vector<40x1xf32>
    %343 = vector.broadcast %342 : vector<40x1xf32> to vector<40x40xf32>
    %344 = arith.subf %340, %343 : vector<40x40xf32>
    %345 = math.exp %344 : vector<40x40xf32>
    %cst_160 = arith.constant dense<0.000000e+00> : vector<40xf32>
    %346 = vector.multi_reduction <add>, %345, %cst_160 [1] : vector<40x40xf32> to vector<40xf32>
    %347 = vector.shape_cast %346 : vector<40xf32> to vector<40x1xf32>
    %348 = vector.broadcast %347 : vector<40x1xf32> to vector<40x40xf32>
    %349 = arith.divf %345, %348 : vector<40x40xf32>
    %cst_161 = arith.constant dense<0.000000e+00> : vector<40x8xf32>
    %350 = tpu.matmul %349, %335, %cst_161 {dimension_numbers = #tpu.dot_dimension_numbers<[1], [0], [0], [1], [0, 0, 1, 1], [], []>} : vector<40x40xf32>, vector<40x8xf32>, vector<40x8xf32> -> vector<40x8xf32>
    %351 = arith.subf %335, %350 : vector<40x8xf32>
    %352 = arith.mulf %351, %351 : vector<40x8xf32>
    %cst_162 = arith.constant dense<0.000000e+00> : vector<40x8xf32>
    %353 = tpu.matmul %349, %352, %cst_162 {dimension_numbers = #tpu.dot_dimension_numbers<[1], [0], [0], [1], [0, 0, 1, 1], [], []>} : vector<40x40xf32>, vector<40x8xf32>, vector<40x8xf32> -> vector<40x8xf32>
    %354 = vector.broadcast %257 : f32 to vector<40x8xf32>
    %355 = arith.addf %354, %353 : vector<40x8xf32>
    %c0_163 = arith.constant 0 : index
    %c24_164 = arith.constant 24 : index
    %356 = vector.load %arg19[%c0_163, %c24_164] : memref<40x32xf32, #tpu.memory_space<vmem>>, vector<40x8xf32>
    tpu.vector_store %arg19[%c0_163, %c24_164], %350 {strides = array<i32>} : memref<40x32xf32, #tpu.memory_space<vmem>>, vector<40x8xf32>,
    %c0_165 = arith.constant 0 : index
    %c24_166 = arith.constant 24 : index
    %357 = vector.load %arg20[%c0_165, %c24_166] : memref<40x32xf32, #tpu.memory_space<vmem>>, vector<40x8xf32>
    tpu.vector_store %arg20[%c0_165, %c24_166], %355 {strides = array<i32>} : memref<40x32xf32, #tpu.memory_space<vmem>>, vector<40x8xf32>,
    %c0_167 = arith.constant 0 : index
    %c0_168 = arith.constant 0 : index
    %358 = vector.load %arg19[%c0_167, %c0_168] : memref<40x32xf32, #tpu.memory_space<vmem>>, vector<40x32xf32>
    %c1_169 = arith.constant 1 : index
    %c0_170 = arith.constant 0 : index
    %c0_171 = arith.constant 0 : index
    %359 = vector.load %arg9[%c1_169, %c0_170, %c0_171] : memref<2x32x32xf32, #tpu.memory_space<vmem>>, vector<1x32x32xf32>
    %360 = vector.shape_cast %359 : vector<1x32x32xf32> to vector<32x32xf32>
    %cst_172 = arith.constant dense<0.000000e+00> : vector<40x32xf32>
    %361 = tpu.matmul %358, %360, %cst_172 {dimension_numbers = #tpu.dot_dimension_numbers<[1], [0], [0], [1], [0, 0, 1, 1], [], []>} : vector<40x32xf32>, vector<32x32xf32>, vector<40x32xf32> -> vector<40x32xf32>
    %362 = vector.broadcast %228 : vector<1x32xf32> to vector<40x32xf32>
    %363 = arith.addf %361, %362 : vector<40x32xf32>
    %c0_173 = arith.constant 0 : index
    %c0_174 = arith.constant 0 : index
    %364 = vector.load %arg20[%c0_173, %c0_174] : memref<40x32xf32, #tpu.memory_space<vmem>>, vector<40x32xf32>
    %c1_175 = arith.constant 1 : index
    %c0_176 = arith.constant 0 : index
    %c0_177 = arith.constant 0 : index
    %365 = vector.load %arg10[%c1_175, %c0_176, %c0_177] : memref<2x32x32xf32, #tpu.memory_space<vmem>>, vector<1x32x32xf32>
    %366 = vector.shape_cast %365 : vector<1x32x32xf32> to vector<32x32xf32>
    %cst_178 = arith.constant dense<0.000000e+00> : vector<40x32xf32>
    %367 = tpu.matmul %364, %366, %cst_178 {dimension_numbers = #tpu.dot_dimension_numbers<[1], [0], [0], [1], [0, 0, 1, 1], [], []>} : vector<40x32xf32>, vector<32x32xf32>, vector<40x32xf32> -> vector<40x32xf32>
    %368 = arith.addf %363, %221 : vector<40x32xf32>
    %cst_179 = arith.constant dense<0.000000e+00> : vector<40xf32>
    %369 = vector.multi_reduction <add>, %368, %cst_179 [1] : vector<40x32xf32> to vector<40xf32>
    %370 = vector.shape_cast %369 : vector<40xf32> to vector<40x1xf32>
    %cst_180 = arith.constant 3.200000e+01 : f32
    %371 = vector.broadcast %cst_180 : f32 to vector<40x1xf32>
    %372 = arith.divf %370, %371 : vector<40x1xf32>
    %373 = vector.broadcast %372 : vector<40x1xf32> to vector<40x32xf32>
    %374 = arith.subf %368, %373 : vector<40x32xf32>
    %375 = arith.mulf %374, %374 : vector<40x32xf32>
    %cst_181 = arith.constant dense<0.000000e+00> : vector<40xf32>
    %376 = vector.multi_reduction <add>, %375, %cst_181 [1] : vector<40x32xf32> to vector<40xf32>
    %377 = vector.shape_cast %376 : vector<40xf32> to vector<40x1xf32>
    %cst_182 = arith.constant 3.200000e+01 : f32
    %378 = vector.broadcast %cst_182 : f32 to vector<40x1xf32>
    %379 = arith.divf %377, %378 : vector<40x1xf32>
    %cst_183 = arith.constant 9.99999997E-7 : f32
    %380 = vector.broadcast %cst_183 : f32 to vector<40x1xf32>
    %381 = arith.addf %379, %380 : vector<40x1xf32>
    %382 = math.rsqrt %381 : vector<40x1xf32>
    %383 = vector.broadcast %382 : vector<40x1xf32> to vector<40x32xf32>
    %384 = arith.mulf %374, %383 : vector<40x32xf32>
    %385 = vector.broadcast %226 : vector<1x32xf32> to vector<40x32xf32>
    %386 = arith.mulf %384, %385 : vector<40x32xf32>
    %387 = vector.broadcast %227 : vector<1x32xf32> to vector<40x32xf32>
    %388 = arith.addf %386, %387 : vector<40x32xf32>
    %c1_184 = arith.constant 1 : index
    %c0_185 = arith.constant 0 : index
    %c0_186 = arith.constant 0 : index
    %389 = vector.load %arg11[%c1_184, %c0_185, %c0_186] : memref<2x32x64xf32, #tpu.memory_space<vmem>>, vector<1x32x64xf32>
    %390 = vector.shape_cast %389 : vector<1x32x64xf32> to vector<32x64xf32>
    %cst_187 = arith.constant dense<0.000000e+00> : vector<40x64xf32>
    %391 = tpu.matmul %388, %390, %cst_187 {dimension_numbers = #tpu.dot_dimension_numbers<[1], [0], [0], [1], [0, 0, 1, 1], [], []>} : vector<40x32xf32>, vector<32x64xf32>, vector<40x64xf32> -> vector<40x64xf32>
    %c1_188 = arith.constant 1 : index
    %c0_189 = arith.constant 0 : index
    %c0_190 = arith.constant 0 : index
    %392 = vector.load %arg12[%c1_188, %c0_189, %c0_190] : memref<2x1x64xf32, #tpu.memory_space<vmem>>, vector<1x1x64xf32>
    %393 = vector.shape_cast %392 : vector<1x1x64xf32> to vector<1x64xf32>
    %394 = vector.broadcast %393 : vector<1x64xf32> to vector<40x64xf32>
    %395 = arith.addf %391, %394 : vector<40x64xf32>
    %cst_191 = arith.constant 5.000000e-01 : f32
    %396 = vector.broadcast %cst_191 : f32 to vector<40x64xf32>
    %397 = arith.mulf %396, %395 : vector<40x64xf32>
    %cst_192 = arith.constant 0.707106769 : f32
    %398 = vector.broadcast %cst_192 : f32 to vector<40x64xf32>
    %399 = arith.mulf %395, %398 : vector<40x64xf32>
    %400 = math.absf %399 : vector<40x64xf32>
    %cst_193 = arith.constant 0.327591091 : f32
    %401 = vector.broadcast %cst_193 : f32 to vector<40x64xf32>
    %402 = arith.mulf %401, %400 : vector<40x64xf32>
    %cst_194 = arith.constant 1.000000e+00 : f32
    %403 = vector.broadcast %cst_194 : f32 to vector<40x64xf32>
    %404 = arith.addf %403, %402 : vector<40x64xf32>
    %cst_195 = arith.constant 1.000000e+00 : f32
    %405 = vector.broadcast %cst_195 : f32 to vector<40x64xf32>
    %406 = arith.divf %405, %404 : vector<40x64xf32>
    %cst_196 = arith.constant 1.06140542 : f32
    %407 = vector.broadcast %cst_196 : f32 to vector<40x64xf32>
    %408 = arith.mulf %406, %407 : vector<40x64xf32>
    %cst_197 = arith.constant -1.45315206 : f32
    %409 = vector.broadcast %cst_197 : f32 to vector<40x64xf32>
    %410 = arith.addf %409, %408 : vector<40x64xf32>
    %411 = arith.mulf %406, %410 : vector<40x64xf32>
    %cst_198 = arith.constant 1.42141378 : f32
    %412 = vector.broadcast %cst_198 : f32 to vector<40x64xf32>
    %413 = arith.addf %412, %411 : vector<40x64xf32>
    %414 = arith.mulf %406, %413 : vector<40x64xf32>
    %cst_199 = arith.constant -0.284496725 : f32
    %415 = vector.broadcast %cst_199 : f32 to vector<40x64xf32>
    %416 = arith.addf %415, %414 : vector<40x64xf32>
    %417 = arith.mulf %406, %416 : vector<40x64xf32>
    %cst_200 = arith.constant 0.254829586 : f32
    %418 = vector.broadcast %cst_200 : f32 to vector<40x64xf32>
    %419 = arith.addf %418, %417 : vector<40x64xf32>
    %420 = arith.mulf %406, %419 : vector<40x64xf32>
    %cst_201 = arith.constant 0.000000e+00 : f32
    %421 = vector.broadcast %cst_201 : f32 to vector<40x64xf32>
    %422 = arith.subf %421, %400 : vector<40x64xf32>
    %423 = arith.mulf %422, %400 : vector<40x64xf32>
    %424 = math.exp %423 : vector<40x64xf32>
    %425 = arith.mulf %420, %424 : vector<40x64xf32>
    %cst_202 = arith.constant 1.000000e+00 : f32
    %426 = vector.broadcast %cst_202 : f32 to vector<40x64xf32>
    %427 = arith.subf %426, %425 : vector<40x64xf32>
    %cst_203 = arith.constant 0.000000e+00 : f32
    %428 = vector.broadcast %cst_203 : f32 to vector<40x64xf32>
    %429 = arith.cmpf oge, %399, %428 : vector<40x64xf32>
    %cst_204 = arith.constant 0.000000e+00 : f32
    %430 = vector.broadcast %cst_204 : f32 to vector<40x64xf32>
    %431 = arith.subf %430, %427 : vector<40x64xf32>
    %432 = arith.select %429, %427, %431 : vector<40x64xi1>, vector<40x64xf32>
    %cst_205 = arith.constant 1.000000e+00 : f32
    %433 = vector.broadcast %cst_205 : f32 to vector<40x64xf32>
    %434 = arith.addf %433, %432 : vector<40x64xf32>
    %435 = arith.mulf %397, %434 : vector<40x64xf32>
    %c1_206 = arith.constant 1 : index
    %c0_207 = arith.constant 0 : index
    %c0_208 = arith.constant 0 : index
    %436 = vector.load %arg13[%c1_206, %c0_207, %c0_208] : memref<2x64x32xf32, #tpu.memory_space<vmem>>, vector<1x64x32xf32>
    %437 = vector.shape_cast %436 : vector<1x64x32xf32> to vector<64x32xf32>
    %cst_209 = arith.constant dense<0.000000e+00> : vector<40x32xf32>
    %438 = tpu.matmul %435, %437, %cst_209 {dimension_numbers = #tpu.dot_dimension_numbers<[1], [0], [0], [1], [0, 0, 1, 1], [], []>} : vector<40x64xf32>, vector<64x32xf32>, vector<40x32xf32> -> vector<40x32xf32>
    %439 = vector.broadcast %229 : vector<1x32xf32> to vector<40x32xf32>
    %440 = arith.addf %438, %439 : vector<40x32xf32>
    %441 = arith.addf %440, %368 : vector<40x32xf32>
    %c0_210 = arith.constant 0 : index
    %c0_211 = arith.constant 0 : index
    %442 = vector.load %arg14[%c0_210, %c0_211] : memref<2x32xf32, #tpu.memory_space<vmem>>, vector<2x32xf32>
    %443 = vector.extract_strided_slice %441 {offsets = [0, 0], sizes = [8, 32], strides = [1, 1]} : vector<40x32xf32> to vector<8x32xf32>
    %444 = vector.extract_strided_slice %442 {offsets = [0, 0], sizes = [1, 32], strides = [1, 1]} : vector<2x32xf32> to vector<1x32xf32>
    %445 = vector.extract_strided_slice %442 {offsets = [1, 0], sizes = [1, 32], strides = [1, 1]} : vector<2x32xf32> to vector<1x32xf32>
    %cst_212 = arith.constant dense<0.000000e+00> : vector<8xf32>
    %446 = vector.multi_reduction <add>, %443, %cst_212 [1] : vector<8x32xf32> to vector<8xf32>
    %447 = vector.shape_cast %446 : vector<8xf32> to vector<8x1xf32>
    %cst_213 = arith.constant 3.200000e+01 : f32
    %448 = vector.broadcast %cst_213 : f32 to vector<8x1xf32>
    %449 = arith.divf %447, %448 : vector<8x1xf32>
    %450 = vector.broadcast %449 : vector<8x1xf32> to vector<8x32xf32>
    %451 = arith.subf %443, %450 : vector<8x32xf32>
    %452 = arith.mulf %451, %451 : vector<8x32xf32>
    %cst_214 = arith.constant dense<0.000000e+00> : vector<8xf32>
    %453 = vector.multi_reduction <add>, %452, %cst_214 [1] : vector<8x32xf32> to vector<8xf32>
    %454 = vector.shape_cast %453 : vector<8xf32> to vector<8x1xf32>
    %cst_215 = arith.constant 3.200000e+01 : f32
    %455 = vector.broadcast %cst_215 : f32 to vector<8x1xf32>
    %456 = arith.divf %454, %455 : vector<8x1xf32>
    %cst_216 = arith.constant 9.99999997E-7 : f32
    %457 = vector.broadcast %cst_216 : f32 to vector<8x1xf32>
    %458 = arith.addf %456, %457 : vector<8x1xf32>
    %459 = math.rsqrt %458 : vector<8x1xf32>
    %460 = vector.broadcast %459 : vector<8x1xf32> to vector<8x32xf32>
    %461 = arith.mulf %451, %460 : vector<8x32xf32>
    %462 = vector.broadcast %444 : vector<1x32xf32> to vector<8x32xf32>
    %463 = arith.mulf %461, %462 : vector<8x32xf32>
    %464 = vector.broadcast %445 : vector<1x32xf32> to vector<8x32xf32>
    %465 = arith.addf %463, %464 : vector<8x32xf32>
    %466 = vector.extract_strided_slice %363 {offsets = [0, 0], sizes = [8, 32], strides = [1, 1]} : vector<40x32xf32> to vector<8x32xf32>
    %467 = vector.extract_strided_slice %367 {offsets = [0, 0], sizes = [8, 32], strides = [1, 1]} : vector<40x32xf32> to vector<8x32xf32>
    %468 = tpu.concatenate %465, %466 in 0 : vector<8x32xf32>, vector<8x32xf32> -> vector<16x32xf32>
    %c0_217 = arith.constant 0 : index
    %c0_218 = arith.constant 0 : index
    %469 = vector.load %arg15[%c0_217, %c0_218] : memref<32x10xf32, #tpu.memory_space<vmem>>, vector<32x10xf32>
    %cst_219 = arith.constant dense<0.000000e+00> : vector<16x10xf32>
    %470 = tpu.matmul %468, %469, %cst_219 {dimension_numbers = #tpu.dot_dimension_numbers<[1], [0], [0], [1], [0, 0, 1, 1], [], []>} : vector<16x32xf32>, vector<32x10xf32>, vector<16x10xf32> -> vector<16x10xf32>
    %c0_220 = arith.constant 0 : index
    %c0_221 = arith.constant 0 : index
    %471 = vector.load %arg17[%c0_220, %c0_221] : memref<1x10xf32, #tpu.memory_space<vmem>>, vector<1x10xf32>
    %472 = vector.broadcast %471 : vector<1x10xf32> to vector<16x10xf32>
    %473 = arith.addf %470, %472 : vector<16x10xf32>
    %c0_222 = arith.constant 0 : index
    %c0_223 = arith.constant 0 : index
    %474 = vector.load %arg16[%c0_222, %c0_223] : memref<32x10xf32, #tpu.memory_space<vmem>>, vector<32x10xf32>
    %cst_224 = arith.constant dense<0.000000e+00> : vector<8x10xf32>
    %475 = tpu.matmul %467, %474, %cst_224 {dimension_numbers = #tpu.dot_dimension_numbers<[1], [0], [0], [1], [0, 0, 1, 1], [], []>} : vector<8x32xf32>, vector<32x10xf32>, vector<8x10xf32> -> vector<8x10xf32>
    %476 = math.sqrt %475 : vector<8x10xf32>
    %477 = vector.extract_strided_slice %473 {offsets = [0, 0], sizes = [8, 10], strides = [1, 1]} : vector<16x10xf32> to vector<8x10xf32>
    %478 = vector.extract_strided_slice %473 {offsets = [8, 0], sizes = [8, 10], strides = [1, 1]} : vector<16x10xf32> to vector<8x10xf32>
    %479 = tpu.concatenate %477, %478, %476 in 1 : vector<8x10xf32>, vector<8x10xf32>, vector<8x10xf32> -> vector<8x30xf32>
    %c0_225 = arith.constant 0 : index
    %c0_226 = arith.constant 0 : index
    %480 = vector.load %arg18[%c0_225, %c0_226] : memref<8x30xf32, #tpu.memory_space<vmem>>, vector<8x30xf32>
    tpu.vector_store %arg18[%c0_225, %c0_226], %479 {strides = array<i32>} : memref<8x30xf32, #tpu.memory_space<vmem>>, vector<8x30xf32>,
    return
  }
  func.func @transform_0(%arg0: i32) -> i32 {
    %c0_i32 = arith.constant 0 : i32
    %c0_i32_0 = arith.constant 0 : i32
    return %c0_i32 : i32
  }
  func.func @transform_1(%arg0: i32) -> (i32, i32, i32) {
    %c0_i32 = arith.constant 0 : i32
    %c0_i32_0 = arith.constant 0 : i32
    %c0_i32_1 = arith.constant 0 : i32
    return %arg0, %c0_i32, %c0_i32_0 : i32, i32, i32
  }
  func.func @transform_2(%arg0: i32) -> (i32, i32) {
    %c0_i32 = arith.constant 0 : i32
    %c0_i32_0 = arith.constant 0 : i32
    %c0_i32_1 = arith.constant 0 : i32
    return %c0_i32, %c0_i32_0 : i32, i32
  }
  func.func @transform_3(%arg0: i32) -> (i32, i32) {
    %c0_i32 = arith.constant 0 : i32
    %c0_i32_0 = arith.constant 0 : i32
    %c0_i32_1 = arith.constant 0 : i32
    return %c0_i32, %c0_i32_0 : i32, i32
  }
  func.func @transform_4(%arg0: i32) -> (i32, i32) {
    %c0_i32 = arith.constant 0 : i32
    %c0_i32_0 = arith.constant 0 : i32
    %c0_i32_1 = arith.constant 0 : i32
    return %c0_i32, %c0_i32_0 : i32, i32
  }
  func.func @transform_5(%arg0: i32) -> (i32, i32, i32) {
    %c0_i32 = arith.constant 0 : i32
    %c0_i32_0 = arith.constant 0 : i32
    %c0_i32_1 = arith.constant 0 : i32
    %c0_i32_2 = arith.constant 0 : i32
    return %c0_i32, %c0_i32_0, %c0_i32_1 : i32, i32, i32
  }
  func.func @transform_6(%arg0: i32) -> (i32, i32, i32) {
    %c0_i32 = arith.constant 0 : i32
    %c0_i32_0 = arith.constant 0 : i32
    %c0_i32_1 = arith.constant 0 : i32
    %c0_i32_2 = arith.constant 0 : i32
    return %c0_i32, %c0_i32_0, %c0_i32_1 : i32, i32, i32
  }
  func.func @transform_7(%arg0: i32) -> (i32, i32, i32) {
    %c0_i32 = arith.constant 0 : i32
    %c0_i32_0 = arith.constant 0 : i32
    %c0_i32_1 = arith.constant 0 : i32
    %c0_i32_2 = arith.constant 0 : i32
    return %c0_i32, %c0_i32_0, %c0_i32_1 : i32, i32, i32
  }
  func.func @transform_8(%arg0: i32) -> (i32, i32, i32) {
    %c0_i32 = arith.constant 0 : i32
    %c0_i32_0 = arith.constant 0 : i32
    %c0_i32_1 = arith.constant 0 : i32
    %c0_i32_2 = arith.constant 0 : i32
    return %c0_i32, %c0_i32_0, %c0_i32_1 : i32, i32, i32
  }
  func.func @transform_9(%arg0: i32) -> (i32, i32, i32) {
    %c0_i32 = arith.constant 0 : i32
    %c0_i32_0 = arith.constant 0 : i32
    %c0_i32_1 = arith.constant 0 : i32
    %c0_i32_2 = arith.constant 0 : i32
    return %c0_i32, %c0_i32_0, %c0_i32_1 : i32, i32, i32
  }
  func.func @transform_10(%arg0: i32) -> (i32, i32, i32) {
    %c0_i32 = arith.constant 0 : i32
    %c0_i32_0 = arith.constant 0 : i32
    %c0_i32_1 = arith.constant 0 : i32
    %c0_i32_2 = arith.constant 0 : i32
    return %c0_i32, %c0_i32_0, %c0_i32_1 : i32, i32, i32
  }
  func.func @transform_11(%arg0: i32) -> (i32, i32, i32) {
    %c0_i32 = arith.constant 0 : i32
    %c0_i32_0 = arith.constant 0 : i32
    %c0_i32_1 = arith.constant 0 : i32
    %c0_i32_2 = arith.constant 0 : i32
    return %c0_i32, %c0_i32_0, %c0_i32_1 : i32, i32, i32
  }
  func.func @transform_12(%arg0: i32) -> (i32, i32, i32) {
    %c0_i32 = arith.constant 0 : i32
    %c0_i32_0 = arith.constant 0 : i32
    %c0_i32_1 = arith.constant 0 : i32
    %c0_i32_2 = arith.constant 0 : i32
    return %c0_i32, %c0_i32_0, %c0_i32_1 : i32, i32, i32
  }
  func.func @transform_13(%arg0: i32) -> (i32, i32) {
    %c0_i32 = arith.constant 0 : i32
    %c0_i32_0 = arith.constant 0 : i32
    %c0_i32_1 = arith.constant 0 : i32
    return %c0_i32, %c0_i32_0 : i32, i32
  }
  func.func @transform_14(%arg0: i32) -> (i32, i32) {
    %c0_i32 = arith.constant 0 : i32
    %c0_i32_0 = arith.constant 0 : i32
    %c0_i32_1 = arith.constant 0 : i32
    return %c0_i32, %c0_i32_0 : i32, i32
  }
  func.func @transform_15(%arg0: i32) -> (i32, i32) {
    %c0_i32 = arith.constant 0 : i32
    %c0_i32_0 = arith.constant 0 : i32
    %c0_i32_1 = arith.constant 0 : i32
    return %c0_i32, %c0_i32_0 : i32, i32
  }
  func.func @transform_16(%arg0: i32) -> (i32, i32) {
    %c0_i32 = arith.constant 0 : i32
    %c0_i32_0 = arith.constant 0 : i32
    %c0_i32_1 = arith.constant 0 : i32
    return %c0_i32, %c0_i32_0 : i32, i32
  }
  func.func @transform_17(%arg0: i32) -> (i32, i32) {
    %c0_i32 = arith.constant 0 : i32
    %c0_i32_0 = arith.constant 0 : i32
    return %arg0, %c0_i32 : i32, i32
  }
}

</mosaic_0001>

<bundles_post_ra>
// kernel: integer_pow.3
= control target key start
LH: loop header
LB: loop body
LE: loop exit
PB: predicated region body
PF: predicated region fallthrough
CT: control target
= control target key end

     0   :  { %s56_s0 = inlined_call_operand.vmem [shape: f32[10,32], index: 0, kind: input, shape index: {}, may-alias: {0,1}]   ;;  %s57_s1 = inlined_call_operand.vmem [shape: f32[10,32], index: 1, kind: input, shape index: {}, may-alias: {0,1}]   ;;  %s58_s2 = inlined_call_operand.vmem [shape: f32[10,32], index: 2, kind: output, shape index: {}]  }
   0x1   :  { %v3_v0 = vld [vmem:[%s56_s0] sm:$0xff]  ;;  %v20_v2 = vld [vmem:[%s56_s0 + $0x8] sm:$0xff] }
   0x2   :  { %v4_v1 = vld [vmem:[%s57_s1] sm:$0xff]  ;;  %v21_v4 = vld [vmem:[%s57_s1 + $0x8] sm:$0xff] }
   0x3   :  { %v7_v3 = vmul.f32 %v4_v1, %v3_v0  ;;  %v16_v5 = vmul.f32 %v21_v4, %v20_v2 }
   0x5   :  { %9 = vst [vmem:[%s58_s2] sm:$0xff] %v7_v3 }
   0x6   :  { %22 = vst [vmem:[%s58_s2 + $0x8] sm:$0xff] %v16_v5 }

// kernel: probformer_forward.1
= control target key start
LH: loop header
LB: loop body
LE: loop exit
PB: predicated region body
PF: predicated region fallthrough
CT: control target
= control target key end

     0   :  { %s8013_s0 = inlined_call_operand.vmem [shape: f32[2], index: 0, kind: input, shape index: {}]   ;;  %s8014_s1 = inlined_call_operand.vmem [shape: f32[1,40,192], index: 1, kind: input, shape index: {}]   ;;  %s8015_s2 = inlined_call_operand.vmem [shape: f32[40,40], index: 2, kind: input, shape index: {}]   ;;  %s8016_s3 = inlined_call_operand.vmem [shape: f32[40,32], index: 3, kind: input, shape index: {}]   ;;  %s8017_s4 = inlined_call_operand.vmem [shape: f32[192,32], index: 4, kind: input, shape index: {}]   ;;  %s8018_s5 = inlined_call_operand.vmem [shape: f32[2,8,32], index: 5, kind: input, shape index: {}]   ;;  %s8019_s6 = inlined_call_operand.vmem [shape: f32[2,32,96], index: 6, kind: input, shape index: {}]   ;;  %s8020_s7 = inlined_call_operand.vmem [shape: f32[2,1,96], index: 7, kind: input, shape index: {}]   ;;  %s8021_s8 = inlined_call_operand.vmem [shape: f32[2,32,32], index: 8, kind: input, shape index: {}]   ;;  %s8022_s9 = inlined_call_operand.vmem [shape: f32[2,32,32], index: 9, kind: input, shape index: {}]   ;;  %s8023_s10 = inlined_call_operand.vmem [shape: f32[2,32,64], index: 10, kind: input, shape index: {}]   ;;  %s8024_s11 = inlined_call_operand.vmem [shape: f32[2,1,64], index: 11, kind: input, shape index: {}]   ;;  %s8025_s12 = inlined_call_operand.vmem [shape: f32[2,64,32], index: 12, kind: input, shape index: {}]   ;;  %s8026_s13 = inlined_call_operand.vmem [shape: f32[2,32], index: 13, kind: input, shape index: {}]   ;;  %s8027_s14 = inlined_call_operand.vmem [shape: f32[32,10], index: 14, kind: input, shape index: {}]   ;;  %s8028_s15 = inlined_call_operand.vmem [shape: f32[32,10], index: 15, kind: input, shape index: {}]   ;;  %s8029_s16 = inlined_call_operand.vmem [shape: f32[1,10], index: 16, kind: input, shape index: {}]   ;;  %s8030_s17 = inlined_call_operand.vmem [shape: f32[8,30], index: 17, kind: output, shape index: {}]  }
   0x1   :  { %8043 = sst [smem:[#allocation17_spill]] %s8013_s0 }
   0x2   :  { %8044 = sst [smem:[#allocation18_spill]] %s8014_s1 }
   0x3   :  { %22 = vsyncpa [#allocation5], 0  ;;  %s8045_s26 = sld [smem:[#allocation17_spill]]  ;;  %s5549_s28 = smov [#allocation4]  }
   0x9   :  { %s28_s27 = sshll.u32 %s8045_s26, 4  ;;  %s29_s27 = int_to_ptr.vmem [resolvable:$true] %s28_s27 }
   0xa   :  { %31 = dma.vmem_to_smem %s29_s27, 16, %s5549_s28, [#allocation5]  }
   0xb   :  { %5547 = dma.done.wait [#allocation5], 16  }
   0xc   :  { %5548 = vsyncadd [#allocation5], 4294967280 }
   0xd   :  { %68 = sfence }
   0xe   :  { %v94_v0 = vld [vmem:[%s8017_s4 + $0x78] sm:$0xff]  ;;  %v93_v1 = vld [vmem:[%s8017_s4 + $0x70] sm:$0xff]  ;;  %v92_v2 = vld [vmem:[%s8017_s4 + $0x68] sm:$0xff]  ;;  %s8046_s22 = sld [smem:[#allocation18_spill]]  ;;  %vm108_vm0 = vcmask 523264   ;;  %vm189_vm1 = vcmask 261120  }
   0xf   :  { %124 = vmatpush.msra.mxu0 %v94_v0  ;;  %v102_v3 = vld [vmem:[%s8017_s4 + $0xb8] sm:$0xff]  ;;  %v91_v4 = vld [vmem:[%s8017_s4 + $0x60] sm:$0xff]  ;;  %v101_v5 = vld [vmem:[%s8017_s4 + $0xb0] sm:$0xff]  ;;  %v5550_v0 = vmov 32.0   ;;  %s5551_s28 = smov 96   ;;  %s5552_s29 = smov 88  }
  0x10   :  { %164 = vmatpush.msra.mxu1 %v102_v3  ;;  %v100_v6 = vld [vmem:[%s8017_s4 + $0xa8] sm:$0xff]  ;;  %v90_v7 = vld [vmem:[%s8017_s4 + $0x58] sm:$0xff]  ;;  %v99_v8 = vld [vmem:[%s8017_s4 + $0xa0] sm:$0xff]  ;;  %5287 = vrcp.f32 %v5550_v0  ;;  %s5554_s25 = smov 64   ;;  %s5555_s26 = smov 56  }
  0x11   :  { %125 = vmatpush.msra.mxu0 %v93_v1  ;;  %v89_v9 = vld [vmem:[%s8017_s4 + $0x50] sm:$0xff]  ;;  %v88_v10 = vld [vmem:[%s8017_s4 + $0x48] sm:$0xff]  ;;  %v98_v11 = vld [vmem:[%s8017_s4 + $0x98] sm:$0xff]  ;;  %s5556_s27 = smov 80   ;;  %s5558_s0 = smov 72  }
  0x12   :  { %165 = vmatpush.msra.mxu1 %v101_v5  ;;  %v97_v12 = vld [vmem:[%s8017_s4 + $0x90] sm:$0xff]  ;;  %v87_v13 = vld [vmem:[%s8017_s4 + $0x40] sm:$0xff]  ;;  %v96_v14 = vld [vmem:[%s8017_s4 + $0x88] sm:$0xff]  ;;  %s8040_s30 = smov 104   ;;  %s8038_s18 = smov 48  }
  0x13   :  { %126 = vmatpush.msra.mxu0 %v92_v2  ;;  %v86_v15 = vld [vmem:[%s8017_s4 + $0x38] sm:$0xff]  ;;  %v95_v16 = vld [vmem:[%s8017_s4 + $0x80] sm:$0xff]  ;;  %v85_v17 = vld [vmem:[%s8017_s4 + $0x30] sm:$0xff]  ;;  %s5561_s21 = smov 40   ;;  %s8036_s23 = smov 8  }
  0x14   :  { %166 = vmatpush.msra.mxu1 %v100_v6  ;;  %v70_v18 = vld [vmem:[%s8046_s22 + $0x8] sm:$0xff]  ;;  %v83_v20 = vld [vmem:[%s8017_s4 + $0x20] sm:$0xff]  ;;  %v82_v21 = vld [vmem:[%s8017_s4 + $0x18] sm:$0xff]  ;;  %s8034_s24 = smov 16   ;;  %s8059_s1 = smov 24  }
  0x15   :  { %127 = vmatpush.msra.mxu0 %v91_v4  ;;  %v84_v19 = vld [vmem:[%s8017_s4 + $0x28] sm:$0xff]  ;;  %v81_v22 = vld [vmem:[%s8017_s4 + $0x10] sm:$0xff]  ;;  %v72_v23 = vld [vmem:[%s8046_s22 + $0x18] sm:$0xff] }
  0x16   :  { %167 = vmatpush.msra.mxu1 %v99_v8  ;;  %v80_v24 = vld [vmem:[%s8017_s4 + $0x8] sm:$0xff]  ;;  %v79_v25 = vld [vmem:[%s8017_s4] sm:$0xff]  ;;  %v71_v28 = vld [vmem:[%s8046_s22 + $0x10] sm:$0xff]  ;;  %v5288_v1 = vpop.eup %5287  ;;  %s5553_s4 = smov 120  }
  0x17   :  { %128 = vmatpush.msra.mxu0 %v90_v7  ;;  %v69_v26 = vld [vmem:[%s8046_s22] sm:$0xff]  ;;  %v74_v27 = vld [vmem:[%s8046_s22 + $0x28] sm:$0xff]  ;;  %v76_v29 = vld [vmem:[%s8046_s22 + $0x38] sm:$0xff]  ;;  %v206_v2 = vmul.f32 32.0, %v5288_v1  ;;  %vm210_vm2 = vweird.f32 %v5288_v1 }
  0x18   :  { %168 = vmatpush.msra.mxu1 %v98_v11  ;;  %v73_v30 = vld [vmem:[%s8046_s22 + $0x20] sm:$0xff]  ;;  %v78_v31 = vld [vmem:[%s8046_s22 + $0x48] sm:$0xff]  ;;  %v75_v32 = vld [vmem:[%s8046_s22 + $0x30] sm:$0xff] }
  0x19   :  { %129 = vmatpush.msra.mxu0 %v89_v9  ;;  %v77_v33 = vld [vmem:[%s8046_s22 + $0x40] sm:$0xff]  ;;  %v104_v41 = vld [vmem:[%s8016_s3 + $0x8] sm:$0xff]  ;;  %v105_v47 = vld [vmem:[%s8016_s3 + $0x10] sm:$0xff]  ;;  %v207_v3 = vsub.f32 1.0, %v206_v2  ;;  %s5557_s22 = smov 112  }
  0x1a   :  { %169 = vmatpush.msra.mxu1 %v97_v12  ;;  %v103_v35 = vld [vmem:[%s8016_s3] sm:$0xff]  ;;  %v106_v52 = vld [vmem:[%s8016_s3 + $0x18] sm:$0xff] }
  0x1b   :  { %130 = vmatpush.msra.mxu0 %v88_v10  ;;  %v107_v58 = vld [vmem:[%s8016_s3 + $0x20] sm:$0xff]  ;;  %v208_v4 = vmul.f32 %v5288_v1, %v207_v3  ;;  %s374_s3 = sld [smem:[#allocation4]] }
  0x1c   :  { %170 = vmatpush.msra.mxu1 %v96_v14 }
  0x1d   :  { %131 = vmatpush.msra.mxu0 %v87_v13  ;;  %v209_v5 = vadd.f32 %v5288_v1, %v208_v4 }
  0x1e   :  { %171 = vmatpush.msra.mxu1 %v95_v16 }
  0x1f   :  { %132 = vmatpush.msra.mxu0 %v86_v15  ;;  %4863 = vmatmul.msk.f32.vlgmr.msra.gmra.mxu1 %vm108_vm0, %v70_v18  ;;  %v5802_v6 = vsel %vm210_vm2, %v5288_v1, %v209_v5 }
  0x21   :  { %133 = vmatpush.msra.mxu0 %v85_v17 }
  0x23   :  { %134 = vmatpush.msra.mxu0 %v84_v19 }
  0x25   :  { %135 = vmatpush.msra.mxu0 %v83_v20 }
  0x27   :  { %136 = vmatpush.msra.mxu0 %v82_v21  ;;  %4864 = vmatmul.msk.f32.gmra.mxu1 %vm108_vm0, %v72_v23 }
  0x29   :  { %137 = vmatpush.msra.mxu0 %v81_v22 }
  0x2b   :  { %138 = vmatpush.msra.mxu0 %v80_v24 }
  0x2d   :  { %139 = vmatpush.msra.mxu0 %v79_v25 }
  0x2e   :  { %140 = vmatmul.f32.vlgmr.msra.gmra.mxu0 %v69_v26 }
  0x2f   :  { %4865 = vmatmul.msk.f32.gmra.mxu1 %vm108_vm0, %v74_v27 }
  0x36   :  { %143 = vmatmul.f32.gmra.mxu0 %v71_v28 }
  0x37   :  { %4866 = vmatmul.msk.f32.gmra.mxu1 %vm108_vm0, %v76_v29 }
  0x3e   :  { %146 = vmatmul.f32.gmra.mxu0 %v73_v30 }
  0x3f   :  { %4867 = vmatmul.msk.f32.gmra.mxu1 %vm108_vm0, %v78_v31 }
  0x46   :  { %149 = vmatmul.f32.gmra.mxu0 %v75_v32  ;;  %v322_v32 = vld [vmem:[%s8019_s6 + $0x18] sm:$0xff] }
  0x47   :  { %354 = vmatpush.msra.mxu2 %v322_v32 }
  0x4e   :  { %152 = vmatmul.f32.gmra.mxu0 %v77_v33  ;;  %v321_v33 = vld [vmem:[%s8019_s6 + $0x10] sm:$0xff] }
  0x4f   :  { %355 = vmatpush.msra.mxu2 %v321_v33 }
  0x9c   :  { %v173_v34 = vpop.f32.mrf.mxu1 }
  0xa4   :  { %v176_v38 = vpop.f32.mrf.mxu1 }
  0xab   :  { %v141_v36 = vpop.f32.mrf.mxu0 }
  0xac   :  { %v142_v37 = vadd.f32 %v141_v36, %v103_v35  ;;  %v179_v45 = vpop.f32.mrf.mxu1  ;;  %v319_v35 = vld [vmem:[%s8019_s6] sm:$0xff] }
  0xae   :  { %v5770_v39 = vadd.f32 %v173_v34, %v142_v37  ;;  %v320_v34 = vld [vmem:[%s8019_s6 + $0x8] sm:$0xff] }
  0xaf   :  { %356 = vmatpush.msra.mxu2 %v320_v34 }
  0xb0   :  { %v190_v40 = vsel %vm189_vm1, %v5770_v39, 0.0 }
  0xb1   :  { %191 = vadd.xlane.f32.xlu0 %v190_v40  ;;  %357 = vmatpush.msra.mxu2 %v319_v35 }
  0xb3   :  { %v144_v42 = vpop.f32.mrf.mxu0 }
  0xb4   :  { %v145_v43 = vadd.f32 %v144_v42, %v104_v41  ;;  %v182_v53 = vpop.f32.mrf.mxu1 }
  0xb6   :  { %v5777_v44 = vadd.f32 %v176_v38, %v145_v43 }
  0xb8   :  { %v193_v46 = vsel %vm189_vm1, %v5777_v44, 0.0 }
  0xb9   :  { %194 = vadd.xlane.f32.xlu0 %v193_v46 }
  0xbb   :  { %v147_v48 = vpop.f32.mrf.mxu0 }
  0xbc   :  { %v148_v49 = vadd.f32 %v147_v48, %v105_v47  ;;  %v185_v60 = vpop.f32.mrf.mxu1 }
  0xbe   :  { %v5784_v50 = vadd.f32 %v179_v45, %v148_v49 }
  0xc0   :  { %v196_v51 = vsel %vm189_vm1, %v5784_v50, 0.0 }
  0xc1   :  { %197 = vadd.xlane.f32.xlu1 %v196_v51 }
  0xc3   :  { %v150_v54 = vpop.f32.mrf.mxu0 }
  0xc4   :  { %v151_v55 = vadd.f32 %v150_v54, %v106_v52  ;;  %v188_v52 = vld [vmem:[%s8018_s5] sm:$0xff] }
  0xc6   :  { %v5791_v56 = vadd.f32 %v182_v53, %v151_v55 }
  0xc8   :  { %v199_v57 = vsel %vm189_vm1, %v5791_v56, 0.0 }
  0xc9   :  { %200 = vadd.xlane.f32.xlu1 %v199_v57 }
  0xcb   :  { %v153_v59 = vpop.f32.mrf.mxu0 }
  0xcc   :  { %v154_v61 = vadd.f32 %v153_v59, %v107_v58  ;;  %v5857_v58 = vperm.slane %v188_v52, 0 }
  0xce   :  { %v5798_v62 = vadd.f32 %v185_v60, %v154_v61 }
  0xd0   :  { %v202_v63 = vsel %vm189_vm1, %v5798_v62, 0.0 }
  0xd1   :  { %203 = vadd.xlane.f32.xlu2 %v202_v63  ;;  %v5860_v63 = vperm.slane %v188_v52, 1  ;;  %v5282_v52 = vld [vmem:[%s8020_s7] ss:$0 sm:$0xff] }
 0x124   :  { %v192_v7 = vpop.xlane.xlu0 %191 }
 0x125   :  { %v212_v8 = vmul.f32 %v5802_v6, %v192_v7 }
 0x127   :  { %v5806_v9 = vsub.f32 %v5770_v39, %v212_v8 }
 0x129   :  { %v222_v10 = vmul.f32 %v5806_v9, %v5806_v9 }
 0x12b   :  { %v227_v11 = vsel %vm189_vm1, %v222_v10, 0.0 }
 0x12c   :  { %228 = vadd.xlane.f32.xlu2 %v227_v11  ;;  %v195_v12 = vpop.xlane.xlu0 %194 }
 0x12d   :  { %v213_v13 = vmul.f32 %v5802_v6, %v195_v12 }
 0x12f   :  { %v5813_v14 = vsub.f32 %v5777_v44, %v213_v13 }
 0x131   :  { %v223_v15 = vmul.f32 %v5813_v14, %v5813_v14 }
 0x133   :  { %v230_v16 = vsel %vm189_vm1, %v223_v15, 0.0 }
 0x134   :  { %v198_v17 = vpop.xlane.xlu1 %197  ;;  %231 = vadd.xlane.f32.xlu0 %v230_v16 }
 0x135   :  { %v214_v18 = vmul.f32 %v5802_v6, %v198_v17 }
 0x137   :  { %v5820_v19 = vsub.f32 %v5784_v50, %v214_v18 }
 0x139   :  { %v224_v20 = vmul.f32 %v5820_v19, %v5820_v19 }
 0x13b   :  { %v233_v21 = vsel %vm189_vm1, %v224_v20, 0.0 }
 0x13c   :  { %234 = vadd.xlane.f32.xlu1 %v233_v21  ;;  %v201_v22 = vpop.xlane.xlu1 %200 }
 0x13d   :  { %v215_v23 = vmul.f32 %v5802_v6, %v201_v22 }
 0x13f   :  { %v5827_v24 = vsub.f32 %v5791_v56, %v215_v23 }
 0x141   :  { %v225_v25 = vmul.f32 %v5827_v24, %v5827_v24 }
 0x143   :  { %v236_v26 = vsel %vm189_vm1, %v225_v25, 0.0 }
 0x144   :  { %v204_v27 = vpop.xlane.xlu2 %203  ;;  %237 = vadd.xlane.f32.xlu2 %v236_v26 }
 0x145   :  { %v216_v28 = vmul.f32 %v5802_v6, %v204_v27 }
 0x147   :  { %v5834_v29 = vsub.f32 %v5798_v62, %v216_v28 }
 0x149   :  { %v226_v30 = vmul.f32 %v5834_v29, %v5834_v29 }
 0x14b   :  { %v239_v31 = vsel %vm189_vm1, %v226_v30, 0.0 }
 0x14c   :  { %240 = vadd.xlane.f32.xlu0 %v239_v31 }
 0x19f   :  { %v229_v36 = vpop.xlane.xlu2 %228 }
 0x1a0   :  { %v242_v37 = vmul.f32 %v229_v36, %v5802_v6 }
 0x1a2   :  { %v247_v38 = vadd.f32 1e-06, %v242_v37 }
 0x1a4   :  { %5289 = vrsqrt.f32 %v247_v38  ;;  %vm258_vm4 = vweird.f32 %v247_v38 }
 0x1a7   :  { %v232_v40 = vpop.xlane.xlu0 %231 }
 0x1a8   :  { %v243_v41 = vmul.f32 %v232_v40, %v5802_v6 }
 0x1aa   :  { %v5290_v42 = vpop.eup %5289  ;;  %v248_v43 = vadd.f32 1e-06, %v243_v41 }
 0x1ab   :  { %v253_v45 = vmul.f32 %v5290_v42, %v247_v38  ;;  %vm259_vm3 = vweird.f32 %v5290_v42 }
 0x1ac   :  { %5291 = vrsqrt.f32 %v248_v43  ;;  %vm260_vm5 = vmor %vm258_vm4, %vm259_vm3  ;;  %vm268_vm7 = vweird.f32 %v248_v43  ;;  %vm390_vm4 = vcmask 64512  }
 0x1ad   :  { %v254_v46 = vmul.f32 %v5290_v42, %v253_v45 }
 0x1af   :  { %v255_v47 = vmul.f32 0.5, %v254_v46  ;;  %v235_v48 = vpop.xlane.xlu1 %234 }
 0x1b0   :  { %v244_v49 = vmul.f32 %v235_v48, %v5802_v6 }
 0x1b1   :  { %v256_v51 = vsub.f32 1.5, %v255_v47 }
 0x1b2   :  { %v5292_v53 = vpop.eup %5291  ;;  %v249_v54 = vadd.f32 1e-06, %v244_v49 }
 0x1b3   :  { %v257_v55 = vmul.f32 %v5290_v42, %v256_v51  ;;  %v263_v57 = vmul.f32 %v5292_v53, %v248_v43  ;;  %vm269_vm6 = vweird.f32 %v5292_v53 }
 0x1b4   :  { %5293 = vrsqrt.f32 %v249_v54  ;;  %vm270_vm8 = vmor %vm268_vm7, %vm269_vm6  ;;  %vm278_vm10 = vweird.f32 %v249_v54 }
 0x1b5   :  { %v264_v59 = vmul.f32 %v5292_v53, %v263_v57  ;;  %v261_v60 = vsel %vm260_vm5, %v5290_v42, %v257_v55  ;;  %vm458_vm5 = vcmask 326656  }
 0x1b6   :  { %v302_v61 = vmul.f32 %v261_v60, %v5806_v9 }
 0x1b7   :  { %v265_v0 = vmul.f32 0.5, %v264_v59  ;;  %v238_v1 = vpop.xlane.xlu2 %237 }
 0x1b8   :  { %v245_v2 = vmul.f32 %v238_v1, %v5802_v6  ;;  %v308_v3 = vmul.f32 %v5857_v58, %v302_v61 }
 0x1b9   :  { %v266_v4 = vsub.f32 1.5, %v265_v0 }
 0x1ba   :  { %v5294_v5 = vpop.eup %5293  ;;  %v250_v7 = vadd.f32 1e-06, %v245_v2  ;;  %v314_v8 = vadd.f32 %v5860_v63, %v308_v3 }
 0x1bb   :  { %v267_v10 = vmul.f32 %v5292_v53, %v266_v4  ;;  %v273_v11 = vmul.f32 %v5294_v5, %v249_v54  ;;  %vm279_vm9 = vweird.f32 %v5294_v5 }
 0x1bc   :  { %5295 = vrsqrt.f32 %v250_v7  ;;  %4868 = vmatmul.msk.f32.vlgmr.msra.gmra.mxu2 %vm189_vm1, %v314_v8  ;;  %vm280_vm11 = vmor %vm278_vm10, %vm279_vm9  ;;  %vm288_vm13 = vweird.f32 %v250_v7 }
 0x1bd   :  { %v274_v9 = vmul.f32 %v5294_v5, %v273_v11  ;;  %v271_v12 = vsel %vm270_vm8, %v5292_v53, %v267_v10 }
 0x1be   :  { %v303_v13 = vmul.f32 %v271_v12, %v5813_v14 }
 0x1bf   :  { %v275_v15 = vmul.f32 0.5, %v274_v9  ;;  %v241_v16 = vpop.xlane.xlu0 %240 }
 0x1c0   :  { %v246_v17 = vmul.f32 %v241_v16, %v5802_v6  ;;  %v309_v18 = vmul.f32 %v5857_v58, %v303_v13  ;;  %v5954_v16 = vld [vmem:[%s8015_s2] sm:$0xff] }
 0x1c1   :  { %v276_v20 = vsub.f32 1.5, %v275_v15 }
 0x1c2   :  { %v5296_v21 = vpop.eup %5295  ;;  %v251_v22 = vadd.f32 1e-06, %v246_v17  ;;  %v315_v23 = vadd.f32 %v5860_v63, %v309_v18 }
 0x1c3   :  { %v277_v25 = vmul.f32 %v5294_v5, %v276_v20  ;;  %v283_v26 = vmul.f32 %v5296_v21, %v250_v7  ;;  %vm289_vm12 = vweird.f32 %v5296_v21 }
 0x1c4   :  { %5297 = vrsqrt.f32 %v251_v22  ;;  %4869 = vmatmul.msk.f32.gmra.mxu2 %vm189_vm1, %v315_v23  ;;  %vm290_vm14 = vmor %vm288_vm13, %vm289_vm12  ;;  %vm298_vm2 = vweird.f32 %v251_v22 }
 0x1c5   :  { %v284_v14 = vmul.f32 %v5296_v21, %v283_v26  ;;  %v281_v27 = vsel %vm280_vm11, %v5294_v5, %v277_v25 }
 0x1c6   :  { %v304_v28 = vmul.f32 %v281_v27, %v5820_v19  ;;  %v5968_v27 = vld [vmem:[%s8015_s2 + $0x10] sm:$0xff] }
 0x1c7   :  { %v285_v30 = vmul.f32 0.5, %v284_v14 }
 0x1c8   :  { %v310_v31 = vmul.f32 %v5857_v58, %v304_v28 }
 0x1c9   :  { %v286_v32 = vsub.f32 1.5, %v285_v30 }
 0x1ca   :  { %v5298_v33 = vpop.eup %5297  ;;  %v316_v34 = vadd.f32 %v5860_v63, %v310_v31 }
 0x1cb   :  { %v287_v35 = vmul.f32 %v5296_v21, %v286_v32  ;;  %v293_v36 = vmul.f32 %v5298_v33, %v251_v22  ;;  %vm299_vm15 = vweird.f32 %v5298_v33  ;;  %v5961_v22 = vld [vmem:[%s8015_s2 + $0x8] sm:$0xff] }
 0x1cc   :  { %4870 = vmatmul.msk.f32.gmra.mxu2 %vm189_vm1, %v316_v34  ;;  %vm300_vm3 = vmor %vm298_vm2, %vm299_vm15 }
 0x1cd   :  { %v294_v37 = vmul.f32 %v5298_v33, %v293_v36  ;;  %v291_v38 = vsel %vm290_vm14, %v5296_v21, %v287_v35 }
 0x1ce   :  { %v305_v40 = vmul.f32 %v291_v38, %v5827_v24  ;;  %v5982_v38 = vld [vmem:[%s8015_s2 + $0x20] sm:$0xff] }
 0x1cf   :  { %v295_v41 = vmul.f32 0.5, %v294_v37 }
 0x1d0   :  { %v311_v19 = vmul.f32 %v5857_v58, %v305_v40 }
 0x1d1   :  { %v296_v42 = vsub.f32 1.5, %v295_v41 }
 0x1d2   :  { %v317_v43 = vadd.f32 %v5860_v63, %v311_v19 }
 0x1d3   :  { %v297_v45 = vmul.f32 %v5298_v33, %v296_v42 }
 0x1d4   :  { %4871 = vmatmul.msk.f32.gmra.mxu2 %vm189_vm1, %v317_v43 }
 0x1d5   :  { %v301_v46 = vsel %vm300_vm3, %v5298_v33, %v297_v45  ;;  %v5975_v33 = vld [vmem:[%s8015_s2 + $0x18] sm:$0xff] }
 0x1d6   :  { %v306_v47 = vmul.f32 %v301_v46, %v5834_v29 }
 0x1d8   :  { %v312_v48 = vmul.f32 %v5857_v58, %v306_v47 }
 0x1da   :  { %v318_v49 = vadd.f32 %v5860_v63, %v312_v48 }
 0x1dc   :  { %4872 = vmatmul.msk.f32.gmra.mxu2 %vm189_vm1, %v318_v49 }
 0x23f   :  { %v359_v24 = vpop.f32.mrf.mxu2 }
 0x240   :  { %v5904_v60 = vadd.f32 %v5282_v52, %v359_v24 }
 0x247   :  { %v362_v51 = vpop.f32.mrf.mxu2 }
 0x248   :  { %v5894_v58 = vadd.f32 %v5282_v52, %v362_v51 }
 0x24f   :  { %v365_v53 = vpop.f32.mrf.mxu2 }
 0x250   :  { %v5886_v54 = vadd.f32 %v5282_v52, %v365_v53 }
 0x252   :  { %384 = vrot.lane.b32.xlu0 %v5886_v54, %s5551_s28 }
 0x257   :  { %v368_v29 = vpop.f32.mrf.mxu2 }
 0x258   :  { %v5890_v55 = vadd.f32 %v5282_v52, %v368_v29 }
 0x25a   :  { %386 = vrot.lane.b32.xlu2 %v5890_v55, %s5551_s28 }
 0x25f   :  { %v371_v57 = vpop.f32.mrf.mxu2 }
 0x260   :  { %v5896_v59 = vadd.f32 %v5282_v52, %v371_v57 }
 0x262   :  { %382 = vrot.lane.b32.xlu2 %v5894_v58, %s5551_s28  ;;  %757 = vrot.lane.b32.xlu0 %v5896_v59, %s5552_s29  ;;  %v5988_v42 = vpack.i.bf16 %v5890_v55, %v5896_v59 }
 0x263   :  { %388 = vrot.lane.b32.xlu1 %v5896_v59, %s5551_s28 }
 0x26a   :  { %755 = vrot.lane.b32.xlu2 %v5890_v55, %s5552_s29  ;;  %751 = vrot.lane.b32.xlu0 %v5894_v58, %s5552_s29 }
 0x26b   :  { %380 = vrot.lane.b32.xlu1 %v5904_v60, %s5551_s28 }
 0x272   :  { %749 = vrot.lane.b32.xlu2 %v5904_v60, %s5552_s29  ;;  %741 = vrot.lane.b32.xlu0 %v5894_v58, %s5553_s4 }
 0x273   :  { %753 = vrot.lane.b32.xlu1 %v5886_v54, %s5552_s29 }
 0x27a   :  { %743 = vrot.lane.b32.xlu2 %v5886_v54, %s5553_s4  ;;  %747 = vrot.lane.b32.xlu0 %v5896_v59, %s5553_s4 }
 0x27b   :  { %739 = vrot.lane.b32.xlu1 %v5904_v60, %s5553_s4 }
 0x283   :  { %745 = vrot.lane.b32.xlu1 %v5890_v55, %s5553_s4 }
 0x2b4   :  { %v387_v63 = vpop.permute.xlu2 %386 }
 0x2bc   :  { %v383_v1 = vpop.permute.xlu2 %382 }
 0x2c4   :  { %v385_v0 = vpop.permute.xlu0 %384  ;;  %v756_v4 = vpop.permute.xlu2 %755 }
 0x2cc   :  { %v750_v8 = vpop.permute.xlu2 %749 }
 0x2d4   :  { %v758_v3 = vpop.permute.xlu0 %757  ;;  %v744_v9 = vpop.permute.xlu2 %743 }
 0x2d5   :  { %v389_v61 = vpop.permute.xlu1 %388 }
 0x2d6   :  { %4873 = vmatpush.xpose.msk.msra.mxu3 %vm390_vm4, %v389_v61 }
 0x2da   :  { %4874 = vmatpush.xpose.msk.msra.mxu3 %vm390_vm4, %v387_v63 }
 0x2dc   :  { %v752_v7 = vpop.permute.xlu0 %751 }
 0x2dd   :  { %v381_v2 = vpop.permute.xlu1 %380 }
 0x2de   :  { %4875 = vmatpush.xpose.msk.msra.mxu3 %vm390_vm4, %v385_v0 }
 0x2e2   :  { %4876 = vmatpush.xpose.msk.msra.mxu3 %vm390_vm4, %v383_v1 }
 0x2e4   :  { %v742_v11 = vpop.permute.xlu0 %741 }
 0x2e5   :  { %v754_v5 = vpop.permute.xlu1 %753 }
 0x2e6   :  { %4877 = vmatpush.xpose.msk.msra.mxu3 %vm390_vm4, %v381_v2 }
 0x2e9   :  { %4878 = vmatmul.msk.f32.vlgmr.msra.gmra.mxu3 %vm390_vm4, %v5904_v60 }
 0x2ea   :  { %4893 = vmatpush.xpose.msk.msrb.mxu3 %vm390_vm4, %v758_v3 }
 0x2ec   :  { %v748_v13 = vpop.permute.xlu0 %747 }
 0x2ed   :  { %v740_v10 = vpop.permute.xlu1 %739 }
 0x2ee   :  { %4894 = vmatpush.xpose.msk.msrb.mxu3 %vm390_vm4, %v756_v4  ;;  %v6006_v4 = vpack.i.bf16 %v5894_v58, %v5886_v54 }
 0x2f1   :  { %4879 = vmatmul.msk.f32.gmra.mxu3 %vm390_vm4, %v5894_v58 }
 0x2f2   :  { %4895 = vmatpush.xpose.msk.msrb.mxu3 %vm390_vm4, %v754_v5 }
 0x2f5   :  { %v746_v12 = vpop.permute.xlu1 %745 }
 0x2f6   :  { %4896 = vmatpush.xpose.msk.msrb.mxu3 %vm390_vm4, %v752_v7 }
 0x2f9   :  { %4880 = vmatmul.msk.f32.gmra.mxu3 %vm390_vm4, %v5886_v54 }
 0x2fa   :  { %4897 = vmatpush.xpose.msk.msrb.mxu3 %vm390_vm4, %v750_v8 }
 0x301   :  { %4881 = vmatmul.msk.f32.gmra.mxu3 %vm390_vm4, %v5890_v55 }
 0x309   :  { %4882 = vmatmul.msk.f32.gmra.mxu3 %vm390_vm4, %v5896_v59 }
 0x311   :  { %4898 = vmatmul.msk.f32.vlgmr.msrb.gmra.mxu3 %vm390_vm4, %v740_v10 }
 0x319   :  { %4899 = vmatmul.msk.f32.gmra.mxu3 %vm390_vm4, %v742_v11 }
 0x321   :  { %4900 = vmatmul.msk.f32.gmra.mxu3 %vm390_vm4, %v744_v9 }
 0x329   :  { %4901 = vmatmul.msk.f32.gmra.mxu3 %vm390_vm4, %v746_v12 }
 0x331   :  { %4902 = vmatmul.msk.f32.gmra.mxu3 %vm390_vm4, %v748_v13 }
 0x36c   :  { %v428_v15 = vpop.f32.mrf.mxu3 }
 0x36d   :  { %v443_v17 = vmul.f32 0.35355338, %v428_v15 }
 0x36f   :  { %v453_v18 = vadd.f32 %v5954_v16, %v443_v17 }
 0x371   :  { %v459_v20 = vsel %vm458_vm5, %v453_v18, -inf }
 0x372   :  { %460 = vmax.xlane.f32.xlu2 %v459_v20 }
 0x374   :  { %v431_v21 = vpop.f32.mrf.mxu3 }
 0x375   :  { %v444_v23 = vmul.f32 0.35355338, %v431_v21 }
 0x377   :  { %v454_v25 = vadd.f32 %v5961_v22, %v444_v23 }
 0x379   :  { %v462_v26 = vsel %vm458_vm5, %v454_v25, -inf }
 0x37a   :  { %463 = vmax.xlane.f32.xlu1 %v462_v26 }
 0x37c   :  { %v434_v14 = vpop.f32.mrf.mxu3 }
 0x37d   :  { %v445_v28 = vmul.f32 0.35355338, %v434_v14 }
 0x37f   :  { %v455_v30 = vadd.f32 %v5968_v27, %v445_v28 }
 0x381   :  { %v465_v31 = vsel %vm458_vm5, %v455_v30, -inf }
 0x382   :  { %466 = vmax.xlane.f32.xlu0 %v465_v31 }
 0x384   :  { %v437_v32 = vpop.f32.mrf.mxu3 }
 0x385   :  { %v446_v34 = vmul.f32 0.35355338, %v437_v32 }
 0x387   :  { %v456_v35 = vadd.f32 %v5975_v33, %v446_v34 }
 0x389   :  { %v468_v36 = vsel %vm458_vm5, %v456_v35, -inf }
 0x38a   :  { %469 = vmax.xlane.f32.xlu2 %v468_v36 }
 0x38c   :  { %v440_v37 = vpop.f32.mrf.mxu3 }
 0x38d   :  { %v447_v40 = vmul.f32 0.35355338, %v440_v37 }
 0x38f   :  { %v457_v41 = vadd.f32 %v5982_v38, %v447_v40 }
 0x391   :  { %v471_v19 = vsel %vm458_vm5, %v457_v41, -inf }
 0x392   :  { %472 = vmax.xlane.f32.xlu1 %v471_v19 }
 0x394   :  { %v796_v48 = vpop.f32.mrf.mxu3 }
 0x395   :  { %v811_v40 = vmul.f32 0.35355338, %v796_v48 }
 0x397   :  { %v6041_v19 = vadd.f32 %v811_v40, %v5954_v16 }
 0x39c   :  { %v799_v61 = vpop.f32.mrf.mxu3 }
 0x39d   :  { %v812_v32 = vmul.f32 0.35355338, %v799_v61 }
 0x39f   :  { %v6031_v36 = vadd.f32 %v812_v32, %v5961_v22 }
 0x3a1   :  { %v829_v37 = vsel %vm458_vm5, %v6031_v36, -inf }
 0x3a4   :  { %v802_v3 = vpop.f32.mrf.mxu3 }
 0x3a5   :  { %v813_v9 = vmul.f32 0.35355338, %v802_v3 }
 0x3a7   :  { %v6015_v13 = vadd.f32 %v813_v9, %v5968_v27 }
 0x3ab   :  { %5123 = vrot.lane.b32.xlu1 %v5988_v42, %s5554_s25 }
 0x3ac   :  { %v805_v10 = vpop.f32.mrf.mxu3 }
 0x3b4   :  { %v808_v15 = vpop.f32.mrf.mxu3 }
 0x3b5   :  { %v815_v17 = vmul.f32 0.35355338, %v808_v15 }
 0x3b7   :  { %v6022_v23 = vadd.f32 %v815_v17, %v5982_v38 }
 0x3b9   :  { %v838_v28 = vsel %vm458_vm5, %v6022_v23, -inf }
 0x3e5   :  { %v461_v43 = vpop.xlane.xlu2 %460 }
 0x3e6   :  { %v474_v45 = vsub.f32 %v453_v18, %v461_v43  ;;  %v832_v18 = vsel %vm458_vm5, %v6015_v13, -inf }
 0x3e8   :  { %v479_v46 = vmul.f32 1.442695, %v474_v45  ;;  %v826_v45 = vsel %vm458_vm5, %v6041_v19, -inf }
 0x3ea   :  { %5299 = vpow2.f32 %v479_v46 }
 0x3ed   :  { %v464_v47 = vpop.xlane.xlu1 %463 }
 0x3ee   :  { %v475_v49 = vsub.f32 %v454_v25, %v464_v47 }
 0x3f0   :  { %v5992_v24 = vpop.eup %5299  ;;  %v481_v51 = vmul.f32 1.442695, %v475_v49 }
 0x3f1   :  { %v489_v52 = vsel %vm458_vm5, %v5992_v24, 0.0 }
 0x3f2   :  { %5301 = vpow2.f32 %v481_v51  ;;  %490 = vadd.xlane.f32.xlu0 %v489_v52 }
 0x3f5   :  { %v467_v53 = vpop.xlane.xlu0 %466 }
 0x3f6   :  { %v476_v29 = vsub.f32 %v455_v30, %v467_v53 }
 0x3f8   :  { %v5996_v57 = vpop.eup %5301  ;;  %v483_v63 = vmul.f32 1.442695, %v476_v29 }
 0x3f9   :  { %v492_v0 = vsel %vm458_vm5, %v5996_v57, 0.0 }
 0x3fa   :  { %5303 = vpow2.f32 %v483_v63  ;;  %493 = vadd.xlane.f32.xlu2 %v492_v0 }
 0x3fd   :  { %v470_v20 = vpop.xlane.xlu2 %469 }
 0x3fe   :  { %v477_v25 = vsub.f32 %v456_v35, %v470_v20  ;;  %v814_v35 = vmul.f32 0.35355338, %v805_v10 }
 0x400   :  { %v6000_v1 = vpop.eup %5303  ;;  %v485_v30 = vmul.f32 1.442695, %v477_v25 }
 0x401   :  { %v495_v2 = vsel %vm458_vm5, %v6000_v1, 0.0 }
 0x402   :  { %496 = vadd.xlane.f32.xlu2 %v495_v2 }
 0x405   :  { %v473_v5 = vpop.xlane.xlu1 %472 }
 0x406   :  { %v478_v7 = vsub.f32 %v457_v41, %v473_v5  ;;  %5128 = vrot.lane.b32.xlu0 %v6006_v4, %s5554_s25  ;;  %v6038_v41 = vadd.f32 %v814_v35, %v5975_v33 }
 0x408   :  { %v487_v8 = vmul.f32 1.442695, %v478_v7  ;;  %v835_v43 = vsel %vm458_vm5, %v6038_v41, -inf }
 0x40a   :  { %5305 = vpow2.f32 %v487_v8 }
 0x40b   :  { %5307 = vpow2.f32 %v485_v30 }
 0x410   :  { %v6010_v11 = vpop.eup %5305 }
 0x411   :  { %v501_v12 = vsel %vm458_vm5, %v6010_v11, 0.0  ;;  %v6026_v31 = vpop.eup %5307 }
 0x412   :  { %502 = vadd.xlane.f32.xlu1 %v501_v12  ;;  %v498_v34 = vsel %vm458_vm5, %v6026_v31, 0.0 }
 0x41a   :  { %833 = vmax.xlane.f32.xlu1 %v832_v18  ;;  %579 = vrot.lane.b32.xlu2 %v5904_v60, %s5554_s25 }
 0x41d   :  { %v5124_v21 = vpop.permute.xlu1 %5123 }
 0x41e   :  { %v5125_v26 = vunpack.i.l.bf16 %v5124_v21  ;;  %v5126_v14 = vunpack.i.h.bf16 %v5124_v21 }
 0x420   :  { %620 = vmatpush.msrb.mxu2 %v5125_v26 }
 0x422   :  { %621 = vmatpush.msrb.mxu2 %v5126_v14  ;;  %839 = vmax.xlane.f32.xlu1 %v838_v28 }
 0x430   :  { %499 = vadd.xlane.f32.xlu0 %v498_v34 }
 0x438   :  { %830 = vmax.xlane.f32.xlu0 %v829_v37 }
 0x43b   :  { %5133 = vrot.lane.b32.xlu1 %v5988_v42, %s5555_s26 }
 0x440   :  { %836 = vmax.xlane.f32.xlu0 %v835_v43 }
 0x443   :  { %827 = vmax.xlane.f32.xlu2 %v826_v45 }
 0x465   :  { %v491_v46 = vpop.xlane.xlu0 %490 }
 0x466   :  { %5309 = vrcp.f32 %v491_v46  ;;  %v515_v61 = vand.u32 2147483648, %v491_v46  ;;  %vm509_vm7 = vweird.f32 %v491_v46  ;;  %v513_v2 = vand.u32 2147483647, %v491_v46 }
 0x468   :  { %v516_v8 = vor.u32 1.1754944e-38, %v515_v61  ;;  %vm514_vm9 = vcmp.eq.f32.partialorder %v513_v2, 8.507059e+37 }
 0x46c   :  { %v5310_v47 = vpop.eup %5309 }
 0x46d   :  { %v505_v48 = vmul.f32 %v5310_v47, %v491_v46  ;;  %v494_v49 = vpop.xlane.xlu2 %493  ;;  %vm510_vm6 = vweird.f32 %v5310_v47 }
 0x46e   :  { %5311 = vrcp.f32 %v494_v49  ;;  %vm511_vm8 = vmor %vm509_vm7, %vm510_vm6  ;;  %v530_v25 = vand.u32 2147483648, %v494_v49  ;;  %vm524_vm11 = vweird.f32 %v494_v49  ;;  %v528_v14 = vand.u32 2147483647, %v494_v49 }
 0x46f   :  { %v506_v51 = vsub.f32 1.0, %v505_v48 }
 0x470   :  { %v531_v32 = vor.u32 1.1754944e-38, %v530_v25  ;;  %vm529_vm13 = vcmp.eq.f32.partialorder %v528_v14, 8.507059e+37 }
 0x471   :  { %v507_v52 = vmul.f32 %v5310_v47, %v506_v51 }
 0x473   :  { %v508_v29 = vadd.f32 %v5310_v47, %v507_v52 }
 0x474   :  { %v5312_v53 = vpop.eup %5311 }
 0x475   :  { %v520_v63 = vmul.f32 %v5312_v53, %v494_v49  ;;  %v497_v0 = vpop.xlane.xlu2 %496  ;;  %v512_v7 = vsel %vm511_vm8, %v5310_v47, %v508_v29  ;;  %vm525_vm10 = vweird.f32 %v5312_v53 }
 0x476   :  { %5313 = vrcp.f32 %v497_v0  ;;  %v517_v15 = vsel %vm514_vm9, %v516_v8, %v512_v7  ;;  %vm526_vm12 = vmor %vm524_vm11, %vm525_vm10  ;;  %v545_v40 = vand.u32 2147483648, %v497_v0  ;;  %vm539_vm15 = vweird.f32 %v497_v0 }
 0x477   :  { %v521_v3 = vsub.f32 1.0, %v520_v63  ;;  %v6048_v26 = vmul.f32 %v5992_v24, %v517_v15  ;;  %v543_v24 = vand.u32 2147483647, %v497_v0 }
 0x478   :  { %v5129_v5 = vpop.permute.xlu0 %5128  ;;  %v546_v46 = vor.u32 1.1754944e-38, %v545_v40 }
 0x479   :  { %v5130_v10 = vunpack.i.l.bf16 %v5129_v5  ;;  %v522_v9 = vmul.f32 %v5312_v53, %v521_v3  ;;  %v5131_v12 = vunpack.i.h.bf16 %v5129_v5  ;;  %vm544_vm3 = vcmp.eq.f32.partialorder %v543_v24, 8.507059e+37 }
 0x47b   :  { %622 = vmatpush.msrb.mxu2 %v5130_v10  ;;  %v523_v18 = vadd.f32 %v5312_v53, %v522_v9 }
 0x47c   :  { %v5314_v17 = vpop.eup %5313 }
 0x47d   :  { %v535_v20 = vmul.f32 %v5314_v17, %v497_v0  ;;  %v580_v21 = vpop.permute.xlu2 %579  ;;  %623 = vmatpush.msrb.mxu2 %v5131_v12  ;;  %v527_v30 = vsel %vm526_vm12, %v5312_v53, %v523_v18  ;;  %vm540_vm14 = vweird.f32 %v5314_v17 }
 0x47e   :  { %v532_v35 = vsel %vm529_vm13, %v531_v32, %v527_v30  ;;  %vm541_vm2 = vmor %vm539_vm15, %vm540_vm14 }
 0x47f   :  { %v536_v28 = vsub.f32 1.0, %v535_v20  ;;  %624 = vmatpush.msrb.mxu2 %v580_v21  ;;  %v6053_v43 = vmul.f32 %v5996_v57, %v532_v35 }
 0x480   :  { %4883 = vmatmul.msk.f32.vlgmr.msrb.gmra.mxu2 %vm458_vm5, %v6048_v26 }
 0x481   :  { %v537_v34 = vmul.f32 %v5314_v17, %v536_v28 }
 0x483   :  { %v538_v37 = vadd.f32 %v5314_v17, %v537_v34 }
 0x485   :  { %v542_v45 = vsel %vm541_vm2, %v5314_v17, %v538_v37  ;;  %v503_v49 = vpop.xlane.xlu1 %502 }
 0x486   :  { %v547_v47 = vsel %vm544_vm3, %v546_v46, %v542_v45  ;;  %5315 = vrcp.f32 %v503_v49  ;;  %v575_v32 = vand.u32 2147483648, %v503_v49  ;;  %vm569_vm11 = vweird.f32 %v503_v49 }
 0x487   :  { %v6058_v48 = vmul.f32 %v6000_v1, %v547_v47  ;;  %v573_v35 = vand.u32 2147483647, %v503_v49 }
 0x488   :  { %4884 = vmatmul.msk.f32.gmra.mxu2 %vm458_vm5, %v6053_v43 }
 0x489   :  { %vm574_vm13 = vcmp.eq.f32.partialorder %v573_v35, 8.507059e+37 }
 0x48c   :  { %v5316_v52 = vpop.eup %5315 }
 0x48d   :  { %v834_v51 = vpop.xlane.xlu1 %833  ;;  %v565_v29 = vmul.f32 %v5316_v52, %v503_v49  ;;  %vm570_vm10 = vweird.f32 %v5316_v52 }
 0x48e   :  { %v843_v7 = vsub.f32 %v6015_v13, %v834_v51  ;;  %vm571_vm12 = vmor %vm569_vm11, %vm570_vm10 }
 0x48f   :  { %v566_v63 = vsub.f32 1.0, %v565_v29 }
 0x490   :  { %4885 = vmatmul.msk.f32.gmra.mxu2 %vm458_vm5, %v6058_v48  ;;  %v850_v21 = vmul.f32 1.442695, %v843_v7 }
 0x491   :  { %v567_v17 = vmul.f32 %v5316_v52, %v566_v63 }
 0x493   :  { %v568_v13 = vadd.f32 %v5316_v52, %v567_v17 }
 0x495   :  { %v6062_v53 = vpop.xlane.xlu1 %839  ;;  %v572_v46 = vsel %vm571_vm12, %v5316_v52, %v568_v13 }
 0x4a3   :  { %v500_v57 = vpop.xlane.xlu0 %499 }
 0x4a4   :  { %5317 = vrcp.f32 %v500_v57  ;;  %v560_v9 = vand.u32 2147483648, %v500_v57  ;;  %v558_v15 = vand.u32 2147483647, %v500_v57  ;;  %vm554_vm7 = vweird.f32 %v500_v57 }
 0x4a6   :  { %vm559_vm9 = vcmp.eq.f32.partialorder %v558_v15, 8.507059e+37 }
 0x4aa   :  { %v5318_v61 = vpop.eup %5317 }
 0x4ab   :  { %v550_v0 = vmul.f32 %v5318_v61, %v500_v57  ;;  %v831_v2 = vpop.xlane.xlu0 %830  ;;  %vm555_vm6 = vweird.f32 %v5318_v61 }
 0x4ac   :  { %v842_v3 = vsub.f32 %v6031_v36, %v831_v2  ;;  %vm556_vm8 = vmor %vm554_vm7, %vm555_vm6  ;;  %v561_v36 = vor.u32 1.1754944e-38, %v560_v9 }
 0x4ad   :  { %v551_v1 = vsub.f32 1.0, %v550_v0  ;;  %v5134_v5 = vpop.permute.xlu1 %5133 }
 0x4ae   :  { %v848_v8 = vmul.f32 1.442695, %v842_v3  ;;  %v5135_v10 = vunpack.i.l.bf16 %v5134_v5  ;;  %v5136_v18 = vunpack.i.h.bf16 %v5134_v5 }
 0x4af   :  { %v552_v12 = vmul.f32 %v5318_v61, %v551_v1 }
 0x4b0   :  { %5319 = vpow2.f32 %v848_v8  ;;  %987 = vmatpush.msrb.mxu0 %v5135_v10 }
 0x4b1   :  { %v553_v20 = vadd.f32 %v5318_v61, %v552_v12  ;;  %5321 = vpow2.f32 %v850_v21 }
 0x4b2   :  { %988 = vmatpush.msrb.mxu0 %v5136_v18 }
 0x4b3   :  { %v837_v25 = vpop.xlane.xlu0 %836  ;;  %v557_v14 = vsel %vm556_vm8, %v5318_v61, %v553_v20 }
 0x4b4   :  { %v844_v28 = vsub.f32 %v6038_v41, %v837_v25  ;;  %v562_v30 = vsel %vm559_vm9, %v561_v36, %v557_v14 }
 0x4b5   :  { %v6068_v34 = vmul.f32 %v6026_v31, %v562_v30  ;;  %v576_v31 = vor.u32 1.1754944e-38, %v575_v32 }
 0x4b6   :  { %v6070_v37 = vpop.eup %5319  ;;  %v852_v40 = vmul.f32 1.442695, %v844_v28  ;;  %v828_v24 = vpop.xlane.xlu2 %827 }
 0x4b7   :  { %v841_v45 = vsub.f32 %v6041_v19, %v828_v24  ;;  %4886 = vmatmul.msk.f32.gmra.mxu2 %vm458_vm5, %v6068_v34  ;;  %v859_v41 = vsel %vm458_vm5, %v6070_v37, 0.0  ;;  %v577_v49 = vsel %vm574_vm13, %v576_v31, %v572_v46  ;;  %v6077_v51 = vpop.eup %5321 }
 0x4b8   :  { %5323 = vpow2.f32 %v852_v40  ;;  %860 = vadd.xlane.f32.xlu0 %v859_v41  ;;  %v6080_v57 = vmul.f32 %v6010_v11, %v577_v49  ;;  %v862_v52 = vsel %vm458_vm5, %v6077_v51, 0.0  ;;  %v845_v11 = vsub.f32 %v6022_v23, %v6062_v53 }
 0x4b9   :  { %v846_v47 = vmul.f32 1.442695, %v841_v45 }
 0x4ba   :  { %v854_v0 = vmul.f32 1.442695, %v845_v11 }
 0x4bb   :  { %5325 = vpow2.f32 %v846_v47 }
 0x4bc   :  { %5327 = vpow2.f32 %v854_v0 }
 0x4be   :  { %v6082_v19 = vpop.eup %5323 }
 0x4bf   :  { %4887 = vmatmul.msk.f32.gmra.mxu2 %vm458_vm5, %v6080_v57  ;;  %v865_v29 = vsel %vm458_vm5, %v6082_v19, 0.0 }
 0x4c0   :  { %863 = vadd.xlane.f32.xlu0 %v862_v52  ;;  %866 = vadd.xlane.f32.xlu1 %v865_v29 }
 0x4c1   :  { %v6090_v61 = vpop.eup %5325 }
 0x4c2   :  { %v856_v63 = vsel %vm458_vm5, %v6090_v61, 0.0  ;;  %v6100_v2 = vpop.eup %5327 }
 0x4c3   :  { %857 = vadd.xlane.f32.xlu2 %v856_v63  ;;  %v868_v1 = vsel %vm458_vm5, %v6100_v2, 0.0 }
 0x4d4   :  { %946 = vrot.lane.b32.xlu0 %v5904_v60, %s5555_s26 }
 0x4db   :  { %5138 = vrot.lane.b32.xlu2 %v6006_v4, %s5555_s26 }
 0x503   :  { %v6102_v3 = vpop.f32.mrf.mxu2 }
 0x504   :  { %729 = vst.msk [vmem:[#allocation2] sm:$0xff] %vm390_vm4, %v6102_v3  ;;  %869 = vadd.xlane.f32.xlu2 %v868_v1 }
 0x50b   :  { %v629_v5 = vpop.f32.mrf.mxu2 }
 0x50c   :  { %730 = vst.msk [vmem:[#allocation2 + $0x8] sm:$0xff] %vm390_vm4, %v629_v5  ;;  %648 = vrot.lane.b32.xlu0 %v629_v5, %s5554_s25 }
 0x513   :  { %v632_v7 = vpop.f32.mrf.mxu2 }
 0x514   :  { %731 = vst.msk [vmem:[#allocation2 + $0x10] sm:$0xff] %vm390_vm4, %v632_v7  ;;  %650 = vrot.lane.b32.xlu0 %v632_v7, %s5554_s25 }
 0x52b   :  { %v861_v23 = vpop.xlane.xlu0 %860 }
 0x52c   :  { %5329 = vrcp.f32 %v861_v23  ;;  %v897_v63 = vand.u32 2147483648, %v861_v23  ;;  %vm891_vm7 = vweird.f32 %v861_v23  ;;  %v895_v0 = vand.u32 2147483647, %v861_v23 }
 0x52e   :  { %vm896_vm9 = vcmp.eq.f32.partialorder %v895_v0, 8.507059e+37 }
 0x532   :  { %v5330_v10 = vpop.eup %5329 }
 0x533   :  { %v6112_v53 = vpop.xlane.xlu0 %863  ;;  %v887_v9 = vmul.f32 %v5330_v10, %v861_v23  ;;  %v6117_v18 = vpop.xlane.xlu1 %866  ;;  %vm892_vm3 = vweird.f32 %v5330_v10 }
 0x534   :  { %vm893_vm8 = vmor %vm891_vm7, %vm892_vm3  ;;  %vm906_vm11 = vweird.f32 %v6112_v53 }
 0x535   :  { %v888_v17 = vsub.f32 1.0, %v887_v9 }
 0x536   :  { %v858_v8 = vpop.xlane.xlu2 %857 }
 0x537   :  { %5331 = vrcp.f32 %v858_v8  ;;  %v882_v13 = vand.u32 2147483648, %v858_v8  ;;  %v880_v30 = vand.u32 2147483647, %v858_v8  ;;  %v889_v24 = vmul.f32 %v5330_v10, %v888_v17 }
 0x538   :  { %5333 = vrcp.f32 %v6112_v53  ;;  %vm876_vm15 = vweird.f32 %v858_v8  ;;  %v910_v17 = vand.u32 2147483647, %v6112_v53 }
 0x539   :  { %5335 = vrcp.f32 %v6117_v18  ;;  %v883_v41 = vor.u32 1.1754944e-38, %v882_v13  ;;  %vm881_vm6 = vcmp.eq.f32.partialorder %v880_v30, 8.507059e+37  ;;  %v890_v49 = vadd.f32 %v5330_v10, %v889_v24 }
 0x53a   :  { %v635_v12 = vpop.f32.mrf.mxu2  ;;  %vm911_vm13 = vcmp.eq.f32.partialorder %v910_v17, 8.507059e+37 }
 0x53b   :  { %732 = vst.msk [vmem:[#allocation2 + $0x18] sm:$0xff] %vm390_vm4, %v635_v12  ;;  %652 = vrot.lane.b32.xlu0 %v635_v12, %s5554_s25  ;;  %v894_v5 = vsel %vm893_vm8, %v5330_v10, %v890_v49 }
 0x53d   :  { %v5332_v15 = vpop.eup %5331 }
 0x53e   :  { %v872_v20 = vmul.f32 %v5332_v15, %v858_v8  ;;  %v5139_v21 = vpop.permute.xlu2 %5138  ;;  %v5334_v36 = vpop.eup %5333  ;;  %vm877_vm14 = vweird.f32 %v5332_v15  ;;  %v898_v8 = vor.u32 1.1754944e-38, %v897_v63 }
 0x53f   :  { %v5140_v25 = vunpack.i.l.bf16 %v5139_v21  ;;  %v5141_v28 = vunpack.i.h.bf16 %v5139_v21  ;;  %v902_v32 = vmul.f32 %v5334_v36, %v6112_v53  ;;  %vm878_vm2 = vmor %vm876_vm15, %vm877_vm14  ;;  %v5336_v52 = vpop.eup %5335  ;;  %vm907_vm10 = vweird.f32 %v5334_v36 }
 0x540   :  { %v873_v14 = vsub.f32 1.0, %v872_v20  ;;  %v917_v1 = vmul.f32 %v5336_v52, %v6117_v18  ;;  %v899_v9 = vsel %vm896_vm9, %v898_v8, %v894_v5  ;;  %vm908_vm12 = vmor %vm906_vm11, %vm907_vm10  ;;  %vm922_vm14 = vweird.f32 %v5336_v52 }
 0x541   :  { %989 = vmatpush.msrb.mxu0 %v5140_v25  ;;  %v903_v46 = vsub.f32 1.0, %v902_v32  ;;  %v6133_v23 = vmul.f32 %v6070_v37, %v899_v9  ;;  %vm921_vm15 = vweird.f32 %v6117_v18 }
 0x542   :  { %v874_v35 = vmul.f32 %v5332_v15, %v873_v14  ;;  %v638_v40 = vpop.f32.mrf.mxu2  ;;  %v918_v12 = vsub.f32 1.0, %v917_v1  ;;  %v927_v14 = vand.u32 2147483648, %v6117_v18 }
 0x543   :  { %733 = vst.msk [vmem:[#allocation2 + $0x20] sm:$0xff] %vm390_vm4, %v638_v40  ;;  %990 = vmatpush.msrb.mxu0 %v5141_v28  ;;  %654 = vrot.lane.b32.xlu0 %v638_v40, %s5554_s25  ;;  %v904_v7 = vmul.f32 %v5334_v36, %v903_v46 }
 0x544   :  { %v875_v45 = vadd.f32 %v5332_v15, %v874_v35  ;;  %v919_v10 = vmul.f32 %v5336_v52, %v918_v12  ;;  %v928_v13 = vor.u32 1.1754944e-38, %v927_v14 }
 0x546   :  { %v947_v31 = vpop.permute.xlu0 %946  ;;  %v879_v47 = vsel %vm878_vm2, %v5332_v15, %v875_v45  ;;  %v905_v15 = vadd.f32 %v5334_v36, %v904_v7  ;;  %v920_v25 = vadd.f32 %v5336_v52, %v919_v10  ;;  %vm923_vm2 = vmor %vm921_vm15, %vm922_vm14 }
 0x547   :  { %991 = vmatpush.msrb.mxu0 %v947_v31  ;;  %v884_v29 = vsel %vm881_vm6, %v883_v41, %v879_v47 }
 0x548   :  { %v6124_v11 = vmul.f32 %v6090_v61, %v884_v29  ;;  %v912_v61 = vand.u32 2147483648, %v6112_v53  ;;  %v925_v53 = vand.u32 2147483647, %v6117_v18 }
 0x54a   :  { %4903 = vmatmul.msk.f32.vlgmr.msrb.gmra.mxu0 %vm458_vm5, %v6124_v11  ;;  %v913_v20 = vor.u32 1.1754944e-38, %v912_v61  ;;  %vm926_vm3 = vcmp.eq.f32.partialorder %v925_v53, 8.507059e+37 }
 0x54b   :  { %646 = vrot.lane.b32.xlu0 %v6102_v3, %s5554_s25  ;;  %v909_v3 = vsel %vm908_vm12, %v5334_v36, %v905_v15  ;;  %v924_v36 = vsel %vm923_vm2, %v5336_v52, %v920_v25 }
 0x54c   :  { %v914_v21 = vsel %vm911_vm13, %v913_v20, %v909_v3  ;;  %v929_v28 = vsel %vm926_vm3, %v928_v13, %v924_v36 }
 0x54d   :  { %v6141_v37 = vmul.f32 %v6077_v51, %v914_v21  ;;  %v6148_v30 = vmul.f32 %v6082_v19, %v929_v28 }
 0x552   :  { %4904 = vmatmul.msk.f32.gmra.mxu0 %vm458_vm5, %v6133_v23 }
 0x55a   :  { %4905 = vmatmul.msk.f32.gmra.mxu0 %vm458_vm5, %v6141_v37 }
 0x562   :  { %4906 = vmatmul.msk.f32.gmra.mxu0 %vm458_vm5, %v6148_v30 }
 0x577   :  { %v870_v51 = vpop.xlane.xlu2 %869 }
 0x578   :  { %5337 = vrcp.f32 %v870_v51  ;;  %v942_v24 = vand.u32 2147483648, %v870_v51  ;;  %v940_v41 = vand.u32 2147483647, %v870_v51  ;;  %vm936_vm7 = vweird.f32 %v870_v51 }
 0x57a   :  { %v943_v19 = vor.u32 1.1754944e-38, %v942_v24  ;;  %vm941_vm9 = vcmp.eq.f32.partialorder %v940_v41, 8.507059e+37 }
 0x57e   :  { %v5338_v32 = vpop.eup %5337  ;;  %v649_v35 = vpop.permute.xlu0 %648 }
 0x57f   :  { %v932_v40 = vmul.f32 %v5338_v32, %v870_v51  ;;  %vm937_vm6 = vweird.f32 %v5338_v32  ;;  %v662_v46 = vsub.f32 %v5894_v58, %v649_v35 }
 0x580   :  { %vm938_vm8 = vmor %vm936_vm7, %vm937_vm6 }
 0x581   :  { %v933_v18 = vsub.f32 1.0, %v932_v40  ;;  %v667_v63 = vmul.f32 %v662_v46, %v662_v46 }
 0x583   :  { %v934_v45 = vmul.f32 %v5338_v32, %v933_v18 }
 0x585   :  { %v935_v31 = vadd.f32 %v5338_v32, %v934_v45 }
 0x586   :  { %v651_v47 = vpop.permute.xlu0 %650 }
 0x587   :  { %v663_v49 = vsub.f32 %v5886_v54, %v651_v47  ;;  %v939_v52 = vsel %vm938_vm8, %v5338_v32, %v935_v31 }
 0x588   :  { %v944_v29 = vsel %vm941_vm9, %v943_v19, %v939_v52 }
 0x589   :  { %v668_v0 = vmul.f32 %v663_v49, %v663_v49  ;;  %v6155_v1 = vmul.f32 %v6100_v2, %v944_v29 }
 0x58b   :  { %4907 = vmatmul.msk.f32.gmra.mxu0 %vm458_vm5, %v6155_v1  ;;  %v5147_v5 = vpack.i.bf16 %v667_v63, %v668_v0 }
 0x58d   :  { %5148 = vrot.lane.b32.xlu2 %v5147_v5, %s5554_s25 }
 0x595   :  { %1153 = vrot.lane.b32.xlu2 %v5894_v58, %s5556_s27 }
 0x59d   :  { %1143 = vrot.lane.b32.xlu2 %v5894_v58, %s5557_s22 }
 0x5a5   :  { %1147 = vrot.lane.b32.xlu2 %v5890_v55, %s5557_s22 }
 0x5ad   :  { %v653_v7 = vpop.permute.xlu0 %652 }
 0x5ae   :  { %v664_v2 = vsub.f32 %v5890_v55, %v653_v7 }
 0x5b0   :  { %v669_v12 = vmul.f32 %v664_v2, %v664_v2 }
 0x5b5   :  { %v655_v8 = vpop.permute.xlu0 %654 }
 0x5b6   :  { %v665_v9 = vsub.f32 %v5896_v59, %v655_v8 }
 0x5b8   :  { %v670_v15 = vmul.f32 %v665_v9, %v665_v9 }
 0x5ba   :  { %v5142_v61 = vpack.i.bf16 %v669_v12, %v670_v15 }
 0x5bc   :  { %5143 = vrot.lane.b32.xlu1 %v5142_v61, %s5554_s25 }
 0x5bd   :  { %v647_v17 = vpop.permute.xlu0 %646 }
 0x5be   :  { %v661_v3 = vsub.f32 %v5904_v60, %v647_v17 }
 0x5c0   :  { %v666_v10 = vmul.f32 %v661_v3, %v661_v3  ;;  %v6253_v3 = vstv %s374_s3  ;;  %s8032_s3 = smov 24  }
 0x5c2   :  { %676 = vrot.lane.b32.xlu0 %v666_v10, %s5554_s25 }
 0x5c4   :  { %1155 = vrot.lane.b32.xlu1 %v5886_v54, %s5556_s27 }
 0x5c7   :  { %v6173_v20 = vpop.f32.mrf.mxu0 }
 0x5ca   :  { %1159 = vrot.lane.b32.xlu0 %v5896_v59, %s5556_s27 }
 0x5cc   :  { %1141 = vrot.lane.b32.xlu1 %v5904_v60, %s5557_s22 }
 0x5cf   :  { %v6179_v21 = vpop.f32.mrf.mxu0 }
 0x5d0   :  { %1015 = vrot.lane.b32.xlu2 %v6179_v21, %s5558_s0 }
 0x5d2   :  { %1157 = vrot.lane.b32.xlu0 %v5890_v55, %s5556_s27 }
 0x5d7   :  { %v6187_v25 = vpop.f32.mrf.mxu0 }
 0x5da   :  { %1151 = vrot.lane.b32.xlu0 %v5904_v60, %s5556_s27 }
 0x5df   :  { %v6191_v14 = vpop.f32.mrf.mxu0 }
 0x5e2   :  { %1145 = vrot.lane.b32.xlu0 %v5886_v54, %s5557_s22 }
 0x5e7   :  { %v5149_v28 = vpop.permute.xlu2 %5148 }
 0x5e8   :  { %v5150_v32 = vunpack.i.l.bf16 %v5149_v28  ;;  %v5151_v40 = vunpack.i.h.bf16 %v5149_v28 }
 0x5ea   :  { %1019 = vrot.lane.b32.xlu0 %v6191_v14, %s5558_s0 }
 0x5ef   :  { %v1154_v41 = vpop.permute.xlu2 %1153 }
 0x5f2   :  { %1013 = vrot.lane.b32.xlu0 %v6173_v20, %s5558_s0 }
 0x5f7   :  { %v1144_v49 = vpop.permute.xlu2 %1143 }
 0x608   :  { %v6197_v53 = vpop.f32.mrf.mxu0 }
 0x609   :  { %1021 = vrot.lane.b32.xlu1 %v6197_v53, %s5558_s0 }
 0x611   :  { %1017 = vrot.lane.b32.xlu1 %v6187_v25, %s5558_s0 }
 0x619   :  { %1149 = vrot.lane.b32.xlu1 %v5896_v59, %s5557_s22 }
 0x62e   :  { %v5144_v36 = vpop.permute.xlu1 %5143 }
 0x62f   :  { %v5145_v13 = vunpack.i.l.bf16 %v5144_v36  ;;  %v5146_v51 = vunpack.i.h.bf16 %v5144_v36 }
 0x631   :  { %702 = vmatpush.msrb.mxu1 %v5145_v13 }
 0x633   :  { %703 = vmatpush.msrb.mxu1 %v5146_v51 }
 0x634   :  { %v677_v35 = vpop.permute.xlu0 %676 }
 0x635   :  { %704 = vmatpush.msrb.mxu1 %v5150_v32 }
 0x636   :  { %v1156_v45 = vpop.permute.xlu1 %1155 }
 0x637   :  { %705 = vmatpush.msrb.mxu1 %v5151_v40 }
 0x639   :  { %706 = vmatpush.msrb.mxu1 %v677_v35 }
 0x63a   :  { %4888 = vmatmul.msk.f32.vlgmr.msrb.gmra.mxu1 %vm458_vm5, %v6048_v26 }
 0x63c   :  { %v1160_v18 = vpop.permute.xlu0 %1159 }
 0x63d   :  { %4913 = vmatpush.xpose.msk.msra.mxu1 %vm390_vm4, %v1160_v18 }
 0x63e   :  { %v1142_v31 = vpop.permute.xlu1 %1141 }
 0x642   :  { %4889 = vmatmul.msk.f32.gmra.mxu1 %vm458_vm5, %v6053_v43 }
 0x644   :  { %v1158_v24 = vpop.permute.xlu0 %1157 }
 0x645   :  { %4914 = vmatpush.xpose.msk.msra.mxu1 %vm390_vm4, %v1158_v24 }
 0x649   :  { %4915 = vmatpush.xpose.msk.msra.mxu1 %vm390_vm4, %v1156_v45 }
 0x64a   :  { %4890 = vmatmul.msk.f32.gmra.mxu1 %vm458_vm5, %v6058_v48 }
 0x64c   :  { %v1152_v46 = vpop.permute.xlu0 %1151 }
 0x64d   :  { %4916 = vmatpush.xpose.msk.msra.mxu1 %vm390_vm4, %v1154_v41 }
 0x651   :  { %4917 = vmatpush.xpose.msk.msra.mxu1 %vm390_vm4, %v1152_v46 }
 0x652   :  { %4891 = vmatmul.msk.f32.gmra.mxu1 %vm458_vm5, %v6068_v34  ;;  %v1148_v34 = vpop.permute.xlu2 %1147 }
 0x654   :  { %v1146_v26 = vpop.permute.xlu0 %1145 }
 0x65a   :  { %4892 = vmatmul.msk.f32.gmra.mxu1 %vm458_vm5, %v6080_v57  ;;  %v1016_v5 = vpop.permute.xlu2 %1015 }
 0x65b   :  { %v1029_v2 = vsub.f32 %v5894_v58, %v1016_v5 }
 0x65c   :  { %v1020_v43 = vpop.permute.xlu0 %1019 }
 0x65d   :  { %v1031_v57 = vsub.f32 %v5890_v55, %v1020_v43  ;;  %v1034_v12 = vmul.f32 %v1029_v2, %v1029_v2 }
 0x65f   :  { %v1036_v63 = vmul.f32 %v1031_v57, %v1031_v57 }
 0x662   :  { %4918 = vmatmul.msk.f32.vlgmr.msra.gmra.mxu1 %vm390_vm4, %v1142_v31 }
 0x664   :  { %v1014_v47 = vpop.permute.xlu0 %1013 }
 0x665   :  { %v1028_v48 = vsub.f32 %v5904_v60, %v1014_v47 }
 0x667   :  { %v1033_v19 = vmul.f32 %v1028_v48, %v1028_v48 }
 0x669   :  { %1043 = vrot.lane.b32.xlu1 %v1033_v19, %s5555_s26 }
 0x66a   :  { %4919 = vmatmul.msk.f32.gmra.mxu1 %vm390_vm4, %v1144_v49 }
 0x671   :  { %1557 = vrot.lane.b32.xlu1 %v5886_v54, %s5558_s0 }
 0x672   :  { %4920 = vmatmul.msk.f32.gmra.mxu1 %vm390_vm4, %v1146_v26 }
 0x679   :  { %1543 = vrot.lane.b32.xlu1 %v5904_v60, %s8040_s30 }
 0x67a   :  { %4921 = vmatmul.msk.f32.gmra.mxu1 %vm390_vm4, %v1148_v34 }
 0x67b   :  { %v1022_v52 = vpop.permute.xlu1 %1021 }
 0x67c   :  { %v1032_v29 = vsub.f32 %v5896_v59, %v1022_v52 }
 0x67e   :  { %v1037_v0 = vmul.f32 %v1032_v29, %v1032_v29 }
 0x680   :  { %v5152_v7 = vpack.i.bf16 %v1036_v63, %v1037_v0 }
 0x681   :  { %1549 = vrot.lane.b32.xlu1 %v5890_v55, %s8040_s30 }
 0x682   :  { %5153 = vrot.lane.b32.xlu2 %v5152_v7, %s5555_s26 }
 0x683   :  { %v1018_v8 = vpop.permute.xlu1 %1017 }
 0x684   :  { %v1030_v9 = vsub.f32 %v5886_v54, %v1018_v8 }
 0x686   :  { %v1035_v15 = vmul.f32 %v1030_v9, %v1030_v9 }
 0x688   :  { %v5157_v61 = vpack.i.bf16 %v1034_v12, %v1035_v15 }
 0x68a   :  { %5158 = vrot.lane.b32.xlu0 %v5157_v61, %s5555_s26  ;;  %1561 = vrot.lane.b32.xlu2 %v5896_v59, %s5558_s0 }
 0x68b   :  { %v1150_v17 = vpop.permute.xlu1 %1149 }
 0x68c   :  { %4922 = vmatmul.msk.f32.gmra.mxu1 %vm390_vm4, %v1150_v17 }
 0x692   :  { %1559 = vrot.lane.b32.xlu0 %v5890_v55, %s5558_s0  ;;  %1555 = vrot.lane.b32.xlu2 %v5894_v58, %s5558_s0 }
 0x69a   :  { %1553 = vrot.lane.b32.xlu0 %v5904_v60, %s5558_s0  ;;  %1545 = vrot.lane.b32.xlu2 %v5894_v58, %s8040_s30 }
 0x6a2   :  { %1547 = vrot.lane.b32.xlu0 %v5886_v54, %s8040_s30  ;;  %1551 = vrot.lane.b32.xlu2 %v5896_v59, %s8040_s30 }
 0x6b7   :  { %v708_v10 = vpop.f32.mrf.mxu1 }
 0x6b8   :  { %v724_v36 = vadd.f32 %v6253_v3, %v708_v10 }
 0x6ba   :  { %734 = vst.msk [vmem:[#allocation3] sm:$0xff] %vm390_vm4, %v724_v36 }
 0x6bf   :  { %v711_v13 = vpop.f32.mrf.mxu1 }
 0x6c0   :  { %v725_v28 = vadd.f32 %v6253_v3, %v711_v13 }
 0x6c2   :  { %735 = vst.msk [vmem:[#allocation3 + $0x8] sm:$0xff] %vm390_vm4, %v725_v28 }
 0x6c7   :  { %v714_v51 = vpop.f32.mrf.mxu1 }
 0x6c8   :  { %v726_v32 = vadd.f32 %v6253_v3, %v714_v51 }
 0x6ca   :  { %736 = vst.msk [vmem:[#allocation3 + $0x10] sm:$0xff] %vm390_vm4, %v726_v32 }
 0x6cf   :  { %v717_v35 = vpop.f32.mrf.mxu1 }
 0x6d0   :  { %v727_v40 = vadd.f32 %v6253_v3, %v717_v35 }
 0x6d2   :  { %737 = vst.msk [vmem:[#allocation3 + $0x18] sm:$0xff] %vm390_vm4, %v727_v40 }
 0x6d7   :  { %v720_v18 = vpop.f32.mrf.mxu1 }
 0x6d8   :  { %v728_v24 = vadd.f32 %v6253_v3, %v720_v18 }
 0x6da   :  { %738 = vst.msk [vmem:[#allocation3 + $0x20] sm:$0xff] %vm390_vm4, %v728_v24 }
 0x6db   :  { %v1044_v9 = vpop.permute.xlu1 %1043 }
 0x6dc   :  { %v5154_v45 = vpop.permute.xlu2 %5153 }
 0x6dd   :  { %v5155_v41 = vunpack.i.l.bf16 %v5154_v45  ;;  %v5156_v46 = vunpack.i.h.bf16 %v5154_v45 }
 0x6df   :  { %1069 = vmatpush.msra.mxu2 %v5155_v41  ;;  %v1198_v26 = vpop.f32.mrf.mxu1 }
 0x6e0   :  { %v1213_v43 = vmul.f32 0.35355338, %v1198_v26 }
 0x6e1   :  { %1070 = vmatpush.msra.mxu2 %v5156_v46 }
 0x6e2   :  { %v1223_v31 = vadd.f32 %v1213_v43, %v5954_v16 }
 0x6e3   :  { %v1558_v61 = vpop.permute.xlu1 %1557 }
 0x6e4   :  { %v1228_v47 = vsel %vm458_vm5, %v1223_v31, -inf }
 0x6e5   :  { %1229 = vmax.xlane.f32.xlu0 %v1228_v47 }
 0x6e7   :  { %v1201_v48 = vpop.f32.mrf.mxu1 }
 0x6e8   :  { %v1214_v19 = vmul.f32 0.35355338, %v1201_v48 }
 0x6ea   :  { %v1224_v49 = vadd.f32 %v1214_v19, %v5961_v22 }
 0x6ec   :  { %v1231_v34 = vsel %vm458_vm5, %v1224_v49, -inf }
 0x6ed   :  { %1232 = vmax.xlane.f32.xlu1 %v1231_v34 }
 0x6ef   :  { %v1204_v57 = vpop.f32.mrf.mxu1 }
 0x6f0   :  { %v1215_v52 = vmul.f32 0.35355338, %v1204_v57 }
 0x6f2   :  { %v1225_v29 = vadd.f32 %v1215_v52, %v5968_v27  ;;  %v1562_v27 = vpop.permute.xlu2 %1561 }
 0x6f4   :  { %v1234_v63 = vsel %vm458_vm5, %v1225_v29, -inf }
 0x6f5   :  { %1235 = vmax.xlane.f32.xlu2 %v1234_v63 }
 0x6f7   :  { %v1207_v0 = vpop.f32.mrf.mxu1 }
 0x6f8   :  { %v1216_v5 = vmul.f32 0.35355338, %v1207_v0 }
 0x6fa   :  { %v6272_v16 = vadd.f32 %v1216_v5, %v5975_v33  ;;  %v1556_v36 = vpop.permute.xlu2 %1555 }
 0x6fc   :  { %v5159_v7 = vpop.permute.xlu0 %5158  ;;  %v1237_v2 = vsel %vm458_vm5, %v6272_v16, -inf }
 0x6fd   :  { %v5160_v22 = vunpack.i.l.bf16 %v5159_v7  ;;  %1238 = vmax.xlane.f32.xlu0 %v1237_v2  ;;  %v5161_v8 = vunpack.i.h.bf16 %v5159_v7 }
 0x6ff   :  { %1071 = vmatpush.msra.mxu2 %v5160_v22 }
 0x701   :  { %1072 = vmatpush.msra.mxu2 %v5161_v8 }
 0x703   :  { %1073 = vmatpush.msra.mxu2 %v1044_v9 }
 0x704   :  { %4908 = vmatmul.msk.f32.vlgmr.msra.gmra.mxu2 %vm458_vm5, %v6124_v11  ;;  %v1560_v12 = vpop.permute.xlu0 %1559 }
 0x705   :  { %4933 = vmatpush.xpose.msk.msrb.mxu2 %vm390_vm4, %v1562_v27 }
 0x709   :  { %4934 = vmatpush.xpose.msk.msrb.mxu2 %vm390_vm4, %v1560_v12  ;;  %v1210_v33 = vpop.f32.mrf.mxu1 }
 0x70a   :  { %v1217_v15 = vmul.f32 0.35355338, %v1210_v33 }
 0x70c   :  { %4909 = vmatmul.msk.f32.gmra.mxu2 %vm458_vm5, %v6133_v23  ;;  %v1227_v17 = vadd.f32 %v1217_v15, %v5982_v38  ;;  %v1554_v11 = vpop.permute.xlu0 %1553  ;;  %v1544_v38 = vpop.permute.xlu1 %1543  ;;  %v1620_v15 = vld [vmem:[%s8015_s2] sm:$0xff] }
 0x70d   :  { %4935 = vmatpush.xpose.msk.msrb.mxu2 %vm390_vm4, %v1558_v61  ;;  %v1546_v23 = vpop.permute.xlu2 %1545 }
 0x70e   :  { %v1240_v10 = vsel %vm458_vm5, %v1227_v17, -inf }
 0x70f   :  { %1241 = vmax.xlane.f32.xlu1 %v1240_v10 }
 0x711   :  { %4936 = vmatpush.xpose.msk.msrb.mxu2 %vm390_vm4, %v1556_v36 }
 0x714   :  { %4910 = vmatmul.msk.f32.gmra.mxu2 %vm458_vm5, %v6141_v37  ;;  %v1548_v13 = vpop.permute.xlu0 %1547  ;;  %v1550_v37 = vpop.permute.xlu1 %1549 }
 0x715   :  { %4937 = vmatpush.xpose.msk.msrb.mxu2 %vm390_vm4, %v1554_v11  ;;  %v1621_v11 = vld [vmem:[%s8015_s2 + $0x8] sm:$0xff] }
 0x71c   :  { %4911 = vmatmul.msk.f32.gmra.mxu2 %vm458_vm5, %v6148_v30  ;;  %v1552_v30 = vpop.permute.xlu2 %1551 }
 0x724   :  { %4912 = vmatmul.msk.f32.gmra.mxu2 %vm458_vm5, %v6155_v1 }
 0x728   :  { %5163 = vrot.lane.b32.xlu1 %v5988_v42, %s8038_s18 }
 0x72c   :  { %4938 = vmatmul.msk.f32.vlgmr.msrb.gmra.mxu2 %vm390_vm4, %v1544_v38 }
 0x734   :  { %4939 = vmatmul.msk.f32.gmra.mxu2 %vm390_vm4, %v1546_v23 }
 0x73c   :  { %4940 = vmatmul.msk.f32.gmra.mxu2 %vm390_vm4, %v1548_v13 }
 0x744   :  { %4941 = vmatmul.msk.f32.gmra.mxu2 %vm390_vm4, %v1550_v37 }
 0x74c   :  { %4942 = vmatmul.msk.f32.gmra.mxu2 %vm390_vm4, %v1552_v30  ;;  %v1622_v30 = vld [vmem:[%s8015_s2 + $0x10] sm:$0xff] }
 0x758   :  { %v1230_v1 = vpop.xlane.xlu0 %1229 }
 0x759   :  { %v1243_v28 = vsub.f32 %v1223_v31, %v1230_v1 }
 0x75b   :  { %v1248_v51 = vmul.f32 1.442695, %v1243_v28 }
 0x75d   :  { %5339 = vpow2.f32 %v1248_v51 }
 0x760   :  { %v1233_v32 = vpop.xlane.xlu1 %1232 }
 0x761   :  { %v1244_v35 = vsub.f32 %v1224_v49, %v1233_v32 }
 0x763   :  { %v6300_v40 = vpop.eup %5339  ;;  %v1250_v18 = vmul.f32 1.442695, %v1244_v35  ;;  %v1623_v35 = vld [vmem:[%s8015_s2 + $0x18] sm:$0xff] }
 0x764   :  { %v1258_v24 = vsel %vm458_vm5, %v6300_v40, 0.0 }
 0x765   :  { %5341 = vpow2.f32 %v1250_v18  ;;  %1259 = vadd.xlane.f32.xlu2 %v1258_v24 }
 0x768   :  { %v1236_v45 = vpop.xlane.xlu2 %1235 }
 0x769   :  { %v1245_v41 = vsub.f32 %v1225_v29, %v1236_v45 }
 0x76b   :  { %v6304_v46 = vpop.eup %5341  ;;  %v1252_v26 = vmul.f32 1.442695, %v1245_v41 }
 0x76c   :  { %v1261_v43 = vsel %vm458_vm5, %v6304_v46, 0.0 }
 0x76d   :  { %5343 = vpow2.f32 %v1252_v26  ;;  %1262 = vadd.xlane.f32.xlu0 %v1261_v43  ;;  %v1624_v26 = vld [vmem:[%s8015_s2 + $0x20] sm:$0xff] }
 0x770   :  { %v1239_v63 = vpop.xlane.xlu0 %1238 }
 0x771   :  { %v1246_v0 = vsub.f32 %v6272_v16, %v1239_v63 }
 0x773   :  { %v6308_v31 = vpop.eup %5343  ;;  %v1254_v7 = vmul.f32 1.442695, %v1246_v0 }
 0x774   :  { %v1264_v47 = vsel %vm458_vm5, %v6308_v31, 0.0 }
 0x775   :  { %1265 = vadd.xlane.f32.xlu0 %v1264_v47 }
 0x77d   :  { %5168 = vrot.lane.b32.xlu2 %v6006_v4, %s8038_s18 }
 0x782   :  { %v1242_v48 = vpop.xlane.xlu1 %1241 }
 0x783   :  { %v1247_v19 = vsub.f32 %v1227_v17, %v1242_v48 }
 0x785   :  { %v1256_v49 = vmul.f32 1.442695, %v1247_v19 }
 0x787   :  { %5345 = vpow2.f32 %v1256_v49  ;;  %v6314_v34 = vpop.f32.mrf.mxu2 }
 0x788   :  { %5347 = vpow2.f32 %v1254_v7 }
 0x789   :  { %1348 = vrot.lane.b32.xlu0 %v5904_v60, %s8038_s18 }
 0x78d   :  { %v6318_v57 = vpop.eup %5345 }
 0x78e   :  { %v1270_v52 = vsel %vm458_vm5, %v6318_v57, 0.0  ;;  %v6329_v27 = vpop.eup %5347 }
 0x78f   :  { %1271 = vadd.xlane.f32.xlu1 %v1270_v52  ;;  %v6322_v29 = vpop.f32.mrf.mxu2  ;;  %v1267_v12 = vsel %vm458_vm5, %v6329_v27, 0.0 }
 0x797   :  { %v6325_v5 = vpop.f32.mrf.mxu2 }
 0x79a   :  { %v5164_v2 = vpop.permute.xlu1 %5163 }
 0x79b   :  { %v5165_v22 = vunpack.i.l.bf16 %v5164_v2  ;;  %v5166_v8 = vunpack.i.h.bf16 %v5164_v2 }
 0x79d   :  { %1389 = vmatpush.msra.mxu3 %v5165_v22 }
 0x79f   :  { %v6327_v9 = vpop.f32.mrf.mxu2  ;;  %1390 = vmatpush.msra.mxu3 %v5166_v8 }
 0x7a6   :  { %1268 = vadd.xlane.f32.xlu2 %v1267_v12 }
 0x7a7   :  { %v6333_v33 = vpop.f32.mrf.mxu2 }
 0x7af   :  { %v1600_v16 = vpop.f32.mrf.mxu2 }
 0x7b0   :  { %v1615_v61 = vmul.f32 0.35355338, %v1600_v16 }
 0x7b2   :  { %v6338_v17 = vadd.f32 %v1620_v15, %v1615_v61 }
 0x7b4   :  { %v1630_v10 = vsel %vm458_vm5, %v6338_v17, -inf }
 0x7b5   :  { %1631 = vmax.xlane.f32.xlu0 %v1630_v10 }
 0x7b7   :  { %v1603_v36 = vpop.f32.mrf.mxu2 }
 0x7b8   :  { %v1616_v38 = vmul.f32 0.35355338, %v1603_v36 }
 0x7ba   :  { %v6345_v23 = vadd.f32 %v1621_v11, %v1616_v38 }
 0x7bc   :  { %v1633_v13 = vsel %vm458_vm5, %v6345_v23, -inf }
 0x7bd   :  { %1634 = vmax.xlane.f32.xlu2 %v1633_v13 }
 0x7bf   :  { %v1606_v37 = vpop.f32.mrf.mxu2 }
 0x7c0   :  { %v1617_v1 = vmul.f32 0.35355338, %v1606_v37 }
 0x7c2   :  { %v6352_v28 = vadd.f32 %v1622_v30, %v1617_v1 }
 0x7c4   :  { %v1636_v51 = vsel %vm458_vm5, %v6352_v28, -inf }
 0x7c5   :  { %1637 = vmax.xlane.f32.xlu1 %v1636_v51 }
 0x7c7   :  { %v1609_v32 = vpop.f32.mrf.mxu2 }
 0x7c8   :  { %v1618_v18 = vmul.f32 0.35355338, %v1609_v32 }
 0x7ca   :  { %v6359_v24 = vadd.f32 %v1623_v35, %v1618_v18 }
 0x7cc   :  { %v1639_v45 = vsel %vm458_vm5, %v6359_v24, -inf }
 0x7cd   :  { %1640 = vmax.xlane.f32.xlu2 %v1639_v45 }
 0x7cf   :  { %v1612_v41 = vpop.f32.mrf.mxu2 }
 0x7d0   :  { %v1619_v43 = vmul.f32 0.35355338, %v1612_v41 }
 0x7d2   :  { %v6366_v47 = vadd.f32 %v1624_v26, %v1619_v43 }
 0x7d4   :  { %v1642_v48 = vsel %vm458_vm5, %v6366_v47, -inf }
 0x7d5   :  { %1643 = vmax.xlane.f32.xlu1 %v1642_v48 }
 0x7d8   :  { %v1260_v19 = vpop.xlane.xlu2 %1259 }
 0x7d9   :  { %5349 = vrcp.f32 %v1260_v19  ;;  %v1284_v11 = vand.u32 2147483648, %v1260_v19  ;;  %vm1278_vm11 = vweird.f32 %v1260_v19  ;;  %v1282_v38 = vand.u32 2147483647, %v1260_v19 }
 0x7db   :  { %v1285_v1 = vor.u32 1.1754944e-38, %v1284_v11  ;;  %vm1283_vm13 = vcmp.eq.f32.partialorder %v1282_v38, 8.507059e+37 }
 0x7df   :  { %v5350_v0 = vpop.eup %5349 }
 0x7e0   :  { %v5169_v49 = vpop.permute.xlu2 %5168  ;;  %v1263_v52 = vpop.xlane.xlu0 %1262  ;;  %v1274_v2 = vmul.f32 %v5350_v0, %v1260_v19  ;;  %vm1279_vm10 = vweird.f32 %v5350_v0 }
 0x7e1   :  { %v5170_v63 = vunpack.i.l.bf16 %v5169_v49  ;;  %v5171_v7 = vunpack.i.h.bf16 %v5169_v49  ;;  %5351 = vrcp.f32 %v1263_v52  ;;  %vm1280_vm12 = vmor %vm1278_vm11, %vm1279_vm10  ;;  %v1299_v18 = vand.u32 2147483648, %v1263_v52 }
 0x7e2   :  { %v1275_v22 = vsub.f32 1.0, %v1274_v2  ;;  %vm1293_vm15 = vweird.f32 %v1263_v52  ;;  %v1297_v41 = vand.u32 2147483647, %v1263_v52 }
 0x7e3   :  { %1391 = vmatpush.msra.mxu3 %v5170_v63  ;;  %v1300_v48 = vor.u32 1.1754944e-38, %v1299_v18 }
 0x7e4   :  { %v1276_v16 = vmul.f32 %v5350_v0, %v1275_v22  ;;  %vm1298_vm3 = vcmp.eq.f32.partialorder %v1297_v41, 8.507059e+37 }
 0x7e5   :  { %1392 = vmatpush.msra.mxu3 %v5171_v7 }
 0x7e6   :  { %v1277_v61 = vadd.f32 %v5350_v0, %v1276_v16 }
 0x7e7   :  { %v5352_v12 = vpop.eup %5351 }
 0x7e8   :  { %v1266_v8 = vpop.xlane.xlu0 %1265  ;;  %v1289_v15 = vmul.f32 %v5352_v12, %v1263_v52  ;;  %v1281_v13 = vsel %vm1280_vm12, %v5350_v0, %v1277_v61  ;;  %vm1294_vm14 = vweird.f32 %v5352_v12 }
 0x7e9   :  { %5353 = vrcp.f32 %v1266_v8  ;;  %v1286_v51 = vsel %vm1283_vm13, %v1285_v1, %v1281_v13  ;;  %vm1295_vm2 = vmor %vm1293_vm15, %vm1294_vm14  ;;  %v1314_v63 = vand.u32 2147483648, %v1266_v8  ;;  %vm1308_vm7 = vweird.f32 %v1266_v8 }
 0x7ea   :  { %v1290_v10 = vsub.f32 1.0, %v1289_v15 }
 0x7eb   :  { %v1315_v7 = vor.u32 1.1754944e-38, %v1314_v63 }
 0x7ec   :  { %v1291_v30 = vmul.f32 %v5352_v12, %v1290_v10 }
 0x7ee   :  { %5173 = vrot.lane.b32.xlu1 %v5988_v42, %s5561_s21  ;;  %v1292_v35 = vadd.f32 %v5352_v12, %v1291_v30  ;;  %v6373_v42 = vmul.f32 %v6300_v40, %v1286_v51  ;;  %v1312_v40 = vand.u32 2147483647, %v1266_v8 }
 0x7ef   :  { %v5354_v36 = vpop.eup %5353 }
 0x7f0   :  { %v1304_v37 = vmul.f32 %v5354_v36, %v1266_v8  ;;  %v1296_v26 = vsel %vm1295_vm2, %v5352_v12, %v1292_v35  ;;  %vm1309_vm6 = vweird.f32 %v5354_v36  ;;  %vm1313_vm9 = vcmp.eq.f32.partialorder %v1312_v40, 8.507059e+37 }
 0x7f1   :  { %v1301_v19 = vsel %vm1298_vm3, %v1300_v48, %v1296_v26  ;;  %vm1310_vm8 = vmor %vm1308_vm7, %vm1309_vm6 }
 0x7f2   :  { %v1305_v32 = vsub.f32 1.0, %v1304_v37  ;;  %v6378_v0 = vmul.f32 %v6304_v46, %v1301_v19 }
 0x7f4   :  { %v1306_v43 = vmul.f32 %v5354_v36, %v1305_v32 }
 0x7f6   :  { %v1307_v49 = vadd.f32 %v5354_v36, %v1306_v43 }
 0x7f8   :  { %v1311_v52 = vsel %vm1310_vm8, %v5354_v36, %v1307_v49 }
 0x7f9   :  { %v1316_v2 = vsel %vm1313_vm9, %v1315_v7, %v1311_v52 }
 0x7fa   :  { %v6383_v22 = vmul.f32 %v6308_v31, %v1316_v2 }
 0x7fb   :  { %v1349_v45 = vpop.permute.xlu0 %1348 }
 0x7fc   :  { %1393 = vmatpush.msra.mxu3 %v1349_v45 }
 0x7fd   :  { %4923 = vmatmul.msk.f32.vlgmr.msra.gmra.mxu3 %vm458_vm5, %v6373_v42 }
 0x802   :  { %v1272_v12 = vpop.xlane.xlu1 %1271 }
 0x803   :  { %5355 = vrcp.f32 %v1272_v12  ;;  %v1344_v45 = vand.u32 2147483648, %v1272_v12  ;;  %vm1338_vm15 = vweird.f32 %v1272_v12  ;;  %v1342_v43 = vand.u32 2147483647, %v1272_v12 }
 0x805   :  { %4924 = vmatmul.msk.f32.gmra.mxu3 %vm458_vm5, %v6378_v0  ;;  %v1345_v19 = vor.u32 1.1754944e-38, %v1344_v45  ;;  %vm1343_vm3 = vcmp.eq.f32.partialorder %v1342_v43, 8.507059e+37 }
 0x809   :  { %v5356_v16 = vpop.eup %5355 }
 0x80a   :  { %v1334_v8 = vmul.f32 %v5356_v16, %v1272_v12  ;;  %vm1339_vm13 = vweird.f32 %v5356_v16 }
 0x80b   :  { %vm1340_vm2 = vmor %vm1338_vm15, %vm1339_vm13 }
 0x80c   :  { %v1335_v61 = vsub.f32 1.0, %v1334_v8 }
 0x80d   :  { %4925 = vmatmul.msk.f32.gmra.mxu3 %vm458_vm5, %v6383_v22 }
 0x80e   :  { %v1336_v37 = vmul.f32 %v5356_v16, %v1335_v61 }
 0x810   :  { %v1337_v35 = vadd.f32 %v5356_v16, %v1336_v37 }
 0x812   :  { %v1341_v48 = vsel %vm1340_vm2, %v5356_v16, %v1337_v35 }
 0x813   :  { %v1346_v49 = vsel %vm1343_vm3, %v1345_v19, %v1341_v48 }
 0x819   :  { %v1269_v46 = vpop.xlane.xlu2 %1268 }
 0x81a   :  { %5357 = vrcp.f32 %v1269_v46  ;;  %v1329_v36 = vand.u32 2147483648, %v1269_v46  ;;  %v1327_v13 = vand.u32 2147483647, %v1269_v46  ;;  %vm1323_vm11 = vweird.f32 %v1269_v46 }
 0x81c   :  { %v1330_v1 = vor.u32 1.1754944e-38, %v1329_v36  ;;  %vm1328_vm14 = vcmp.eq.f32.partialorder %v1327_v13, 8.507059e+37 }
 0x820   :  { %v5358_v15 = vpop.eup %5357 }
 0x821   :  { %v1319_v10 = vmul.f32 %v5358_v15, %v1269_v46  ;;  %vm1324_vm10 = vweird.f32 %v5358_v15 }
 0x822   :  { %vm1325_vm12 = vmor %vm1323_vm11, %vm1324_vm10 }
 0x823   :  { %v1320_v11 = vsub.f32 1.0, %v1319_v10 }
 0x825   :  { %v1321_v38 = vmul.f32 %v5358_v15, %v1320_v11 }
 0x827   :  { %v1322_v31 = vadd.f32 %v5358_v15, %v1321_v38 }
 0x828   :  { %v1632_v30 = vpop.xlane.xlu0 %1631 }
 0x829   :  { %v1645_v51 = vsub.f32 %v6338_v17, %v1632_v30  ;;  %v1326_v32 = vsel %vm1325_vm12, %v5358_v15, %v1322_v31 }
 0x82a   :  { %v1331_v18 = vsel %vm1328_vm14, %v1330_v1, %v1326_v32 }
 0x82b   :  { %v1650_v41 = vmul.f32 1.442695, %v1645_v51  ;;  %v6389_v26 = vmul.f32 %v6329_v27, %v1331_v18  ;;  %v6397_v27 = vmul.f32 %v6318_v57, %v1346_v49 }
 0x82d   :  { %5359 = vpow2.f32 %v1650_v41  ;;  %4926 = vmatmul.msk.f32.gmra.mxu3 %vm458_vm5, %v6389_v26 }
 0x830   :  { %v1635_v17 = vpop.xlane.xlu2 %1634 }
 0x831   :  { %v1646_v63 = vsub.f32 %v6345_v23, %v1635_v17 }
 0x833   :  { %v6394_v40 = vpop.eup %5359  ;;  %v1652_v52 = vmul.f32 1.442695, %v1646_v63 }
 0x834   :  { %v1660_v7 = vsel %vm458_vm5, %v6394_v40, 0.0 }
 0x835   :  { %5361 = vpow2.f32 %v1652_v52  ;;  %4927 = vmatmul.msk.f32.gmra.mxu3 %vm458_vm5, %v6397_v27  ;;  %1661 = vadd.xlane.f32.xlu0 %v1660_v7 }
 0x838   :  { %v1638_v2 = vpop.xlane.xlu1 %1637 }
 0x839   :  { %v1647_v12 = vsub.f32 %v6352_v28, %v1638_v2 }
 0x83b   :  { %v6404_v46 = vpop.eup %5361  ;;  %v1654_v23 = vmul.f32 1.442695, %v1647_v12 }
 0x83c   :  { %v1663_v16 = vsel %vm458_vm5, %v6404_v46, 0.0 }
 0x83d   :  { %5363 = vpow2.f32 %v1654_v23  ;;  %1664 = vadd.xlane.f32.xlu2 %v1663_v16 }
 0x840   :  { %v1641_v36 = vpop.xlane.xlu2 %1640 }
 0x841   :  { %v1648_v13 = vsub.f32 %v6359_v24, %v1641_v36 }
 0x843   :  { %v6408_v57 = vpop.eup %5363  ;;  %v1656_v31 = vmul.f32 1.442695, %v1648_v13 }
 0x844   :  { %v1666_v8 = vsel %vm458_vm5, %v6408_v57, 0.0 }
 0x845   :  { %1667 = vadd.xlane.f32.xlu2 %v1666_v8 }
 0x848   :  { %v1644_v15 = vpop.xlane.xlu1 %1643 }
 0x849   :  { %v1649_v61 = vsub.f32 %v6366_v47, %v1644_v15  ;;  %5178 = vrot.lane.b32.xlu0 %v6006_v4, %s5561_s21 }
 0x84b   :  { %v1658_v28 = vmul.f32 1.442695, %v1649_v61 }
 0x84d   :  { %5365 = vpow2.f32 %v1658_v28 }
 0x84e   :  { %5367 = vpow2.f32 %v1656_v31 }
 0x853   :  { %v6415_v10 = vpop.eup %5365 }
 0x854   :  { %v1672_v11 = vsel %vm458_vm5, %v6415_v10, 0.0  ;;  %v6422_v4 = vpop.eup %5367 }
 0x855   :  { %1673 = vadd.xlane.f32.xlu1 %v1672_v11  ;;  %v1669_v30 = vsel %vm458_vm5, %v6422_v4, 0.0 }
 0x85d   :  { %1750 = vrot.lane.b32.xlu2 %v5904_v60, %s5561_s21 }
 0x860   :  { %v5174_v38 = vpop.permute.xlu1 %5173 }
 0x861   :  { %v5175_v37 = vunpack.i.l.bf16 %v5174_v38  ;;  %v5176_v47 = vunpack.i.h.bf16 %v5174_v38 }
 0x863   :  { %1791 = vmatpush.msrb.mxu1 %v5175_v37 }
 0x865   :  { %1792 = vmatpush.msrb.mxu1 %v5176_v47 }
 0x873   :  { %1670 = vadd.xlane.f32.xlu0 %v1669_v30 }
 0x880   :  { %v6426_v1 = vpop.f32.mrf.mxu3 }
 0x887   :  { %1415 = vrot.lane.b32.xlu0 %v6426_v1, %s5556_s27 }
 0x888   :  { %v6430_v51 = vpop.f32.mrf.mxu3 }
 0x88f   :  { %1095 = vrot.lane.b32.xlu0 %v6173_v20, %s8036_s23 }
 0x890   :  { %v6434_v24 = vpop.f32.mrf.mxu3 }
 0x891   :  { %1419 = vrot.lane.b32.xlu2 %v6434_v24, %s5556_s27 }
 0x8a8   :  { %v1662_v32 = vpop.xlane.xlu0 %1661 }
 0x8a9   :  { %5369 = vrcp.f32 %v1662_v32  ;;  %v1686_v17 = vand.u32 2147483648, %v1662_v32  ;;  %vm1680_vm7 = vweird.f32 %v1662_v32  ;;  %v1684_v7 = vand.u32 2147483647, %v1662_v32 }
 0x8ab   :  { %v1687_v16 = vor.u32 1.1754944e-38, %v1686_v17  ;;  %vm1685_vm9 = vcmp.eq.f32.partialorder %v1684_v7, 8.507059e+37 }
 0x8af   :  { %v5370_v35 = vpop.eup %5369 }
 0x8b0   :  { %v1676_v18 = vmul.f32 %v5370_v35, %v1662_v32  ;;  %v6438_v45 = vpop.f32.mrf.mxu3  ;;  %v1665_v41 = vpop.xlane.xlu2 %1664  ;;  %vm1681_vm6 = vweird.f32 %v5370_v35 }
 0x8b1   :  { %5371 = vrcp.f32 %v1665_v41  ;;  %1421 = vrot.lane.b32.xlu2 %v6438_v45, %s5556_s27  ;;  %vm1682_vm8 = vmor %vm1680_vm7, %vm1681_vm6  ;;  %v1701_v37 = vand.u32 2147483648, %v1665_v41  ;;  %vm1695_vm11 = vweird.f32 %v1665_v41  ;;  %v1699_v31 = vand.u32 2147483647, %v1665_v41 }
 0x8b2   :  { %v1677_v43 = vsub.f32 1.0, %v1676_v18 }
 0x8b3   :  { %vm1700_vm13 = vcmp.eq.f32.partialorder %v1699_v31, 8.507059e+37 }
 0x8b4   :  { %v1678_v48 = vmul.f32 %v5370_v35, %v1677_v43 }
 0x8b6   :  { %v1679_v20 = vadd.f32 %v5370_v35, %v1678_v48 }
 0x8b7   :  { %v5372_v19 = vpop.eup %5371 }
 0x8b8   :  { %v1691_v49 = vmul.f32 %v5372_v19, %v1665_v41  ;;  %v6442_v63 = vpop.f32.mrf.mxu3  ;;  %v1668_v52 = vpop.xlane.xlu2 %1667  ;;  %v1683_v12 = vsel %vm1682_vm8, %v5370_v35, %v1679_v20  ;;  %vm1696_vm10 = vweird.f32 %v5372_v19  ;;  %v1702_v35 = vor.u32 1.1754944e-38, %v1701_v37 }
 0x8b9   :  { %5373 = vrcp.f32 %v1668_v52  ;;  %1423 = vrot.lane.b32.xlu2 %v6442_v63, %s5556_s27  ;;  %v1688_v28 = vsel %vm1685_vm9, %v1687_v16, %v1683_v12  ;;  %vm1697_vm12 = vmor %vm1695_vm11, %vm1696_vm10  ;;  %v1716_v20 = vand.u32 2147483648, %v1668_v52  ;;  %vm1710_vm15 = vweird.f32 %v1668_v52 }
 0x8ba   :  { %v1692_v2 = vsub.f32 1.0, %v1691_v49  ;;  %v6449_v47 = vmul.f32 %v6394_v40, %v1688_v28  ;;  %v1714_v40 = vand.u32 2147483647, %v1668_v52 }
 0x8bb   :  { %v5179_v23 = vpop.permute.xlu0 %5178  ;;  %v1717_v49 = vor.u32 1.1754944e-38, %v1716_v20 }
 0x8bc   :  { %v5180_v8 = vunpack.i.l.bf16 %v5179_v23  ;;  %v1693_v15 = vmul.f32 %v5372_v19, %v1692_v2  ;;  %v5181_v61 = vunpack.i.h.bf16 %v5179_v23  ;;  %vm1715_vm3 = vcmp.eq.f32.partialorder %v1714_v40, 8.507059e+37 }
 0x8be   :  { %1793 = vmatpush.msrb.mxu1 %v5180_v8  ;;  %v1694_v36 = vadd.f32 %v5372_v19, %v1693_v15 }
 0x8bf   :  { %v5374_v11 = vpop.eup %5373 }
 0x8c0   :  { %v1706_v38 = vmul.f32 %v5374_v11, %v1668_v52  ;;  %v1751_v13 = vpop.permute.xlu2 %1750  ;;  %1794 = vmatpush.msrb.mxu1 %v5181_v61  ;;  %v1698_v32 = vsel %vm1697_vm12, %v5372_v19, %v1694_v36  ;;  %vm1711_vm14 = vweird.f32 %v5374_v11 }
 0x8c1   :  { %1417 = vrot.lane.b32.xlu2 %v6430_v51, %s5556_s27  ;;  %v1703_v43 = vsel %vm1700_vm13, %v1702_v35, %v1698_v32  ;;  %vm1712_vm2 = vmor %vm1710_vm15, %vm1711_vm14  ;;  %vm1110_vm14 = vcmask 130112   ;;  %vm1512_vm15 = vcmask 195712  }
 0x8c2   :  { %v1707_v30 = vsub.f32 1.0, %v1706_v38  ;;  %1795 = vmatpush.msrb.mxu1 %v1751_v13  ;;  %v6454_v17 = vmul.f32 %v6404_v46, %v1703_v43 }
 0x8c3   :  { %4943 = vmatmul.msk.f32.vlgmr.msrb.gmra.mxu1 %vm458_vm5, %v6449_v47 }
 0x8c4   :  { %v1708_v18 = vmul.f32 %v5374_v11, %v1707_v30 }
 0x8c6   :  { %v1709_v48 = vadd.f32 %v5374_v11, %v1708_v18 }
 0x8c8   :  { %v1713_v41 = vsel %vm1712_vm2, %v5374_v11, %v1709_v48  ;;  %v1674_v2 = vpop.xlane.xlu1 %1673  ;;  %vm1914_vm2 = vcmask 261312  }
 0x8c9   :  { %v1718_v19 = vsel %vm1715_vm3, %v1717_v49, %v1713_v41  ;;  %5375 = vrcp.f32 %v1674_v2  ;;  %v1746_v30 = vand.u32 2147483648, %v1674_v2  ;;  %vm1740_vm11 = vweird.f32 %v1674_v2 }
 0x8ca   :  { %v6459_v7 = vmul.f32 %v6408_v57, %v1718_v19  ;;  %v1744_v35 = vand.u32 2147483647, %v1674_v2 }
 0x8cb   :  { %4944 = vmatmul.msk.f32.gmra.mxu1 %vm458_vm5, %v6454_v17  ;;  %v1747_v48 = vor.u32 1.1754944e-38, %v1746_v30 }
 0x8cc   :  { %vm1745_vm13 = vcmp.eq.f32.partialorder %v1744_v35, 8.507059e+37  ;;  %v1953_v35 = vld [vmem:[%s8021_s8 + $0x18] sm:$0xff] }
 0x8cf   :  { %v5376_v12 = vpop.eup %5375 }
 0x8d0   :  { %v1736_v52 = vmul.f32 %v5376_v12, %v1674_v2  ;;  %vm1741_vm10 = vweird.f32 %v5376_v12 }
 0x8d1   :  { %vm1742_vm12 = vmor %vm1740_vm11, %vm1741_vm10 }
 0x8d2   :  { %v1737_v16 = vsub.f32 1.0, %v1736_v52 }
 0x8d3   :  { %4945 = vmatmul.msk.f32.gmra.mxu1 %vm458_vm5, %v6459_v7 }
 0x8d4   :  { %v1738_v36 = vmul.f32 %v5376_v12, %v1737_v16 }
 0x8d6   :  { %v1739_v37 = vadd.f32 %v5376_v12, %v1738_v36 }
 0x8d8   :  { %v1743_v43 = vsel %vm1742_vm12, %v5376_v12, %v1739_v37 }
 0x8d9   :  { %v1748_v20 = vsel %vm1745_vm13, %v1747_v48, %v1743_v43 }
 0x8da   :  { %v6469_v40 = vmul.f32 %v6415_v10, %v1748_v20  ;;  %v1951_v20 = vld [vmem:[%s8021_s8 + $0x8] sm:$0xff] }
 0x8e6   :  { %v1671_v46 = vpop.xlane.xlu0 %1670 }
 0x8e7   :  { %5377 = vrcp.f32 %v1671_v46  ;;  %v1731_v61 = vand.u32 2147483648, %v1671_v46  ;;  %v1729_v11 = vand.u32 2147483647, %v1671_v46  ;;  %vm1725_vm7 = vweird.f32 %v1671_v46 }
 0x8e9   :  { %v1732_v38 = vor.u32 1.1754944e-38, %v1731_v61  ;;  %vm1730_vm9 = vcmp.eq.f32.partialorder %v1729_v11, 8.507059e+37 }
 0x8ed   :  { %v5378_v23 = vpop.eup %5377 }
 0x8ee   :  { %v1721_v8 = vmul.f32 %v5378_v23, %v1671_v46  ;;  %vm1726_vm6 = vweird.f32 %v5378_v23 }
 0x8ef   :  { %vm1727_vm8 = vmor %vm1725_vm7, %vm1726_vm6 }
 0x8f0   :  { %v1722_v15 = vsub.f32 1.0, %v1721_v8 }
 0x8f2   :  { %v1723_v28 = vmul.f32 %v5378_v23, %v1722_v15 }
 0x8f4   :  { %v1724_v57 = vadd.f32 %v5378_v23, %v1723_v28 }
 0x8f6   :  { %v1728_v13 = vsel %vm1727_vm8, %v5378_v23, %v1724_v57 }
 0x8f7   :  { %v1733_v31 = vsel %vm1730_vm9, %v1732_v38, %v1728_v13 }
 0x8f8   :  { %v6464_v32 = vmul.f32 %v6422_v4, %v1733_v31  ;;  %v1420_v4 = vpop.permute.xlu2 %1419 }
 0x8f9   :  { %v1416_v18 = vpop.permute.xlu0 %1415  ;;  %v1432_v16 = vsub.f32 %v5886_v54, %v1420_v4 }
 0x8fa   :  { %4946 = vmatmul.msk.f32.gmra.mxu1 %vm458_vm5, %v6464_v32  ;;  %v1430_v11 = vsub.f32 %v5904_v60, %v1416_v18  ;;  %v1952_v18 = vld [vmem:[%s8021_s8 + $0x10] sm:$0xff] }
 0x8fb   :  { %v1437_v15 = vmul.f32 %v1432_v16, %v1432_v16 }
 0x8fc   :  { %v1435_v36 = vmul.f32 %v1430_v11, %v1430_v11  ;;  %v6574_v11 = vld [vmem:[%s8018_s5] sm:$0xff] }
 0x901   :  { %v1096_v41 = vpop.permute.xlu0 %1095 }
 0x902   :  { %1111 = vst.msk [vmem:[#allocation2] sm:$0xff] %vm1110_vm14, %v1096_v41  ;;  %4947 = vmatmul.msk.f32.gmra.mxu1 %vm458_vm5, %v6469_v40 }
 0x90b   :  { %v1422_v49 = vpop.permute.xlu2 %1421 }
 0x90c   :  { %v1433_v19 = vsub.f32 %v5890_v55, %v1422_v49 }
 0x90e   :  { %v1438_v12 = vmul.f32 %v1433_v19, %v1433_v19 }
 0x913   :  { %v1424_v2 = vpop.permute.xlu2 %1423 }
 0x914   :  { %v1434_v46 = vsub.f32 %v5896_v59, %v1424_v2 }
 0x916   :  { %v1439_v52 = vmul.f32 %v1434_v46, %v1434_v46 }
 0x918   :  { %v5182_v23 = vpack.i.bf16 %v1438_v12, %v1439_v52 }
 0x91a   :  { %5183 = vrot.lane.b32.xlu1 %v5182_v23, %s8038_s18 }
 0x91b   :  { %v1418_v10 = vpop.permute.xlu2 %1417 }
 0x91c   :  { %v1431_v8 = vsub.f32 %v5894_v58, %v1418_v10 }
 0x91e   :  { %v1436_v61 = vmul.f32 %v1431_v8, %v1431_v8 }
 0x920   :  { %v5187_v28 = vpack.i.bf16 %v1436_v61, %v1437_v15 }
 0x922   :  { %5188 = vrot.lane.b32.xlu2 %v5187_v28, %s8038_s18  ;;  %1097 = vrot.lane.b32.xlu1 %v6179_v21, %s8036_s23 }
 0x92a   :  { %1445 = vrot.lane.b32.xlu2 %v1435_v36, %s8038_s18  ;;  %1099 = vrot.lane.b32.xlu1 %v6187_v25, %s8036_s23  ;;  %v1954_v36 = vperm.slane %v6574_v11, 4 }
 0x932   :  { %1497 = vrot.lane.b32.xlu2 %v6426_v1, %s8034_s24  ;;  %1101 = vrot.lane.b32.xlu1 %v6191_v14, %s8036_s23 }
 0x93a   :  { %1499 = vrot.lane.b32.xlu2 %v6430_v51, %s8034_s24  ;;  %1103 = vrot.lane.b32.xlu1 %v6197_v53, %s8036_s23 }
 0x940   :  { %v6494_v21 = vpop.f32.mrf.mxu1 }
 0x941   :  { %1899 = vrot.lane.b32.xlu0 %v6494_v21, %s8032_s3 }
 0x942   :  { %1501 = vrot.lane.b32.xlu2 %v6434_v24, %s8034_s24 }
 0x948   :  { %v6500_v25 = vpop.f32.mrf.mxu1 }
 0x949   :  { %1901 = vrot.lane.b32.xlu0 %v6500_v25, %s8032_s3 }
 0x94a   :  { %1503 = vrot.lane.b32.xlu2 %v6438_v45, %s8034_s24 }
 0x950   :  { %v6506_v14 = vpop.f32.mrf.mxu1 }
 0x951   :  { %1903 = vrot.lane.b32.xlu0 %v6506_v14, %s8032_s3 }
 0x952   :  { %1505 = vrot.lane.b32.xlu2 %v6442_v63, %s8034_s24 }
 0x977   :  { %v6512_v53 = vpop.f32.mrf.mxu1 }
 0x978   :  { %1905 = vrot.lane.b32.xlu0 %v6512_v53, %s8032_s3 }
 0x97c   :  { %v5189_v1 = vpop.permute.xlu2 %5188 }
 0x97d   :  { %v5190_v63 = vunpack.i.l.bf16 %v5189_v1  ;;  %v5191_v37 = vunpack.i.h.bf16 %v5189_v1 }
 0x97f   :  { %v6516_v51 = vpop.f32.mrf.mxu1 }
 0x980   :  { %1907 = vrot.lane.b32.xlu0 %v6516_v51, %s8032_s3 }
 0x984   :  { %v1446_v24 = vpop.permute.xlu2 %1445 }
 0x98c   :  { %v1498_v45 = vpop.permute.xlu2 %1497  ;;  %v5184_v57 = vpop.permute.xlu1 %5183 }
 0x98d   :  { %1513 = vst.msk [vmem:[#allocation2] sm:$0xff] %vm1512_vm15, %v1498_v45  ;;  %v5185_v38 = vunpack.i.l.bf16 %v5184_v57  ;;  %v5186_v13 = vunpack.i.h.bf16 %v5184_v57 }
 0x98f   :  { %1471 = vmatpush.msra.mxu0 %v5185_v38 }
 0x991   :  { %1472 = vmatpush.msra.mxu0 %v5186_v13 }
 0x993   :  { %1473 = vmatpush.msra.mxu0 %v5190_v63 }
 0x994   :  { %v1500_v31 = vpop.permute.xlu2 %1499  ;;  %v1098_v30 = vpop.permute.xlu1 %1097 }
 0x995   :  { %1112 = vst.msk [vmem:[#allocation2 + $0x8] sm:$0xff] %vm1110_vm14, %v1098_v30  ;;  %1474 = vmatpush.msra.mxu0 %v5191_v37 }
 0x996   :  { %1514 = vst.msk [vmem:[#allocation2 + $0x8] sm:$0xff] %vm1512_vm15, %v1500_v31 }
 0x997   :  { %1475 = vmatpush.msra.mxu0 %v1446_v24 }
 0x998   :  { %4928 = vmatmul.msk.f32.vlgmr.msra.gmra.mxu0 %vm458_vm5, %v6373_v42  ;;  %v1950_v42 = vld [vmem:[%s8021_s8] sm:$0xff] }
 0x999   :  { %1982 = vmatpush.msrb.mxu0 %v1953_v35 }
 0x99b   :  { %1983 = vmatpush.msrb.mxu0 %v1952_v18 }
 0x99c   :  { %v1502_v43 = vpop.permute.xlu2 %1501  ;;  %v1100_v48 = vpop.permute.xlu1 %1099 }
 0x99d   :  { %1113 = vst.msk [vmem:[#allocation2 + $0x10] sm:$0xff] %vm1110_vm14, %v1100_v48  ;;  %1984 = vmatpush.msrb.mxu0 %v1951_v20 }
 0x99e   :  { %1515 = vst.msk [vmem:[#allocation2 + $0x10] sm:$0xff] %vm1512_vm15, %v1502_v43 }
 0x99f   :  { %1985 = vmatpush.msrb.mxu0 %v1950_v42 }
 0x9a0   :  { %4929 = vmatmul.msk.f32.gmra.mxu0 %vm458_vm5, %v6378_v0 }
 0x9a4   :  { %v1504_v41 = vpop.permute.xlu2 %1503  ;;  %v1102_v4 = vpop.permute.xlu1 %1101 }
 0x9a5   :  { %1114 = vst.msk [vmem:[#allocation2 + $0x18] sm:$0xff] %vm1110_vm14, %v1102_v4 }
 0x9a6   :  { %1516 = vst.msk [vmem:[#allocation2 + $0x18] sm:$0xff] %vm1512_vm15, %v1504_v41 }
 0x9a8   :  { %4930 = vmatmul.msk.f32.gmra.mxu0 %vm458_vm5, %v6383_v22 }
 0x9ac   :  { %v1506_v49 = vpop.permute.xlu2 %1505  ;;  %v1104_v19 = vpop.permute.xlu1 %1103 }
 0x9ad   :  { %1115 = vst.msk [vmem:[#allocation2 + $0x20] sm:$0xff] %vm1110_vm14, %v1104_v19 }
 0x9ae   :  { %1517 = vst.msk [vmem:[#allocation2 + $0x20] sm:$0xff] %vm1512_vm15, %v1506_v49 }
 0x9b0   :  { %4931 = vmatmul.msk.f32.gmra.mxu0 %vm458_vm5, %v6389_v26 }
 0x9b3   :  { %v1900_v0 = vpop.permute.xlu0 %1899 }
 0x9b4   :  { %1915 = vst.msk [vmem:[#allocation2] sm:$0xff] %vm1914_vm2, %v1900_v0 }
 0x9b8   :  { %4932 = vmatmul.msk.f32.gmra.mxu0 %vm458_vm5, %v6397_v27 }
 0x9bb   :  { %v1902_v2 = vpop.permute.xlu0 %1901  ;;  %v1945_v22 = vld [vmem:[#allocation2] sm:$0xff] }
 0x9bc   :  { %1916 = vst.msk [vmem:[#allocation2 + $0x8] sm:$0xff] %vm1914_vm2, %v1902_v2 }
 0x9c0   :  { %4953 = vmatmul.msk.f32.vlgmr.msrb.gmra.mxu0 %vm189_vm1, %v1945_v22 }
 0x9c3   :  { %v1904_v46 = vpop.permute.xlu0 %1903  ;;  %v1946_v12 = vld [vmem:[#allocation2 + $0x8] sm:$0xff] }
 0x9c4   :  { %1917 = vst.msk [vmem:[#allocation2 + $0x10] sm:$0xff] %vm1914_vm2, %v1904_v46 }
 0x9c8   :  { %4954 = vmatmul.msk.f32.gmra.mxu0 %vm189_vm1, %v1946_v12 }
 0x9cb   :  { %v1947_v26 = vld [vmem:[#allocation2 + $0x10] sm:$0xff] }
 0x9d0   :  { %4955 = vmatmul.msk.f32.gmra.mxu0 %vm189_vm1, %v1947_v26 }
 0x9ea   :  { %v1906_v52 = vpop.permute.xlu0 %1905 }
 0x9eb   :  { %1918 = vst.msk [vmem:[#allocation2 + $0x18] sm:$0xff] %vm1914_vm2, %v1906_v52 }
 0x9f2   :  { %v1908_v23 = vpop.permute.xlu0 %1907  ;;  %v1948_v27 = vld [vmem:[#allocation2 + $0x18] sm:$0xff] }
 0x9f3   :  { %1919 = vst.msk [vmem:[#allocation2 + $0x20] sm:$0xff] %vm1914_vm2, %v1908_v23  ;;  %4956 = vmatmul.msk.f32.gmra.mxu0 %vm189_vm1, %v1948_v27 }
 0x9fa   :  { %v1949_v16 = vld [vmem:[#allocation2 + $0x20] sm:$0xff] }
 0x9fb   :  { %4957 = vmatmul.msk.f32.gmra.mxu0 %vm189_vm1, %v1949_v16 }
 0xa15   :  { %v6561_v10 = vpop.f32.mrf.mxu0 }
 0xa1d   :  { %v6563_v8 = vpop.f32.mrf.mxu0 }
 0xa25   :  { %v6565_v15 = vpop.f32.mrf.mxu0 }
 0xa26   :  { %8047 = vst [vmem:[#allocation7_spill] sm:$0xff] %v6565_v15 }
 0xa2d   :  { %v6567_v61 = vpop.f32.mrf.mxu0 }
 0xa2e   :  { %8048 = vst [vmem:[#allocation8_spill] sm:$0xff] %v6567_v61 }
 0xa35   :  { %v6569_v28 = vpop.f32.mrf.mxu0 }
 0xa36   :  { %8049 = vst [vmem:[#allocation9_spill] sm:$0xff] %v6569_v28 }
 0xa3d   :  { %v1987_v1 = vpop.f32.mrf.mxu0 }
 0xa3e   :  { %v1988_v24 = vadd.f32 %v1987_v1, %v1954_v36 }
 0xa40   :  { %v6578_v45 = vadd.f32 %v1988_v24, %v5770_v39 }
 0xa42   :  { %v2007_v57 = vsel %vm189_vm1, %v6578_v45, 0.0 }
 0xa43   :  { %2008 = vadd.xlane.f32.xlu1 %v2007_v57 }
 0xa45   :  { %v1990_v38 = vpop.f32.mrf.mxu0 }
 0xa46   :  { %v1991_v13 = vadd.f32 %v1990_v38, %v1954_v36 }
 0xa48   :  { %v6583_v63 = vadd.f32 %v1991_v13, %v5777_v44 }
 0xa4a   :  { %v2010_v37 = vsel %vm189_vm1, %v6583_v63, 0.0 }
 0xa4b   :  { %2011 = vadd.xlane.f32.xlu2 %v2010_v37 }
 0xa4d   :  { %v1993_v31 = vpop.f32.mrf.mxu0 }
 0xa4e   :  { %v1994_v30 = vadd.f32 %v1993_v31, %v1954_v36 }
 0xa50   :  { %v6588_v35 = vadd.f32 %v1994_v30, %v5784_v50 }
 0xa52   :  { %v2013_v39 = vsel %vm189_vm1, %v6588_v35, 0.0 }
 0xa53   :  { %2014 = vadd.xlane.f32.xlu0 %v2013_v39  ;;  %v2131_v39 = vld [vmem:[%s8023_s10 + $0x10] sm:$0xff] }
 0xa70   :  { %v1996_v18 = vpop.f32.mrf.mxu0 }
 0xa71   :  { %v1997_v43 = vadd.f32 %v1996_v18, %v1954_v36 }
 0xa73   :  { %v6593_v48 = vadd.f32 %v1997_v43, %v5791_v56 }
 0xa75   :  { %v2016_v44 = vsel %vm189_vm1, %v6593_v48, 0.0 }
 0xa76   :  { %2017 = vadd.xlane.f32.xlu1 %v2016_v44 }
 0xa78   :  { %v1999_v20 = vpop.f32.mrf.mxu0 }
 0xa79   :  { %v2000_v42 = vadd.f32 %v1999_v20, %v1954_v36 }
 0xa7b   :  { %v6598_v41 = vadd.f32 %v2000_v42, %v5798_v62 }
 0xa7d   :  { %v2019_v50 = vsel %vm189_vm1, %v6598_v41, 0.0 }
 0xa7e   :  { %2020 = vadd.xlane.f32.xlu2 %v2019_v50 }
 0xab6   :  { %v2009_v4 = vpop.xlane.xlu1 %2008 }
 0xab7   :  { %v2022_v49 = vmul.f32 %v2009_v4, %v5802_v6 }
 0xab9   :  { %v6604_v19 = vsub.f32 %v6578_v45, %v2022_v49 }
 0xabb   :  { %v2032_v56 = vmul.f32 %v6604_v19, %v6604_v19 }
 0xabd   :  { %v2037_v0 = vsel %vm189_vm1, %v2032_v56, 0.0 }
 0xabe   :  { %v2012_v2 = vpop.xlane.xlu2 %2011  ;;  %2038 = vadd.xlane.f32.xlu0 %v2037_v0 }
 0xabf   :  { %v2023_v62 = vmul.f32 %v2012_v2, %v5802_v6 }
 0xac1   :  { %v6611_v22 = vsub.f32 %v6583_v63, %v2023_v62 }
 0xac3   :  { %v2033_v46 = vmul.f32 %v6611_v22, %v6611_v22 }
 0xac5   :  { %v2040_v12 = vsel %vm189_vm1, %v2033_v46, 0.0 }
 0xac6   :  { %2041 = vadd.xlane.f32.xlu1 %v2040_v12  ;;  %v2015_v26 = vpop.xlane.xlu0 %2014 }
 0xac7   :  { %v2024_v52 = vmul.f32 %v2015_v26, %v5802_v6 }
 0xac9   :  { %v6618_v23 = vsub.f32 %v6588_v35, %v2024_v52 }
 0xacb   :  { %v2034_v27 = vmul.f32 %v6618_v23, %v6618_v23 }
 0xacd   :  { %v2043_v16 = vsel %vm189_vm1, %v2034_v27, 0.0  ;;  %v6663_v27 = vperm.slane %v6574_v11, 2 }
 0xace   :  { %2044 = vadd.xlane.f32.xlu2 %v2043_v16 }
 0xae6   :  { %1825 = vrot.lane.b32.xlu2 %v6516_v51, %s5552_s29 }
 0xae9   :  { %v2018_v36 = vpop.xlane.xlu1 %2017 }
 0xaea   :  { %v2025_v1 = vmul.f32 %v2018_v36, %v5802_v6 }
 0xaec   :  { %v6627_v24 = vsub.f32 %v6593_v48, %v2025_v1 }
 0xaee   :  { %1819 = vrot.lane.b32.xlu2 %v6500_v25, %s5552_s29  ;;  %v2035_v57 = vmul.f32 %v6627_v24, %v6627_v24  ;;  %v2132_v25 = vld [vmem:[%s8023_s10 + $0x18] sm:$0xff] }
 0xaef   :  { %2164 = vmatpush.msra.mxu2 %v2132_v25 }
 0xaf0   :  { %v2046_v38 = vsel %vm189_vm1, %v2035_v57, 0.0  ;;  %v6667_v57 = vperm.slane %v6574_v11, 3 }
 0xaf1   :  { %2047 = vadd.xlane.f32.xlu0 %v2046_v38  ;;  %v2021_v13 = vpop.xlane.xlu2 %2020  ;;  %2165 = vmatpush.msra.mxu2 %v2131_v39 }
 0xaf2   :  { %v2026_v37 = vmul.f32 %v2021_v13, %v5802_v6 }
 0xaf4   :  { %v6636_v51 = vsub.f32 %v6598_v41, %v2026_v37 }
 0xaf6   :  { %v2036_v31 = vmul.f32 %v6636_v51, %v6636_v51 }
 0xaf8   :  { %v2049_v30 = vsel %vm189_vm1, %v2036_v31, 0.0 }
 0xaf9   :  { %2050 = vadd.xlane.f32.xlu1 %v2049_v30 }
 0xb05   :  { %1823 = vrot.lane.b32.xlu0 %v6512_v53, %s5552_s29  ;;  %v2130_v53 = vld [vmem:[%s8023_s10 + $0x8] sm:$0xff] }
 0xb06   :  { %2166 = vmatpush.msra.mxu2 %v2130_v53 }
 0xb0d   :  { %1817 = vrot.lane.b32.xlu0 %v6494_v21, %s5552_s29  ;;  %v2129_v21 = vld [vmem:[%s8023_s10] sm:$0xff] }
 0xb0e   :  { %2167 = vmatpush.msra.mxu2 %v2129_v21 }
 0xb12   :  { %1821 = vrot.lane.b32.xlu1 %v6506_v14, %s5552_s29 }
 0xb31   :  { %v2039_v14 = vpop.xlane.xlu0 %2038 }
 0xb32   :  { %v2052_v18 = vmul.f32 %v2039_v14, %v5802_v6 }
 0xb34   :  { %v2057_v43 = vadd.f32 1e-06, %v2052_v18 }
 0xb36   :  { %5379 = vrsqrt.f32 %v2057_v43  ;;  %vm2068_vm6 = vweird.f32 %v2057_v43 }
 0xb39   :  { %v2042_v44 = vpop.xlane.xlu1 %2041 }
 0xb3a   :  { %v2053_v20 = vmul.f32 %v2042_v44, %v5802_v6 }
 0xb3c   :  { %v5380_v42 = vpop.eup %5379  ;;  %v2058_v50 = vadd.f32 1e-06, %v2053_v20 }
 0xb3d   :  { %v2063_v4 = vmul.f32 %v5380_v42, %v2057_v43  ;;  %vm2069_vm3 = vweird.f32 %v5380_v42 }
 0xb3e   :  { %5381 = vrsqrt.f32 %v2058_v50  ;;  %vm2070_vm7 = vmor %vm2068_vm6, %vm2069_vm3  ;;  %vm2078_vm9 = vweird.f32 %v2058_v50 }
 0xb3f   :  { %v2064_v49 = vmul.f32 %v5380_v42, %v2063_v4 }
 0xb41   :  { %v2065_v56 = vmul.f32 0.5, %v2064_v49  ;;  %v2045_v0 = vpop.xlane.xlu2 %2044 }
 0xb42   :  { %v2054_v2 = vmul.f32 %v2045_v0, %v5802_v6 }
 0xb43   :  { %v2066_v62 = vsub.f32 1.5, %v2065_v56 }
 0xb44   :  { %v5382_v46 = vpop.eup %5381  ;;  %v2059_v12 = vadd.f32 1e-06, %v2054_v2 }
 0xb45   :  { %v2067_v26 = vmul.f32 %v5380_v42, %v2066_v62  ;;  %v2073_v52 = vmul.f32 %v5382_v46, %v2058_v50  ;;  %vm2079_vm8 = vweird.f32 %v5382_v46 }
 0xb46   :  { %5383 = vrsqrt.f32 %v2059_v12  ;;  %vm2080_vm10 = vmor %vm2078_vm9, %vm2079_vm8  ;;  %vm2088_vm12 = vweird.f32 %v2059_v12 }
 0xb47   :  { %v2071_v16 = vsel %vm2070_vm7, %v5380_v42, %v2067_v26  ;;  %v2074_v36 = vmul.f32 %v5382_v46, %v2073_v52 }
 0xb48   :  { %v2112_v1 = vmul.f32 %v2071_v16, %v6604_v19 }
 0xb49   :  { %v2075_v38 = vmul.f32 0.5, %v2074_v36 }
 0xb4a   :  { %v2118_v13 = vmul.f32 %v6663_v27, %v2112_v1 }
 0xb4b   :  { %v2076_v37 = vsub.f32 1.5, %v2075_v38 }
 0xb4c   :  { %v5384_v31 = vpop.eup %5383  ;;  %v2124_v30 = vadd.f32 %v6667_v57, %v2118_v13 }
 0xb4d   :  { %v2077_v25 = vmul.f32 %v5382_v46, %v2076_v37  ;;  %v2083_v39 = vmul.f32 %v5384_v31, %v2059_v12  ;;  %vm2089_vm11 = vweird.f32 %v5384_v31 }
 0xb4e   :  { %4958 = vmatmul.msk.f32.vlgmr.msra.gmra.mxu2 %vm189_vm1, %v2124_v30  ;;  %vm2090_vm13 = vmor %vm2088_vm12, %vm2089_vm11 }
 0xb4f   :  { %v2084_v53 = vmul.f32 %v5384_v31, %v2083_v39  ;;  %v2081_v21 = vsel %vm2080_vm10, %v5382_v46, %v2077_v25 }
 0xb50   :  { %v2113_v19 = vmul.f32 %v2081_v21, %v6611_v22 }
 0xb51   :  { %v2085_v14 = vmul.f32 0.5, %v2084_v53 }
 0xb52   :  { %v2119_v18 = vmul.f32 %v6663_v27, %v2113_v19 }
 0xb53   :  { %v2086_v43 = vsub.f32 1.5, %v2085_v14 }
 0xb54   :  { %v2125_v44 = vadd.f32 %v6667_v57, %v2119_v18 }
 0xb55   :  { %v2087_v20 = vmul.f32 %v5384_v31, %v2086_v43 }
 0xb56   :  { %4959 = vmatmul.msk.f32.gmra.mxu2 %vm189_vm1, %v2125_v44 }
 0xb57   :  { %v2091_v42 = vsel %vm2090_vm13, %v5384_v31, %v2087_v20 }
 0xb58   :  { %v2114_v50 = vmul.f32 %v2091_v42, %v6618_v23 }
 0xb5a   :  { %v2120_v4 = vmul.f32 %v6663_v27, %v2114_v50 }
 0xb5c   :  { %v2126_v49 = vadd.f32 %v6667_v57, %v2120_v4 }
 0xb5e   :  { %4960 = vmatmul.msk.f32.gmra.mxu2 %vm189_vm1, %v2126_v49  ;;  %v2391_v49 = vld [vmem:[%s8025_s12 + $0x38] sm:$0xff] }
 0xb5f   :  { %2416 = vmatpush.msra.mxu1 %v2391_v49 }
 0xb64   :  { %v2048_v22 = vpop.xlane.xlu0 %2047 }
 0xb65   :  { %v2055_v56 = vmul.f32 %v2048_v22, %v5802_v6 }
 0xb67   :  { %v2060_v0 = vadd.f32 1e-06, %v2055_v56  ;;  %v2390_v56 = vld [vmem:[%s8025_s12 + $0x30] sm:$0xff] }
 0xb68   :  { %2417 = vmatpush.msra.mxu1 %v2390_v56 }
 0xb69   :  { %5385 = vrsqrt.f32 %v2060_v0  ;;  %vm2098_vm6 = vweird.f32 %v2060_v0 }
 0xb6c   :  { %v2051_v2 = vpop.xlane.xlu1 %2050 }
 0xb6d   :  { %v2056_v62 = vmul.f32 %v2051_v2, %v5802_v6  ;;  %v2389_v2 = vld [vmem:[%s8025_s12 + $0x28] sm:$0xff] }
 0xb6e   :  { %2418 = vmatpush.msra.mxu1 %v2389_v2 }
 0xb6f   :  { %v5386_v46 = vpop.eup %5385  ;;  %v2061_v12 = vadd.f32 1e-06, %v2056_v62 }
 0xb70   :  { %v2093_v26 = vmul.f32 %v5386_v46, %v2060_v0  ;;  %vm2099_vm3 = vweird.f32 %v5386_v46 }
 0xb71   :  { %5387 = vrsqrt.f32 %v2061_v12  ;;  %vm2100_vm7 = vmor %vm2098_vm6, %vm2099_vm3  ;;  %vm2108_vm9 = vweird.f32 %v2061_v12 }
 0xb72   :  { %v2094_v52 = vmul.f32 %v5386_v46, %v2093_v26 }
 0xb74   :  { %v2095_v23 = vmul.f32 0.5, %v2094_v52  ;;  %v2388_v52 = vld [vmem:[%s8025_s12 + $0x20] sm:$0xff] }
 0xb75   :  { %2419 = vmatpush.msra.mxu1 %v2388_v52 }
 0xb76   :  { %v2096_v16 = vsub.f32 1.5, %v2095_v23 }
 0xb77   :  { %v5388_v36 = vpop.eup %5387 }
 0xb78   :  { %v2097_v1 = vmul.f32 %v5386_v46, %v2096_v16  ;;  %v2103_v38 = vmul.f32 %v5388_v36, %v2061_v12  ;;  %vm2109_vm8 = vweird.f32 %v5388_v36 }
 0xb79   :  { %vm2110_vm10 = vmor %vm2108_vm9, %vm2109_vm8 }
 0xb7a   :  { %v2104_v13 = vmul.f32 %v5388_v36, %v2103_v38  ;;  %v2101_v37 = vsel %vm2100_vm7, %v5386_v46, %v2097_v1  ;;  %v2387_v1 = vld [vmem:[%s8025_s12 + $0x18] sm:$0xff] }
 0xb7b   :  { %v2115_v31 = vmul.f32 %v2101_v37, %v6627_v24  ;;  %v6693_v24 = vld [vmem:[%s8024_s11] ss:$0 sm:$0xff]  ;;  %2420 = vmatpush.msra.mxu1 %v2387_v1 }
 0xb7c   :  { %v2105_v30 = vmul.f32 0.5, %v2104_v13 }
 0xb7d   :  { %v2121_v25 = vmul.f32 %v6663_v27, %v2115_v31 }
 0xb7e   :  { %v2106_v39 = vsub.f32 1.5, %v2105_v30 }
 0xb7f   :  { %v2127_v53 = vadd.f32 %v6667_v57, %v2121_v25  ;;  %v2386_v25 = vld [vmem:[%s8025_s12 + $0x10] sm:$0xff] }
 0xb80   :  { %v2107_v21 = vmul.f32 %v5388_v36, %v2106_v39  ;;  %2421 = vmatpush.msra.mxu1 %v2386_v25 }
 0xb81   :  { %4961 = vmatmul.msk.f32.gmra.mxu2 %vm189_vm1, %v2127_v53  ;;  %v2385_v53 = vld [vmem:[%s8025_s12 + $0x8] sm:$0xff] }
 0xb82   :  { %v2111_v19 = vsel %vm2110_vm10, %v5388_v36, %v2107_v21  ;;  %2422 = vmatpush.msra.mxu1 %v2385_v53 }
 0xb83   :  { %v2116_v14 = vmul.f32 %v2111_v19, %v6636_v51 }
 0xb85   :  { %v2122_v18 = vmul.f32 %v6663_v27, %v2116_v14 }
 0xb87   :  { %v2128_v43 = vadd.f32 %v6667_v57, %v2122_v18  ;;  %v2384_v18 = vld [vmem:[%s8025_s12] sm:$0xff] }
 0xb88   :  { %2423 = vmatpush.msra.mxu1 %v2384_v18 }
 0xb89   :  { %4962 = vmatmul.msk.f32.gmra.mxu2 %vm189_vm1, %v2128_v43 }
 0xbd1   :  { %v2169_v44 = vpop.f32.mrf.mxu2 }
 0xbd2   :  { %v6696_v20 = vadd.f32 %v6693_v24, %v2169_v44 }
 0xbd4   :  { %v6699_v42 = vmul.f32 0.70710677, %v6696_v20 }
 0xbd6   :  { %v2194_v51 = vand.u32 2147483647, %v6699_v42 }
 0xbd8   :  { %v2199_v50 = vmul.f32 0.3275911, %v2194_v51 }
 0xbd9   :  { %v2172_v27 = vpop.f32.mrf.mxu2 }
 0xbda   :  { %v2204_v4 = vadd.f32 1.0, %v2199_v50  ;;  %v6703_v57 = vadd.f32 %v6693_v24, %v2172_v27  ;;  %v2329_v27 = vsub.f32 0.0, %v2194_v51 }
 0xbdc   :  { %5389 = vrcp.f32 %v2204_v4  ;;  %v6709_v22 = vmul.f32 0.70710677, %v6703_v57  ;;  %v2220_v13 = vand.u32 2147483648, %v2204_v4  ;;  %v2218_v30 = vand.u32 2147483647, %v2204_v4 }
 0xbdd   :  { %vm2214_vm12 = vweird.f32 %v2204_v4 }
 0xbde   :  { %v6715_v0 = vand.u32 2147483647, %v6709_v22  ;;  %v2221_v19 = vor.u32 1.1754944e-38, %v2220_v13  ;;  %vm2219_vm3 = vcmp.eq.f32.partialorder %v2218_v30, 8.507059e+37 }
 0xbe0   :  { %v2200_v62 = vmul.f32 0.3275911, %v6715_v0 }
 0xbe1   :  { %v2175_v46 = vpop.f32.mrf.mxu2 }
 0xbe2   :  { %v5390_v12 = vpop.eup %5389  ;;  %v6722_v26 = vadd.f32 %v6693_v24, %v2175_v46  ;;  %v2205_v16 = vadd.f32 1.0, %v2200_v62  ;;  %v2334_v46 = vmul.f32 %v2329_v27, %v2194_v51 }
 0xbe3   :  { %v2210_v23 = vmul.f32 %v5390_v12, %v2204_v4  ;;  %vm2215_vm11 = vweird.f32 %v5390_v12 }
 0xbe4   :  { %v6728_v36 = vmul.f32 0.70710677, %v6722_v26  ;;  %5391 = vrcp.f32 %v2205_v16  ;;  %vm2216_vm13 = vmor %vm2214_vm12, %vm2215_vm11  ;;  %v2235_v4 = vand.u32 2147483648, %v2205_v16  ;;  %vm2229_vm7 = vweird.f32 %v2205_v16 }
 0xbe5   :  { %v2211_v38 = vsub.f32 1.0, %v2210_v23  ;;  %v2233_v23 = vand.u32 2147483647, %v2205_v16  ;;  %v2339_v25 = vmul.f32 1.442695, %v2334_v46 }
 0xbe6   :  { %v6734_v37 = vand.u32 2147483647, %v6728_v36 }
 0xbe7   :  { %v2212_v31 = vmul.f32 %v5390_v12, %v2211_v38  ;;  %vm2234_vm9 = vcmp.eq.f32.partialorder %v2233_v23, 8.507059e+37 }
 0xbe8   :  { %v2201_v39 = vmul.f32 0.3275911, %v6734_v37 }
 0xbe9   :  { %v2213_v21 = vadd.f32 %v5390_v12, %v2212_v31 }
 0xbea   :  { %v2206_v14 = vadd.f32 1.0, %v2201_v39  ;;  %v5392_v43 = vpop.eup %5391 }
 0xbeb   :  { %v2217_v44 = vsel %vm2216_vm13, %v5390_v12, %v2213_v21  ;;  %v2225_v49 = vmul.f32 %v5392_v43, %v2205_v16  ;;  %vm2230_vm6 = vweird.f32 %v5392_v43  ;;  %v2236_v12 = vor.u32 1.1754944e-38, %v2235_v4 }
 0xbec   :  { %v2222_v50 = vsel %vm2219_vm3, %v2221_v19, %v2217_v44  ;;  %5393 = vrcp.f32 %v2206_v14  ;;  %vm2231_vm8 = vmor %vm2229_vm7, %vm2230_vm6  ;;  %v2330_v21 = vsub.f32 0.0, %v6715_v0  ;;  %v2250_v51 = vand.u32 2147483648, %v2206_v14 }
 0xbed   :  { %v2284_v56 = vmul.f32 1.0614054, %v2222_v50  ;;  %v2226_v2 = vsub.f32 1.0, %v2225_v49  ;;  %5395 = vpow2.f32 %v2339_v25  ;;  %vm2244_vm11 = vweird.f32 %v2206_v14 }
 0xbee   :  { %v2331_v25 = vsub.f32 0.0, %v6734_v37  ;;  %vm2359_vm3 = vcmp.ge.f32.partialorder %v6699_v42, 0.0  ;;  %vm2360_vm6 = vcmp.ge.f32.partialorder %v6709_v22, 0.0  ;;  %vm2361_vm7 = vcmp.ge.f32.partialorder %v6728_v36, 0.0 }
 0xbef   :  { %v2289_v62 = vadd.f32 -1.4531521, %v2284_v56  ;;  %v2227_v52 = vmul.f32 %v5392_v43, %v2226_v2  ;;  %v2248_v56 = vand.u32 2147483647, %v2206_v14 }
 0xbf1   :  { %v2294_v1 = vmul.f32 %v2289_v62, %v2222_v50  ;;  %v2228_v13 = vadd.f32 %v5392_v43, %v2227_v52  ;;  %v2335_v62 = vmul.f32 %v2330_v21, %v6715_v0  ;;  %vm2249_vm13 = vcmp.eq.f32.partialorder %v2248_v56, 8.507059e+37 }
 0xbf2   :  { %v5394_v38 = vpop.eup %5393 }
 0xbf3   :  { %v2299_v31 = vadd.f32 1.4214138, %v2294_v1  ;;  %v2240_v30 = vmul.f32 %v5394_v38, %v2206_v14  ;;  %v2232_v39 = vsel %vm2231_vm8, %v5392_v43, %v2228_v13  ;;  %vm2245_vm10 = vweird.f32 %v5394_v38 }
 0xbf4   :  { %v2237_v18 = vsel %vm2234_vm9, %v2236_v12, %v2232_v39  ;;  %vm2246_vm12 = vmor %vm2244_vm11, %vm2245_vm10  ;;  %v2251_v43 = vor.u32 1.1754944e-38, %v2250_v51  ;;  %v2341_v12 = vmul.f32 1.442695, %v2335_v62  ;;  %v5396_v39 = vpop.eup %5395  ;;  %v2336_v51 = vmul.f32 %v2331_v25, %v6734_v37 }
 0xbf5   :  { %v2304_v53 = vmul.f32 %v2299_v31, %v2222_v50  ;;  %v2241_v19 = vsub.f32 1.0, %v2240_v30  ;;  %v2285_v44 = vmul.f32 1.0614054, %v2237_v18 }
 0xbf6   :  { %5397 = vpow2.f32 %v2341_v12 }
 0xbf7   :  { %v2309_v27 = vadd.f32 -0.28449672, %v2304_v53  ;;  %v2242_v49 = vmul.f32 %v5394_v38, %v2241_v19  ;;  %v2290_v16 = vadd.f32 -1.4531521, %v2285_v44 }
 0xbf9   :  { %v2314_v2 = vmul.f32 %v2309_v27, %v2222_v50  ;;  %v2243_v4 = vadd.f32 %v5394_v38, %v2242_v49  ;;  %v2295_v46 = vmul.f32 %v2290_v16, %v2237_v18 }
 0xbfb   :  { %v2319_v52 = vadd.f32 0.2548296, %v2314_v2  ;;  %v2247_v23 = vsel %vm2246_vm12, %v5394_v38, %v2243_v4  ;;  %v2300_v1 = vadd.f32 1.4214138, %v2295_v46  ;;  %v2184_v4 = vmul.f32 0.5, %v6696_v20 }
 0xbfc   :  { %v2252_v13 = vsel %vm2249_vm13, %v2251_v43, %v2247_v23  ;;  %v2343_v46 = vmul.f32 1.442695, %v2336_v51  ;;  %v5398_v23 = vpop.eup %5397  ;;  %v2185_v51 = vmul.f32 0.5, %v6703_v57 }
 0xbfd   :  { %v2324_v31 = vmul.f32 %v2319_v52, %v2222_v50  ;;  %v2286_v30 = vmul.f32 1.0614054, %v2252_v13  ;;  %v2305_v53 = vmul.f32 %v2300_v1, %v2237_v18 }
 0xbfe   :  { %5399 = vpow2.f32 %v2343_v46  ;;  %v2186_v46 = vmul.f32 0.5, %v6722_v26 }
 0xbff   :  { %v2349_v19 = vmul.f32 %v5396_v39, %v2324_v31  ;;  %v2291_v44 = vadd.f32 -1.4531521, %v2286_v30  ;;  %v2310_v0 = vadd.f32 -0.28449672, %v2305_v53 }
 0xc01   :  { %v2354_v14 = vsub.f32 1.0, %v2349_v19  ;;  %v2296_v21 = vmul.f32 %v2291_v44, %v2252_v13  ;;  %v2315_v27 = vmul.f32 %v2310_v0, %v2237_v18 }
 0xc03   :  { %v2364_v38 = vsub.f32 0.0, %v2354_v14  ;;  %v2301_v49 = vadd.f32 1.4214138, %v2296_v21  ;;  %v2320_v56 = vadd.f32 0.2548296, %v2315_v27 }
 0xc04   :  { %v2178_v50 = vpop.f32.mrf.mxu2  ;;  %v5400_v21 = vpop.eup %5399 }
 0xc05   :  { %v2369_v16 = vsel %vm2359_vm3, %v2354_v14, %v2364_v38  ;;  %v6752_v2 = vadd.f32 %v6693_v24, %v2178_v50  ;;  %v2306_v62 = vmul.f32 %v2301_v49, %v2252_v13  ;;  %v2325_v52 = vmul.f32 %v2320_v56, %v2237_v18 }
 0xc06   :  { %v2374_v43 = vadd.f32 1.0, %v2369_v16 }
 0xc07   :  { %v6756_v37 = vmul.f32 0.70710677, %v6752_v2  ;;  %v2311_v1 = vadd.f32 -0.28449672, %v2306_v62  ;;  %v2350_v12 = vmul.f32 %v5398_v23, %v2325_v52 }
 0xc08   :  { %v2379_v31 = vmul.f32 %v2374_v43, %v2184_v4 }
 0xc09   :  { %v2197_v42 = vand.u32 2147483647, %v6756_v37  ;;  %v2316_v30 = vmul.f32 %v2311_v1, %v2252_v13  ;;  %v2355_v39 = vsub.f32 1.0, %v2350_v12 }
 0xc0a   :  { %4963 = vmatmul.msk.f32.vlgmr.msra.gmra.mxu1 %vm108_vm0, %v2379_v31 }
 0xc0b   :  { %v2202_v25 = vmul.f32 0.3275911, %v2197_v42  ;;  %v2321_v53 = vadd.f32 0.2548296, %v2316_v30  ;;  %v2365_v19 = vsub.f32 0.0, %v2355_v39 }
 0xc0c   :  { %v2181_v20 = vpop.f32.mrf.mxu2 }
 0xc0d   :  { %v2207_v18 = vadd.f32 1.0, %v2202_v25  ;;  %v6762_v44 = vadd.f32 %v6693_v24, %v2181_v20  ;;  %v2326_v0 = vmul.f32 %v2321_v53, %v2252_v13  ;;  %v2370_v14 = vsel %vm2360_vm6, %v2355_v39, %v2365_v19 }
 0xc0e   :  { %v2375_v38 = vadd.f32 1.0, %v2370_v14  ;;  %v2332_v53 = vsub.f32 0.0, %v2197_v42 }
 0xc0f   :  { %5401 = vrcp.f32 %v2207_v18  ;;  %v6766_v27 = vmul.f32 0.70710677, %v6762_v44  ;;  %v2351_v49 = vmul.f32 %v5400_v21, %v2326_v0  ;;  %v2265_v52 = vand.u32 2147483648, %v2207_v18 }
 0xc10   :  { %v2380_v56 = vmul.f32 %v2375_v38, %v2185_v51  ;;  %v2263_v31 = vand.u32 2147483647, %v2207_v18  ;;  %vm2259_vm9 = vweird.f32 %v2207_v18  ;;  %v2337_v51 = vmul.f32 %v2332_v53, %v2197_v42 }
 0xc11   :  { %v2198_v50 = vand.u32 2147483647, %v6766_v27  ;;  %v2356_v16 = vsub.f32 1.0, %v2351_v49  ;;  %v2266_v39 = vor.u32 1.1754944e-38, %v2265_v52 }
 0xc12   :  { %4964 = vmatmul.msk.f32.gmra.mxu1 %vm108_vm0, %v2380_v56  ;;  %vm2264_vm11 = vcmp.eq.f32.partialorder %v2263_v31, 8.507059e+37 }
 0xc13   :  { %v2203_v22 = vmul.f32 0.3275911, %v2198_v50  ;;  %v2366_v62 = vsub.f32 0.0, %v2356_v16 }
 0xc15   :  { %v5402_v24 = vpop.eup %5401  ;;  %v2208_v4 = vadd.f32 1.0, %v2203_v22  ;;  %v2371_v43 = vsel %vm2361_vm7, %v2356_v16, %v2366_v62  ;;  %v2345_v62 = vmul.f32 1.442695, %v2337_v51  ;;  %vm2362_vm7 = vcmp.ge.f32.partialorder %v6756_v37, 0.0 }
 0xc16   :  { %v2255_v13 = vmul.f32 %v5402_v24, %v2207_v18  ;;  %v2376_v23 = vadd.f32 1.0, %v2371_v43  ;;  %vm2260_vm8 = vweird.f32 %v5402_v24  ;;  %v2333_v43 = vsub.f32 0.0, %v2198_v50 }
 0xc17   :  { %5403 = vrcp.f32 %v2208_v4  ;;  %vm2261_vm10 = vmor %vm2259_vm9, %vm2260_vm8  ;;  %v2280_v14 = vand.u32 2147483648, %v2208_v4  ;;  %v2278_v49 = vand.u32 2147483647, %v2208_v4  ;;  %vm2274_vm13 = vweird.f32 %v2208_v4 }
 0xc18   :  { %v2256_v57 = vsub.f32 1.0, %v2255_v13  ;;  %v2381_v12 = vmul.f32 %v2376_v23, %v2186_v46  ;;  %5405 = vpow2.f32 %v2345_v62  ;;  %v2338_v42 = vmul.f32 %v2333_v43, %v2198_v50 }
 0xc19   :  { %v2281_v16 = vor.u32 1.1754944e-38, %v2280_v14  ;;  %vm2279_vm6 = vcmp.eq.f32.partialorder %v2278_v49, 8.507059e+37  ;;  %v2187_v50 = vmul.f32 0.5, %v6752_v2  ;;  %vm2363_vm8 = vcmp.ge.f32.partialorder %v6766_v27, 0.0 }
 0xc1a   :  { %v2257_v1 = vmul.f32 %v5402_v24, %v2256_v57  ;;  %4965 = vmatmul.msk.f32.gmra.mxu1 %vm108_vm0, %v2381_v12  ;;  %v2392_v2 = vperm.slane %v6574_v11, 5 }
 0xc1c   :  { %v2258_v30 = vadd.f32 %v5402_v24, %v2257_v1 }
 0xc1d   :  { %v5404_v36 = vpop.eup %5403 }
 0xc1e   :  { %v2262_v25 = vsel %vm2261_vm10, %v5402_v24, %v2258_v30  ;;  %v2270_v20 = vmul.f32 %v5404_v36, %v2208_v4  ;;  %vm2275_vm12 = vweird.f32 %v5404_v36 }
 0xc1f   :  { %v2267_v19 = vsel %vm2264_vm11, %v2266_v39, %v2262_v25  ;;  %vm2276_vm3 = vmor %vm2274_vm13, %vm2275_vm12  ;;  %v2347_v39 = vmul.f32 1.442695, %v2338_v42  ;;  %v5406_v25 = vpop.eup %5405 }
 0xc20   :  { %v2287_v0 = vmul.f32 1.0614054, %v2267_v19  ;;  %v2271_v26 = vsub.f32 1.0, %v2270_v20 }
 0xc21   :  { %5407 = vpow2.f32 %v2347_v39 }
 0xc22   :  { %v2292_v21 = vadd.f32 -1.4531521, %v2287_v0  ;;  %v2272_v38 = vmul.f32 %v5404_v36, %v2271_v26 }
 0xc24   :  { %v2297_v18 = vmul.f32 %v2292_v21, %v2267_v19  ;;  %v2273_v56 = vadd.f32 %v5404_v36, %v2272_v38 }
 0xc26   :  { %v2302_v22 = vadd.f32 1.4214138, %v2297_v18  ;;  %v2277_v24 = vsel %vm2276_vm3, %v5404_v36, %v2273_v56 }
 0xc27   :  { %v2282_v13 = vsel %vm2279_vm6, %v2281_v16, %v2277_v24  ;;  %v5408_v18 = vpop.eup %5407  ;;  %v2188_v24 = vmul.f32 0.5, %v6762_v44 }
 0xc28   :  { %v2307_v57 = vmul.f32 %v2302_v22, %v2267_v19  ;;  %v2288_v46 = vmul.f32 1.0614054, %v2282_v13 }
 0xc2a   :  { %v2312_v52 = vadd.f32 -0.28449672, %v2307_v57  ;;  %v2293_v23 = vadd.f32 -1.4531521, %v2288_v46 }
 0xc2c   :  { %v2317_v1 = vmul.f32 %v2312_v52, %v2267_v19  ;;  %v2298_v31 = vmul.f32 %v2293_v23, %v2282_v13 }
 0xc2e   :  { %v2322_v12 = vadd.f32 0.2548296, %v2317_v1  ;;  %v2303_v30 = vadd.f32 1.4214138, %v2298_v31  ;;  %v1824_v1 = vpop.permute.xlu0 %1823  ;;  %v1826_v31 = vpop.permute.xlu2 %1825 }
 0xc2f   :  { %v1836_v39 = vsub.f32 %v5896_v59, %v1826_v31 }
 0xc30   :  { %v2327_v4 = vmul.f32 %v2322_v12, %v2267_v19  ;;  %v2308_v53 = vmul.f32 %v2303_v30, %v2282_v13 }
 0xc32   :  { %v2352_v20 = vmul.f32 %v5406_v25, %v2327_v4  ;;  %v2313_v0 = vadd.f32 -0.28449672, %v2308_v53  ;;  %v1841_v25 = vmul.f32 %v1836_v39, %v1836_v39 }
 0xc34   :  { %v2357_v36 = vsub.f32 1.0, %v2352_v20  ;;  %v2318_v26 = vmul.f32 %v2313_v0, %v2282_v13  ;;  %v1822_v20 = vpop.permute.xlu1 %1821 }
 0xc36   :  { %v2367_v14 = vsub.f32 0.0, %v2357_v36  ;;  %v2323_v21 = vadd.f32 0.2548296, %v2318_v26  ;;  %v1820_v0 = vpop.permute.xlu2 %1819 }
 0xc38   :  { %v2372_v51 = vsel %vm2362_vm7, %v2357_v36, %v2367_v14  ;;  %v2328_v38 = vmul.f32 %v2323_v21, %v2282_v13  ;;  %v1834_v36 = vsub.f32 %v5886_v54, %v1822_v20 }
 0xc39   :  { %v2377_v49 = vadd.f32 1.0, %v2372_v51 }
 0xc3a   :  { %v2353_v56 = vmul.f32 %v5408_v18, %v2328_v38  ;;  %v1839_v26 = vmul.f32 %v1834_v36, %v1834_v36  ;;  %v1818_v18 = vpop.permute.xlu0 %1817 }
 0xc3b   :  { %v2382_v16 = vmul.f32 %v2377_v49, %v2187_v50 }
 0xc3c   :  { %v2358_v19 = vsub.f32 1.0, %v2353_v56  ;;  %v1832_v56 = vsub.f32 %v5904_v60, %v1818_v18 }
 0xc3d   :  { %4966 = vmatmul.msk.f32.gmra.mxu1 %vm108_vm0, %v2382_v16 }
 0xc3e   :  { %v2368_v22 = vsub.f32 0.0, %v2358_v19  ;;  %v1837_v16 = vmul.f32 %v1832_v56, %v1832_v56 }
 0xc40   :  { %v2373_v62 = vsel %vm2363_vm8, %v2358_v19, %v2368_v22 }
 0xc41   :  { %v2378_v43 = vadd.f32 1.0, %v2373_v62 }
 0xc43   :  { %v2383_v37 = vmul.f32 %v2378_v43, %v2188_v24 }
 0xc45   :  { %4967 = vmatmul.msk.f32.gmra.mxu1 %vm108_vm0, %v2383_v37 }
 0xc87   :  { %v2425_v13 = vpop.f32.mrf.mxu1 }
 0xc88   :  { %v2426_v57 = vadd.f32 %v2425_v13, %v2392_v2 }
 0xc8a   :  { %v6781_v46 = vadd.f32 %v2426_v57, %v6578_v45  ;;  %v1835_v45 = vsub.f32 %v5890_v55, %v1824_v1  ;;  %v1833_v55 = vsub.f32 %v5894_v58, %v1820_v0 }
 0xc8c   :  { %v2447_v52 = vsel %vm189_vm1, %v6781_v46, 0.0 }
 0xc8d   :  { %2448 = vadd.xlane.f32.xlu1 %v2447_v52 }
 0xc8f   :  { %v2428_v23 = vpop.f32.mrf.mxu1 }
 0xc90   :  { %v2429_v27 = vadd.f32 %v2428_v23, %v2392_v2 }
 0xc92   :  { %v6786_v42 = vadd.f32 %v2429_v27, %v6583_v63  ;;  %v1840_v63 = vmul.f32 %v1835_v45, %v1835_v45 }
 0xc94   :  { %v2450_v44 = vsel %vm189_vm1, %v6786_v42, 0.0  ;;  %v5192_v53 = vpack.i.bf16 %v1840_v63, %v1841_v25 }
 0xc95   :  { %2451 = vadd.xlane.f32.xlu2 %v2450_v44 }
 0xc97   :  { %v2431_v11 = vpop.f32.mrf.mxu1 }
 0xc98   :  { %v2432_v12 = vadd.f32 %v2431_v11, %v2392_v2 }
 0xc9a   :  { %v6792_v30 = vadd.f32 %v2432_v12, %v6588_v35  ;;  %v1838_v35 = vmul.f32 %v1833_v55, %v1833_v55 }
 0xc9c   :  { %v2453_v4 = vsel %vm189_vm1, %v6792_v30, 0.0  ;;  %v5197_v14 = vpack.i.bf16 %v1838_v35, %v1839_v26 }
 0xc9d   :  { %2454 = vadd.xlane.f32.xlu0 %v2453_v4 }
 0xca6   :  { %5193 = vrot.lane.b32.xlu1 %v5192_v53, %s5561_s21 }
 0xcb1   :  { %5198 = vrot.lane.b32.xlu0 %v5197_v14, %s5561_s21  ;;  %v4972_v14 = vld [vmem:[%s8019_s6 + $0x38] sm:$0xff] }
 0xcba   :  { %v2434_v59 = vpop.f32.mrf.mxu1 }
 0xcbb   :  { %v2435_v21 = vadd.f32 %v2434_v59, %v2392_v2 }
 0xcbd   :  { %v6802_v51 = vadd.f32 %v2435_v21, %v6593_v48 }
 0xcbf   :  { %v2456_v50 = vsel %vm189_vm1, %v6802_v51, 0.0 }
 0xcc0   :  { %2457 = vadd.xlane.f32.xlu2 %v2456_v50 }
 0xcc2   :  { %v2437_v38 = vpop.f32.mrf.mxu1 }
 0xcc3   :  { %v2438_v49 = vadd.f32 %v2437_v38, %v2392_v2 }
 0xcc5   :  { %v6807_v54 = vadd.f32 %v2438_v49, %v6598_v41 }
 0xcc7   :  { %v2459_v58 = vsel %vm189_vm1, %v6807_v54, 0.0 }
 0xcc8   :  { %2460 = vadd.xlane.f32.xlu2 %v2459_v58 }
 0xce0   :  { %1847 = vrot.lane.b32.xlu2 %v1837_v16, %s5561_s21  ;;  %v4968_v16 = vld [vmem:[%s8018_s5 + $0x8] sm:$0xff] }
 0xd00   :  { %v2449_v48 = vpop.xlane.xlu1 %2448 }
 0xd01   :  { %v2462_v19 = vmul.f32 %v2449_v48, %v5802_v6 }
 0xd03   :  { %v6815_v22 = vsub.f32 %v6781_v46, %v2462_v19 }
 0xd05   :  { %v2472_v41 = vmul.f32 %v6815_v22, %v6815_v22 }
 0xd07   :  { %v2477_v62 = vsel %vm189_vm1, %v2472_v41, 0.0 }
 0xd08   :  { %2478 = vadd.xlane.f32.xlu0 %v2477_v62  ;;  %v2452_v24 = vpop.xlane.xlu2 %2451 }
 0xd09   :  { %v2463_v43 = vmul.f32 %v2452_v24, %v5802_v6 }
 0xd0b   :  { %v6822_v60 = vsub.f32 %v6786_v42, %v2463_v43  ;;  %v6876_v43 = vperm.slane %v4968_v16, 0 }
 0xd0d   :  { %v2473_v37 = vmul.f32 %v6822_v60, %v6822_v60 }
 0xd0f   :  { %v2480_v2 = vsel %vm189_vm1, %v2473_v37, 0.0 }
 0xd10   :  { %2481 = vadd.xlane.f32.xlu1 %v2480_v2  ;;  %v2455_v13 = vpop.xlane.xlu0 %2454 }
 0xd11   :  { %v2464_v57 = vmul.f32 %v2455_v13, %v5802_v6 }
 0xd13   :  { %v6829_v52 = vsub.f32 %v6792_v30, %v2464_v57 }
 0xd15   :  { %v2474_v23 = vmul.f32 %v6829_v52, %v6829_v52 }
 0xd17   :  { %v2483_v1 = vsel %vm189_vm1, %v2474_v23, 0.0  ;;  %v6879_v23 = vperm.slane %v4968_v16, 1 }
 0xd18   :  { %v5194_v27 = vpop.permute.xlu1 %5193  ;;  %2484 = vadd.xlane.f32.xlu2 %v2483_v1 }
 0xd19   :  { %v5195_v44 = vunpack.i.l.bf16 %v5194_v27  ;;  %v5196_v11 = vunpack.i.h.bf16 %v5194_v27 }
 0xd1b   :  { %1873 = vmatpush.msrb.mxu3 %v5195_v44 }
 0xd1d   :  { %1874 = vmatpush.msrb.mxu3 %v5196_v11 }
 0xd23   :  { %v5199_v31 = vpop.permute.xlu0 %5198 }
 0xd24   :  { %v5200_v12 = vunpack.i.l.bf16 %v5199_v31  ;;  %v5201_v45 = vunpack.i.h.bf16 %v5199_v31 }
 0xd26   :  { %1875 = vmatpush.msrb.mxu3 %v5200_v12 }
 0xd28   :  { %1876 = vmatpush.msrb.mxu3 %v5201_v45 }
 0xd33   :  { %v2458_v39 = vpop.xlane.xlu2 %2457 }
 0xd34   :  { %v2465_v4 = vmul.f32 %v2458_v39, %v5802_v6 }
 0xd36   :  { %v6836_v63 = vsub.f32 %v6802_v51, %v2465_v4 }
 0xd38   :  { %v2475_v25 = vmul.f32 %v6836_v63, %v6836_v63 }
 0xd3a   :  { %v2486_v53 = vsel %vm189_vm1, %v2475_v25, 0.0 }
 0xd3b   :  { %2487 = vadd.xlane.f32.xlu0 %v2486_v53  ;;  %v2461_v20 = vpop.xlane.xlu2 %2460 }
 0xd3c   :  { %v2466_v0 = vmul.f32 %v2461_v20, %v5802_v6 }
 0xd3e   :  { %v6843_v36 = vsub.f32 %v6807_v54, %v2466_v0 }
 0xd40   :  { %v2476_v55 = vmul.f32 %v6843_v36, %v6843_v36 }
 0xd42   :  { %v2489_v26 = vsel %vm189_vm1, %v2476_v55, 0.0 }
 0xd43   :  { %2490 = vadd.xlane.f32.xlu1 %v2489_v26  ;;  %v1848_v35 = vpop.permute.xlu2 %1847 }
 0xd44   :  { %1877 = vmatpush.msrb.mxu3 %v1848_v35 }
 0xd45   :  { %4948 = vmatmul.msk.f32.vlgmr.msrb.gmra.mxu3 %vm458_vm5, %v6449_v47  ;;  %v4971_v47 = vld [vmem:[%s8019_s6 + $0x30] sm:$0xff] }
 0xd46   :  { %2606 = vmatpush.msra.mxu3 %v4972_v14 }
 0xd48   :  { %2607 = vmatpush.msra.mxu3 %v4971_v47 }
 0xd4d   :  { %4949 = vmatmul.msk.f32.gmra.mxu3 %vm458_vm5, %v6454_v17  ;;  %v4970_v17 = vld [vmem:[%s8019_s6 + $0x28] sm:$0xff] }
 0xd4e   :  { %2608 = vmatpush.msra.mxu3 %v4970_v17 }
 0xd55   :  { %4950 = vmatmul.msk.f32.gmra.mxu3 %vm458_vm5, %v6459_v7  ;;  %v4969_v7 = vld [vmem:[%s8019_s6 + $0x20] sm:$0xff]  ;;  %s8058_s6 = smov 16  }
 0xd56   :  { %2609 = vmatpush.msra.mxu3 %v4969_v7 }
 0xd5d   :  { %4951 = vmatmul.msk.f32.gmra.mxu3 %vm458_vm5, %v6464_v32 }
 0xd65   :  { %4952 = vmatmul.msk.f32.gmra.mxu3 %vm458_vm5, %v6469_v40 }
 0xd7b   :  { %v2479_v32 = vpop.xlane.xlu0 %2478 }
 0xd7c   :  { %v2492_v40 = vmul.f32 %v2479_v32, %v5802_v6 }
 0xd7e   :  { %v2497_v59 = vadd.f32 1e-06, %v2492_v40 }
 0xd80   :  { %5409 = vrsqrt.f32 %v2497_v59  ;;  %vm2508_vm10 = vweird.f32 %v2497_v59 }
 0xd83   :  { %v2482_v21 = vpop.xlane.xlu1 %2481 }
 0xd84   :  { %v2493_v38 = vmul.f32 %v2482_v21, %v5802_v6 }
 0xd86   :  { %v5410_v50 = vpop.eup %5409  ;;  %v2498_v58 = vadd.f32 1e-06, %v2493_v38 }
 0xd87   :  { %v2503_v49 = vmul.f32 %v5410_v50, %v2497_v59  ;;  %vm2509_vm9 = vweird.f32 %v5410_v50 }
 0xd88   :  { %5411 = vrsqrt.f32 %v2498_v58  ;;  %vm2510_vm11 = vmor %vm2508_vm10, %vm2509_vm9  ;;  %vm2518_vm13 = vweird.f32 %v2498_v58 }
 0xd89   :  { %v2504_v18 = vmul.f32 %v5410_v50, %v2503_v49 }
 0xd8b   :  { %v2505_v56 = vmul.f32 0.5, %v2504_v18  ;;  %v2485_v19 = vpop.xlane.xlu2 %2484 }
 0xd8c   :  { %v2494_v62 = vmul.f32 %v2485_v19, %v5802_v6 }
 0xd8d   :  { %v2506_v48 = vsub.f32 1.5, %v2505_v56 }
 0xd8e   :  { %v5412_v24 = vpop.eup %5411  ;;  %v2499_v13 = vadd.f32 1e-06, %v2494_v62 }
 0xd8f   :  { %v2507_v41 = vmul.f32 %v5410_v50, %v2506_v48  ;;  %v2513_v2 = vmul.f32 %v5412_v24, %v2498_v58  ;;  %vm2519_vm12 = vweird.f32 %v5412_v24 }
 0xd90   :  { %5413 = vrsqrt.f32 %v2499_v13  ;;  %vm2520_vm3 = vmor %vm2518_vm13, %vm2519_vm12  ;;  %vm2528_vm7 = vweird.f32 %v2499_v13 }
 0xd91   :  { %v2511_v37 = vsel %vm2510_vm11, %v5410_v50, %v2507_v41  ;;  %v2514_v27 = vmul.f32 %v5412_v24, %v2513_v2 }
 0xd92   :  { %v2552_v57 = vmul.f32 %v2511_v37, %v6815_v22 }
 0xd93   :  { %v2515_v1 = vmul.f32 0.5, %v2514_v27 }
 0xd94   :  { %v2558_v44 = vmul.f32 %v6876_v43, %v2552_v57 }
 0xd95   :  { %v2516_v31 = vsub.f32 1.5, %v2515_v1 }
 0xd96   :  { %v2564_v11 = vadd.f32 %v6879_v23, %v2558_v44  ;;  %v5414_v12 = vpop.eup %5413 }
 0xd97   :  { %v2517_v45 = vmul.f32 %v5412_v24, %v2516_v31  ;;  %v2523_v39 = vmul.f32 %v5414_v12, %v2499_v13  ;;  %vm2529_vm6 = vweird.f32 %v5414_v12 }
 0xd98   :  { %4974 = vmatmul.msk.f32.vlgmr.msra.gmra.mxu3 %vm189_vm1, %v2564_v11  ;;  %vm2530_vm8 = vmor %vm2528_vm7, %vm2529_vm6 }
 0xd99   :  { %v2521_v4 = vsel %vm2520_vm3, %v5412_v24, %v2517_v45  ;;  %v2524_v22 = vmul.f32 %v5414_v12, %v2523_v39 }
 0xd9a   :  { %v2553_v25 = vmul.f32 %v2521_v4, %v6822_v60 }
 0xd9b   :  { %v2525_v53 = vmul.f32 0.5, %v2524_v22 }
 0xd9c   :  { %v2559_v20 = vmul.f32 %v6876_v43, %v2553_v25 }
 0xd9d   :  { %v2526_v0 = vsub.f32 1.5, %v2525_v53 }
 0xd9e   :  { %v2565_v55 = vadd.f32 %v6879_v23, %v2559_v20 }
 0xd9f   :  { %v2527_v26 = vmul.f32 %v5414_v12, %v2526_v0 }
 0xda0   :  { %4975 = vmatmul.msk.f32.gmra.mxu3 %vm189_vm1, %v2565_v55 }
 0xda1   :  { %v2531_v35 = vsel %vm2530_vm8, %v5414_v12, %v2527_v26 }
 0xda2   :  { %v2554_v14 = vmul.f32 %v2531_v35, %v6829_v52 }
 0xda4   :  { %v2560_v47 = vmul.f32 %v6876_v43, %v2554_v14 }
 0xda6   :  { %v2566_v17 = vadd.f32 %v6879_v23, %v2560_v47 }
 0xda8   :  { %4976 = vmatmul.msk.f32.gmra.mxu3 %vm189_vm1, %v2566_v17 }
 0xdae   :  { %v2488_v60 = vpop.xlane.xlu0 %2487 }
 0xdaf   :  { %v2495_v7 = vmul.f32 %v2488_v60, %v5802_v6 }
 0xdb1   :  { %v2500_v32 = vadd.f32 1e-06, %v2495_v7 }
 0xdb3   :  { %5415 = vrsqrt.f32 %v2500_v32  ;;  %vm2538_vm10 = vweird.f32 %v2500_v32 }
 0xdb6   :  { %v2491_v40 = vpop.xlane.xlu1 %2490 }
 0xdb7   :  { %v2496_v59 = vmul.f32 %v2491_v40, %v5802_v6 }
 0xdb9   :  { %v5416_v21 = vpop.eup %5415  ;;  %v2501_v38 = vadd.f32 1e-06, %v2496_v59 }
 0xdba   :  { %v2533_v50 = vmul.f32 %v5416_v21, %v2500_v32  ;;  %vm2539_vm9 = vweird.f32 %v5416_v21 }
 0xdbb   :  { %5417 = vrsqrt.f32 %v2501_v38  ;;  %vm2540_vm11 = vmor %vm2538_vm10, %vm2539_vm9  ;;  %vm2548_vm13 = vweird.f32 %v2501_v38 }
 0xdbc   :  { %v2534_v49 = vmul.f32 %v5416_v21, %v2533_v50 }
 0xdbe   :  { %v2535_v52 = vmul.f32 0.5, %v2534_v49 }
 0xdc0   :  { %v2536_v58 = vsub.f32 1.5, %v2535_v52 }
 0xdc1   :  { %v5418_v18 = vpop.eup %5417 }
 0xdc2   :  { %v2537_v56 = vmul.f32 %v5416_v21, %v2536_v58  ;;  %v2543_v16 = vmul.f32 %v5418_v18, %v2501_v38  ;;  %vm2549_vm12 = vweird.f32 %v5418_v18 }
 0xdc3   :  { %vm2550_vm3 = vmor %vm2548_vm13, %vm2549_vm12 }
 0xdc4   :  { %v2541_v48 = vsel %vm2540_vm11, %v5416_v21, %v2537_v56  ;;  %v2544_v19 = vmul.f32 %v5418_v18, %v2543_v16 }
 0xdc5   :  { %v2555_v41 = vmul.f32 %v2541_v48, %v6836_v63 }
 0xdc6   :  { %v2545_v62 = vmul.f32 0.5, %v2544_v19 }
 0xdc7   :  { %v2561_v24 = vmul.f32 %v6876_v43, %v2555_v41  ;;  %v6990_v41 = vld [vmem:[%s8015_s2 + $0x8] sm:$0xff] }
 0xdc8   :  { %v2546_v37 = vsub.f32 1.5, %v2545_v62  ;;  %v6902_v63 = vpop.f32.mrf.mxu3 }
 0xdc9   :  { %v2567_v2 = vadd.f32 %v6879_v23, %v2561_v24 }
 0xdca   :  { %v2547_v13 = vmul.f32 %v5418_v18, %v2546_v37 }
 0xdcb   :  { %4977 = vmatmul.msk.f32.gmra.mxu3 %vm189_vm1, %v2567_v2 }
 0xdcc   :  { %v2551_v57 = vsel %vm2550_vm3, %v5418_v18, %v2547_v13  ;;  %v6983_v18 = vld [vmem:[%s8015_s2] sm:$0xff]  ;;  %v6997_v13 = vld [vmem:[%s8015_s2 + $0x10] sm:$0xff] }
 0xdcd   :  { %v2556_v27 = vmul.f32 %v2551_v57, %v6843_v36  ;;  %v5284_v36 = vld [vmem:[%s8020_s7 + $0x1] ss:$0 sm:$0xff] }
 0xdcf   :  { %v2562_v44 = vmul.f32 %v6876_v43, %v2556_v27 }
 0xdd0   :  { %v6904_v11 = vpop.f32.mrf.mxu3 }
 0xdd1   :  { %v2568_v1 = vadd.f32 %v6879_v23, %v2562_v44 }
 0xdd3   :  { %4978 = vmatmul.msk.f32.gmra.mxu3 %vm189_vm1, %v2568_v1 }
 0xdd8   :  { %v6906_v31 = vpop.f32.mrf.mxu3 }
 0xde0   :  { %v6908_v12 = vpop.f32.mrf.mxu3 }
 0xde8   :  { %v6910_v45 = vpop.f32.mrf.mxu3 }
 0xde9   :  { %8050 = vst [vmem:[#allocation10_spill] sm:$0xff] %v6910_v45 }
 0xe1b   :  { %v2611_v39 = vpop.f32.mrf.mxu3 }
 0xe1c   :  { %v6925_v53 = vadd.f32 %v5284_v36, %v2611_v39  ;;  %v7004_v39 = vld [vmem:[%s8015_s2 + $0x18] sm:$0xff] }
 0xe23   :  { %v2614_v4 = vpop.f32.mrf.mxu3 }
 0xe24   :  { %v6935_v55 = vadd.f32 %v5284_v36, %v2614_v4 }
 0xe2b   :  { %v2617_v43 = vpop.f32.mrf.mxu3 }
 0xe2c   :  { %v6915_v23 = vadd.f32 %v5284_v36, %v2617_v43 }
 0xe2e   :  { %2636 = vrot.lane.b32.xlu2 %v6915_v23, %s5551_s28 }
 0xe4e   :  { %v2620_v22 = vpop.f32.mrf.mxu3 }
 0xe4f   :  { %v6919_v25 = vadd.f32 %v5284_v36, %v2620_v22 }
 0xe51   :  { %2638 = vrot.lane.b32.xlu1 %v6919_v25, %s5551_s28  ;;  %3005 = vrot.lane.b32.xlu2 %v6919_v25, %s5552_s29 }
 0xe56   :  { %v2623_v20 = vpop.f32.mrf.mxu3 }
 0xe57   :  { %v6927_v0 = vadd.f32 %v5284_v36, %v2623_v20  ;;  %v7011_v20 = vld [vmem:[%s8015_s2 + $0x20] sm:$0xff] }
 0xe59   :  { %2999 = vrot.lane.b32.xlu2 %v6925_v53, %s5552_s29  ;;  %2640 = vrot.lane.b32.xlu0 %v6927_v0, %s5551_s28 }
 0xe5a   :  { %3007 = vrot.lane.b32.xlu1 %v6927_v0, %s5552_s29 }
 0xe61   :  { %2993 = vrot.lane.b32.xlu2 %v6915_v23, %s5553_s4  ;;  %2634 = vrot.lane.b32.xlu0 %v6935_v55, %s5551_s28 }
 0xe62   :  { %3001 = vrot.lane.b32.xlu1 %v6935_v55, %s5552_s29 }
 0xe69   :  { %2632 = vrot.lane.b32.xlu0 %v6925_v53, %s5551_s28 }
 0xe6a   :  { %2991 = vrot.lane.b32.xlu1 %v6935_v55, %s5553_s4 }
 0xe71   :  { %3003 = vrot.lane.b32.xlu0 %v6915_v23, %s5552_s29 }
 0xe72   :  { %2997 = vrot.lane.b32.xlu1 %v6927_v0, %s5553_s4 }
 0xe79   :  { %2989 = vrot.lane.b32.xlu0 %v6925_v53, %s5553_s4 }
 0xe81   :  { %2995 = vrot.lane.b32.xlu0 %v6919_v25, %s5553_s4 }
 0xe88   :  { %v2637_v35 = vpop.permute.xlu2 %2636 }
 0xeab   :  { %v3006_v17 = vpop.permute.xlu2 %3005 }
 0xeb3   :  { %v3000_v59 = vpop.permute.xlu2 %2999 }
 0xebb   :  { %v2994_v38 = vpop.permute.xlu2 %2993 }
 0xec3   :  { %v2639_v26 = vpop.permute.xlu1 %2638 }
 0xecb   :  { %v2641_v14 = vpop.permute.xlu0 %2640 }
 0xecc   :  { %v3008_v47 = vpop.permute.xlu1 %3007  ;;  %4980 = vmatpush.xpose.msk.msra.mxu0 %vm390_vm4, %v2641_v14 }
 0xecd   :  { %5000 = vmatpush.xpose.msk.msrb.mxu3 %vm390_vm4, %v3008_v47  ;;  %v7017_v47 = vpack.i.bf16 %v6919_v25, %v6927_v0 }
 0xed0   :  { %4981 = vmatpush.xpose.msk.msra.mxu0 %vm390_vm4, %v2639_v26 }
 0xed1   :  { %5001 = vmatpush.xpose.msk.msrb.mxu3 %vm390_vm4, %v3006_v17 }
 0xed3   :  { %v2635_v60 = vpop.permute.xlu0 %2634 }
 0xed4   :  { %4982 = vmatpush.xpose.msk.msra.mxu0 %vm390_vm4, %v2637_v35  ;;  %v3002_v40 = vpop.permute.xlu1 %3001 }
 0xed8   :  { %4983 = vmatpush.xpose.msk.msra.mxu0 %vm390_vm4, %v2635_v60 }
 0xedb   :  { %v2633_v7 = vpop.permute.xlu0 %2632 }
 0xedc   :  { %4984 = vmatpush.xpose.msk.msra.mxu0 %vm390_vm4, %v2633_v7  ;;  %v2992_v50 = vpop.permute.xlu1 %2991 }
 0xedf   :  { %4985 = vmatmul.msk.f32.vlgmr.msra.gmra.mxu0 %vm390_vm4, %v6925_v53 }
 0xee3   :  { %v3004_v32 = vpop.permute.xlu0 %3003 }
 0xee4   :  { %5002 = vmatpush.xpose.msk.msrb.mxu3 %vm390_vm4, %v3004_v32  ;;  %v2998_v52 = vpop.permute.xlu1 %2997 }
 0xee7   :  { %4986 = vmatmul.msk.f32.gmra.mxu0 %vm390_vm4, %v6935_v55 }
 0xee8   :  { %5003 = vmatpush.xpose.msk.msrb.mxu3 %vm390_vm4, %v3002_v40 }
 0xeeb   :  { %v2990_v21 = vpop.permute.xlu0 %2989 }
 0xeec   :  { %5004 = vmatpush.xpose.msk.msrb.mxu3 %vm390_vm4, %v3000_v59 }
 0xeef   :  { %4987 = vmatmul.msk.f32.gmra.mxu0 %vm390_vm4, %v6915_v23  ;;  %5005 = vmatmul.msk.f32.vlgmr.msrb.gmra.mxu3 %vm390_vm4, %v2990_v21 }
 0xef3   :  { %v2996_v49 = vpop.permute.xlu0 %2995 }
 0xef7   :  { %4988 = vmatmul.msk.f32.gmra.mxu0 %vm390_vm4, %v6919_v25  ;;  %5006 = vmatmul.msk.f32.gmra.mxu3 %vm390_vm4, %v2992_v50 }
 0xeff   :  { %4989 = vmatmul.msk.f32.gmra.mxu0 %vm390_vm4, %v6927_v0  ;;  %5007 = vmatmul.msk.f32.gmra.mxu3 %vm390_vm4, %v2994_v38 }
 0xf07   :  { %5008 = vmatmul.msk.f32.gmra.mxu3 %vm390_vm4, %v2996_v49 }
 0xf0f   :  { %5009 = vmatmul.msk.f32.gmra.mxu3 %vm390_vm4, %v2998_v52 }
 0xf5c   :  { %v2679_v58 = vpop.f32.mrf.mxu0 }
 0xf5d   :  { %v2694_v56 = vmul.f32 0.35355338, %v2679_v58 }
 0xf5f   :  { %v2704_v16 = vadd.f32 %v6983_v18, %v2694_v56 }
 0xf61   :  { %v2709_v48 = vsel %vm458_vm5, %v2704_v16, -inf }
 0xf62   :  { %2710 = vmax.xlane.f32.xlu2 %v2709_v48 }
 0xf64   :  { %v2682_v19 = vpop.f32.mrf.mxu0 }
 0xf65   :  { %v2695_v62 = vmul.f32 0.35355338, %v2682_v19 }
 0xf67   :  { %v2705_v24 = vadd.f32 %v6990_v41, %v2695_v62 }
 0xf69   :  { %v2712_v37 = vsel %vm458_vm5, %v2705_v24, -inf }
 0xf6a   :  { %2713 = vmax.xlane.f32.xlu0 %v2712_v37 }
 0xf6c   :  { %v2685_v2 = vpop.f32.mrf.mxu0 }
 0xf6d   :  { %v2696_v57 = vmul.f32 0.35355338, %v2685_v2 }
 0xf6f   :  { %v2706_v27 = vadd.f32 %v6997_v13, %v2696_v57 }
 0xf71   :  { %v2715_v44 = vsel %vm458_vm5, %v2706_v27, -inf }
 0xf72   :  { %2716 = vmax.xlane.f32.xlu1 %v2715_v44  ;;  %v3046_v21 = vpop.f32.mrf.mxu3 }
 0xf74   :  { %v2688_v1 = vpop.f32.mrf.mxu0 }
 0xf75   :  { %v2697_v4 = vmul.f32 0.35355338, %v2688_v1 }
 0xf77   :  { %v2707_v36 = vadd.f32 %v7004_v39, %v2697_v4  ;;  %v7039_v4 = vpack.i.bf16 %v6935_v55, %v6915_v23 }
 0xf79   :  { %v2718_v43 = vsel %vm458_vm5, %v2707_v36, -inf }
 0xf7a   :  { %2719 = vmax.xlane.f32.xlu2 %v2718_v43  ;;  %v3049_v48 = vpop.f32.mrf.mxu3 }
 0xf7b   :  { %v3062_v44 = vmul.f32 0.35355338, %v3049_v48 }
 0xf7c   :  { %v2691_v22 = vpop.f32.mrf.mxu0 }
 0xf7d   :  { %v2698_v26 = vmul.f32 0.35355338, %v2691_v22 }
 0xf7f   :  { %v2708_v35 = vadd.f32 %v7011_v20, %v2698_v26 }
 0xf81   :  { %v2721_v14 = vsel %vm458_vm5, %v2708_v35, -inf }
 0xf82   :  { %2722 = vmax.xlane.f32.xlu0 %v2721_v14  ;;  %v3052_v57 = vpop.f32.mrf.mxu3 }
 0xf8a   :  { %v3055_v43 = vpop.f32.mrf.mxu3 }
 0xf8b   :  { %v3064_v26 = vmul.f32 0.35355338, %v3055_v43 }
 0xf92   :  { %v3058_v48 = vpop.f32.mrf.mxu3 }
 0xf96   :  { %5203 = vrot.lane.b32.xlu0 %v7017_v47, %s5554_s25 }
 0xfd5   :  { %v2711_v17 = vpop.xlane.xlu2 %2710 }
 0xfd6   :  { %v2724_v60 = vsub.f32 %v2704_v16, %v2711_v17  ;;  %v7049_v17 = vadd.f32 %v3064_v26, %v7004_v39 }
 0xfd8   :  { %v2729_v7 = vmul.f32 1.442695, %v2724_v60 }
 0xfda   :  { %5419 = vpow2.f32 %v2729_v7 }
 0xfdd   :  { %v2714_v32 = vpop.xlane.xlu0 %2713 }
 0xfde   :  { %v2725_v40 = vsub.f32 %v2705_v24, %v2714_v32  ;;  %v3085_v32 = vsel %vm458_vm5, %v7049_v17, -inf }
 0xfe0   :  { %v7021_v59 = vpop.eup %5419  ;;  %v2731_v50 = vmul.f32 1.442695, %v2725_v40 }
 0xfe1   :  { %v2739_v38 = vsel %vm458_vm5, %v7021_v59, 0.0 }
 0xfe2   :  { %5421 = vpow2.f32 %v2731_v50  ;;  %2740 = vadd.xlane.f32.xlu1 %v2739_v38 }
 0xfe5   :  { %v2717_v49 = vpop.xlane.xlu1 %2716 }
 0xfe6   :  { %v2726_v52 = vsub.f32 %v2706_v27, %v2717_v49 }
 0xfe8   :  { %v7025_v58 = vpop.eup %5421  ;;  %v2733_v56 = vmul.f32 1.442695, %v2726_v52  ;;  %v3063_v52 = vmul.f32 0.35355338, %v3052_v57 }
 0xfe9   :  { %v2742_v16 = vsel %vm458_vm5, %v7025_v58, 0.0 }
 0xfea   :  { %5423 = vpow2.f32 %v2733_v56  ;;  %2743 = vadd.xlane.f32.xlu2 %v2742_v16  ;;  %v7060_v16 = vadd.f32 %v3063_v52, %v6997_v13 }
 0xfed   :  { %v2720_v19 = vpop.xlane.xlu2 %2719 }
 0xfee   :  { %v2727_v62 = vsub.f32 %v2707_v36, %v2720_v19  ;;  %v7044_v36 = vadd.f32 %v3062_v44, %v6990_v41  ;;  %v3061_v19 = vmul.f32 0.35355338, %v3046_v21 }
 0xff0   :  { %v7029_v24 = vpop.eup %5423  ;;  %v2735_v37 = vmul.f32 1.442695, %v2727_v62  ;;  %v3079_v14 = vsel %vm458_vm5, %v7044_v36, -inf  ;;  %v3065_v62 = vmul.f32 0.35355338, %v3058_v48 }
 0xff1   :  { %v2745_v2 = vsel %vm458_vm5, %v7029_v24, 0.0 }
 0xff2   :  { %5425 = vpow2.f32 %v2735_v37  ;;  %2746 = vadd.xlane.f32.xlu2 %v2745_v2  ;;  %v3082_v37 = vsel %vm458_vm5, %v7060_v16, -inf  ;;  %v7068_v2 = vadd.f32 %v3065_v62, %v7011_v20 }
 0xff4   :  { %v3088_v44 = vsel %vm458_vm5, %v7068_v2, -inf }
 0xff5   :  { %v2723_v22 = vpop.xlane.xlu0 %2722 }
 0xff6   :  { %v2728_v50 = vsub.f32 %v2708_v35, %v2723_v22  ;;  %v7065_v35 = vadd.f32 %v3061_v19, %v6983_v18 }
 0xff8   :  { %v7033_v27 = vpop.eup %5425  ;;  %v2737_v38 = vmul.f32 1.442695, %v2728_v50  ;;  %v3076_v57 = vsel %vm458_vm5, %v7065_v35, -inf }
 0xff9   :  { %v2748_v1 = vsel %vm458_vm5, %v7033_v27, 0.0 }
 0xffa   :  { %2749 = vadd.xlane.f32.xlu0 %v2748_v1  ;;  %5427 = vpow2.f32 %v2737_v38 }
 0xffb   :  { %5208 = vrot.lane.b32.xlu1 %v7039_v4, %s5554_s25 }
0x1000   :  { %v7055_v49 = vpop.eup %5427 }
0x1001   :  { %v2751_v56 = vsel %vm458_vm5, %v7055_v49, 0.0 }
0x1002   :  { %3080 = vmax.xlane.f32.xlu0 %v3079_v14 }
0x1008   :  { %v5204_v60 = vpop.permute.xlu0 %5203 }
0x1009   :  { %v5205_v7 = vunpack.i.l.bf16 %v5204_v60  ;;  %v5206_v40 = vunpack.i.h.bf16 %v5204_v60 }
0x100a   :  { %2829 = vrot.lane.b32.xlu2 %v6925_v53, %s5554_s25  ;;  %3086 = vmax.xlane.f32.xlu0 %v3085_v32 }
0x100b   :  { %2870 = vmatpush.msrb.mxu2 %v5205_v7 }
0x100d   :  { %2871 = vmatpush.msrb.mxu2 %v5206_v40 }
0x1025   :  { %2752 = vadd.xlane.f32.xlu1 %v2751_v56 }
0x102d   :  { %3083 = vmax.xlane.f32.xlu1 %v3082_v37 }
0x1033   :  { %3077 = vmax.xlane.f32.xlu2 %v3076_v57 }
0x1035   :  { %3089 = vmax.xlane.f32.xlu1 %v3088_v44 }
0x104e   :  { %5213 = vrot.lane.b32.xlu1 %v7017_v47, %s5555_s26 }
0x1055   :  { %v2741_v21 = vpop.xlane.xlu1 %2740 }
0x1056   :  { %5429 = vrcp.f32 %v2741_v21  ;;  %v2765_v38 = vand.u32 2147483648, %v2741_v21  ;;  %vm2759_vm7 = vweird.f32 %v2741_v21  ;;  %v2763_v52 = vand.u32 2147483647, %v2741_v21 }
0x1058   :  { %v2766_v44 = vor.u32 1.1754944e-38, %v2765_v38  ;;  %vm2764_vm9 = vcmp.eq.f32.partialorder %v2763_v52, 8.507059e+37 }
0x105c   :  { %v5430_v1 = vpop.eup %5429 }
0x105d   :  { %v2755_v43 = vmul.f32 %v5430_v1, %v2741_v21  ;;  %v2744_v22 = vpop.xlane.xlu2 %2743  ;;  %vm2760_vm6 = vweird.f32 %v5430_v1 }
0x105e   :  { %5431 = vrcp.f32 %v2744_v22  ;;  %vm2761_vm8 = vmor %vm2759_vm7, %vm2760_vm6  ;;  %v2780_v61 = vand.u32 2147483648, %v2744_v22  ;;  %vm2774_vm11 = vweird.f32 %v2744_v22 }
0x105f   :  { %v2756_v26 = vsub.f32 1.0, %v2755_v43 }
0x1061   :  { %v2757_v60 = vmul.f32 %v5430_v1, %v2756_v26 }
0x1063   :  { %v2758_v40 = vadd.f32 %v5430_v1, %v2757_v60 }
0x1064   :  { %v5432_v14 = vpop.eup %5431 }
0x1065   :  { %v2770_v7 = vmul.f32 %v5432_v14, %v2744_v22  ;;  %v2747_v32 = vpop.xlane.xlu2 %2746  ;;  %v2762_v48 = vsel %vm2761_vm8, %v5430_v1, %v2758_v40  ;;  %vm2775_vm10 = vweird.f32 %v5432_v14  ;;  %v2778_v1 = vand.u32 2147483647, %v2744_v22 }
0x1066   :  { %5433 = vrcp.f32 %v2747_v32  ;;  %v2767_v26 = vsel %vm2764_vm9, %v2766_v44, %v2762_v48  ;;  %vm2776_vm12 = vmor %vm2774_vm11, %vm2775_vm10  ;;  %v2795_v44 = vand.u32 2147483648, %v2747_v32  ;;  %vm2789_vm6 = vweird.f32 %v2747_v32 }
0x1067   :  { %v2771_v50 = vsub.f32 1.0, %v2770_v7  ;;  %v7077_v21 = vmul.f32 %v7021_v59, %v2767_v26  ;;  %vm2779_vm13 = vcmp.eq.f32.partialorder %v2778_v1, 8.507059e+37 }
0x1069   :  { %v2772_v19 = vmul.f32 %v5432_v14, %v2771_v50 }
0x106b   :  { %v2773_v60 = vadd.f32 %v5432_v14, %v2772_v19  ;;  %v2781_v19 = vor.u32 1.1754944e-38, %v2780_v61 }
0x106c   :  { %v5434_v56 = vpop.eup %5433 }
0x106d   :  { %v2785_v62 = vmul.f32 %v5434_v56, %v2747_v32  ;;  %v5209_v37 = vpop.permute.xlu1 %5208  ;;  %v2750_v57 = vpop.xlane.xlu0 %2749  ;;  %v2777_v48 = vsel %vm2776_vm12, %v5432_v14, %v2773_v60  ;;  %vm2790_vm3 = vweird.f32 %v5434_v56 }
0x106e   :  { %v5210_v43 = vunpack.i.l.bf16 %v5209_v37  ;;  %5435 = vrcp.f32 %v2750_v57  ;;  %v5211_v28 = vunpack.i.h.bf16 %v5209_v37  ;;  %v2830_v40 = vpop.permute.xlu2 %2829  ;;  %v2782_v59 = vsel %vm2779_vm13, %v2781_v19, %v2777_v48  ;;  %vm2791_vm7 = vmor %vm2789_vm6, %vm2790_vm3 }
0x106f   :  { %v2786_v7 = vsub.f32 1.0, %v2785_v62  ;;  %v7083_v26 = vmul.f32 %v7025_v58, %v2782_v59  ;;  %vm2804_vm10 = vweird.f32 %v2750_v57 }
0x1070   :  { %2872 = vmatpush.msrb.mxu2 %v5210_v43  ;;  %v2793_v43 = vand.u32 2147483647, %v2747_v32 }
0x1071   :  { %v2787_v38 = vmul.f32 %v5434_v56, %v2786_v7 }
0x1072   :  { %2873 = vmatpush.msrb.mxu2 %v5211_v28  ;;  %vm2794_vm8 = vcmp.eq.f32.partialorder %v2793_v43, 8.507059e+37 }
0x1073   :  { %v2788_v37 = vadd.f32 %v5434_v56, %v2787_v38  ;;  %v2810_v38 = vand.u32 2147483648, %v2750_v57 }
0x1074   :  { %v5436_v50 = vpop.eup %5435  ;;  %2874 = vmatpush.msrb.mxu2 %v2830_v40 }
0x1075   :  { %v2800_v15 = vmul.f32 %v5436_v50, %v2750_v57  ;;  %v3081_v52 = vpop.xlane.xlu0 %3080  ;;  %4990 = vmatmul.msk.f32.vlgmr.msrb.gmra.mxu2 %vm458_vm5, %v7077_v21  ;;  %v2792_v61 = vsel %vm2791_vm7, %v5434_v56, %v2788_v37  ;;  %vm2805_vm9 = vweird.f32 %v5436_v50  ;;  %v2808_v56 = vand.u32 2147483647, %v2750_v57 }
0x1076   :  { %v3092_v62 = vsub.f32 %v7044_v36, %v3081_v52  ;;  %v2796_v36 = vor.u32 1.1754944e-38, %v2795_v44  ;;  %vm2806_vm11 = vmor %vm2804_vm10, %vm2805_vm9  ;;  %v2811_v48 = vor.u32 1.1754944e-38, %v2810_v38 }
0x1077   :  { %v2801_v22 = vsub.f32 1.0, %v2800_v15  ;;  %vm2809_vm12 = vcmp.eq.f32.partialorder %v2808_v56, 8.507059e+37 }
0x1078   :  { %v3098_v28 = vmul.f32 1.442695, %v3092_v62  ;;  %v2797_v1 = vsel %vm2794_vm8, %v2796_v36, %v2792_v61 }
0x1079   :  { %v2802_v7 = vmul.f32 %v5436_v50, %v2801_v22  ;;  %v7093_v52 = vmul.f32 %v7029_v24, %v2797_v1 }
0x107a   :  { %5437 = vpow2.f32 %v3098_v28 }
0x107b   :  { %v2803_v32 = vadd.f32 %v5436_v50, %v2802_v7 }
0x107d   :  { %v3087_v40 = vpop.xlane.xlu0 %3086  ;;  %4991 = vmatmul.msk.f32.gmra.mxu2 %vm458_vm5, %v7083_v26 }
0x107e   :  { %v3094_v14 = vsub.f32 %v7049_v17, %v3087_v40  ;;  %v2807_v17 = vsel %vm2806_vm11, %v5436_v50, %v2803_v32 }
0x107f   :  { %v2812_v62 = vsel %vm2809_vm12, %v2811_v48, %v2807_v17 }
0x1080   :  { %v7088_v60 = vpop.eup %5437  ;;  %v3102_v15 = vmul.f32 1.442695, %v3094_v14  ;;  %v7102_v59 = vmul.f32 %v7033_v27, %v2812_v62 }
0x1081   :  { %v3109_v58 = vsel %vm458_vm5, %v7088_v60, 0.0 }
0x1082   :  { %5439 = vpow2.f32 %v3102_v15  ;;  %3110 = vadd.xlane.f32.xlu0 %v3109_v58 }
0x1085   :  { %4992 = vmatmul.msk.f32.gmra.mxu2 %vm458_vm5, %v7093_v52 }
0x1088   :  { %v7097_v19 = vpop.eup %5439 }
0x1089   :  { %v3115_v28 = vsel %vm458_vm5, %v7097_v19, 0.0 }
0x108a   :  { %3116 = vadd.xlane.f32.xlu1 %v3115_v28 }
0x108d   :  { %4993 = vmatmul.msk.f32.gmra.mxu2 %vm458_vm5, %v7102_v59 }
0x1098   :  { %v2753_v24 = vpop.xlane.xlu1 %2752 }
0x1099   :  { %5441 = vrcp.f32 %v2753_v24  ;;  %v2825_v43 = vand.u32 2147483648, %v2753_v24  ;;  %v2823_v61 = vand.u32 2147483647, %v2753_v24  ;;  %vm2819_vm3 = vweird.f32 %v2753_v24 }
0x109b   :  { %v2826_v14 = vor.u32 1.1754944e-38, %v2825_v43  ;;  %vm2824_vm7 = vcmp.eq.f32.partialorder %v2823_v61, 8.507059e+37 }
0x109f   :  { %v5442_v57 = vpop.eup %5441 }
0x10a0   :  { %v2815_v37 = vmul.f32 %v5442_v57, %v2753_v24  ;;  %v3084_v50 = vpop.xlane.xlu1 %3083  ;;  %vm2820_vm13 = vweird.f32 %v5442_v57 }
0x10a1   :  { %v3093_v22 = vsub.f32 %v7060_v16, %v3084_v50  ;;  %vm2821_vm6 = vmor %vm2819_vm3, %vm2820_vm13 }
0x10a2   :  { %v2816_v44 = vsub.f32 1.0, %v2815_v37 }
0x10a3   :  { %v3100_v7 = vmul.f32 1.442695, %v3093_v22 }
0x10a4   :  { %v2817_v40 = vmul.f32 %v5442_v57, %v2816_v44 }
0x10a5   :  { %5443 = vpow2.f32 %v3100_v7 }
0x10a6   :  { %v3078_v27 = vpop.xlane.xlu2 %3077  ;;  %v2818_v36 = vadd.f32 %v5442_v57, %v2817_v40 }
0x10a7   :  { %v3091_v15 = vsub.f32 %v7065_v35, %v3078_v27 }
0x10a8   :  { %v2822_v1 = vsel %vm2821_vm6, %v5442_v57, %v2818_v36  ;;  %v3090_v48 = vpop.xlane.xlu1 %3089 }
0x10a9   :  { %v3096_v58 = vmul.f32 1.442695, %v3091_v15  ;;  %v2827_v32 = vsel %vm2824_vm7, %v2826_v14, %v2822_v1  ;;  %v3095_v24 = vsub.f32 %v7068_v2, %v3090_v48 }
0x10aa   :  { %v7109_v16 = vmul.f32 %v7055_v49, %v2827_v32 }
0x10ab   :  { %v7111_v38 = vpop.eup %5443  ;;  %5445 = vpow2.f32 %v3096_v58  ;;  %v3104_v57 = vmul.f32 1.442695, %v3095_v24 }
0x10ac   :  { %4994 = vmatmul.msk.f32.gmra.mxu2 %vm458_vm5, %v7109_v16  ;;  %v3112_v56 = vsel %vm458_vm5, %v7111_v38, 0.0 }
0x10ad   :  { %3113 = vadd.xlane.f32.xlu0 %v3112_v56  ;;  %5447 = vpow2.f32 %v3104_v57 }
0x10b1   :  { %v7117_v17 = vpop.eup %5445 }
0x10b2   :  { %v3106_v35 = vsel %vm458_vm5, %v7117_v17, 0.0 }
0x10b3   :  { %3107 = vadd.xlane.f32.xlu2 %v3106_v35  ;;  %v7126_v37 = vpop.eup %5447 }
0x10b4   :  { %v3118_v50 = vsel %vm458_vm5, %v7126_v37, 0.0 }
0x10c0   :  { %v5214_v62 = vpop.permute.xlu1 %5213 }
0x10c1   :  { %v5215_v49 = vunpack.i.l.bf16 %v5214_v62  ;;  %3196 = vrot.lane.b32.xlu0 %v6925_v53, %s5555_s26  ;;  %v5216_v28 = vunpack.i.h.bf16 %v5214_v62 }
0x10c3   :  { %3237 = vmatpush.msrb.mxu0 %v5215_v49 }
0x10c5   :  { %3238 = vmatpush.msrb.mxu0 %v5216_v28 }
0x10cb   :  { %5218 = vrot.lane.b32.xlu2 %v7039_v4, %s5555_s26 }
0x10f4   :  { %3119 = vadd.xlane.f32.xlu2 %v3118_v50 }
0x10f5   :  { %v3111_v7 = vpop.xlane.xlu0 %3110 }
0x10f6   :  { %5449 = vrcp.f32 %v3111_v7  ;;  %vm3141_vm13 = vweird.f32 %v3111_v7 }
0x10f8   :  { %v2876_v22 = vpop.f32.mrf.mxu2 }
0x10f9   :  { %2979 = vst.msk [vmem:[#allocation2] sm:$0xff] %vm390_vm4, %v2876_v22 }
0x10fc   :  { %v5450_v40 = vpop.eup %5449 }
0x10fd   :  { %v3137_v36 = vmul.f32 %v5450_v40, %v3111_v7  ;;  %v7140_v1 = vpop.xlane.xlu1 %3116  ;;  %vm3142_vm10 = vweird.f32 %v5450_v40 }
0x10fe   :  { %vm3143_vm3 = vmor %vm3141_vm13, %vm3142_vm10 }
0x10ff   :  { %v3138_v15 = vsub.f32 1.0, %v3137_v36 }
0x1100   :  { %v2879_v44 = vpop.f32.mrf.mxu2 }
0x1101   :  { %2980 = vst.msk [vmem:[#allocation2 + $0x8] sm:$0xff] %vm390_vm4, %v2879_v44  ;;  %2898 = vrot.lane.b32.xlu0 %v2879_v44, %s5554_s25  ;;  %v3139_v49 = vmul.f32 %v5450_v40, %v3138_v15 }
0x1108   :  { %v2882_v43 = vpop.f32.mrf.mxu2 }
0x1109   :  { %2981 = vst.msk [vmem:[#allocation2 + $0x10] sm:$0xff] %vm390_vm4, %v2882_v43  ;;  %2900 = vrot.lane.b32.xlu0 %v2882_v43, %s5554_s25 }
0x1110   :  { %v2885_v2 = vpop.f32.mrf.mxu2 }
0x1111   :  { %2982 = vst.msk [vmem:[#allocation2 + $0x18] sm:$0xff] %vm390_vm4, %v2885_v2  ;;  %2902 = vrot.lane.b32.xlu0 %v2885_v2, %s5554_s25 }
0x1120   :  { %v7137_v61 = vpop.xlane.xlu0 %3113 }
0x1126   :  { %v3108_v27 = vpop.xlane.xlu2 %3107 }
0x1127   :  { %5451 = vrcp.f32 %v3108_v27  ;;  %v3132_v28 = vand.u32 2147483648, %v3108_v27  ;;  %v3130_v44 = vand.u32 2147483647, %v3108_v27  ;;  %vm3126_vm9 = vweird.f32 %v3108_v27 }
0x1128   :  { %5453 = vrcp.f32 %v7137_v61 }
0x1129   :  { %5455 = vrcp.f32 %v7140_v1  ;;  %v3133_v36 = vor.u32 1.1754944e-38, %v3132_v28  ;;  %vm3131_vm12 = vcmp.eq.f32.partialorder %v3130_v44, 8.507059e+37 }
0x112d   :  { %v5452_v14 = vpop.eup %5451 }
0x112e   :  { %v3122_v58 = vmul.f32 %v5452_v14, %v3108_v27  ;;  %v5219_v32 = vpop.permute.xlu2 %5218  ;;  %v5454_v56 = vpop.eup %5453  ;;  %vm3127_vm8 = vweird.f32 %v5452_v14 }
0x112f   :  { %v5220_v35 = vunpack.i.l.bf16 %v5219_v32  ;;  %v2888_v48 = vpop.f32.mrf.mxu2  ;;  %v5221_v24 = vunpack.i.h.bf16 %v5219_v32  ;;  %v3152_v57 = vmul.f32 %v5454_v56, %v7137_v61  ;;  %vm3128_vm11 = vmor %vm3126_vm9, %vm3127_vm8  ;;  %v5456_v45 = vpop.eup %5455  ;;  %v3147_v32 = vand.u32 2147483648, %v3111_v7 }
0x1130   :  { %v3123_v62 = vsub.f32 1.0, %v3122_v58  ;;  %2983 = vst.msk [vmem:[#allocation2 + $0x20] sm:$0xff] %vm390_vm4, %v2888_v48  ;;  %2904 = vrot.lane.b32.xlu0 %v2888_v48, %s5554_s25  ;;  %v3140_v48 = vadd.f32 %v5450_v40, %v3139_v49  ;;  %v3167_v27 = vmul.f32 %v5456_v45, %v7140_v1  ;;  %vm3157_vm7 = vweird.f32 %v5454_v56 }
0x1131   :  { %3239 = vmatpush.msrb.mxu0 %v5220_v35  ;;  %v3153_v58 = vsub.f32 1.0, %v3152_v57  ;;  %v3148_v49 = vor.u32 1.1754944e-38, %v3147_v32  ;;  %vm3156_vm8 = vweird.f32 %v7137_v61 }
0x1132   :  { %v3124_v50 = vmul.f32 %v5452_v14, %v3123_v62  ;;  %vm3158_vm9 = vmor %vm3156_vm8, %vm3157_vm7 }
0x1133   :  { %v3197_v43 = vpop.permute.xlu0 %3196  ;;  %3240 = vmatpush.msrb.mxu0 %v5221_v24  ;;  %v3145_v24 = vand.u32 2147483647, %v3111_v7  ;;  %v3154_v28 = vmul.f32 %v5454_v56, %v3153_v58  ;;  %v3160_v7 = vand.u32 2147483647, %v7137_v61 }
0x1134   :  { %v3125_v2 = vadd.f32 %v5452_v14, %v3124_v50  ;;  %v3168_v50 = vsub.f32 1.0, %v3167_v27 }
0x1135   :  { %3241 = vmatpush.msrb.mxu0 %v3197_v43  ;;  %vm3146_vm6 = vcmp.eq.f32.partialorder %v3145_v24, 8.507059e+37  ;;  %v3155_v44 = vadd.f32 %v5454_v56, %v3154_v28  ;;  %vm3161_vm10 = vcmp.eq.f32.partialorder %v3160_v7, 8.507059e+37 }
0x1136   :  { %v3129_v15 = vsel %vm3128_vm11, %v5452_v14, %v3125_v2  ;;  %v3144_v14 = vsel %vm3143_vm3, %v5450_v40, %v3140_v48  ;;  %v3169_v43 = vmul.f32 %v5456_v45, %v3168_v50  ;;  %vm3172_vm11 = vweird.f32 %v5456_v45 }
0x1137   :  { %v3134_v35 = vsel %vm3131_vm12, %v3133_v36, %v3129_v15  ;;  %v3149_v57 = vsel %vm3146_vm6, %v3148_v49, %v3144_v14  ;;  %v3159_v40 = vsel %vm3158_vm9, %v5454_v56, %v3155_v44  ;;  %v3177_v15 = vand.u32 2147483648, %v7140_v1 }
0x1138   :  { %v7147_v62 = vmul.f32 %v7117_v17, %v3134_v35  ;;  %2896 = vrot.lane.b32.xlu0 %v2876_v22, %s5554_s25  ;;  %v3162_v17 = vand.u32 2147483648, %v7137_v61  ;;  %v7157_v22 = vmul.f32 %v7088_v60, %v3149_v57  ;;  %v3170_v58 = vadd.f32 %v5456_v45, %v3169_v43 }
0x1139   :  { %vm3171_vm12 = vweird.f32 %v7140_v1  ;;  %v3175_v60 = vand.u32 2147483647, %v7140_v1  ;;  %v3178_v56 = vor.u32 1.1754944e-38, %v3177_v15 }
0x113a   :  { %5010 = vmatmul.msk.f32.vlgmr.msrb.gmra.mxu0 %vm458_vm5, %v7147_v62  ;;  %v3163_v2 = vor.u32 1.1754944e-38, %v3162_v17  ;;  %vm3173_vm13 = vmor %vm3171_vm12, %vm3172_vm11 }
0x113b   :  { %v3174_v61 = vsel %vm3173_vm13, %v5456_v45, %v3170_v58  ;;  %vm3176_vm3 = vcmp.eq.f32.partialorder %v3175_v60, 8.507059e+37 }
0x113c   :  { %v3164_v36 = vsel %vm3161_vm10, %v3163_v2, %v3159_v40  ;;  %v3179_v32 = vsel %vm3176_vm3, %v3178_v56, %v3174_v61 }
0x113d   :  { %v7166_v48 = vmul.f32 %v7111_v38, %v3164_v36  ;;  %v7171_v35 = vmul.f32 %v7097_v19, %v3179_v32 }
0x1142   :  { %5011 = vmatmul.msk.f32.gmra.mxu0 %vm458_vm5, %v7157_v22 }
0x114a   :  { %5012 = vmatmul.msk.f32.gmra.mxu0 %vm458_vm5, %v7166_v48 }
0x1152   :  { %5013 = vmatmul.msk.f32.gmra.mxu0 %vm458_vm5, %v7171_v35 }
0x1167   :  { %v3120_v24 = vpop.xlane.xlu2 %3119 }
0x1168   :  { %5457 = vrcp.f32 %v3120_v24  ;;  %v3192_v28 = vand.u32 2147483648, %v3120_v24  ;;  %v3190_v49 = vand.u32 2147483647, %v3120_v24  ;;  %vm3186_vm7 = vweird.f32 %v3120_v24 }
0x116a   :  { %v3193_v50 = vor.u32 1.1754944e-38, %v3192_v28  ;;  %vm3191_vm9 = vcmp.eq.f32.partialorder %v3190_v49, 8.507059e+37 }
0x116e   :  { %v5458_v1 = vpop.eup %5457 }
0x116f   :  { %v3182_v27 = vmul.f32 %v5458_v1, %v3120_v24  ;;  %vm3187_vm6 = vweird.f32 %v5458_v1 }
0x1170   :  { %vm3188_vm8 = vmor %vm3186_vm7, %vm3187_vm6 }
0x1171   :  { %v3183_v38 = vsub.f32 1.0, %v3182_v27 }
0x1173   :  { %v3184_v14 = vmul.f32 %v5458_v1, %v3183_v38  ;;  %v2899_v57 = vpop.permute.xlu0 %2898 }
0x1174   :  { %v2912_v7 = vsub.f32 %v6935_v55, %v2899_v57 }
0x1175   :  { %v3185_v45 = vadd.f32 %v5458_v1, %v3184_v14 }
0x1176   :  { %v2917_v2 = vmul.f32 %v2912_v7, %v2912_v7 }
0x1177   :  { %v3189_v19 = vsel %vm3188_vm8, %v5458_v1, %v3185_v45 }
0x1178   :  { %v3194_v44 = vsel %vm3191_vm9, %v3193_v50, %v3189_v19 }
0x1179   :  { %v7176_v17 = vmul.f32 %v7126_v37, %v3194_v44 }
0x117b   :  { %v2901_v43 = vpop.permute.xlu0 %2900  ;;  %5014 = vmatmul.msk.f32.gmra.mxu0 %vm458_vm5, %v7176_v17 }
0x117c   :  { %v2913_v40 = vsub.f32 %v6915_v23, %v2901_v43 }
0x117e   :  { %v2918_v36 = vmul.f32 %v2913_v40, %v2913_v40 }
0x1180   :  { %v5227_v58 = vpack.i.bf16 %v2917_v2, %v2918_v36 }
0x1182   :  { %5228 = vrot.lane.b32.xlu1 %v5227_v58, %s5554_s25 }
0x1183   :  { %v2903_v37 = vpop.permute.xlu0 %2902 }
0x1184   :  { %v2914_v15 = vsub.f32 %v6919_v25, %v2903_v37 }
0x1186   :  { %v2919_v56 = vmul.f32 %v2914_v15, %v2914_v15 }
0x118a   :  { %3402 = vrot.lane.b32.xlu1 %v6935_v55, %s5556_s27 }
0x1192   :  { %3392 = vrot.lane.b32.xlu1 %v6935_v55, %s5557_s22 }
0x119a   :  { %3396 = vrot.lane.b32.xlu1 %v6919_v25, %s5557_s22 }
0x11a2   :  { %v2905_v60 = vpop.permute.xlu0 %2904 }
0x11a3   :  { %v2915_v61 = vsub.f32 %v6927_v0, %v2905_v60 }
0x11a5   :  { %v2920_v32 = vmul.f32 %v2915_v61, %v2915_v61 }
0x11a7   :  { %v5222_v24 = vpack.i.bf16 %v2919_v56, %v2920_v32 }
0x11a9   :  { %5223 = vrot.lane.b32.xlu2 %v5222_v24, %s5554_s25 }
0x11aa   :  { %v2897_v1 = vpop.permute.xlu0 %2896 }
0x11ab   :  { %v2911_v27 = vsub.f32 %v6925_v53, %v2897_v1 }
0x11ad   :  { %v2916_v38 = vmul.f32 %v2911_v27, %v2911_v27 }
0x11af   :  { %2926 = vrot.lane.b32.xlu0 %v2916_v38, %s5554_s25  ;;  %s8051_s25 = smov 104  }
0x11b1   :  { %3404 = vrot.lane.b32.xlu2 %v6915_v23, %s5556_s27 }
0x11b7   :  { %3408 = vrot.lane.b32.xlu0 %v6927_v0, %s5556_s27  ;;  %v7198_v28 = vpop.f32.mrf.mxu0 }
0x11b9   :  { %3390 = vrot.lane.b32.xlu2 %v6925_v53, %s5557_s22 }
0x11bf   :  { %3406 = vrot.lane.b32.xlu0 %v6919_v25, %s5556_s27  ;;  %v7204_v14 = vpop.f32.mrf.mxu0 }
0x11c0   :  { %3265 = vrot.lane.b32.xlu1 %v7204_v14, %s5558_s0 }
0x11c7   :  { %3400 = vrot.lane.b32.xlu0 %v6925_v53, %s5556_s27  ;;  %v7210_v49 = vpop.f32.mrf.mxu0 }
0x11cf   :  { %3394 = vrot.lane.b32.xlu0 %v6915_v23, %s5557_s22  ;;  %v7214_v57 = vpop.f32.mrf.mxu0 }
0x11d7   :  { %3269 = vrot.lane.b32.xlu0 %v7214_v57, %s5558_s0 }
0x11df   :  { %3263 = vrot.lane.b32.xlu0 %v7198_v28, %s5558_s0 }
0x11f4   :  { %v5229_v44 = vpop.permute.xlu1 %5228 }
0x11f5   :  { %v5230_v43 = vunpack.i.l.bf16 %v5229_v44  ;;  %v5231_v40 = vunpack.i.h.bf16 %v5229_v44 }
0x11f8   :  { %v7220_v45 = vpop.f32.mrf.mxu0 }
0x11f9   :  { %3271 = vrot.lane.b32.xlu2 %v7220_v45, %s5558_s0 }
0x11fc   :  { %v3403_v15 = vpop.permute.xlu1 %3402 }
0x1201   :  { %3267 = vrot.lane.b32.xlu2 %v7210_v49, %s5558_s0 }
0x1203   :  { %v5224_v50 = vpop.permute.xlu2 %5223 }
0x1204   :  { %v5225_v19 = vunpack.i.l.bf16 %v5224_v50  ;;  %v5226_v7 = vunpack.i.h.bf16 %v5224_v50 }
0x1206   :  { %2952 = vmatpush.msrb.mxu1 %v5225_v19 }
0x1208   :  { %2953 = vmatpush.msrb.mxu1 %v5226_v7 }
0x1209   :  { %3398 = vrot.lane.b32.xlu2 %v6927_v0, %s5557_s22 }
0x120a   :  { %2954 = vmatpush.msrb.mxu1 %v5230_v43 }
0x120b   :  { %v3405_v37 = vpop.permute.xlu2 %3404 }
0x120c   :  { %2955 = vmatpush.msrb.mxu1 %v5231_v40 }
0x1213   :  { %v3391_v56 = vpop.permute.xlu2 %3390 }
0x1221   :  { %v2927_v2 = vpop.permute.xlu0 %2926 }
0x1222   :  { %2956 = vmatpush.msrb.mxu1 %v2927_v2 }
0x1223   :  { %4995 = vmatmul.msk.f32.vlgmr.msrb.gmra.mxu1 %vm458_vm5, %v7077_v21 }
0x1229   :  { %v3409_v36 = vpop.permute.xlu0 %3408 }
0x122a   :  { %5020 = vmatpush.xpose.msk.msra.mxu1 %vm390_vm4, %v3409_v36 }
0x122b   :  { %4996 = vmatmul.msk.f32.gmra.mxu1 %vm458_vm5, %v7083_v26  ;;  %v3393_v26 = vpop.permute.xlu1 %3392 }
0x1231   :  { %v3407_v58 = vpop.permute.xlu0 %3406 }
0x1232   :  { %5021 = vmatpush.xpose.msk.msra.mxu1 %vm390_vm4, %v3407_v58 }
0x1233   :  { %4997 = vmatmul.msk.f32.gmra.mxu1 %vm458_vm5, %v7093_v52  ;;  %v3397_v52 = vpop.permute.xlu1 %3396 }
0x1236   :  { %5022 = vmatpush.xpose.msk.msra.mxu1 %vm390_vm4, %v3405_v37 }
0x1239   :  { %v3401_v60 = vpop.permute.xlu0 %3400 }
0x123a   :  { %5023 = vmatpush.xpose.msk.msra.mxu1 %vm390_vm4, %v3403_v15 }
0x123b   :  { %4998 = vmatmul.msk.f32.gmra.mxu1 %vm458_vm5, %v7102_v59 }
0x123e   :  { %5024 = vmatpush.xpose.msk.msra.mxu1 %vm390_vm4, %v3401_v60 }
0x1241   :  { %v3395_v21 = vpop.permute.xlu0 %3394 }
0x1243   :  { %4999 = vmatmul.msk.f32.gmra.mxu1 %vm458_vm5, %v7109_v16  ;;  %v3266_v16 = vpop.permute.xlu1 %3265 }
0x1244   :  { %v3279_v7 = vsub.f32 %v6935_v55, %v3266_v16 }
0x1246   :  { %v3284_v2 = vmul.f32 %v3279_v7, %v3279_v7 }
0x1249   :  { %v3270_v61 = vpop.permute.xlu0 %3269 }
0x124a   :  { %v3281_v24 = vsub.f32 %v6919_v25, %v3270_v61 }
0x124b   :  { %5025 = vmatmul.msk.f32.vlgmr.msra.gmra.mxu1 %vm390_vm4, %v3391_v56 }
0x124c   :  { %v3286_v50 = vmul.f32 %v3281_v24, %v3281_v24 }
0x1251   :  { %v3264_v32 = vpop.permute.xlu0 %3263 }
0x1252   :  { %v3278_v1 = vsub.f32 %v6925_v53, %v3264_v32 }
0x1253   :  { %5026 = vmatmul.msk.f32.gmra.mxu1 %vm390_vm4, %v3393_v26  ;;  %v3272_v59 = vpop.permute.xlu2 %3271 }
0x1254   :  { %v3283_v27 = vmul.f32 %v3278_v1, %v3278_v1  ;;  %v3282_v38 = vsub.f32 %v6927_v0, %v3272_v59 }
0x1256   :  { %v3287_v19 = vmul.f32 %v3282_v38, %v3282_v38  ;;  %3293 = vrot.lane.b32.xlu2 %v3283_v27, %s5555_s26 }
0x1258   :  { %v5232_v44 = vpack.i.bf16 %v3286_v50, %v3287_v19 }
0x125a   :  { %5233 = vrot.lane.b32.xlu1 %v5232_v44, %s5555_s26 }
0x125b   :  { %5027 = vmatmul.msk.f32.gmra.mxu1 %vm390_vm4, %v3395_v21  ;;  %v3268_v43 = vpop.permute.xlu2 %3267 }
0x125c   :  { %v3280_v40 = vsub.f32 %v6915_v23, %v3268_v43 }
0x125e   :  { %v3285_v36 = vmul.f32 %v3280_v40, %v3280_v40  ;;  %3805 = vrot.lane.b32.xlu2 %v6915_v23, %s5558_s0 }
0x1260   :  { %v5237_v58 = vpack.i.bf16 %v3284_v2, %v3285_v36 }
0x1262   :  { %3809 = vrot.lane.b32.xlu1 %v6927_v0, %s5558_s0  ;;  %5238 = vrot.lane.b32.xlu0 %v5237_v58, %s5555_s26  ;;  %s8056_s26 = smov 48  }
0x1263   :  { %5028 = vmatmul.msk.f32.gmra.mxu1 %vm390_vm4, %v3397_v52  ;;  %v3399_v37 = vpop.permute.xlu2 %3398 }
0x1266   :  { %3791 = vrot.lane.b32.xlu2 %v6925_v53, %s8051_s25 }
0x126a   :  { %3803 = vrot.lane.b32.xlu1 %v6935_v55, %s5558_s0  ;;  %3807 = vrot.lane.b32.xlu0 %v6919_v25, %s5558_s0 }
0x126b   :  { %5029 = vmatmul.msk.f32.gmra.mxu1 %vm390_vm4, %v3399_v37 }
0x1272   :  { %3801 = vrot.lane.b32.xlu0 %v6925_v53, %s5558_s0 }
0x12a0   :  { %v7268_v15 = vpop.f32.mrf.mxu1 }
0x12a8   :  { %v7270_v60 = vpop.f32.mrf.mxu1 }
0x12a9   :  { %8052 = vst [vmem:[#allocation11_spill] sm:$0xff] %v7270_v60 }
0x12b0   :  { %v7272_v21 = vpop.f32.mrf.mxu1  ;;  %v3294_v2 = vpop.permute.xlu2 %3293 }
0x12b1   :  { %8053 = vst [vmem:[#allocation12_spill] sm:$0xff] %v7272_v21 }
0x12b8   :  { %v7274_v26 = vpop.f32.mrf.mxu1 }
0x12b9   :  { %8054 = vst [vmem:[#allocation13_spill] sm:$0xff] %v7274_v26 }
0x12c0   :  { %v7276_v61 = vpop.f32.mrf.mxu1 }
0x12c1   :  { %8055 = vst [vmem:[#allocation14_spill] sm:$0xff] %v7276_v61 }
0x12c8   :  { %v3447_v56 = vpop.f32.mrf.mxu1 }
0x12c9   :  { %v3462_v52 = vmul.f32 0.35355338, %v3447_v56 }
0x12cb   :  { %v3472_v32 = vadd.f32 %v3462_v52, %v6983_v18 }
0x12cc   :  { %v5234_v24 = vpop.permute.xlu1 %5233 }
0x12cd   :  { %v5235_v1 = vunpack.i.l.bf16 %v5234_v24  ;;  %v3477_v59 = vsel %vm458_vm5, %v3472_v32, -inf  ;;  %v5236_v27 = vunpack.i.h.bf16 %v5234_v24 }
0x12ce   :  { %3478 = vmax.xlane.f32.xlu1 %v3477_v59 }
0x12cf   :  { %3319 = vmatpush.msra.mxu2 %v5235_v1  ;;  %v3806_v1 = vpop.permute.xlu2 %3805 }
0x12d0   :  { %v3450_v38 = vpop.f32.mrf.mxu1 }
0x12d1   :  { %v3463_v50 = vmul.f32 0.35355338, %v3450_v38  ;;  %3320 = vmatpush.msra.mxu2 %v5236_v27 }
0x12d3   :  { %v3473_v19 = vadd.f32 %v3463_v50, %v6990_v41 }
0x12d4   :  { %v5239_v16 = vpop.permute.xlu0 %5238  ;;  %v3810_v58 = vpop.permute.xlu1 %3809 }
0x12d5   :  { %v5240_v44 = vunpack.i.l.bf16 %v5239_v16  ;;  %v3480_v7 = vsel %vm458_vm5, %v3473_v19, -inf  ;;  %v5241_v43 = vunpack.i.h.bf16 %v5239_v16 }
0x12d6   :  { %3481 = vmax.xlane.f32.xlu0 %v3480_v7 }
0x12d7   :  { %3321 = vmatpush.msra.mxu2 %v5240_v44 }
0x12d8   :  { %v3453_v18 = vpop.f32.mrf.mxu1 }
0x12d9   :  { %v3464_v40 = vmul.f32 0.35355338, %v3453_v18  ;;  %3322 = vmatpush.msra.mxu2 %v5241_v43 }
0x12db   :  { %v3474_v36 = vadd.f32 %v3464_v40, %v6997_v13  ;;  %3323 = vmatpush.msra.mxu2 %v3294_v2 }
0x12dc   :  { %5015 = vmatmul.msk.f32.vlgmr.msra.gmra.mxu2 %vm458_vm5, %v7147_v62  ;;  %v3808_v37 = vpop.permute.xlu0 %3807  ;;  %v3804_v62 = vpop.permute.xlu1 %3803 }
0x12dd   :  { %5040 = vmatpush.xpose.msk.msrb.mxu2 %vm390_vm4, %v3810_v58  ;;  %v3483_v41 = vsel %vm458_vm5, %v3474_v36, -inf }
0x12de   :  { %3484 = vmax.xlane.f32.xlu2 %v3483_v41 }
0x12e0   :  { %v3456_v56 = vpop.f32.mrf.mxu1 }
0x12e1   :  { %v3465_v52 = vmul.f32 0.35355338, %v3456_v56  ;;  %5041 = vmatpush.xpose.msk.msrb.mxu2 %vm390_vm4, %v3808_v37 }
0x12e3   :  { %v3475_v24 = vadd.f32 %v3465_v52, %v7004_v39 }
0x12e4   :  { %5016 = vmatmul.msk.f32.gmra.mxu2 %vm458_vm5, %v7157_v22  ;;  %v3802_v50 = vpop.permute.xlu0 %3801  ;;  %v3792_v22 = vpop.permute.xlu2 %3791 }
0x12e5   :  { %5042 = vmatpush.xpose.msk.msrb.mxu2 %vm390_vm4, %v3806_v1  ;;  %v3486_v13 = vsel %vm458_vm5, %v3475_v24, -inf }
0x12e6   :  { %3487 = vmax.xlane.f32.xlu1 %v3486_v13 }
0x12e8   :  { %v3459_v59 = vpop.f32.mrf.mxu1 }
0x12e9   :  { %v3466_v27 = vmul.f32 0.35355338, %v3459_v59  ;;  %5043 = vmatpush.xpose.msk.msrb.mxu2 %vm390_vm4, %v3804_v62 }
0x12eb   :  { %v3476_v38 = vadd.f32 %v3466_v27, %v7011_v20 }
0x12ec   :  { %5017 = vmatmul.msk.f32.gmra.mxu2 %vm458_vm5, %v7166_v48 }
0x12ed   :  { %5044 = vmatpush.xpose.msk.msrb.mxu2 %vm390_vm4, %v3802_v50  ;;  %v3489_v39 = vsel %vm458_vm5, %v3476_v38, -inf }
0x12ee   :  { %3490 = vmax.xlane.f32.xlu0 %v3489_v39 }
0x12f4   :  { %5018 = vmatmul.msk.f32.gmra.mxu2 %vm458_vm5, %v7171_v35 }
0x12fc   :  { %5019 = vmatmul.msk.f32.gmra.mxu2 %vm458_vm5, %v7176_v17 }
0x1302   :  { %5243 = vrot.lane.b32.xlu0 %v7017_v47, %s8056_s26 }
0x1304   :  { %5045 = vmatmul.msk.f32.vlgmr.msrb.gmra.mxu2 %vm390_vm4, %v3792_v22 }
0x1341   :  { %v3479_v20 = vpop.xlane.xlu1 %3478 }
0x1342   :  { %v3492_v16 = vsub.f32 %v3472_v32, %v3479_v20 }
0x1344   :  { %v3497_v48 = vmul.f32 1.442695, %v3492_v16 }
0x1346   :  { %5459 = vpow2.f32 %v3497_v48 }
0x1349   :  { %v3482_v44 = vpop.xlane.xlu0 %3481 }
0x134a   :  { %v3493_v7 = vsub.f32 %v3473_v19, %v3482_v44 }
0x134c   :  { %v7306_v43 = vpop.eup %5459  ;;  %v3499_v18 = vmul.f32 1.442695, %v3493_v7 }
0x134d   :  { %v3507_v35 = vsel %vm458_vm5, %v7306_v43, 0.0 }
0x134e   :  { %5461 = vpow2.f32 %v3499_v18  ;;  %3508 = vadd.xlane.f32.xlu2 %v3507_v35 }
0x1351   :  { %v3485_v17 = vpop.xlane.xlu2 %3484 }
0x1352   :  { %v3494_v40 = vsub.f32 %v3474_v36, %v3485_v17  ;;  %v3868_v17 = vld [vmem:[%s8015_s2] sm:$0xff] }
0x1354   :  { %v7310_v2 = vpop.eup %5461  ;;  %v3501_v58 = vmul.f32 1.442695, %v3494_v40 }
0x1355   :  { %v3510_v32 = vsel %vm458_vm5, %v7310_v2, 0.0 }
0x1356   :  { %5463 = vpow2.f32 %v3501_v58  ;;  %3511 = vadd.xlane.f32.xlu1 %v3510_v32 }
0x1359   :  { %v3488_v41 = vpop.xlane.xlu1 %3487 }
0x135a   :  { %v3495_v19 = vsub.f32 %v3475_v24, %v3488_v41 }
0x135c   :  { %v7314_v37 = vpop.eup %5463  ;;  %v3503_v56 = vmul.f32 1.442695, %v3495_v19 }
0x135d   :  { %v3513_v52 = vsel %vm458_vm5, %v7314_v37, 0.0 }
0x135e   :  { %5465 = vpow2.f32 %v3503_v56  ;;  %3514 = vadd.xlane.f32.xlu1 %v3513_v52 }
0x135f   :  { %v7318_v1 = vpop.f32.mrf.mxu2 }
0x1361   :  { %v3491_v24 = vpop.xlane.xlu0 %3490 }
0x1362   :  { %v3496_v22 = vsub.f32 %v3476_v38, %v3491_v24 }
0x1364   :  { %v7320_v36 = vpop.eup %5465  ;;  %v3505_v20 = vmul.f32 1.442695, %v3496_v22 }
0x1365   :  { %v3516_v13 = vsel %vm458_vm5, %v7320_v36, 0.0 }
0x1366   :  { %5248 = vrot.lane.b32.xlu2 %v7039_v4, %s8056_s26  ;;  %3517 = vadd.xlane.f32.xlu0 %v3516_v13  ;;  %5467 = vpow2.f32 %v3505_v20 }
0x1367   :  { %v7326_v62 = vpop.f32.mrf.mxu2 }
0x136c   :  { %v7334_v48 = vpop.eup %5467 }
0x136d   :  { %v3519_v7 = vsel %vm458_vm5, %v7334_v48, 0.0 }
0x136f   :  { %v7328_v50 = vpop.f32.mrf.mxu2 }
0x1374   :  { %v5244_v59 = vpop.permute.xlu0 %5243 }
0x1375   :  { %v5245_v27 = vunpack.i.l.bf16 %v5244_v59  ;;  %v5246_v39 = vunpack.i.h.bf16 %v5244_v59 }
0x1377   :  { %3638 = vmatpush.msra.mxu3 %v5245_v27  ;;  %3597 = vrot.lane.b32.xlu1 %v6925_v53, %s8056_s26  ;;  %v7332_v16 = vpop.f32.mrf.mxu2 }
0x1379   :  { %3639 = vmatpush.msra.mxu3 %v5246_v39 }
0x137f   :  { %v7336_v44 = vpop.f32.mrf.mxu2 }
0x1387   :  { %v3848_v18 = vpop.f32.mrf.mxu2 }
0x1388   :  { %v3863_v35 = vmul.f32 0.35355338, %v3848_v18 }
0x138a   :  { %v7343_v40 = vadd.f32 %v3868_v17, %v3863_v35 }
0x138c   :  { %v3878_v38 = vsel %vm458_vm5, %v7343_v40, -inf }
0x138f   :  { %3520 = vadd.xlane.f32.xlu2 %v3519_v7 }
0x13a1   :  { %3879 = vmax.xlane.f32.xlu1 %v3878_v38 }
0x13a7   :  { %5253 = vrot.lane.b32.xlu2 %v7017_v47, %s5561_s21 }
0x13af   :  { %3795 = vrot.lane.b32.xlu2 %v6915_v23, %s8051_s25 }
0x13b7   :  { %3799 = vrot.lane.b32.xlu2 %v6927_v0, %s8051_s25 }
0x13ba   :  { %3998 = vrot.lane.b32.xlu1 %v6925_v53, %s5561_s21 }
0x13c1   :  { %v3509_v58 = vpop.xlane.xlu2 %3508 }
0x13c2   :  { %5469 = vrcp.f32 %v3509_v58  ;;  %v3533_v35 = vand.u32 2147483648, %v3509_v58  ;;  %vm3527_vm11 = vweird.f32 %v3509_v58  ;;  %v3531_v17 = vand.u32 2147483647, %v3509_v58 }
0x13c4   :  { %vm3532_vm13 = vcmp.eq.f32.partialorder %v3531_v17, 8.507059e+37 }
0x13c8   :  { %v5470_v52 = vpop.eup %5469 }
0x13c9   :  { %v5249_v32 = vpop.permute.xlu2 %5248  ;;  %v3512_v19 = vpop.xlane.xlu1 %3511  ;;  %v3523_v47 = vmul.f32 %v5470_v52, %v3509_v58  ;;  %vm3528_vm10 = vweird.f32 %v5470_v52 }
0x13ca   :  { %v5250_v41 = vunpack.i.l.bf16 %v5249_v32  ;;  %v5251_v56 = vunpack.i.h.bf16 %v5249_v32  ;;  %5471 = vrcp.f32 %v3512_v19  ;;  %vm3529_vm12 = vmor %vm3527_vm11, %vm3528_vm10  ;;  %vm3542_vm6 = vweird.f32 %v3512_v19 }
0x13cb   :  { %v3524_v13 = vsub.f32 1.0, %v3523_v47  ;;  %v3546_v21 = vand.u32 2147483647, %v3512_v19 }
0x13cc   :  { %3640 = vmatpush.msra.mxu3 %v5250_v41 }
0x13cd   :  { %v3525_v27 = vmul.f32 %v5470_v52, %v3524_v13  ;;  %vm3547_vm8 = vcmp.eq.f32.partialorder %v3546_v21, 8.507059e+37 }
0x13ce   :  { %3641 = vmatpush.msra.mxu3 %v5251_v56  ;;  %v3534_v56 = vor.u32 1.1754944e-38, %v3533_v35 }
0x13cf   :  { %v3526_v22 = vadd.f32 %v5470_v52, %v3525_v27  ;;  %v3548_v27 = vand.u32 2147483648, %v3512_v19 }
0x13d0   :  { %v5472_v59 = vpop.eup %5471 }
0x13d1   :  { %v3515_v24 = vpop.xlane.xlu1 %3514  ;;  %v3538_v39 = vmul.f32 %v5472_v59, %v3512_v19  ;;  %v3530_v38 = vsel %vm3529_vm12, %v5470_v52, %v3526_v22  ;;  %vm3543_vm3 = vweird.f32 %v5472_v59 }
0x13d2   :  { %5473 = vrcp.f32 %v3515_v24  ;;  %v3535_v47 = vsel %vm3532_vm13, %v3534_v56, %v3530_v38  ;;  %vm3544_vm7 = vmor %vm3542_vm6, %vm3543_vm3  ;;  %vm3557_vm10 = vweird.f32 %v3515_v24 }
0x13d3   :  { %v3539_v20 = vsub.f32 1.0, %v3538_v39  ;;  %v7356_v39 = vmul.f32 %v7306_v43, %v3535_v47  ;;  %v3561_v43 = vand.u32 2147483647, %v3515_v24 }
0x13d5   :  { %v3540_v32 = vmul.f32 %v5472_v59, %v3539_v20  ;;  %v3549_v20 = vor.u32 1.1754944e-38, %v3548_v27  ;;  %vm3562_vm12 = vcmp.eq.f32.partialorder %v3561_v43, 8.507059e+37 }
0x13d7   :  { %v3541_v61 = vadd.f32 %v5472_v59, %v3540_v32  ;;  %v3563_v32 = vand.u32 2147483648, %v3515_v24 }
0x13d8   :  { %v5474_v18 = vpop.eup %5473 }
0x13d9   :  { %v3518_v7 = vpop.xlane.xlu0 %3517  ;;  %v3553_v41 = vmul.f32 %v5474_v18, %v3515_v24  ;;  %v3545_v22 = vsel %vm3544_vm7, %v5472_v59, %v3541_v61  ;;  %vm3558_vm9 = vweird.f32 %v5474_v18  ;;  %v3564_v56 = vor.u32 1.1754944e-38, %v3563_v32 }
0x13da   :  { %5475 = vrcp.f32 %v3518_v7  ;;  %v3550_v35 = vsel %vm3547_vm8, %v3549_v20, %v3545_v22  ;;  %vm3559_vm11 = vmor %vm3557_vm10, %vm3558_vm9  ;;  %v3578_v59 = vand.u32 2147483648, %v3518_v7  ;;  %vm3572_vm3 = vweird.f32 %v3518_v7 }
0x13db   :  { %v3554_v13 = vsub.f32 1.0, %v3553_v41  ;;  %v7361_v19 = vmul.f32 %v7310_v2, %v3550_v35  ;;  %v3576_v47 = vand.u32 2147483647, %v3518_v7 }
0x13dc   :  { %v3579_v24 = vor.u32 1.1754944e-38, %v3578_v59 }
0x13dd   :  { %v3555_v58 = vmul.f32 %v5474_v18, %v3554_v13  ;;  %vm3577_vm7 = vcmp.eq.f32.partialorder %v3576_v47, 8.507059e+37 }
0x13df   :  { %v3556_v17 = vadd.f32 %v5474_v18, %v3555_v58 }
0x13e0   :  { %v5476_v26 = vpop.eup %5475 }
0x13e1   :  { %v3568_v52 = vmul.f32 %v5476_v26, %v3518_v7  ;;  %v3560_v41 = vsel %vm3559_vm11, %v5474_v18, %v3556_v17  ;;  %vm3573_vm13 = vweird.f32 %v5476_v26 }
0x13e2   :  { %v3565_v61 = vsel %vm3562_vm12, %v3564_v56, %v3560_v41  ;;  %vm3574_vm6 = vmor %vm3572_vm3, %vm3573_vm13 }
0x13e3   :  { %v3569_v38 = vsub.f32 1.0, %v3568_v52  ;;  %v7366_v13 = vmul.f32 %v7314_v37, %v3565_v61 }
0x13e9   :  { %v3598_v60 = vpop.permute.xlu1 %3597 }
0x13ea   :  { %3642 = vmatpush.msra.mxu3 %v3598_v60  ;;  %v3570_v60 = vmul.f32 %v5476_v26, %v3569_v38 }
0x13eb   :  { %5030 = vmatmul.msk.f32.vlgmr.msra.gmra.mxu3 %vm458_vm5, %v7356_v39 }
0x13ec   :  { %v3571_v21 = vadd.f32 %v5476_v26, %v3570_v60 }
0x13ee   :  { %v3575_v2 = vsel %vm3574_vm6, %v5476_v26, %v3571_v21 }
0x13ef   :  { %v3580_v27 = vsel %vm3577_vm7, %v3579_v24, %v3575_v2 }
0x13f0   :  { %v7371_v18 = vmul.f32 %v7320_v36, %v3580_v27 }
0x13f3   :  { %5031 = vmatmul.msk.f32.gmra.mxu3 %vm458_vm5, %v7361_v19 }
0x13fb   :  { %5032 = vmatmul.msk.f32.gmra.mxu3 %vm458_vm5, %v7366_v13 }
0x1402   :  { %v3521_v58 = vpop.xlane.xlu2 %3520 }
0x1403   :  { %5477 = vrcp.f32 %v3521_v58  ;;  %5033 = vmatmul.msk.f32.gmra.mxu3 %vm458_vm5, %v7371_v18  ;;  %v3593_v35 = vand.u32 2147483648, %v3521_v58  ;;  %v3591_v38 = vand.u32 2147483647, %v3521_v58  ;;  %vm3587_vm9 = vweird.f32 %v3521_v58 }
0x1405   :  { %v3594_v36 = vor.u32 1.1754944e-38, %v3593_v35  ;;  %vm3592_vm11 = vcmp.eq.f32.partialorder %v3591_v38, 8.507059e+37 }
0x1409   :  { %v5478_v7 = vpop.eup %5477 }
0x140a   :  { %v3583_v52 = vmul.f32 %v5478_v7, %v3521_v58  ;;  %v5254_v37 = vpop.permute.xlu2 %5253  ;;  %vm3588_vm8 = vweird.f32 %v5478_v7 }
0x140b   :  { %v5255_v22 = vunpack.i.l.bf16 %v5254_v37  ;;  %v5256_v17 = vunpack.i.h.bf16 %v5254_v37  ;;  %vm3589_vm10 = vmor %vm3587_vm9, %vm3588_vm8 }
0x140c   :  { %v3584_v20 = vsub.f32 1.0, %v3583_v52 }
0x140d   :  { %4039 = vmatpush.msrb.mxu1 %v5255_v22 }
0x140e   :  { %v3585_v26 = vmul.f32 %v5478_v7, %v3584_v20 }
0x140f   :  { %4040 = vmatpush.msrb.mxu1 %v5256_v17 }
0x1410   :  { %v3586_v32 = vadd.f32 %v5478_v7, %v3585_v26 }
0x1412   :  { %v3590_v43 = vsel %vm3589_vm10, %v5478_v7, %v3586_v32 }
0x1413   :  { %v3595_v60 = vsel %vm3592_vm11, %v3594_v36, %v3590_v43 }
0x1414   :  { %v3880_v41 = vpop.xlane.xlu1 %3879  ;;  %v7376_v56 = vmul.f32 %v7334_v48, %v3595_v60 }
0x1415   :  { %v3893_v61 = vsub.f32 %v7343_v40, %v3880_v41 }
0x1416   :  { %5034 = vmatmul.msk.f32.gmra.mxu3 %vm458_vm5, %v7376_v56 }
0x1417   :  { %v3898_v21 = vmul.f32 1.442695, %v3893_v61 }
0x1419   :  { %5479 = vpow2.f32 %v3898_v21  ;;  %v3796_v21 = vpop.permute.xlu2 %3795 }
0x141f   :  { %v5480_v59 = vpop.eup %5479 }
0x1420   :  { %v3908_v47 = vsel %vm458_vm5, %v5480_v59, 0.0 }
0x1421   :  { %3909 = vadd.xlane.f32.xlu0 %v3908_v47 }
0x142c   :  { %v3999_v60 = vpop.permute.xlu1 %3998 }
0x1435   :  { %5258 = vrot.lane.b32.xlu0 %v7039_v4, %s5561_s21 }
0x143d   :  { %3793 = vrot.lane.b32.xlu0 %v6935_v55, %s8051_s25 }
0x1445   :  { %3797 = vrot.lane.b32.xlu0 %v6919_v25, %s8051_s25 }
0x146e   :  { %v7388_v48 = vpop.f32.mrf.mxu3 }
0x1476   :  { %v7390_v40 = vpop.f32.mrf.mxu3 }
0x147e   :  { %v7392_v2 = vpop.f32.mrf.mxu3 }
0x147f   :  { %3668 = vrot.lane.b32.xlu2 %v7392_v2, %s5556_s27 }
0x1486   :  { %v7396_v24 = vpop.f32.mrf.mxu3 }
0x1487   :  { %3670 = vrot.lane.b32.xlu0 %v7396_v24, %s5556_s27 }
0x148f   :  { %3664 = vrot.lane.b32.xlu0 %v7388_v48, %s5556_s27 }
0x1494   :  { %v3910_v4 = vpop.xlane.xlu0 %3909 }
0x1495   :  { %5481 = vrcp.f32 %v3910_v4  ;;  %v3934_v20 = vand.u32 2147483648, %v3910_v4  ;;  %vm3928_vm13 = vweird.f32 %v3910_v4  ;;  %v3932_v35 = vand.u32 2147483647, %v3910_v4 }
0x1497   :  { %v3935_v38 = vor.u32 1.1754944e-38, %v3934_v20  ;;  %vm3933_vm6 = vcmp.eq.f32.partialorder %v3932_v35, 8.507059e+37 }
0x1499   :  { %v7402_v27 = vpop.f32.mrf.mxu3 }
0x149a   :  { %3672 = vrot.lane.b32.xlu1 %v7402_v27, %s5556_s27 }
0x149b   :  { %v5482_v58 = vpop.eup %5481 }
0x149c   :  { %v3924_v7 = vmul.f32 %v5482_v58, %v3910_v4  ;;  %vm3929_vm12 = vweird.f32 %v5482_v58  ;;  %v3800_v4 = vpop.permute.xlu2 %3799 }
0x149d   :  { %vm3930_vm3 = vmor %vm3928_vm13, %vm3929_vm12 }
0x149e   :  { %v3925_v52 = vsub.f32 1.0, %v3924_v7 }
0x14a0   :  { %v3926_v37 = vmul.f32 %v5482_v58, %v3925_v52 }
0x14a2   :  { %3666 = vrot.lane.b32.xlu1 %v7390_v40, %s5556_s27  ;;  %v3927_v22 = vadd.f32 %v5482_v58, %v3926_v37  ;;  %s8057_s27 = smov 8  }
0x14a4   :  { %v3931_v17 = vsel %vm3930_vm3, %v5482_v58, %v3927_v22 }
0x14a5   :  { %v3936_v36 = vsel %vm3933_vm6, %v3935_v38, %v3931_v17 }
0x14a6   :  { %v7408_v41 = vmul.f32 %v5480_v59, %v3936_v36 }
0x14a7   :  { %v5259_v26 = vpop.permute.xlu0 %5258 }
0x14a8   :  { %v5260_v32 = vunpack.i.l.bf16 %v5259_v26  ;;  %v5261_v43 = vunpack.i.h.bf16 %v5259_v26 }
0x14aa   :  { %4041 = vmatpush.msrb.mxu1 %v5260_v32 }
0x14ac   :  { %4042 = vmatpush.msrb.mxu1 %v5261_v43 }
0x14ae   :  { %4043 = vmatpush.msrb.mxu1 %v3999_v60 }
0x14af   :  { %v3794_v61 = vpop.permute.xlu0 %3793  ;;  %5050 = vmatmul.msk.f32.vlgmr.msrb.gmra.mxu1 %vm458_vm5, %v7408_v41 }
0x14b0   :  { %5046 = vmatmul.msk.f32.gmra.mxu2 %vm390_vm4, %v3794_v61 }
0x14b7   :  { %v3798_v47 = vpop.permute.xlu0 %3797 }
0x14b8   :  { %5047 = vmatmul.msk.f32.gmra.mxu2 %vm390_vm4, %v3796_v21 }
0x14c0   :  { %5048 = vmatmul.msk.f32.gmra.mxu2 %vm390_vm4, %v3798_v47 }
0x14c8   :  { %5049 = vmatmul.msk.f32.gmra.mxu2 %vm390_vm4, %v3800_v4 }
0x14d9   :  { %v3669_v26 = vpop.permute.xlu2 %3668 }
0x14da   :  { %v3681_v32 = vsub.f32 %v6915_v23, %v3669_v26 }
0x14dc   :  { %v3686_v60 = vmul.f32 %v3681_v32, %v3681_v32 }
0x14f9   :  { %v3671_v58 = vpop.permute.xlu0 %3670 }
0x14fa   :  { %v3682_v37 = vsub.f32 %v6919_v25, %v3671_v58 }
0x14fc   :  { %v3687_v35 = vmul.f32 %v3682_v37, %v3682_v37 }
0x1501   :  { %v3665_v7 = vpop.permute.xlu0 %3664 }
0x1502   :  { %v3679_v59 = vsub.f32 %v6925_v53, %v3665_v7 }
0x1504   :  { %v3684_v52 = vmul.f32 %v3679_v59, %v3679_v59  ;;  %v3869_v59 = vld [vmem:[%s8015_s2 + $0x8] sm:$0xff] }
0x1506   :  { %3694 = vrot.lane.b32.xlu0 %v3684_v52, %s8056_s26 }
0x150c   :  { %v3673_v22 = vpop.permute.xlu1 %3672 }
0x150d   :  { %v3683_v20 = vsub.f32 %v6927_v0, %v3673_v22 }
0x150f   :  { %v3688_v17 = vmul.f32 %v3683_v20, %v3683_v20 }
0x1511   :  { %v5262_v38 = vpack.i.bf16 %v3687_v35, %v3688_v17  ;;  %v3872_v17 = vld [vmem:[%s8015_s2 + $0x20] sm:$0xff] }
0x1513   :  { %5263 = vrot.lane.b32.xlu2 %v5262_v38, %s8056_s26 }
0x1514   :  { %v3667_v36 = vpop.permute.xlu1 %3666 }
0x1515   :  { %v3680_v43 = vsub.f32 %v6935_v55, %v3667_v36 }
0x1517   :  { %v3685_v61 = vmul.f32 %v3680_v43, %v3680_v43  ;;  %v3871_v43 = vld [vmem:[%s8015_s2 + $0x18] sm:$0xff] }
0x1519   :  { %v5267_v21 = vpack.i.bf16 %v3685_v61, %v3686_v60 }
0x151b   :  { %3345 = vrot.lane.b32.xlu2 %v7198_v28, %s8057_s27  ;;  %5268 = vrot.lane.b32.xlu1 %v5267_v21, %s8056_s26 }
0x1523   :  { %3746 = vrot.lane.b32.xlu1 %v7388_v48, %s8058_s6  ;;  %v3870_v48 = vld [vmem:[%s8015_s2 + $0x10] sm:$0xff] }
0x152c   :  { %v7428_v47 = vpop.f32.mrf.mxu1 }
0x152d   :  { %4147 = vrot.lane.b32.xlu0 %v7428_v47, %s8059_s1 }
0x1533   :  { %v3851_v4 = vpop.f32.mrf.mxu2 }
0x1534   :  { %v3864_v58 = vmul.f32 0.35355338, %v3851_v4 }
0x1536   :  { %v3874_v52 = vadd.f32 %v3869_v59, %v3864_v58 }
0x1538   :  { %v3881_v28 = vsel %vm458_vm5, %v3874_v52, -inf }
0x153b   :  { %v3854_v7 = vpop.f32.mrf.mxu2 }
0x153c   :  { %v3865_v22 = vmul.f32 0.35355338, %v3854_v7 }
0x153e   :  { %v3875_v20 = vadd.f32 %v3870_v48, %v3865_v22 }
0x1540   :  { %v3884_v38 = vsel %vm458_vm5, %v3875_v20, -inf }
0x1543   :  { %v3857_v37 = vpop.f32.mrf.mxu2 }
0x1544   :  { %3882 = vmax.xlane.f32.xlu2 %v3881_v28  ;;  %v3866_v32 = vmul.f32 0.35355338, %v3857_v37 }
0x1546   :  { %v3876_v61 = vadd.f32 %v3871_v43, %v3866_v32 }
0x1548   :  { %v3887_v21 = vsel %vm458_vm5, %v3876_v61, -inf }
0x154b   :  { %v3860_v35 = vpop.f32.mrf.mxu2 }
0x154c   :  { %v3867_v26 = vmul.f32 0.35355338, %v3860_v35 }
0x154d   :  { %3885 = vmax.xlane.f32.xlu1 %v3884_v38  ;;  %v5061_v38 = vld [vmem:[%s8021_s8 + $0x28] sm:$0xff] }
0x154e   :  { %v3877_v36 = vadd.f32 %v3872_v17, %v3867_v26  ;;  %v5063_v17 = vld [vmem:[%s8021_s8 + $0x38] sm:$0xff]  ;;  %v5062_v26 = vld [vmem:[%s8021_s8 + $0x30] sm:$0xff] }
0x1550   :  { %v3890_v60 = vsel %vm458_vm5, %v3877_v36, -inf }
0x1551   :  { %3891 = vmax.xlane.f32.xlu2 %v3890_v60 }
0x1557   :  { %3888 = vmax.xlane.f32.xlu0 %v3887_v21 }
0x156d   :  { %v5264_v4 = vpop.permute.xlu2 %5263 }
0x156e   :  { %v5265_v58 = vunpack.i.l.bf16 %v5264_v4  ;;  %v5266_v7 = vunpack.i.h.bf16 %v5264_v4 }
0x1570   :  { %3720 = vmatpush.msra.mxu0 %v5265_v58 }
0x1572   :  { %3721 = vmatpush.msra.mxu0 %v5266_v7 }
0x1575   :  { %v3346_v59 = vpop.permute.xlu2 %3345 }
0x1576   :  { %3360 = vst.msk [vmem:[#allocation2] sm:$0xff] %vm1110_vm14, %v3346_v59 }
0x1578   :  { %v3695_v48 = vpop.permute.xlu0 %3694 }
0x158d   :  { %v5269_v37 = vpop.permute.xlu1 %5268 }
0x158e   :  { %v5270_v28 = vunpack.i.l.bf16 %v5269_v37  ;;  %v5271_v22 = vunpack.i.h.bf16 %v5269_v37 }
0x1590   :  { %3722 = vmatpush.msra.mxu0 %v5270_v28 }
0x1592   :  { %3723 = vmatpush.msra.mxu0 %v5271_v22 }
0x1594   :  { %3724 = vmatpush.msra.mxu0 %v3695_v48 }
0x1595   :  { %v3747_v35 = vpop.permute.xlu1 %3746  ;;  %5035 = vmatmul.msk.f32.vlgmr.msra.gmra.mxu0 %vm458_vm5, %v7356_v39  ;;  %v5060_v39 = vld [vmem:[%s8021_s8 + $0x20] sm:$0xff] }
0x1596   :  { %3761 = vst.msk [vmem:[#allocation2] sm:$0xff] %vm1512_vm15, %v3747_v35  ;;  %4230 = vmatpush.msrb.mxu0 %v5063_v17 }
0x1598   :  { %4231 = vmatpush.msrb.mxu0 %v5062_v26 }
0x159a   :  { %4232 = vmatpush.msrb.mxu0 %v5061_v38 }
0x159c   :  { %4233 = vmatpush.msrb.mxu0 %v5060_v39 }
0x159d   :  { %5036 = vmatmul.msk.f32.gmra.mxu0 %vm458_vm5, %v7361_v19 }
0x159f   :  { %v4148_v32 = vpop.permute.xlu0 %4147 }
0x15a0   :  { %4162 = vst.msk [vmem:[#allocation2] sm:$0xff] %vm1914_vm2, %v4148_v32 }
0x15a5   :  { %5037 = vmatmul.msk.f32.gmra.mxu0 %vm458_vm5, %v7366_v13 }
0x15a7   :  { %v4192_v4 = vld [vmem:[#allocation2] sm:$0xff] }
0x15ad   :  { %5038 = vmatmul.msk.f32.gmra.mxu0 %vm458_vm5, %v7371_v18 }
0x15b5   :  { %5039 = vmatmul.msk.f32.gmra.mxu0 %vm458_vm5, %v7376_v56 }
0x15b7   :  { %v3883_v43 = vpop.xlane.xlu2 %3882 }
0x15b8   :  { %v3894_v60 = vsub.f32 %v3874_v52, %v3883_v43 }
0x15ba   :  { %v3900_v21 = vmul.f32 1.442695, %v3894_v60 }
0x15bc   :  { %5483 = vpow2.f32 %v3900_v21 }
0x15bd   :  { %5064 = vmatmul.msk.f32.vlgmr.msrb.gmra.mxu0 %vm189_vm1, %v4192_v4 }
0x15c0   :  { %v3886_v19 = vpop.xlane.xlu1 %3885 }
0x15c1   :  { %v3895_v58 = vsub.f32 %v3875_v20, %v3886_v19 }
0x15c2   :  { %v5484_v7 = vpop.eup %5483 }
0x15c3   :  { %v3902_v59 = vmul.f32 1.442695, %v3895_v58  ;;  %v3911_v37 = vsel %vm458_vm5, %v5484_v7, 0.0 }
0x15c4   :  { %v3892_v13 = vpop.xlane.xlu2 %3891  ;;  %3912 = vadd.xlane.f32.xlu1 %v3911_v37 }
0x15c5   :  { %5485 = vpow2.f32 %v3902_v59  ;;  %v3897_v18 = vsub.f32 %v3877_v36, %v3892_v13 }
0x15c7   :  { %v3906_v28 = vmul.f32 1.442695, %v3897_v18 }
0x15c9   :  { %5487 = vpow2.f32 %v3906_v28 }
0x15ca   :  { %v3889_v56 = vpop.xlane.xlu0 %3888 }
0x15cb   :  { %v7475_v22 = vpop.eup %5485  ;;  %v3896_v52 = vsub.f32 %v3876_v61, %v3889_v56 }
0x15cc   :  { %v3914_v48 = vsel %vm458_vm5, %v7475_v22, 0.0 }
0x15cd   :  { %v3904_v35 = vmul.f32 1.442695, %v3896_v52  ;;  %3915 = vadd.xlane.f32.xlu0 %v3914_v48 }
0x15cf   :  { %v7479_v20 = vpop.eup %5487  ;;  %5489 = vpow2.f32 %v3904_v35 }
0x15d0   :  { %v3920_v17 = vsel %vm458_vm5, %v7479_v20, 0.0 }
0x15d1   :  { %3921 = vadd.xlane.f32.xlu1 %v3920_v17 }
0x15d5   :  { %v7483_v26 = vpop.eup %5489 }
0x15d6   :  { %v3917_v36 = vsel %vm458_vm5, %v7483_v26, 0.0 }
0x15d7   :  { %3918 = vadd.xlane.f32.xlu2 %v3917_v36 }
0x15ea   :  { %3347 = vrot.lane.b32.xlu1 %v7204_v14, %s8057_s27 }
0x15f2   :  { %3750 = vrot.lane.b32.xlu1 %v7392_v2, %s8058_s6  ;;  %v7508_v2 = vld [vmem:[%s8018_s5 + $0x8] sm:$0xff] }
0x15fa   :  { %3752 = vrot.lane.b32.xlu1 %v7396_v24, %s8058_s6  ;;  %v7511_v24 = vperm.slane %v7508_v2, 4 }
0x1602   :  { %3754 = vrot.lane.b32.xlu1 %v7402_v27, %s8058_s6 }
0x1612   :  { %v7495_v61 = vpop.f32.mrf.mxu0 }
0x161a   :  { %v7497_v38 = vpop.f32.mrf.mxu0 }
0x1622   :  { %v7499_v39 = vpop.f32.mrf.mxu0 }
0x162a   :  { %v7501_v32 = vpop.f32.mrf.mxu0 }
0x1632   :  { %v7503_v43 = vpop.f32.mrf.mxu0 }
0x1633   :  { %8060 = vst [vmem:[#allocation15_spill] sm:$0xff] %v7503_v43 }
0x1637   :  { %v3913_v14 = vpop.xlane.xlu1 %3912 }
0x1638   :  { %5491 = vrcp.f32 %v3913_v14  ;;  %v3949_v13 = vand.u32 2147483648, %v3913_v14  ;;  %v3947_v28 = vand.u32 2147483647, %v3913_v14  ;;  %vm3943_vm8 = vweird.f32 %v3913_v14 }
0x163a   :  { %v4235_v27 = vpop.f32.mrf.mxu0  ;;  %vm3948_vm10 = vcmp.eq.f32.partialorder %v3947_v28, 8.507059e+37 }
0x163b   :  { %v7514_v60 = vadd.f32 %v4235_v27, %v7511_v24 }
0x163d   :  { %8061 = vst [vmem:[#allocation16_spill] sm:$0xff] %v7514_v60  ;;  %v7518_v21 = vadd.f32 %v7514_v60, %v6781_v46  ;;  %v3950_v46 = vor.u32 1.1754944e-38, %v3949_v13 }
0x163e   :  { %v5492_v4 = vpop.eup %5491 }
0x163f   :  { %v3939_v19 = vmul.f32 %v5492_v4, %v3913_v14  ;;  %v4308_v58 = vsel %vm189_vm1, %v7518_v21, 0.0  ;;  %vm3944_vm7 = vweird.f32 %v5492_v4 }
0x1640   :  { %v3916_v59 = vpop.xlane.xlu0 %3915  ;;  %4309 = vadd.xlane.f32.xlu0 %v4308_v58  ;;  %vm3945_vm9 = vmor %vm3943_vm8, %vm3944_vm7 }
0x1641   :  { %v3940_v37 = vsub.f32 1.0, %v3939_v19  ;;  %5493 = vrcp.f32 %v3916_v59  ;;  %v3964_v43 = vand.u32 2147483648, %v3916_v59  ;;  %v3962_v14 = vand.u32 2147483647, %v3916_v59 }
0x1642   :  { %vm3958_vm12 = vweird.f32 %v3916_v59 }
0x1643   :  { %v3941_v18 = vmul.f32 %v5492_v4, %v3940_v37  ;;  %vm3963_vm3 = vcmp.eq.f32.partialorder %v3962_v14, 8.507059e+37 }
0x1644   :  { %v3922_v56 = vpop.xlane.xlu1 %3921 }
0x1645   :  { %v3942_v52 = vadd.f32 %v5492_v4, %v3941_v18  ;;  %5495 = vrcp.f32 %v3922_v56 }
0x1647   :  { %v5494_v48 = vpop.eup %5493  ;;  %v3946_v35 = vsel %vm3945_vm9, %v5492_v4, %v3942_v52  ;;  %v3965_v4 = vor.u32 1.1754944e-38, %v3964_v43 }
0x1648   :  { %v3954_v17 = vmul.f32 %v5494_v48, %v3916_v59  ;;  %v3951_v36 = vsel %vm3948_vm10, %v3950_v46, %v3946_v35  ;;  %vm3959_vm11 = vweird.f32 %v5494_v48 }
0x1649   :  { %v7522_v27 = vmul.f32 %v5484_v7, %v3951_v36  ;;  %vm3960_vm13 = vmor %vm3958_vm12, %vm3959_vm11  ;;  %vm3988_vm11 = vweird.f32 %v3922_v56 }
0x164a   :  { %v3955_v58 = vsub.f32 1.0, %v3954_v17  ;;  %v3919_v19 = vpop.xlane.xlu2 %3918 }
0x164b   :  { %v5496_v60 = vpop.eup %5495  ;;  %5497 = vrcp.f32 %v3919_v19  ;;  %5051 = vmatmul.msk.f32.gmra.mxu1 %vm458_vm5, %v7522_v27  ;;  %v3979_v59 = vand.u32 2147483648, %v3919_v19  ;;  %v3977_v43 = vand.u32 2147483647, %v3919_v19  ;;  %vm3973_vm7 = vweird.f32 %v3919_v19 }
0x164c   :  { %v3956_v37 = vmul.f32 %v5494_v48, %v3955_v58  ;;  %v3984_v13 = vmul.f32 %v5496_v60, %v3922_v56  ;;  %vm3989_vm9 = vweird.f32 %v5496_v60 }
0x164d   :  { %v3980_v14 = vor.u32 1.1754944e-38, %v3979_v59  ;;  %vm3978_vm10 = vcmp.eq.f32.partialorder %v3977_v43, 8.507059e+37  ;;  %vm3990_vm12 = vmor %vm3988_vm11, %vm3989_vm9 }
0x164e   :  { %v3957_v18 = vadd.f32 %v5494_v48, %v3956_v37  ;;  %v3985_v46 = vsub.f32 1.0, %v3984_v13  ;;  %v3994_v13 = vand.u32 2147483648, %v3922_v56 }
0x1650   :  { %v3961_v28 = vsel %vm3960_vm13, %v5494_v48, %v3957_v18  ;;  %v3986_v58 = vmul.f32 %v5496_v60, %v3985_v46  ;;  %v3995_v46 = vor.u32 1.1754944e-38, %v3994_v13  ;;  %v5081_v13 = vld [vmem:[%s8023_s10 + $0x38] sm:$0xff] }
0x1651   :  { %v5498_v7 = vpop.eup %5497  ;;  %v3966_v52 = vsel %vm3963_vm3, %v3965_v4, %v3961_v28  ;;  %v3992_v28 = vand.u32 2147483647, %v3922_v56  ;;  %4467 = vmatpush.msra.mxu1 %v5081_v13 }
0x1652   :  { %v3969_v35 = vmul.f32 %v5498_v7, %v3919_v19  ;;  %v7527_v17 = vmul.f32 %v7475_v22, %v3966_v52  ;;  %vm3974_vm6 = vweird.f32 %v5498_v7  ;;  %v3987_v18 = vadd.f32 %v5496_v60, %v3986_v58 }
0x1653   :  { %vm3975_vm8 = vmor %vm3973_vm7, %vm3974_vm6  ;;  %vm3993_vm13 = vcmp.eq.f32.partialorder %v3992_v28, 8.507059e+37  ;;  %v5078_v28 = vld [vmem:[%s8023_s10 + $0x20] sm:$0xff] }
0x1654   :  { %v3970_v36 = vsub.f32 1.0, %v3969_v35  ;;  %5052 = vmatmul.msk.f32.gmra.mxu1 %vm458_vm5, %v7527_v17  ;;  %3748 = vrot.lane.b32.xlu0 %v7390_v40, %s8058_s6  ;;  %v3991_v19 = vsel %vm3990_vm12, %v5496_v60, %v3987_v18 }
0x1656   :  { %v3971_v37 = vmul.f32 %v5498_v7, %v3970_v36 }
0x1658   :  { %v3972_v48 = vadd.f32 %v5498_v7, %v3971_v37 }
0x165a   :  { %v3976_v22 = vsel %vm3975_vm8, %v5498_v7, %v3972_v48  ;;  %v3996_v7 = vsel %vm3993_vm13, %v3995_v46, %v3991_v19 }
0x165b   :  { %v3981_v4 = vsel %vm3978_vm10, %v3980_v14, %v3976_v22  ;;  %v7544_v56 = vmul.f32 %v7479_v20, %v3996_v7 }
0x165c   :  { %v3348_v52 = vpop.permute.xlu1 %3347  ;;  %3349 = vrot.lane.b32.xlu0 %v7210_v49, %s8057_s27  ;;  %v7536_v40 = vmul.f32 %v7483_v26, %v3981_v4  ;;  %v5080_v4 = vld [vmem:[%s8023_s10 + $0x30] sm:$0xff] }
0x165d   :  { %3361 = vst.msk [vmem:[#allocation2 + $0x8] sm:$0xff] %vm1110_vm14, %v3348_v52  ;;  %4468 = vmatpush.msra.mxu1 %v5080_v4 }
0x165e   :  { %5053 = vmatmul.msk.f32.gmra.mxu1 %vm458_vm5, %v7536_v40 }
0x1664   :  { %3351 = vrot.lane.b32.xlu0 %v7214_v57, %s8057_s27  ;;  %v3751_v20 = vpop.permute.xlu1 %3750 }
0x1666   :  { %5054 = vmatmul.msk.f32.gmra.mxu1 %vm458_vm5, %v7544_v56 }
0x166c   :  { %3353 = vrot.lane.b32.xlu0 %v7220_v45, %s8057_s27  ;;  %v3753_v37 = vpop.permute.xlu1 %3752 }
0x1674   :  { %v3755_v18 = vpop.permute.xlu1 %3754 }
0x16b3   :  { %v4310_v49 = vpop.xlane.xlu0 %4309 }
0x16b4   :  { %v4323_v26 = vmul.f32 %v4310_v49, %v5802_v6 }
0x16b6   :  { %v4328_v60 = vsub.f32 %v7518_v21, %v4323_v26 }
0x16b8   :  { %v4333_v35 = vmul.f32 %v4328_v60, %v4328_v60 }
0x16ba   :  { %v4338_v36 = vsel %vm189_vm1, %v4333_v35, 0.0 }
0x16bb   :  { %4339 = vadd.xlane.f32.xlu2 %v4338_v36 }
0x16c6   :  { %v3749_v59 = vpop.permute.xlu0 %3748 }
0x16c7   :  { %3762 = vst.msk [vmem:[#allocation2 + $0x8] sm:$0xff] %vm1512_vm15, %v3749_v59 }
0x16c8   :  { %v4048_v57 = vpop.f32.mrf.mxu1 }
0x16ce   :  { %v3350_v58 = vpop.permute.xlu0 %3349 }
0x16cf   :  { %3362 = vst.msk [vmem:[#allocation2 + $0x10] sm:$0xff] %vm1110_vm14, %v3350_v58 }
0x16d0   :  { %3763 = vst.msk [vmem:[#allocation2 + $0x10] sm:$0xff] %vm1512_vm15, %v3751_v20 }
0x16d1   :  { %v4051_v45 = vpop.f32.mrf.mxu1 }
0x16d3   :  { %4149 = vrot.lane.b32.xlu2 %v4048_v57, %s8059_s1 }
0x16d6   :  { %v3352_v43 = vpop.permute.xlu0 %3351 }
0x16d7   :  { %3363 = vst.msk [vmem:[#allocation2 + $0x18] sm:$0xff] %vm1110_vm14, %v3352_v43  ;;  %v7590_v43 = vperm.slane %v7508_v2, 3 }
0x16d8   :  { %3764 = vst.msk [vmem:[#allocation2 + $0x18] sm:$0xff] %vm1512_vm15, %v3753_v37 }
0x16db   :  { %v4054_v48 = vpop.f32.mrf.mxu1  ;;  %4151 = vrot.lane.b32.xlu2 %v4051_v45, %s8059_s1 }
0x16dc   :  { %4071 = vrot.lane.b32.xlu1 %v4054_v48, %s5552_s29 }
0x16de   :  { %v3354_v14 = vpop.permute.xlu0 %3353 }
0x16df   :  { %3364 = vst.msk [vmem:[#allocation2 + $0x20] sm:$0xff] %vm1110_vm14, %v3354_v14 }
0x16e0   :  { %3765 = vst.msk [vmem:[#allocation2 + $0x20] sm:$0xff] %vm1512_vm15, %v3755_v18 }
0x16e3   :  { %v4057_v22 = vpop.f32.mrf.mxu1  ;;  %4153 = vrot.lane.b32.xlu2 %v4054_v48, %s8059_s1 }
0x16e4   :  { %4065 = vrot.lane.b32.xlu1 %v7428_v47, %s5552_s29  ;;  %4073 = vrot.lane.b32.xlu0 %v4057_v22, %s5552_s29  ;;  %v5079_v47 = vld [vmem:[%s8023_s10 + $0x28] sm:$0xff] }
0x16e5   :  { %4469 = vmatpush.msra.mxu1 %v5079_v47 }
0x16e7   :  { %4470 = vmatpush.msra.mxu1 %v5078_v28 }
0x16eb   :  { %4155 = vrot.lane.b32.xlu2 %v4057_v22, %s8059_s1 }
0x16ec   :  { %4067 = vrot.lane.b32.xlu0 %v4048_v57, %s5552_s29 }
0x16f3   :  { %4069 = vrot.lane.b32.xlu2 %v4051_v45, %s5552_s29  ;;  %v7587_v45 = vperm.slane %v7508_v2, 2 }
0x172e   :  { %v4340_v52 = vpop.xlane.xlu2 %4339 }
0x172f   :  { %v4353_v19 = vmul.f32 %v4340_v52, %v5802_v6 }
0x1731   :  { %v4358_v46 = vadd.f32 1e-06, %v4353_v19 }
0x1733   :  { %5499 = vrsqrt.f32 %v4358_v46  ;;  %vm4369_vm6 = vweird.f32 %v4358_v46 }
0x1736   :  { %v4150_v7 = vpop.permute.xlu2 %4149 }
0x1737   :  { %4163 = vst.msk [vmem:[#allocation2 + $0x8] sm:$0xff] %vm1914_vm2, %v4150_v7 }
0x1739   :  { %v5500_v49 = vpop.eup %5499 }
0x173a   :  { %v4364_v26 = vmul.f32 %v5500_v49, %v4358_v46  ;;  %vm4370_vm3 = vweird.f32 %v5500_v49 }
0x173b   :  { %vm4371_vm7 = vmor %vm4369_vm6, %vm4370_vm3 }
0x173c   :  { %v4365_v35 = vmul.f32 %v5500_v49, %v4364_v26 }
0x173e   :  { %v4366_v36 = vmul.f32 0.5, %v4365_v35  ;;  %v4152_v59 = vpop.permute.xlu2 %4151  ;;  %v4193_v57 = vld [vmem:[#allocation2 + $0x8] sm:$0xff] }
0x173f   :  { %4164 = vst.msk [vmem:[#allocation2 + $0x10] sm:$0xff] %vm1914_vm2, %v4152_v59  ;;  %5065 = vmatmul.msk.f32.gmra.mxu0 %vm189_vm1, %v4193_v57 }
0x1740   :  { %v4367_v20 = vsub.f32 1.5, %v4366_v36 }
0x1742   :  { %v4368_v58 = vmul.f32 %v5500_v49, %v4367_v20 }
0x1744   :  { %v4372_v37 = vsel %vm4371_vm7, %v5500_v49, %v4368_v58 }
0x1745   :  { %v4413_v48 = vmul.f32 %v4372_v37, %v4328_v60 }
0x1746   :  { %v4154_v14 = vpop.permute.xlu2 %4153  ;;  %v4194_v18 = vld [vmem:[#allocation2 + $0x10] sm:$0xff] }
0x1747   :  { %v4419_v22 = vmul.f32 %v7587_v45, %v4413_v48  ;;  %4165 = vst.msk [vmem:[#allocation2 + $0x18] sm:$0xff] %vm1914_vm2, %v4154_v14  ;;  %5066 = vmatmul.msk.f32.gmra.mxu0 %vm189_vm1, %v4194_v18 }
0x1749   :  { %v4425_v13 = vadd.f32 %v7590_v43, %v4419_v22 }
0x174b   :  { %5083 = vmatmul.msk.f32.vlgmr.msra.gmra.mxu1 %vm189_vm1, %v4425_v13 }
0x174e   :  { %v4072_v4 = vpop.permute.xlu1 %4071  ;;  %v4156_v47 = vpop.permute.xlu2 %4155  ;;  %v4195_v28 = vld [vmem:[#allocation2 + $0x18] sm:$0xff] }
0x174f   :  { %4166 = vst.msk [vmem:[#allocation2 + $0x20] sm:$0xff] %vm1914_vm2, %v4156_v47  ;;  %5067 = vmatmul.msk.f32.gmra.mxu0 %vm189_vm1, %v4195_v28  ;;  %v4083_v60 = vsub.f32 %v6919_v25, %v4072_v4  ;;  %v7618_v28 = vld [vmem:[%s8024_s11 + $0x1] ss:$0 sm:$0xff] }
0x1751   :  { %v4088_v35 = vmul.f32 %v4083_v60, %v4083_v60 }
0x1756   :  { %v4066_v52 = vpop.permute.xlu1 %4065  ;;  %v4196_v19 = vld [vmem:[#allocation2 + $0x20] sm:$0xff]  ;;  %v4074_v7 = vpop.permute.xlu0 %4073 }
0x1757   :  { %v4080_v46 = vsub.f32 %v6925_v53, %v4066_v52  ;;  %5068 = vmatmul.msk.f32.gmra.mxu0 %vm189_vm1, %v4196_v19  ;;  %v4084_v49 = vsub.f32 %v6927_v0, %v4074_v7  ;;  %v4070_v59 = vpop.permute.xlu2 %4069 }
0x1758   :  { %v4082_v20 = vsub.f32 %v6915_v23, %v4070_v59 }
0x1759   :  { %v4085_v26 = vmul.f32 %v4080_v46, %v4080_v46  ;;  %v4089_v36 = vmul.f32 %v4084_v49, %v4084_v49 }
0x175a   :  { %v4087_v53 = vmul.f32 %v4082_v20, %v4082_v20 }
0x175b   :  { %4095 = vrot.lane.b32.xlu1 %v4085_v26, %s5561_s21  ;;  %v5272_v57 = vpack.i.bf16 %v4088_v35, %v4089_v36 }
0x175d   :  { %5273 = vrot.lane.b32.xlu2 %v5272_v57, %s5561_s21 }
0x175e   :  { %v4068_v25 = vpop.permute.xlu0 %4067 }
0x175f   :  { %v4081_v58 = vsub.f32 %v6935_v55, %v4068_v25 }
0x1761   :  { %v4086_v37 = vmul.f32 %v4081_v58, %v4081_v58 }
0x1763   :  { %v5277_v48 = vpack.i.bf16 %v4086_v37, %v4087_v53 }
0x1765   :  { %5278 = vrot.lane.b32.xlu0 %v5277_v48, %s5561_s21 }
0x17b7   :  { %v5274_v0 = vpop.permute.xlu2 %5273 }
0x17b8   :  { %v5275_v14 = vunpack.i.l.bf16 %v5274_v0  ;;  %v5276_v18 = vunpack.i.h.bf16 %v5274_v0 }
0x17ba   :  { %4121 = vmatpush.msrb.mxu3 %v5275_v14  ;;  %v1894_v14 = vadd.f32 %v6902_v63, %v6253_v3  ;;  %v5094_v63 = vld [vmem:[%s8025_s12 + $0x70] sm:$0xff] }
0x17bc   :  { %v4238_v22 = vpop.f32.mrf.mxu0  ;;  %4122 = vmatpush.msrb.mxu3 %v5276_v18 }
0x17bd   :  { %v4239_v13 = vadd.f32 %v4238_v22, %v7511_v24 }
0x17bf   :  { %v7610_v23 = vadd.f32 %v4239_v13, %v6786_v42 }
0x17c1   :  { %v4311_v4 = vsel %vm189_vm1, %v7610_v23, 0.0 }
0x17c2   :  { %4312 = vadd.xlane.f32.xlu2 %v4311_v4  ;;  %v5095_v4 = vld [vmem:[%s8025_s12 + $0x78] sm:$0xff] }
0x17c4   :  { %v4241_v55 = vpop.f32.mrf.mxu0 }
0x17c5   :  { %v4242_v47 = vadd.f32 %v4241_v55, %v7511_v24 }
0x17c7   :  { %v7621_v60 = vadd.f32 %v4242_v47, %v6792_v30 }
0x17c8   :  { %v4472_v52 = vpop.f32.mrf.mxu1 }
0x17c9   :  { %v7624_v19 = vadd.f32 %v7618_v28, %v4472_v52  ;;  %v4314_v42 = vsel %vm189_vm1, %v7621_v60, 0.0 }
0x17ca   :  { %4315 = vadd.xlane.f32.xlu0 %v4314_v42  ;;  %v5093_v42 = vld [vmem:[%s8025_s12 + $0x68] sm:$0xff] }
0x17cb   :  { %v7629_v46 = vmul.f32 0.70710677, %v7624_v19 }
0x17cc   :  { %v4244_v7 = vpop.f32.mrf.mxu0 }
0x17cd   :  { %v4497_v49 = vand.u32 2147483647, %v7629_v46  ;;  %v4245_v26 = vadd.f32 %v4244_v7, %v7511_v24  ;;  %v4096_v13 = vpop.permute.xlu1 %4095  ;;  %vm4662_vm12 = vcmp.ge.f32.partialorder %v7629_v46, 0.0 }
0x17cf   :  { %v4502_v35 = vmul.f32 0.3275911, %v4497_v49  ;;  %v7634_v30 = vadd.f32 %v4245_v26, %v6802_v51  ;;  %v4632_v26 = vsub.f32 0.0, %v4497_v49 }
0x17d1   :  { %v4507_v36 = vadd.f32 1.0, %v4502_v35  ;;  %v4317_v59 = vsel %vm189_vm1, %v7634_v30, 0.0 }
0x17d2   :  { %4318 = vadd.xlane.f32.xlu1 %v4317_v59  ;;  %v5091_v59 = vld [vmem:[%s8025_s12 + $0x58] sm:$0xff] }
0x17d3   :  { %5501 = vrcp.f32 %v4507_v36  ;;  %v4523_v22 = vand.u32 2147483648, %v4507_v36  ;;  %vm4517_vm9 = vweird.f32 %v4507_v36 }
0x17d4   :  { %v4247_v57 = vpop.f32.mrf.mxu0 }
0x17d5   :  { %v4248_v20 = vadd.f32 %v4247_v57, %v7511_v24  ;;  %v4524_v47 = vor.u32 1.1754944e-38, %v4523_v22  ;;  %v4637_v57 = vmul.f32 %v4632_v26, %v4497_v49 }
0x17d7   :  { %v7640_v25 = vadd.f32 %v4248_v20, %v6807_v54  ;;  %v5279_v58 = vpop.permute.xlu0 %5278  ;;  %v4521_v54 = vand.u32 2147483647, %v4507_v36 }
0x17d8   :  { %v5280_v37 = vunpack.i.l.bf16 %v5279_v58  ;;  %v5281_v0 = vunpack.i.h.bf16 %v5279_v58  ;;  %v5090_v58 = vld [vmem:[%s8025_s12 + $0x50] sm:$0xff] }
0x17d9   :  { %v5502_v53 = vpop.eup %5501  ;;  %v4320_v48 = vsel %vm189_vm1, %v7640_v25, 0.0  ;;  %vm4522_vm11 = vcmp.eq.f32.partialorder %v4521_v54, 8.507059e+37 }
0x17da   :  { %v4513_v51 = vmul.f32 %v5502_v53, %v4507_v36  ;;  %4321 = vadd.xlane.f32.xlu2 %v4320_v48  ;;  %4123 = vmatpush.msrb.mxu3 %v5280_v37  ;;  %vm4518_vm8 = vweird.f32 %v5502_v53  ;;  %v5089_v48 = vld [vmem:[%s8025_s12 + $0x48] sm:$0xff] }
0x17db   :  { %vm4519_vm10 = vmor %vm4517_vm9, %vm4518_vm8 }
0x17dc   :  { %v4514_v18 = vsub.f32 1.0, %v4513_v51  ;;  %4124 = vmatpush.msrb.mxu3 %v5281_v0  ;;  %v4642_v51 = vmul.f32 1.442695, %v4637_v57 }
0x17de   :  { %v4515_v24 = vmul.f32 %v5502_v53, %v4514_v18  ;;  %1925 = vrot.lane.b32.xlu0 %v1894_v14, %s8059_s1  ;;  %4125 = vmatpush.msrb.mxu3 %v4096_v13  ;;  %5503 = vpow2.f32 %v4642_v51 }
0x17df   :  { %5055 = vmatmul.msk.f32.vlgmr.msrb.gmra.mxu3 %vm458_vm5, %v7408_v41  ;;  %v5092_v41 = vld [vmem:[%s8025_s12 + $0x60] sm:$0xff] }
0x17e0   :  { %v4516_v55 = vadd.f32 %v5502_v53, %v4515_v24  ;;  %4720 = vmatpush.msra.mxu3 %v5095_v4 }
0x17e2   :  { %v4520_v52 = vsel %vm4519_vm10, %v5502_v53, %v4516_v55  ;;  %4721 = vmatpush.msra.mxu3 %v5094_v63  ;;  %v1492_v53 = vadd.f32 %v6561_v10, %v6253_v3  ;;  %v1090_v10 = vadd.f32 %v6314_v34, %v6253_v3 }
0x17e3   :  { %v4525_v7 = vsel %vm4522_vm11, %v4524_v47, %v4520_v52 }
0x17e4   :  { %v4587_v35 = vmul.f32 1.0614054, %v4525_v7  ;;  %4722 = vmatpush.msra.mxu3 %v5093_v42  ;;  %v5504_v24 = vpop.eup %5503 }
0x17e6   :  { %v4592_v36 = vadd.f32 -1.4531521, %v4587_v35  ;;  %4723 = vmatpush.msra.mxu3 %v5092_v41 }
0x17e7   :  { %5056 = vmatmul.msk.f32.gmra.mxu3 %vm458_vm5, %v7522_v27  ;;  %v5088_v27 = vld [vmem:[%s8025_s12 + $0x40] sm:$0xff]  ;;  %s4979_s12 = sld [smem:[#allocation4 + $0x1]] }
0x17e8   :  { %v4597_v20 = vmul.f32 %v4592_v36, %v4525_v7  ;;  %4724 = vmatpush.msra.mxu3 %v5091_v59 }
0x17ea   :  { %v4602_v37 = vadd.f32 1.4214138, %v4597_v20  ;;  %4725 = vmatpush.msra.mxu3 %v5090_v58 }
0x17eb   :  { %1523 = vrot.lane.b32.xlu1 %v1492_v53, %s8058_s6 }
0x17ec   :  { %v4607_v49 = vmul.f32 %v4602_v37, %v4525_v7  ;;  %4726 = vmatpush.msra.mxu3 %v5089_v48 }
0x17ed   :  { %v7719_v48 = vstv %s4979_s12  ;;  %s5565_s12 = smov 10  }
0x17ee   :  { %v4612_v0 = vadd.f32 -0.28449672, %v4607_v49  ;;  %4727 = vmatpush.msra.mxu3 %v5088_v27  ;;  %v3340_v51 = vadd.f32 %v7318_v1, %v7719_v48  ;;  %v3741_v1 = vadd.f32 %v7495_v61, %v7719_v48 }
0x17ef   :  { %5057 = vmatmul.msk.f32.gmra.mxu3 %vm458_vm5, %v7527_v17  ;;  %v4487_v17 = vmul.f32 0.5, %v7624_v19 }
0x17f0   :  { %v4617_v14 = vmul.f32 %v4612_v0, %v4525_v7 }
0x17f2   :  { %v4622_v18 = vadd.f32 0.2548296, %v4617_v14  ;;  %1121 = vrot.lane.b32.xlu2 %v1090_v10, %s8057_s27 }
0x17f4   :  { %v4627_v22 = vmul.f32 %v4622_v18, %v4525_v7 }
0x17f6   :  { %v4652_v54 = vmul.f32 %v5504_v24, %v4627_v22  ;;  %v1493_v22 = vadd.f32 %v6563_v8, %v6253_v3  ;;  %v3742_v8 = vadd.f32 %v7497_v38, %v7719_v48  ;;  %v3342_v38 = vadd.f32 %v7328_v50, %v7719_v48 }
0x17f7   :  { %5058 = vmatmul.msk.f32.gmra.mxu3 %vm458_vm5, %v7536_v40  ;;  %v3343_v50 = vadd.f32 %v7332_v16, %v7719_v48 }
0x17f8   :  { %v4657_v13 = vsub.f32 1.0, %v4652_v54  ;;  %v1895_v54 = vadd.f32 %v6904_v11, %v6253_v3 }
0x17fa   :  { %v4667_v4 = vsub.f32 0.0, %v4657_v13 }
0x17fc   :  { %v4672_v55 = vsel %vm4662_vm12, %v4657_v13, %v4667_v4  ;;  %v3341_v13 = vadd.f32 %v7326_v62, %v7719_v48  ;;  %v1092_v62 = vadd.f32 %v6325_v5, %v6253_v3 }
0x17fd   :  { %v4677_v34 = vadd.f32 1.0, %v4672_v55 }
0x17ff   :  { %5059 = vmatmul.msk.f32.gmra.mxu3 %vm458_vm5, %v7544_v56  ;;  %v4682_v63 = vmul.f32 %v4677_v34, %v4487_v17  ;;  %v1093_v17 = vadd.f32 %v6327_v9, %v6253_v3 }
0x1807   :  { %5096 = vmatmul.msk.f32.vlgmr.msra.gmra.mxu3 %vm108_vm0, %v4682_v63 }
0x1835   :  { %v4313_v47 = vpop.xlane.xlu2 %4312 }
0x1836   :  { %v4324_v52 = vmul.f32 %v4313_v47, %v5802_v6 }
0x1838   :  { %v7692_v42 = vsub.f32 %v7610_v23, %v4324_v52  ;;  %v1897_v52 = vadd.f32 %v6908_v12, %v6253_v3  ;;  %v5072_v12 = vld [vmem:[%s8022_s9 + $0x38] sm:$0xff] }
0x1839   :  { %4287 = vmatpush.msra.mxu2 %v5072_v12 }
0x183a   :  { %v4334_v40 = vmul.f32 %v7692_v42, %v7692_v42 }
0x183c   :  { %v4341_v46 = vsel %vm189_vm1, %v4334_v40, 0.0 }
0x183d   :  { %4342 = vadd.xlane.f32.xlu0 %v4341_v46  ;;  %v4316_v7 = vpop.xlane.xlu0 %4315 }
0x183e   :  { %v4325_v56 = vmul.f32 %v4316_v7, %v5802_v6 }
0x1840   :  { %v7699_v19 = vsub.f32 %v7621_v60, %v4325_v56  ;;  %v1094_v56 = vadd.f32 %v6333_v33, %v6253_v3 }
0x1842   :  { %v4335_v26 = vmul.f32 %v7699_v19, %v7699_v19 }
0x1844   :  { %v4344_v35 = vsel %vm189_vm1, %v4335_v26, 0.0 }
0x1845   :  { %v4319_v41 = vpop.xlane.xlu1 %4318  ;;  %4345 = vadd.xlane.f32.xlu2 %v4344_v35 }
0x1846   :  { %v4326_v23 = vmul.f32 %v4319_v41, %v5802_v6  ;;  %v5071_v41 = vld [vmem:[%s8022_s9 + $0x30] sm:$0xff] }
0x1847   :  { %4288 = vmatpush.msra.mxu2 %v5071_v41 }
0x1848   :  { %v7706_v36 = vsub.f32 %v7634_v30, %v4326_v23 }
0x184a   :  { %v4336_v59 = vmul.f32 %v7706_v36, %v7706_v36 }
0x184c   :  { %v4347_v57 = vsel %vm189_vm1, %v4336_v59, 0.0 }
0x184d   :  { %4348 = vadd.xlane.f32.xlu1 %v4347_v57  ;;  %v4322_v60 = vpop.xlane.xlu2 %4321 }
0x184e   :  { %v4327_v20 = vmul.f32 %v4322_v60, %v5802_v6  ;;  %v5070_v60 = vld [vmem:[%s8022_s9 + $0x28] sm:$0xff] }
0x184f   :  { %4289 = vmatpush.msra.mxu2 %v5070_v60 }
0x1850   :  { %v7713_v58 = vsub.f32 %v7640_v25, %v4327_v20  ;;  %v2974_v25 = vadd.f32 %v7719_v48, %v7268_v15  ;;  %v1926_v27 = vpop.permute.xlu0 %1925  ;;  %v1091_v15 = vadd.f32 %v6322_v29, %v6253_v3  ;;  %v4696_v29 = vperm.slane %v7508_v2, 5 }
0x1851   :  { %v1896_v2 = vadd.f32 %v6906_v31, %v6253_v3 }
0x1852   :  { %v4337_v53 = vmul.f32 %v7713_v58, %v7713_v58 }
0x1854   :  { %v4350_v37 = vsel %vm189_vm1, %v4337_v53, 0.0 }
0x1855   :  { %v1122_v30 = vpop.permute.xlu2 %1121  ;;  %4351 = vadd.xlane.f32.xlu0 %v4350_v37 }
0x1856   :  { %1136 = vst.msk [vmem:[#allocation3] sm:$0xff] %vm1110_vm14, %v1122_v30  ;;  %v5069_v30 = vld [vmem:[%s8022_s9 + $0x20] sm:$0xff] }
0x1857   :  { %4290 = vmatpush.msra.mxu2 %v5069_v30 }
0x185d   :  { %v1524_v49 = vpop.permute.xlu1 %1523  ;;  %3370 = vrot.lane.b32.xlu2 %v3340_v51, %s8057_s27  ;;  %v3344_v51 = vadd.f32 %v7336_v44, %v7719_v48 }
0x185e   :  { %1538 = vst.msk [vmem:[#allocation3] sm:$0xff] %vm1512_vm15, %v1524_v49 }
0x185f   :  { %1940 = vst.msk [vmem:[#allocation3] sm:$0xff] %vm1914_vm2, %v1926_v27 }
0x1860   :  { %2984 = vst.msk [vmem:[#allocation3] sm:$0xff] %vm390_vm4, %v2974_v25 }
0x1862   :  { %v4127_v0 = vpop.f32.mrf.mxu3 }
0x1863   :  { %v4142_v10 = vadd.f32 %v4127_v0, %v7719_v48 }
0x1866   :  { %4172 = vrot.lane.b32.xlu1 %v4142_v10, %s8059_s1  ;;  %v8062_v10 = vld [vmem:[#allocation10_spill] sm:$0xff] }
0x1869   :  { %3771 = vrot.lane.b32.xlu0 %v3741_v1, %s8058_s6  ;;  %v1898_v1 = vadd.f32 %v8062_v10, %v6253_v3 }
0x186a   :  { %v4130_v14 = vpop.f32.mrf.mxu3 }
0x186e   :  { %1123 = vrot.lane.b32.xlu1 %v1091_v15, %s8057_s27 }
0x1872   :  { %v4133_v18 = vpop.f32.mrf.mxu3 }
0x1873   :  { %v4144_v5 = vadd.f32 %v4133_v18, %v7719_v48 }
0x1876   :  { %1525 = vrot.lane.b32.xlu1 %v1493_v22, %s8058_s6 }
0x187a   :  { %v4136_v24 = vpop.f32.mrf.mxu3 }
0x187b   :  { %v4145_v16 = vadd.f32 %v4136_v24, %v7719_v48 }
0x187e   :  { %1927 = vrot.lane.b32.xlu1 %v1895_v54, %s8059_s1 }
0x1882   :  { %v7743_v61 = vpop.f32.mrf.mxu3 }
0x1886   :  { %3372 = vrot.lane.b32.xlu1 %v3341_v13, %s8057_s27 }
0x188a   :  { %v4729_v4 = vpop.f32.mrf.mxu3 }
0x188b   :  { %v4730_v55 = vadd.f32 %v4729_v4, %v4696_v29 }
0x188d   :  { %v7752_v34 = vadd.f32 %v4730_v55, %v7518_v21  ;;  %v4143_v21 = vadd.f32 %v4130_v14, %v7719_v48 }
0x188e   :  { %3773 = vrot.lane.b32.xlu1 %v3742_v8, %s8058_s6 }
0x188f   :  { %v4742_v11 = vsel %vm189_vm1, %v7752_v34, 0.0 }
0x1890   :  { %4743 = vadd.xlane.f32.xlu2 %v4742_v11  ;;  %v4146_v11 = vadd.f32 %v7743_v61, %v7719_v48 }
0x1896   :  { %1125 = vrot.lane.b32.xlu1 %v1092_v62, %s8057_s27 }
0x189e   :  { %1929 = vrot.lane.b32.xlu1 %v1896_v2, %s8059_s1 }
0x18a6   :  { %3374 = vrot.lane.b32.xlu1 %v3342_v38, %s8057_s27 }
0x18a8   :  { %4174 = vrot.lane.b32.xlu2 %v4143_v21, %s8059_s1 }
0x18ae   :  { %1127 = vrot.lane.b32.xlu1 %v1093_v17, %s8057_s27 }
0x18b0   :  { %v4343_v63 = vpop.xlane.xlu0 %4342  ;;  %4176 = vrot.lane.b32.xlu2 %v4144_v5, %s8059_s1 }
0x18b1   :  { %v4354_v31 = vmul.f32 %v4343_v63, %v5802_v6 }
0x18b3   :  { %v4359_v47 = vadd.f32 1e-06, %v4354_v31 }
0x18b5   :  { %5505 = vrsqrt.f32 %v4359_v47  ;;  %vm4379_vm13 = vweird.f32 %v4359_v47 }
0x18b6   :  { %3376 = vrot.lane.b32.xlu1 %v3343_v50, %s8057_s27 }
0x18b8   :  { %v4346_v9 = vpop.xlane.xlu2 %4345  ;;  %1931 = vrot.lane.b32.xlu2 %v1897_v52, %s8059_s1 }
0x18b9   :  { %v4355_v40 = vmul.f32 %v4346_v9, %v5802_v6 }
0x18bb   :  { %v5506_v46 = vpop.eup %5505  ;;  %v4360_v7 = vadd.f32 1e-06, %v4355_v40 }
0x18bc   :  { %v4374_v26 = vmul.f32 %v5506_v46, %v4359_v47  ;;  %vm4380_vm5 = vweird.f32 %v5506_v46 }
0x18bd   :  { %5507 = vrsqrt.f32 %v4360_v7  ;;  %vm4381_vm3 = vmor %vm4379_vm13, %vm4380_vm5  ;;  %vm4389_vm7 = vweird.f32 %v4360_v7 }
0x18be   :  { %v4375_v35 = vmul.f32 %v5506_v46, %v4374_v26  ;;  %1129 = vrot.lane.b32.xlu1 %v1094_v56, %s8057_s27 }
0x18c0   :  { %v4376_v23 = vmul.f32 0.5, %v4375_v35  ;;  %v4349_v59 = vpop.xlane.xlu1 %4348  ;;  %v3371_v57 = vpop.permute.xlu2 %3370  ;;  %4178 = vrot.lane.b32.xlu2 %v4145_v16, %s8059_s1 }
0x18c1   :  { %v4356_v33 = vmul.f32 %v4349_v59, %v5802_v6  ;;  %3385 = vst.msk [vmem:[#allocation3] sm:$0xff] %vm1110_vm14, %v3371_v57  ;;  %v8063_v59 = vld [vmem:[#allocation11_spill] sm:$0xff] }
0x18c2   :  { %v4377_v20 = vsub.f32 1.5, %v4376_v23  ;;  %v2975_v57 = vadd.f32 %v7719_v48, %v8063_v59 }
0x18c3   :  { %v5508_v53 = vpop.eup %5507  ;;  %v4361_v37 = vadd.f32 1e-06, %v4356_v33 }
0x18c4   :  { %v4378_v49 = vmul.f32 %v5506_v46, %v4377_v20  ;;  %v4384_v25 = vmul.f32 %v5508_v53, %v4360_v7  ;;  %vm4390_vm6 = vweird.f32 %v5508_v53 }
0x18c5   :  { %5509 = vrsqrt.f32 %v4361_v37  ;;  %vm4391_vm8 = vmor %vm4389_vm7, %vm4390_vm6  ;;  %vm4399_vm10 = vweird.f32 %v4361_v37 }
0x18c6   :  { %v4382_v27 = vsel %vm4381_vm3, %v5506_v46, %v4378_v49  ;;  %v4385_v0 = vmul.f32 %v5508_v53, %v4384_v25  ;;  %3378 = vrot.lane.b32.xlu1 %v3344_v51, %s8057_s27 }
0x18c7   :  { %v4414_v14 = vmul.f32 %v4382_v27, %v7692_v42 }
0x18c8   :  { %v4386_v15 = vmul.f32 0.5, %v4385_v0  ;;  %v4352_v18 = vpop.xlane.xlu0 %4351  ;;  %1933 = vrot.lane.b32.xlu2 %v1898_v1, %s8059_s1  ;;  %v3743_v1 = vadd.f32 %v7499_v39, %v7719_v48 }
0x18c9   :  { %v4357_v44 = vmul.f32 %v4352_v18, %v5802_v6  ;;  %v4420_v22 = vmul.f32 %v7587_v45, %v4414_v14 }
0x18ca   :  { %v4387_v24 = vsub.f32 1.5, %v4386_v15  ;;  %v8065_v15 = vld [vmem:[#allocation8_spill] sm:$0xff] }
0x18cb   :  { %v5510_v54 = vpop.eup %5509  ;;  %v4362_v13 = vadd.f32 1e-06, %v4357_v44  ;;  %v4426_v29 = vadd.f32 %v7590_v43, %v4420_v22  ;;  %v1495_v18 = vadd.f32 %v8065_v15, %v6253_v3  ;;  %v3744_v22 = vadd.f32 %v7501_v32, %v7719_v48 }
0x18cc   :  { %v4388_v4 = vmul.f32 %v5508_v53, %v4387_v24  ;;  %v4394_v8 = vmul.f32 %v5510_v54, %v4361_v37  ;;  %vm4400_vm9 = vweird.f32 %v5510_v54  ;;  %v8066_v24 = vld [vmem:[#allocation9_spill] sm:$0xff] }
0x18cd   :  { %5511 = vrsqrt.f32 %v4362_v13  ;;  %5084 = vmatmul.msk.f32.gmra.mxu1 %vm189_vm1, %v4426_v29  ;;  %vm4401_vm11 = vmor %vm4399_vm10, %vm4400_vm9  ;;  %vm4409_vm5 = vweird.f32 %v4362_v13  ;;  %v1496_v39 = vadd.f32 %v8066_v24, %v6253_v3 }
0x18ce   :  { %v4392_v42 = vsel %vm4391_vm8, %v5508_v53, %v4388_v4  ;;  %v4395_v55 = vmul.f32 %v5510_v54, %v4394_v8 }
0x18cf   :  { %v4415_v62 = vmul.f32 %v4392_v42, %v7699_v19 }
0x18d0   :  { %v4396_v2 = vmul.f32 0.5, %v4395_v55  ;;  %4180 = vrot.lane.b32.xlu2 %v4146_v11, %s8059_s1 }
0x18d1   :  { %v4421_v38 = vmul.f32 %v7587_v45, %v4415_v62 }
0x18d2   :  { %v4397_v21 = vsub.f32 1.5, %v4396_v2 }
0x18d3   :  { %v5512_v17 = vpop.eup %5511  ;;  %v4427_v5 = vadd.f32 %v7590_v43, %v4421_v38 }
0x18d4   :  { %v4398_v63 = vmul.f32 %v5510_v54, %v4397_v21  ;;  %v4404_v31 = vmul.f32 %v5512_v17, %v4362_v13  ;;  %vm4410_vm12 = vweird.f32 %v5512_v17 }
0x18d5   :  { %5085 = vmatmul.msk.f32.gmra.mxu1 %vm189_vm1, %v4427_v5  ;;  %vm4411_vm13 = vmor %vm4409_vm5, %vm4410_vm12 }
0x18d6   :  { %v4402_v47 = vsel %vm4401_vm11, %v5510_v54, %v4398_v63  ;;  %v4405_v61 = vmul.f32 %v5512_v17, %v4404_v31  ;;  %v8067_v54 = vld [vmem:[#allocation15_spill] sm:$0xff] }
0x18d7   :  { %v4416_v19 = vmul.f32 %v4402_v47, %v7706_v36  ;;  %v3745_v13 = vadd.f32 %v8067_v54, %v7719_v48 }
0x18d8   :  { %v4406_v50 = vmul.f32 0.5, %v4405_v61  ;;  %v4173_v52 = vpop.permute.xlu1 %4172 }
0x18d9   :  { %v4422_v9 = vmul.f32 %v7587_v45, %v4416_v19 }
0x18da   :  { %v4407_v40 = vsub.f32 1.5, %v4406_v50 }
0x18db   :  { %v3772_v46 = vpop.permute.xlu0 %3771  ;;  %v4428_v7 = vadd.f32 %v7590_v43, %v4422_v9 }
0x18dc   :  { %v4408_v56 = vmul.f32 %v5512_v17, %v4407_v40  ;;  %3786 = vst.msk [vmem:[#allocation3] sm:$0xff] %vm1512_vm15, %v3772_v46 }
0x18dd   :  { %4187 = vst.msk [vmem:[#allocation3] sm:$0xff] %vm1914_vm2, %v4173_v52  ;;  %5086 = vmatmul.msk.f32.gmra.mxu1 %vm189_vm1, %v4428_v7 }
0x18de   :  { %v4412_v26 = vsel %vm4411_vm13, %v5512_v17, %v4408_v56 }
0x18df   :  { %v4417_v36 = vmul.f32 %v4412_v26, %v7713_v58 }
0x18e0   :  { %v1124_v35 = vpop.permute.xlu1 %1123 }
0x18e1   :  { %1137 = vst.msk [vmem:[#allocation3 + $0x8] sm:$0xff] %vm1110_vm14, %v1124_v35  ;;  %v4423_v16 = vmul.f32 %v7587_v45, %v4417_v36 }
0x18e3   :  { %v4429_v12 = vadd.f32 %v7590_v43, %v4423_v16 }
0x18e4   :  { %v4250_v41 = vld [vmem:[#allocation3] sm:$0xff] }
0x18e5   :  { %5073 = vmatmul.msk.f32.vlgmr.msra.gmra.mxu2 %vm189_vm1, %v4250_v41  ;;  %5087 = vmatmul.msk.f32.gmra.mxu1 %vm189_vm1, %v4429_v12 }
0x18e8   :  { %v1526_v23 = vpop.permute.xlu1 %1525 }
0x18e9   :  { %1539 = vst.msk [vmem:[#allocation3 + $0x8] sm:$0xff] %vm1512_vm15, %v1526_v23 }
0x18f0   :  { %v1928_v33 = vpop.permute.xlu1 %1927 }
0x18f1   :  { %1941 = vst.msk [vmem:[#allocation3 + $0x8] sm:$0xff] %vm1914_vm2, %v1928_v33 }
0x18f2   :  { %2985 = vst.msk [vmem:[#allocation3 + $0x8] sm:$0xff] %vm390_vm4, %v2975_v57 }
0x18f8   :  { %v3373_v58 = vpop.permute.xlu1 %3372 }
0x18f9   :  { %3386 = vst.msk [vmem:[#allocation3 + $0x8] sm:$0xff] %vm1110_vm14, %v3373_v58 }
0x1900   :  { %v3774_v45 = vpop.permute.xlu1 %3773 }
0x1901   :  { %3787 = vst.msk [vmem:[#allocation3 + $0x8] sm:$0xff] %vm1512_vm15, %v3774_v45 }
0x1903   :  { %v4744_v43 = vpop.xlane.xlu2 %4743 }
0x1904   :  { %v4745_v60 = vmul.f32 %v4744_v43, %v5802_v6 }
0x1906   :  { %v7839_v20 = vsub.f32 %v7752_v34, %v4745_v60  ;;  %v8064_v34 = vld [vmem:[#allocation7_spill] sm:$0xff] }
0x1907   :  { %v1494_v0 = vadd.f32 %v8064_v34, %v6253_v3 }
0x1908   :  { %v1126_v53 = vpop.permute.xlu1 %1125  ;;  %v4747_v37 = vmul.f32 %v7839_v20, %v7839_v20 }
0x1909   :  { %1138 = vst.msk [vmem:[#allocation3 + $0x10] sm:$0xff] %vm1110_vm14, %v1126_v53 }
0x190a   :  { %v4748_v30 = vsel %vm189_vm1, %v4747_v37, 0.0 }
0x190b   :  { %4749 = vadd.xlane.f32.xlu0 %v4748_v30  ;;  %v4175_v51 = vpop.permute.xlu2 %4174 }
0x190c   :  { %4188 = vst.msk [vmem:[#allocation3 + $0x8] sm:$0xff] %vm1914_vm2, %v4175_v51 }
0x1910   :  { %v7846_v49 = vpop.permute.xlu1 %1929 }
0x1913   :  { %v4251_v25 = vld [vmem:[#allocation3 + $0x8] sm:$0xff] }
0x1914   :  { %5074 = vmatmul.msk.f32.gmra.mxu2 %vm189_vm1, %v4251_v25 }
0x1918   :  { %v7849_v27 = vpop.permute.xlu1 %3374 }
0x191f   :  { %1527 = vrot.lane.b32.xlu0 %v1494_v0, %s8058_s6 }
0x1920   :  { %v1128_v10 = vpop.permute.xlu1 %1127 }
0x1921   :  { %1139 = vst.msk [vmem:[#allocation3 + $0x18] sm:$0xff] %vm1110_vm14, %v1128_v10 }
0x1927   :  { %3775 = vrot.lane.b32.xlu0 %v3743_v1, %s8058_s6 }
0x1928   :  { %v7858_v14 = vpop.permute.xlu1 %3376 }
0x192f   :  { %1529 = vrot.lane.b32.xlu0 %v1495_v18, %s8058_s6 }
0x1930   :  { %v1130_v44 = vpop.permute.xlu1 %1129 }
0x1931   :  { %1140 = vst.msk [vmem:[#allocation3 + $0x20] sm:$0xff] %vm1110_vm14, %v1130_v44 }
0x1937   :  { %3777 = vrot.lane.b32.xlu0 %v3744_v22, %s8058_s6 }
0x193f   :  { %1531 = vrot.lane.b32.xlu0 %v1496_v39, %s8058_s6 }
0x1947   :  { %3779 = vrot.lane.b32.xlu0 %v3745_v13, %s8058_s6 }
0x194a   :  { %v4475_v29 = vpop.f32.mrf.mxu1 }
0x194b   :  { %v7874_v4 = vadd.f32 %v7618_v28, %v4475_v29 }
0x194d   :  { %v7877_v8 = vmul.f32 0.70710677, %v7874_v4 }
0x194f   :  { %v4498_v32 = vand.u32 2147483647, %v7877_v8 }
0x1951   :  { %v4503_v42 = vmul.f32 0.3275911, %v4498_v32  ;;  %v4633_v12 = vsub.f32 0.0, %v4498_v32 }
0x1952   :  { %v4478_v55 = vpop.f32.mrf.mxu1 }
0x1953   :  { %v4508_v11 = vadd.f32 1.0, %v4503_v42  ;;  %v7881_v3 = vadd.f32 %v7618_v28, %v4478_v55  ;;  %v4638_v45 = vmul.f32 %v4633_v12, %v4498_v32 }
0x1955   :  { %5513 = vrcp.f32 %v4508_v11  ;;  %v7884_v62 = vmul.f32 0.70710677, %v7881_v3  ;;  %v4538_v19 = vand.u32 2147483648, %v4508_v11  ;;  %v4536_v9 = vand.u32 2147483647, %v4508_v11 }
0x1956   :  { %vm4532_vm6 = vweird.f32 %v4508_v11  ;;  %v4644_v15 = vmul.f32 1.442695, %v4638_v45 }
0x1957   :  { %v4499_v2 = vand.u32 2147483647, %v7884_v62  ;;  %v4539_v56 = vor.u32 1.1754944e-38, %v4538_v19  ;;  %vm4537_vm8 = vcmp.eq.f32.partialorder %v4536_v9, 8.507059e+37 }
0x1959   :  { %v4504_v38 = vmul.f32 0.3275911, %v4499_v2  ;;  %v4634_v25 = vsub.f32 0.0, %v4499_v2 }
0x195a   :  { %v4481_v21 = vpop.f32.mrf.mxu1 }
0x195b   :  { %v5514_v17 = vpop.eup %5513  ;;  %v7888_v5 = vadd.f32 %v7618_v28, %v4481_v21  ;;  %v4509_v31 = vadd.f32 1.0, %v4504_v38  ;;  %v4639_v13 = vmul.f32 %v4634_v25, %v4499_v2 }
0x195c   :  { %v4528_v63 = vmul.f32 %v5514_v17, %v4508_v11  ;;  %vm4533_vm3 = vweird.f32 %v5514_v17 }
0x195d   :  { %v7891_v47 = vmul.f32 0.70710677, %v7888_v5  ;;  %5515 = vrcp.f32 %v4509_v31  ;;  %vm4534_vm7 = vmor %vm4532_vm6, %vm4533_vm3  ;;  %v4553_v43 = vand.u32 2147483648, %v4509_v31  ;;  %v4551_v53 = vand.u32 2147483647, %v4509_v31 }
0x195e   :  { %v4529_v61 = vsub.f32 1.0, %v4528_v63  ;;  %vm4547_vm10 = vweird.f32 %v4509_v31 }
0x195f   :  { %v7894_v50 = vand.u32 2147483647, %v7891_v47  ;;  %v4554_v10 = vor.u32 1.1754944e-38, %v4553_v43  ;;  %vm4552_vm12 = vcmp.eq.f32.partialorder %v4551_v53, 8.507059e+37 }
0x1960   :  { %v4530_v52 = vmul.f32 %v5514_v17, %v4529_v61  ;;  %v4646_v61 = vmul.f32 1.442695, %v4639_v13 }
0x1961   :  { %v4505_v40 = vmul.f32 0.3275911, %v7894_v50 }
0x1962   :  { %v4531_v46 = vadd.f32 %v5514_v17, %v4530_v52  ;;  %v4484_v7 = vpop.f32.mrf.mxu1 }
0x1963   :  { %v4510_v26 = vadd.f32 1.0, %v4505_v40  ;;  %v7898_v36 = vadd.f32 %v7618_v28, %v4484_v7  ;;  %v5516_v35 = vpop.eup %5515  ;;  %v4635_v40 = vsub.f32 0.0, %v7894_v50 }
0x1964   :  { %v4535_v16 = vsel %vm4534_vm7, %v5514_v17, %v4531_v46  ;;  %v4543_v23 = vmul.f32 %v5516_v35, %v4509_v31  ;;  %vm4548_vm9 = vweird.f32 %v5516_v35 }
0x1965   :  { %v4540_v41 = vsel %vm4537_vm8, %v4539_v56, %v4535_v16  ;;  %5517 = vrcp.f32 %v4510_v26  ;;  %v7901_v33 = vmul.f32 0.70710677, %v7898_v36  ;;  %vm4549_vm11 = vmor %vm4547_vm10, %vm4548_vm9  ;;  %v4568_v29 = vand.u32 2147483648, %v4510_v26 }
0x1966   :  { %v4588_v59 = vmul.f32 1.0614054, %v4540_v41  ;;  %v4544_v57 = vsub.f32 1.0, %v4543_v23  ;;  %v4566_v55 = vand.u32 2147483647, %v4510_v26  ;;  %vm4562_vm13 = vweird.f32 %v4510_v26 }
0x1967   :  { %v7904_v28 = vand.u32 2147483647, %v7901_v33  ;;  %v4569_v63 = vor.u32 1.1754944e-38, %v4568_v29  ;;  %vm4663_vm9 = vcmp.ge.f32.partialorder %v7877_v8, 0.0 }
0x1968   :  { %v4593_v58 = vadd.f32 -1.4531521, %v4588_v59  ;;  %v4545_v60 = vmul.f32 %v5516_v35, %v4544_v57  ;;  %vm4567_vm6 = vcmp.eq.f32.partialorder %v4566_v55, 8.507059e+37 }
0x1969   :  { %v4506_v34 = vmul.f32 0.3275911, %v7904_v28 }
0x196a   :  { %v4598_v37 = vmul.f32 %v4593_v58, %v4540_v41  ;;  %v4546_v51 = vadd.f32 %v5516_v35, %v4545_v60  ;;  %v4640_v58 = vmul.f32 %v4635_v40, %v7894_v50 }
0x196b   :  { %v5518_v30 = vpop.eup %5517  ;;  %v7907_v44 = vadd.f32 1.0, %v4506_v34 }
0x196c   :  { %v4603_v0 = vadd.f32 1.4214138, %v4598_v37  ;;  %v4558_v1 = vmul.f32 %v5518_v30, %v4510_v26  ;;  %v4550_v18 = vsel %vm4549_vm11, %v5516_v35, %v4546_v51  ;;  %vm4563_vm5 = vweird.f32 %v5518_v30  ;;  %v4771_v26 = vld [vmem:[%s8027_s14 + $0x18] sm:$0xff] }
0x196d   :  { %v7909_v24 = vsel %vm4552_vm12, %v4554_v10, %v4550_v18  ;;  %5519 = vrcp.f32 %v7907_v44  ;;  %vm4564_vm3 = vmor %vm4562_vm13, %vm4563_vm5  ;;  %4794 = vmatpush.msra.mxu0 %v4771_v26  ;;  %v4581_v45 = vand.u32 2147483647, %v7907_v44  ;;  %v4583_v43 = vand.u32 2147483648, %v7907_v44  ;;  %v4768_v10 = vld [vmem:[%s8027_s14] sm:$0xff] }
0x196e   :  { %v4608_v22 = vmul.f32 %v4603_v0, %v4540_v41  ;;  %v4559_v39 = vsub.f32 1.0, %v4558_v1  ;;  %v4589_v54 = vmul.f32 1.0614054, %v7909_v24  ;;  %5521 = vpow2.f32 %v4644_v15 }
0x196f   :  { %5523 = vpow2.f32 %v4646_v61  ;;  %v4488_v51 = vmul.f32 0.5, %v7874_v4  ;;  %vm4577_vm8 = vweird.f32 %v7907_v44  ;;  %v4648_v15 = vmul.f32 1.442695, %v4640_v58 }
0x1970   :  { %v4613_v32 = vadd.f32 -0.28449672, %v4608_v22  ;;  %v4560_v42 = vmul.f32 %v5518_v30, %v4559_v39  ;;  %v4594_v11 = vadd.f32 -1.4531521, %v4589_v54  ;;  %v4584_v18 = vor.u32 1.1754944e-38, %v4583_v43 }
0x1971   :  { %vm4582_vm11 = vcmp.eq.f32.partialorder %v4581_v45, 8.507059e+37  ;;  %5525 = vpow2.f32 %v4648_v15  ;;  %vm4664_vm12 = vcmp.ge.f32.partialorder %v7884_v62, 0.0  ;;  %vm4665_vm5 = vcmp.ge.f32.partialorder %v7891_v47, 0.0 }
0x1972   :  { %v4618_v38 = vmul.f32 %v4613_v32, %v4540_v41  ;;  %v4561_v21 = vadd.f32 %v5518_v30, %v4560_v42  ;;  %v4599_v17 = vmul.f32 %v4594_v11, %v7909_v24  ;;  %v4636_v32 = vsub.f32 0.0, %v7904_v28 }
0x1973   :  { %v5520_v2 = vpop.eup %5519 }
0x1974   :  { %v4623_v31 = vadd.f32 0.2548296, %v4618_v38  ;;  %v4565_v19 = vsel %vm4564_vm3, %v5518_v30, %v4561_v21  ;;  %v4604_v52 = vadd.f32 1.4214138, %v4599_v17  ;;  %v4573_v56 = vmul.f32 %v5520_v2, %v7907_v44  ;;  %v5522_v35 = vpop.eup %5521  ;;  %v4769_v30 = vld [vmem:[%s8027_s14 + $0x8] sm:$0xff] }
0x1975   :  { %v7914_v9 = vsel %vm4567_vm6, %v4569_v63, %v4565_v19  ;;  %vm4578_vm7 = vweird.f32 %v5520_v2  ;;  %v5524_v4 = vpop.eup %5523  ;;  %v4641_v19 = vmul.f32 %v4636_v32, %v7904_v28 }
0x1976   :  { %v4628_v46 = vmul.f32 %v4623_v31, %v4540_v41  ;;  %v4590_v7 = vmul.f32 1.0614054, %v7914_v9  ;;  %v4609_v16 = vmul.f32 %v4604_v52, %v7909_v24  ;;  %v4574_v59 = vsub.f32 1.0, %v4573_v56  ;;  %v4770_v41 = vld [vmem:[%s8027_s14 + $0x10] sm:$0xff]  ;;  %vm4579_vm10 = vmor %vm4577_vm8, %vm4578_vm7 }
0x1977   :  { %4795 = vmatpush.msra.mxu0 %v4770_v41  ;;  %v5526_v28 = vpop.eup %5525  ;;  %v4650_v26 = vmul.f32 1.442695, %v4641_v19  ;;  %vm4666_vm7 = vcmp.ge.f32.partialorder %v7901_v33, 0.0  ;;  %v8069_v33 = vld [vmem:[#allocation13_spill] sm:$0xff] }
0x1978   :  { %v4653_v12 = vmul.f32 %v5522_v35, %v4628_v46  ;;  %v4595_v23 = vadd.f32 -1.4531521, %v4590_v7  ;;  %v4614_v57 = vadd.f32 -0.28449672, %v4609_v16  ;;  %v4575_v37 = vmul.f32 %v5520_v2, %v4574_v59  ;;  %v4808_v46 = vld [vmem:[%s8028_s15 + $0x18] sm:$0xff]  ;;  %v4807_v7 = vld [vmem:[%s8028_s15 + $0x10] sm:$0xff] }
0x1979   :  { %4796 = vmatpush.msra.mxu0 %v4769_v30  ;;  %v4489_v35 = vmul.f32 0.5, %v7881_v3  ;;  %v4805_v3 = vld [vmem:[%s8028_s15] sm:$0xff]  ;;  %v4490_v30 = vmul.f32 0.5, %v7888_v5 }
0x197a   :  { %v4658_v60 = vsub.f32 1.0, %v4653_v12  ;;  %v4600_v53 = vmul.f32 %v4595_v23, %v7914_v9  ;;  %v4619_v25 = vmul.f32 %v4614_v57, %v7909_v24  ;;  %v4576_v0 = vadd.f32 %v5520_v2, %v4575_v37 }
0x197b   :  { %4797 = vmatpush.msra.mxu0 %v4768_v10 }
0x197c   :  { %v4668_v50 = vsub.f32 0.0, %v4658_v60  ;;  %v4605_v34 = vadd.f32 1.4214138, %v4600_v53  ;;  %v4624_v1 = vadd.f32 0.2548296, %v4619_v25  ;;  %v4580_v54 = vsel %vm4579_vm10, %v5520_v2, %v4576_v0 }
0x197d   :  { %v4585_v29 = vsel %vm4582_vm11, %v4584_v18, %v4580_v54  ;;  %4824 = vmatpush.msrb.mxu0 %v4808_v46 }
0x197e   :  { %v4673_v22 = vsel %vm4663_vm9, %v4658_v60, %v4668_v50  ;;  %v4610_v39 = vmul.f32 %v4605_v34, %v7914_v9  ;;  %v4629_v44 = vmul.f32 %v4624_v1, %v7909_v24  ;;  %v4750_v42 = vpop.xlane.xlu0 %4749  ;;  %v4591_v8 = vmul.f32 1.0614054, %v4585_v29  ;;  %v4292_v34 = vpop.f32.mrf.mxu2  ;;  %v4741_v1 = vld [vmem:[%s8026_s13] sm:$0x3] }
0x197f   :  { %v4678_v13 = vadd.f32 1.0, %v4673_v22  ;;  %v4751_v11 = vmul.f32 %v4750_v42, %v5802_v6  ;;  %4825 = vmatpush.msrb.mxu0 %v4807_v7  ;;  %v4766_v32 = vperm.slane %v4741_v1, 1 }
0x1980   :  { %v4615_v55 = vadd.f32 -0.28449672, %v4610_v39  ;;  %v4654_v21 = vmul.f32 %v5524_v4, %v4629_v44  ;;  %v4596_v63 = vadd.f32 -1.4531521, %v4591_v8  ;;  %v8068_v4 = vld [vmem:[#allocation12_spill] sm:$0xff]  ;;  %v4177_v39 = vpop.permute.xlu2 %4176 }
0x1981   :  { %v4683_v38 = vmul.f32 %v4678_v13, %v4488_v51  ;;  %v4752_v31 = vadd.f32 1e-06, %v4751_v11  ;;  %v2976_v22 = vadd.f32 %v7719_v48, %v8068_v4  ;;  %v4764_v13 = vperm.slane %v4741_v1, 0 }
0x1982   :  { %v4620_v17 = vmul.f32 %v4615_v55, %v7914_v9  ;;  %v4659_v61 = vsub.f32 1.0, %v4654_v21  ;;  %v4601_v2 = vmul.f32 %v4596_v63, %v4585_v29 }
0x1983   :  { %5097 = vmatmul.msk.f32.gmra.mxu3 %vm108_vm0, %v4683_v38  ;;  %5527 = vrsqrt.f32 %v4752_v31  ;;  %vm4759_vm3 = vweird.f32 %v4752_v31  ;;  %v4491_v38 = vmul.f32 0.5, %v7898_v36 }
0x1984   :  { %v4625_v24 = vadd.f32 0.2548296, %v4620_v17  ;;  %v4669_v52 = vsub.f32 0.0, %v4659_v61  ;;  %v4606_v40 = vadd.f32 1.4214138, %v4601_v2  ;;  %5529 = vpow2.f32 %v4650_v26 }
0x1986   :  { %v4630_v6 = vmul.f32 %v4625_v24, %v7914_v9  ;;  %v4674_v56 = vsel %vm4664_vm12, %v4659_v61, %v4669_v52  ;;  %v4611_v62 = vmul.f32 %v4606_v40, %v4585_v29  ;;  %v4806_v9 = vld [vmem:[%s8028_s15 + $0x8] sm:$0xff]  ;;  %v8070_v61 = vld [vmem:[#allocation16_spill] sm:$0xff] }
0x1987   :  { %v4679_v16 = vadd.f32 1.0, %v4674_v56  ;;  %4826 = vmatpush.msrb.mxu0 %v4806_v9 }
0x1988   :  { %v4655_v12 = vmul.f32 %v5526_v28, %v4630_v6  ;;  %v4616_v57 = vadd.f32 -0.28449672, %v4611_v62  ;;  %v8071_v6 = vld [vmem:[#allocation14_spill] sm:$0xff] }
0x1989   :  { %v5528_v23 = vpop.eup %5527  ;;  %v4684_v59 = vmul.f32 %v4679_v16, %v4489_v35  ;;  %4827 = vmatpush.msrb.mxu0 %v4805_v3  ;;  %v2978_v40 = vadd.f32 %v7719_v48, %v8071_v6  ;;  %v5286_v35 = vld [vmem:[%s8029_s16] ss:$0 sm:$0xff]  ;;  %s5566_s16 = smov 20  }
0x198a   :  { %v4660_v41 = vsub.f32 1.0, %v4655_v12  ;;  %v4754_v58 = vmul.f32 %v5528_v23, %v4752_v31  ;;  %v4621_v43 = vmul.f32 %v4616_v57, %v4585_v29  ;;  %v5530_v0 = vpop.eup %5529  ;;  %vm4760_vm13 = vweird.f32 %v5528_v23 }
0x198b   :  { %5098 = vmatmul.msk.f32.gmra.mxu3 %vm108_vm0, %v4684_v59  ;;  %vm4761_vm6 = vmor %vm4759_vm3, %vm4760_vm13  ;;  %v2977_v31 = vadd.f32 %v7719_v48, %v8069_v33 }
0x198c   :  { %v4670_v45 = vsub.f32 0.0, %v4660_v41  ;;  %v4755_v60 = vmul.f32 %v5528_v23, %v4754_v58  ;;  %v4626_v37 = vadd.f32 0.2548296, %v4621_v43 }
0x198e   :  { %v4675_v53 = vsel %vm4665_vm5, %v4660_v41, %v4670_v45  ;;  %v4756_v25 = vmul.f32 0.5, %v4755_v60  ;;  %v4631_v50 = vmul.f32 %v4626_v37, %v4585_v29 }
0x198f   :  { %v4680_v51 = vadd.f32 1.0, %v4675_v53 }
0x1990   :  { %v4757_v15 = vsub.f32 1.5, %v4756_v25  ;;  %v4656_v18 = vmul.f32 %v5530_v0, %v4631_v50 }
0x1991   :  { %v4685_v10 = vmul.f32 %v4680_v51, %v4490_v30  ;;  %v1528_v47 = vpop.permute.xlu0 %1527 }
0x1992   :  { %v4758_v54 = vmul.f32 %v5528_v23, %v4757_v15  ;;  %1540 = vst.msk [vmem:[#allocation3 + $0x10] sm:$0xff] %vm1512_vm15, %v1528_v47  ;;  %v4661_v5 = vsub.f32 1.0, %v4656_v18 }
0x1993   :  { %1942 = vst.msk [vmem:[#allocation3 + $0x10] sm:$0xff] %vm1914_vm2, %v7846_v49  ;;  %5099 = vmatmul.msk.f32.gmra.mxu3 %vm108_vm0, %v4685_v10 }
0x1994   :  { %v4762_v44 = vsel %vm4761_vm6, %v5528_v23, %v4758_v54  ;;  %2986 = vst.msk [vmem:[#allocation3 + $0x10] sm:$0xff] %vm390_vm4, %v2976_v22  ;;  %v4671_v29 = vsub.f32 0.0, %v4661_v5 }
0x1995   :  { %v4763_v42 = vmul.f32 %v4762_v44, %v7839_v20  ;;  %3387 = vst.msk [vmem:[#allocation3 + $0x10] sm:$0xff] %vm1110_vm14, %v7849_v27  ;;  %v1932_v20 = vpop.permute.xlu2 %1931 }
0x1996   :  { %v4676_v55 = vsel %vm4666_vm7, %v4661_v5, %v4671_v29 }
0x1997   :  { %v4765_v8 = vmul.f32 %v4764_v13, %v4763_v42  ;;  %v4295_v11 = vpop.f32.mrf.mxu2  ;;  %v4681_v49 = vadd.f32 1.0, %v4676_v55 }
0x1999   :  { %v4767_v21 = vadd.f32 %v4766_v32, %v4765_v8  ;;  %v3776_v17 = vpop.permute.xlu0 %3775  ;;  %v4686_v63 = vmul.f32 %v4681_v49, %v4491_v38 }
0x199a   :  { %3788 = vst.msk [vmem:[#allocation3 + $0x10] sm:$0xff] %vm1512_vm15, %v3776_v17 }
0x199b   :  { %4189 = vst.msk [vmem:[#allocation3 + $0x10] sm:$0xff] %vm1914_vm2, %v4177_v39  ;;  %5101 = vmatmul.msk.f32.vlgmr.msra.gmra.mxu0 %vm189_vm1, %v4767_v21  ;;  %5100 = vmatmul.msk.f32.gmra.mxu3 %vm108_vm0, %v4686_v63 }
0x199d   :  { %v4179_v19 = vpop.permute.xlu2 %4178 }
0x19a1   :  { %v1530_v27 = vpop.permute.xlu0 %1529 }
0x19a2   :  { %1541 = vst.msk [vmem:[#allocation3 + $0x18] sm:$0xff] %vm1512_vm15, %v1530_v27  ;;  %v4252_v36 = vld [vmem:[#allocation3 + $0x10] sm:$0xff] }
0x19a3   :  { %1943 = vst.msk [vmem:[#allocation3 + $0x18] sm:$0xff] %vm1914_vm2, %v1932_v20  ;;  %5075 = vmatmul.msk.f32.gmra.mxu2 %vm189_vm1, %v4252_v36  ;;  %5102 = vmatmul.msk.f32.gmra.mxu0 %vm189_vm1, %v8070_v61 }
0x19a4   :  { %2987 = vst.msk [vmem:[#allocation3 + $0x18] sm:$0xff] %vm390_vm4, %v2977_v31 }
0x19a5   :  { %3388 = vst.msk [vmem:[#allocation3 + $0x18] sm:$0xff] %vm1110_vm14, %v7858_v14  ;;  %v1934_v2 = vpop.permute.xlu2 %1933  ;;  %v3379_v14 = vpop.permute.xlu1 %3378 }
0x19a9   :  { %v3778_v24 = vpop.permute.xlu0 %3777 }
0x19aa   :  { %3789 = vst.msk [vmem:[#allocation3 + $0x18] sm:$0xff] %vm1512_vm15, %v3778_v24 }
0x19ab   :  { %4190 = vst.msk [vmem:[#allocation3 + $0x18] sm:$0xff] %vm1914_vm2, %v4179_v19  ;;  %5103 = vmatmul.msk.f32.vlgmr.msrb.gmra.mxu0 %vm189_vm1, %v4292_v34 }
0x19ad   :  { %v4181_v28 = vpop.permute.xlu2 %4180 }
0x19b1   :  { %v1532_v52 = vpop.permute.xlu0 %1531 }
0x19b2   :  { %1542 = vst.msk [vmem:[#allocation3 + $0x20] sm:$0xff] %vm1512_vm15, %v1532_v52  ;;  %v4253_v46 = vld [vmem:[#allocation3 + $0x18] sm:$0xff] }
0x19b3   :  { %1944 = vst.msk [vmem:[#allocation3 + $0x20] sm:$0xff] %vm1914_vm2, %v1934_v2  ;;  %5076 = vmatmul.msk.f32.gmra.mxu2 %vm189_vm1, %v4253_v46 }
0x19b4   :  { %2988 = vst.msk [vmem:[#allocation3 + $0x20] sm:$0xff] %vm390_vm4, %v2978_v40  ;;  %vm4852_vm4 = vcmask 80896  }
0x19b5   :  { %3389 = vst.msk [vmem:[#allocation3 + $0x20] sm:$0xff] %vm1110_vm14, %v3379_v14  ;;  %vm4854_vm14 = vcmask 162816  }
0x19b9   :  { %v3780_v7 = vpop.permute.xlu0 %3779 }
0x19ba   :  { %3790 = vst.msk [vmem:[#allocation3 + $0x20] sm:$0xff] %vm1512_vm15, %v3780_v7  ;;  %vm4856_vm15 = vcmask 244736  }
0x19bb   :  { %4191 = vst.msk [vmem:[#allocation3 + $0x20] sm:$0xff] %vm1914_vm2, %v4181_v28 }
0x19c2   :  { %v4254_v56 = vld [vmem:[#allocation3 + $0x20] sm:$0xff] }
0x19c3   :  { %5077 = vmatmul.msk.f32.gmra.mxu2 %vm189_vm1, %v4254_v56 }
0x1a06   :  { %v4732_v48 = vpop.f32.mrf.mxu3 }
0x1a0e   :  { %v4734_v26 = vpop.f32.mrf.mxu3 }
0x1a16   :  { %v4736_v16 = vpop.f32.mrf.mxu3 }
0x1a18   :  { %v4799_v12 = vpop.f32.mrf.mxu0 }
0x1a19   :  { %v4800_v62 = vadd.f32 %v5286_v35, %v4799_v12 }
0x1a1e   :  { %v4738_v9 = vpop.f32.mrf.mxu3 }
0x1a20   :  { %v4802_v23 = vpop.f32.mrf.mxu0 }
0x1a21   :  { %v4803_v59 = vadd.f32 %v5286_v35, %v4802_v23 }
0x1a23   :  { %4845 = vrot.lane.b32.xlu1 %v4803_v59, %s5565_s12 }
0x1a26   :  { %v4297_v41 = vpop.f32.mrf.mxu2 }
0x1a28   :  { %v4829_v57 = vpop.f32.mrf.mxu0 }
0x1a29   :  { %5531 = vrsqrt.f32 %v4829_v57  ;;  %vm4839_vm0 = vcmp.eq.f32.partialorder %v4829_v57, inf  ;;  %v4842_v51 = vand.u32 2147483648, %v4829_v57  ;;  %vm4841_vm1 = vcmp.eq.f32.partialorder %v4829_v57, 0.0 }
0x1a2f   :  { %v5532_v58 = vpop.eup %5531 }
0x1a30   :  { %v4833_v45 = vmul.f32 %v5532_v58, %v4829_v57 }
0x1a32   :  { %v4834_v43 = vmul.f32 %v5532_v58, %v4833_v45 }
0x1a34   :  { %v4835_v3 = vmul.f32 0.5, %v4834_v43 }
0x1a36   :  { %v4299_v60 = vpop.f32.mrf.mxu2  ;;  %v4836_v53 = vsub.f32 1.5, %v4835_v3 }
0x1a38   :  { %v4837_v37 = vmul.f32 %v5532_v58, %v4836_v53 }
0x1a3a   :  { %v4838_v30 = vmul.f32 %v4837_v37, %v4829_v57 }
0x1a3c   :  { %v4840_v25 = vsel %vm4839_vm0, %v4829_v57, %v4838_v30 }
0x1a3d   :  { %v4843_v50 = vsel %vm4841_vm1, %v4842_v51, %v4840_v25 }
0x1a3e   :  { %4849 = vrot.lane.b32.xlu0 %v4843_v50, %s5566_s16 }
0x1a46   :  { %v4301_v34 = vpop.f32.mrf.mxu2 }
0x1a95   :  { %v4846_v0 = vpop.permute.xlu1 %4845 }
0x1a96   :  { %v4853_v10 = vsel %vm4852_vm4, %v4800_v62, %v4846_v0 }
0x1ab0   :  { %v4850_v1 = vpop.permute.xlu0 %4849 }
0x1ab1   :  { %v4855_v15 = vsel %vm4854_vm14, %v4853_v10, %v4850_v1 }
0x1ab2   :  { %4857 = vst.msk [vmem:[%s8030_s17] sm:$0xff] %vm4856_vm15, %v4855_v15 }
0x1ab3   :  { %4862 = vsyncpa [#allocation5], 1 }

</bundles_post_ra>
